<compile_context>
chip_gen: v5e
topology: v5e:2x2
jax: 0.10.0
libtpu: 0.0.40
codegen_flags: <defaults>
</compile_context>

<pallas_src>
import jax
import jax.numpy as jnp
import numpy as np
from jax.experimental import pallas as pl
from jax.experimental.pallas import tpu as pltpu

# Network hyper-parameters (fixed by the module definition).
L = 128                                   # sequence length (lane-friendly)
K1, K2, K3, K4 = 25, 15, 5, 3             # kernel sizes
P1, P2, P3, P4 = 12, 7, 2, 1              # "same" paddings
C0, C1, C2, C3, C4 = 2, 12, 6, 3, 1       # channel counts


# ----------------------------------------------------------------------------
# Host-side preprocessing: Conv1d ("same") -> banded Toeplitz matmul weights.
# ----------------------------------------------------------------------------
def conv_to_toeplitz(w, length):
    """w: (C_out, C_in, K) -> T: (C_in*length, C_out*length) in bf16 with
    T[i*length + m, o*length + l] = w[o, i, m - l + P]  (zero outside band),
    so that  y[b, o, l] = sum_{i,m} x[b, i, m] * T[i*L+m, o*L+l]  equals a
    'same'-padded Conv1d."""
    w = np.asarray(w, np.float32)
    c_out, c_in, ksz = w.shape
    pad = (ksz - 1) // 2
    t4 = np.zeros((c_in, length, c_out, length), np.float32)
    l = np.arange(length)
    for k in range(ksz):
        m = l + k - pad
        valid = (m >= 0) & (m < length)
        # advanced indexing on axes 1 and 3 -> result shape (n_valid, c_in, c_out)
        t4[:, m[valid], :, l[valid]] = w[:, :, k].T
    return jnp.asarray(t4.reshape(c_in * length, c_out * length),
                       dtype=jnp.bfloat16)


def prepare_kernel_params(conv_params):
    """PyTorch-shaped (w, b) pairs -> (bf16 Toeplitz mats, f32 bias rows)."""
    w1, b1, w2, b2, w3, b3, w4, b4 = conv_params
    ts = tuple(conv_to_toeplitz(w, L) for w in (w1, w2, w3, w4))
    bs = tuple(jnp.repeat(jnp.reshape(b, (-1,)).astype(jnp.float32), L)[None, :]
               for b in (b1, b2, b3, b4))
    return ts, bs


# ----------------------------------------------------------------------------
# Pallas kernel: 4 fused (bf16 matmul + f32 bias + ReLU) layers per batch tile.
# ----------------------------------------------------------------------------
def cnn_kernel(x_ref, t1, b1, t2, b2, t3, b3, t4, b4, o_ref):
    def layer(h_bf16, t_ref, b_ref):
        # bf16 x bf16 MXU matmul with f32 accumulation.
        y = jnp.dot(h_bf16, t_ref[...], preferred_element_type=jnp.float32)
        return jnp.maximum(y + b_ref[...], 0.0)          # bias row broadcasts over batch

    h = x_ref[...].astype(jnp.bfloat16)                   # (B_TILE, C0*L)
    h = layer(h, t1, b1).astype(jnp.bfloat16)             # (B_TILE, C1*L)
    h = layer(h, t2, b2).astype(jnp.bfloat16)             # (B_TILE, C2*L)
    h = layer(h, t3, b3).astype(jnp.bfloat16)             # (B_TILE, C3*L)
    o_ref[...] = layer(h, t4, b4)                         # (B_TILE, C4*L) f32


def cnn_forward(x, kernel_params, b_tile=1024):
    """x: (N, 2, L) float32 -> (N, 1, L) float32."""
    N, C, Lx = x.shape
    assert C == C0 and Lx == L
    ts, bs = kernel_params

    SUB = 16  # bf16 sublane packing -> keep the batch tile a multiple of 16

    def rup(v, m):
        return ((v + m - 1) // m) * m

    bt = max(SUB, min(b_tile, rup(N, SUB)))
    # Keep >= 2 grid steps when the batch permits, so the "parallel" axis can
    # be sharded across v7x's 2 TensorCores (no-op on v5e/v6e).
    if N >= 2 * SUB and pl.cdiv(N, bt) < 2:
        bt = rup(pl.cdiv(N, 2), SUB)
    n_pad = pl.cdiv(N, bt) * bt

    x_flat = x.reshape(N, C0 * L).astype(jnp.float32)     # (N, 256): i*L + l layout
    if n_pad != N:
        # One-time HBM copy; for very large N prefer a b_tile that divides N.
        x_flat = jnp.pad(x_flat, ((0, n_pad - N), (0, 0)))

    def full_spec(arr):
        shape = arr.shape
        return pl.BlockSpec(shape, lambda n, _nd=len(shape): (0,) * _nd)

    weight_args = []
    weight_specs = []
    for t, b in zip(ts, bs):
        weight_args += [t, b]
        weight_specs += [full_spec(t), full_spec(b)]

    out = pl.pallas_call(
        cnn_kernel,
        out_shape=jax.ShapeDtypeStruct((n_pad, C4 * L), jnp.float32),
        grid=(n_pad // bt,),
        in_specs=[pl.BlockSpec((bt, C0 * L), lambda n: (n, 0))] + weight_specs,
        out_specs=pl.BlockSpec((bt, C4 * L), lambda n: (n, 0)),
        compiler_params=pltpu.CompilerParams(
            dimension_semantics=("parallel",),
            vmem_limit_bytes=32 * 1024 * 1024),
    )(x_flat, *weight_args)

    return out[:N].reshape(N, C4, L)


# ----------------------------------------------------------------------------
# Parameter construction + pure-JAX reference (mirrors the PyTorch module).
# ----------------------------------------------------------------------------
def make_params(key):
    """Deterministic synthetic weights matching PyTorch Conv1d shapes (O, I, K)."""
    ks = jax.random.split(key, 8)

    def init(kw, kb, c_out, c_in, ksz):
        fan_in = c_in * ksz
        bound = 1.0 / np.sqrt(fan_in)
        w = jax.random.uniform(kw, (c_out, c_in, ksz), jnp.float32, -bound, bound)
        b = jax.random.uniform(kb, (c_out, 1), jnp.float32, -bound, bound)
        return w, b

    w1, b1 = init(ks[0], ks[1], C1, C0, K1)
    w2, b2 = init(ks[2], ks[3], C2, C1, K2)
    w3, b3 = init(ks[4], ks[5], C3, C2, K3)
    w4, b4 = init(ks[6], ks[7], C4, C3, K4)
    return (w1, b1, w2, b2, w3, b3, w4, b4)


def ref_forward(x, params):
    """Pure-JAX reference (lax.conv) mirroring the PyTorch forward (f32)."""
    w1, b1, w2, b2, w3, b3, w4, b4 = params

    def conv_relu(x, w, b, pad):
        y = jax.lax.conv_general_dilated(
            x, w, window_strides=(1,), padding=[(pad, pad)],
            dimension_numbers=('NCH', 'OIH', 'NCH'))
        return jnp.maximum(y + b[None, :, :], 0.0)

    x = conv_relu(x, w1, b1, P1)
    x = conv_relu(x, w2, b2, P2)
    x = conv_relu(x, w3, b3, P3)
    x = conv_relu(x, w4, b4, P4)
    return x


if __name__ == "__main__":
    key = jax.random.PRNGKey(0)
    k_x, k_p = jax.random.split(key)

    # Small test: N=48 with b_tile=16 exercises a multi-step parallel grid,
    # resident bf16 weights across steps, and the output-slice path
    # (no batch padding since 16 | 48).
    N = 48
    x = jax.random.normal(k_x, (N, C0, L), dtype=jnp.float32)
    conv_params = make_params(k_p)
    kernel_params = prepare_kernel_params(conv_params)

    out = jax.block_until_ready(cnn_forward(x, kernel_params, b_tile=16))

    # Reference with weights rounded to bf16 (the kernel stores bf16 weights);
    # remaining difference is bf16 activation rounding -> relaxed tolerance.
    w1, b1, w2, b2, w3, b3, w4, b4 = conv_params
    ref_params = (w1.astype(jnp.bfloat16).astype(jnp.float32), b1,
                  w2.astype(jnp.bfloat16).astype(jnp.float32), b2,
                  w3.astype(jnp.bfloat16).astype(jnp.float32), b3,
                  w4.astype(jnp.bfloat16).astype(jnp.float32), b4)
    ref = jax.block_until_ready(ref_forward(x, ref_params))

    np.testing.assert_allclose(np.asarray(out), np.asarray(ref),
                               rtol=3e-2, atol=3e-2)
    print("KERNEL_OK")
</pallas_src>

<mosaic_0001>
module attributes {stable_mosaic.version = 11 : i64} {
  func.func @cnn_kernel(%arg0: i32, %arg1: memref<16x256xf32, #tpu.memory_space<vmem>>, %arg2: memref<256x1536xbf16, #tpu.memory_space<vmem>>, %arg3: memref<1x1536xf32, #tpu.memory_space<vmem>>, %arg4: memref<1536x768xbf16, #tpu.memory_space<vmem>>, %arg5: memref<1x768xf32, #tpu.memory_space<vmem>>, %arg6: memref<768x384xbf16, #tpu.memory_space<vmem>>, %arg7: memref<1x384xf32, #tpu.memory_space<vmem>>, %arg8: memref<384x128xbf16, #tpu.memory_space<vmem>>, %arg9: memref<1x128xf32, #tpu.memory_space<vmem>>, %arg10: memref<16x128xf32, #tpu.memory_space<vmem>>) attributes {dimension_semantics = [#tpu.dimension_semantics<parallel>], iteration_bounds = array<i64: 3>, scalar_prefetch = 0 : i64, scratch_operands = 0 : i64, tpu.core_type = #tpu.core_type<tc>, window_params = [{transform_indices = @transform_0, window_bounds = array<i64: 16, 256>}, {pipeline_mode = #tpu.pipeline_mode<synchronous>, transform_indices = @transform_1, window_bounds = array<i64: 256, 1536>}, {pipeline_mode = #tpu.pipeline_mode<synchronous>, transform_indices = @transform_2, window_bounds = array<i64: 1, 1536>}, {pipeline_mode = #tpu.pipeline_mode<synchronous>, transform_indices = @transform_3, window_bounds = array<i64: 1536, 768>}, {pipeline_mode = #tpu.pipeline_mode<synchronous>, transform_indices = @transform_4, window_bounds = array<i64: 1, 768>}, {pipeline_mode = #tpu.pipeline_mode<synchronous>, transform_indices = @transform_5, window_bounds = array<i64: 768, 384>}, {pipeline_mode = #tpu.pipeline_mode<synchronous>, transform_indices = @transform_6, window_bounds = array<i64: 1, 384>}, {pipeline_mode = #tpu.pipeline_mode<synchronous>, transform_indices = @transform_7, window_bounds = array<i64: 384, 128>}, {pipeline_mode = #tpu.pipeline_mode<synchronous>, transform_indices = @transform_8, window_bounds = array<i64: 1, 128>}, {transform_indices = @transform_9, window_bounds = array<i64: 16, 128>}]} {
    %c0 = arith.constant 0 : index
    %c0_0 = arith.constant 0 : index
    %0 = vector.load %arg1[%c0, %c0_0] : memref<16x256xf32, #tpu.memory_space<vmem>>, vector<16x256xf32>
    %1 = arith.truncf %0 : vector<16x256xf32> to vector<16x256xbf16>
    %c0_1 = arith.constant 0 : index
    %c0_2 = arith.constant 0 : index
    %2 = vector.load %arg2[%c0_1, %c0_2] : memref<256x1536xbf16, #tpu.memory_space<vmem>>, vector<256x1536xbf16>
    %cst = arith.constant dense<0.000000e+00> : vector<16x1536xf32>
    %3 = tpu.matmul %1, %2, %cst {dimension_numbers = #tpu.dot_dimension_numbers<[1], [0], [0], [1], [0, 0, 1, 1], [], []>} : vector<16x256xbf16>, vector<256x1536xbf16>, vector<16x1536xf32> -> vector<16x1536xf32>
    %c0_3 = arith.constant 0 : index
    %c0_4 = arith.constant 0 : index
    %4 = vector.load %arg3[%c0_3, %c0_4] : memref<1x1536xf32, #tpu.memory_space<vmem>>, vector<1x1536xf32>
    %5 = vector.broadcast %4 : vector<1x1536xf32> to vector<16x1536xf32>
    %6 = arith.addf %3, %5 : vector<16x1536xf32>
    %cst_5 = arith.constant 0.000000e+00 : f32
    %7 = vector.broadcast %cst_5 : f32 to vector<16x1536xf32>
    %8 = arith.maximumf %6, %7 : vector<16x1536xf32>
    %9 = arith.truncf %8 : vector<16x1536xf32> to vector<16x1536xbf16>
    %c0_6 = arith.constant 0 : index
    %c0_7 = arith.constant 0 : index
    %10 = vector.load %arg4[%c0_6, %c0_7] : memref<1536x768xbf16, #tpu.memory_space<vmem>>, vector<1536x768xbf16>
    %cst_8 = arith.constant dense<0.000000e+00> : vector<16x768xf32>
    %11 = tpu.matmul %9, %10, %cst_8 {dimension_numbers = #tpu.dot_dimension_numbers<[1], [0], [0], [1], [0, 0, 1, 1], [], []>} : vector<16x1536xbf16>, vector<1536x768xbf16>, vector<16x768xf32> -> vector<16x768xf32>
    %c0_9 = arith.constant 0 : index
    %c0_10 = arith.constant 0 : index
    %12 = vector.load %arg5[%c0_9, %c0_10] : memref<1x768xf32, #tpu.memory_space<vmem>>, vector<1x768xf32>
    %13 = vector.broadcast %12 : vector<1x768xf32> to vector<16x768xf32>
    %14 = arith.addf %11, %13 : vector<16x768xf32>
    %cst_11 = arith.constant 0.000000e+00 : f32
    %15 = vector.broadcast %cst_11 : f32 to vector<16x768xf32>
    %16 = arith.maximumf %14, %15 : vector<16x768xf32>
    %17 = arith.truncf %16 : vector<16x768xf32> to vector<16x768xbf16>
    %c0_12 = arith.constant 0 : index
    %c0_13 = arith.constant 0 : index
    %18 = vector.load %arg6[%c0_12, %c0_13] : memref<768x384xbf16, #tpu.memory_space<vmem>>, vector<768x384xbf16>
    %cst_14 = arith.constant dense<0.000000e+00> : vector<16x384xf32>
    %19 = tpu.matmul %17, %18, %cst_14 {dimension_numbers = #tpu.dot_dimension_numbers<[1], [0], [0], [1], [0, 0, 1, 1], [], []>} : vector<16x768xbf16>, vector<768x384xbf16>, vector<16x384xf32> -> vector<16x384xf32>
    %c0_15 = arith.constant 0 : index
    %c0_16 = arith.constant 0 : index
    %20 = vector.load %arg7[%c0_15, %c0_16] : memref<1x384xf32, #tpu.memory_space<vmem>>, vector<1x384xf32>
    %21 = vector.broadcast %20 : vector<1x384xf32> to vector<16x384xf32>
    %22 = arith.addf %19, %21 : vector<16x384xf32>
    %cst_17 = arith.constant 0.000000e+00 : f32
    %23 = vector.broadcast %cst_17 : f32 to vector<16x384xf32>
    %24 = arith.maximumf %22, %23 : vector<16x384xf32>
    %25 = arith.truncf %24 : vector<16x384xf32> to vector<16x384xbf16>
    %c0_18 = arith.constant 0 : index
    %c0_19 = arith.constant 0 : index
    %26 = vector.load %arg8[%c0_18, %c0_19] : memref<384x128xbf16, #tpu.memory_space<vmem>>, vector<384x128xbf16>
    %cst_20 = arith.constant dense<0.000000e+00> : vector<16x128xf32>
    %27 = tpu.matmul %25, %26, %cst_20 {dimension_numbers = #tpu.dot_dimension_numbers<[1], [0], [0], [1], [0, 0, 1, 1], [], []>} : vector<16x384xbf16>, vector<384x128xbf16>, vector<16x128xf32> -> vector<16x128xf32>
    %c0_21 = arith.constant 0 : index
    %c0_22 = arith.constant 0 : index
    %28 = vector.load %arg9[%c0_21, %c0_22] : memref<1x128xf32, #tpu.memory_space<vmem>>, vector<1x128xf32>
    %29 = vector.broadcast %28 : vector<1x128xf32> to vector<16x128xf32>
    %30 = arith.addf %27, %29 : vector<16x128xf32>
    %cst_23 = arith.constant 0.000000e+00 : f32
    %31 = vector.broadcast %cst_23 : f32 to vector<16x128xf32>
    %32 = arith.maximumf %30, %31 : vector<16x128xf32>
    %c0_24 = arith.constant 0 : index
    %c0_25 = arith.constant 0 : index
    %33 = vector.load %arg10[%c0_24, %c0_25] : memref<16x128xf32, #tpu.memory_space<vmem>>, vector<16x128xf32>
    tpu.vector_store %arg10[%c0_24, %c0_25], %32 {strides = array<i32>} : memref<16x128xf32, #tpu.memory_space<vmem>>, vector<16x128xf32>,
    return
  }
  func.func @transform_0(%arg0: i32) -> (i32, i32) {
    %c0_i32 = arith.constant 0 : i32
    %c0_i32_0 = arith.constant 0 : i32
    return %arg0, %c0_i32 : i32, i32
  }
  func.func @transform_1(%arg0: i32) -> (i32, i32) {
    %c0_i32 = arith.constant 0 : i32
    %c0_i32_0 = arith.constant 0 : i32
    %c0_i32_1 = arith.constant 0 : i32
    return %c0_i32, %c0_i32_0 : i32, i32
  }
  func.func @transform_2(%arg0: i32) -> (i32, i32) {
    %c0_i32 = arith.constant 0 : i32
    %c0_i32_0 = arith.constant 0 : i32
    %c0_i32_1 = arith.constant 0 : i32
    return %c0_i32, %c0_i32_0 : i32, i32
  }
  func.func @transform_3(%arg0: i32) -> (i32, i32) {
    %c0_i32 = arith.constant 0 : i32
    %c0_i32_0 = arith.constant 0 : i32
    %c0_i32_1 = arith.constant 0 : i32
    return %c0_i32, %c0_i32_0 : i32, i32
  }
  func.func @transform_4(%arg0: i32) -> (i32, i32) {
    %c0_i32 = arith.constant 0 : i32
    %c0_i32_0 = arith.constant 0 : i32
    %c0_i32_1 = arith.constant 0 : i32
    return %c0_i32, %c0_i32_0 : i32, i32
  }
  func.func @transform_5(%arg0: i32) -> (i32, i32) {
    %c0_i32 = arith.constant 0 : i32
    %c0_i32_0 = arith.constant 0 : i32
    %c0_i32_1 = arith.constant 0 : i32
    return %c0_i32, %c0_i32_0 : i32, i32
  }
  func.func @transform_6(%arg0: i32) -> (i32, i32) {
    %c0_i32 = arith.constant 0 : i32
    %c0_i32_0 = arith.constant 0 : i32
    %c0_i32_1 = arith.constant 0 : i32
    return %c0_i32, %c0_i32_0 : i32, i32
  }
  func.func @transform_7(%arg0: i32) -> (i32, i32) {
    %c0_i32 = arith.constant 0 : i32
    %c0_i32_0 = arith.constant 0 : i32
    %c0_i32_1 = arith.constant 0 : i32
    return %c0_i32, %c0_i32_0 : i32, i32
  }
  func.func @transform_8(%arg0: i32) -> (i32, i32) {
    %c0_i32 = arith.constant 0 : i32
    %c0_i32_0 = arith.constant 0 : i32
    %c0_i32_1 = arith.constant 0 : i32
    return %c0_i32, %c0_i32_0 : i32, i32
  }
  func.func @transform_9(%arg0: i32) -> (i32, i32) {
    %c0_i32 = arith.constant 0 : i32
    %c0_i32_0 = arith.constant 0 : i32
    return %arg0, %c0_i32 : i32, i32
  }
}

</mosaic_0001>

<bundles_post_ra>
// kernel: tpu_custom_call.1
= control target key start
LH: loop header
LB: loop body
LE: loop exit
PB: predicated region body
PF: predicated region fallthrough
CT: control target
= control target key end

     0   :  { %s14150_s0 = inlined_call_operand.hbm [shape: f32[48,256], index: 0, kind: input, shape index: {}]   ;;  %s14151_s1 = inlined_call_operand.hbm [shape: bf16[256,1536], index: 1, kind: input, shape index: {}]   ;;  %s14152_s2 = inlined_call_operand.hbm [shape: f32[1,1536], index: 2, kind: input, shape index: {}]   ;;  %s14153_s3 = inlined_call_operand.hbm [shape: bf16[1536,768], index: 3, kind: input, shape index: {}]   ;;  %s14154_s4 = inlined_call_operand.hbm [shape: f32[1,768], index: 4, kind: input, shape index: {}]   ;;  %s14155_s5 = inlined_call_operand.hbm [shape: bf16[768,384], index: 5, kind: input, shape index: {}]   ;;  %s14156_s6 = inlined_call_operand.hbm [shape: f32[1,384], index: 6, kind: input, shape index: {}]   ;;  %s14157_s7 = inlined_call_operand.hbm [shape: bf16[384,128], index: 7, kind: input, shape index: {}]   ;;  %s14158_s8 = inlined_call_operand.hbm [shape: f32[1,128], index: 8, kind: input, shape index: {}]   ;;  %s14159_s9 = inlined_call_operand.hbm [shape: f32[48,128], index: 9, kind: output, shape index: {}]  }
   0x1   :  { %14164 = sst [smem:[#allocation40_spill]] %s14151_s1 }
   0x2   :  { %14165 = sst [smem:[#allocation41_spill]] %s14152_s2 }
   0x3   :  { %14166 = sst [smem:[#allocation42_spill]] %s14153_s3 }
   0x4   :  { %14167 = sst [smem:[#allocation43_spill]] %s14159_s9 }
   0x5   :  { %14 = vsyncpa [#allocation3], 0 }
   0x6   :  { %16 = vsyncpa [#allocation3 + $0x1], 0 }
   0x7   :  { %17 = vsyncpa [#allocation6], 0 }
   0x8   :  { %18 = vsyncpa [#allocation9], 0 }
   0x9   :  { %19 = vsyncpa [#allocation12], 0 }
   0xa   :  { %20 = vsyncpa [#allocation15], 0 }
   0xb   :  { %21 = vsyncpa [#allocation4], 0 }
   0xc   :  { %23 = vsyncpa [#allocation4 + $0x1], 0  ;;  %s13451_s30 = smov 0   ;;  %s13453_s10 = smov 0  }
   0xd   :  { %s13455_s11 = smov 0   ;;  %s13457_s12 = smov 0  }
   0xe LB: > { %s14168_s1 = sld [smem:[#allocation40_spill]]  ;;  %s13475_s16 = sadd.s32 4294967295, %s13379_s12   ;;  %s13379_s12 = sphi %s13457_s12, %s14217_s12   ;;  %s13375_s11 = sphi %s13455_s11, %s14216_s11   ;;  %s13371_s10 = sphi %s13453_s10, %s14215_s10   ;;  %s13367_s30 = sphi %s13451_s30, %s14214_s30  }
   0xf   : > { %p8171_p0 = scmp.ge.s32.totalorder %s13379_s12, 1  ;;  %p50_p1 = scmp.eq.s32.totalorder %s13475_s16, 0 }
  0x10   : > { %p254_p2 = scmp.lt.s32.totalorder %s13379_s12, 4  ;;  %s13381_s18 = smov [#allocation5]  }
  0x11   : > { %s267_s19 = sshll.u32 %s13381_s18, 4  ;;  %s14170_s3 = sld [smem:[#allocation42_spill]]  ;;  %s268_s19 = int_to_ptr.vmem [resolvable:$true] %s267_s19 }
  0x12   : > { %p13480_p3 = pnand %p8171_p0, %p254_p2  ;;  %s13382_s24 = smov [#allocation8]  }
  0x13   : > { %s293_s25 = sshll.u32 %s13382_s24, 4  ;;  %s13383_s26 = smov 768   ;;  %s294_s25 = int_to_ptr.vmem [resolvable:$true] %s293_s25 }
  0x14   : > { %s265_s15 = sshll.u32 %s14168_s1, 4  ;;  %p12920_p4 = pneg %p13480_p3  ;;  %s266_s15 = int_to_ptr.hbm [resolvable:$true] %s265_s15 }
  0x15   : > { %s13384_s27 = smov 48   ;;  %s13385_s28 = smov 384  }
  0x16   : > { %p13491_p5 = pnand %p12920_p4, %p50_p1  ;;  %s13386_s29 = smov 24  }
  0x17   : > { %s291_s22 = sshll.u32 %s14170_s3, 4  ;;  %s317_s18 = sshll.u32 %s14155_s5, 4  ;;  %s292_s22 = int_to_ptr.hbm [resolvable:$true] %s291_s22  ;;  %s318_s18 = int_to_ptr.hbm [resolvable:$true] %s317_s18 }
  0x18   : > { %12923 = dma.hbm_to_vmem [thread:$0]  (!%p13491_p5), %s266_s15, 24576, %s268_s19, [#allocation6], %s13383_s26, %s13383_s26, %s13384_s27  }
  0x19   : > { %12929 = dma.hbm_to_vmem [thread:$0]  (!%p13491_p5), %s292_s22, 73728, %s294_s25, [#allocation9], %s13385_s28, %s13385_s28, %s13386_s29  }
  0x1a   : > { %s13387_s20 = smov [#allocation11]   ;;  %s343_s3 = sshll.u32 %s14157_s7, 4  ;;  %s344_s3 = int_to_ptr.hbm [resolvable:$true] %s343_s3 }
  0x1b   : > { %s319_s21 = sshll.u32 %s13387_s20, 4  ;;  %s13388_s9 = smov 192   ;;  %s320_s21 = int_to_ptr.vmem [resolvable:$true] %s319_s21 }
  0x1c   : > { %s13389_s15 = smov 12   ;;  %s13390_s19 = smov [#allocation14]  }
  0x1d   : > { %12935 = dma.hbm_to_vmem [thread:$0]  (!%p13491_p5), %s318_s18, 18432, %s320_s21, [#allocation12], %s13388_s9, %s13388_s9, %s13389_s15  }
  0x1e   : > { %s345_s22 = sshll.u32 %s13390_s19, 4  ;;  %s13391_s25 = smov 64   ;;  %s346_s22 = int_to_ptr.vmem [resolvable:$true] %s345_s22 }
  0x1f   : > { %s13392_s26 = smov 4   ;;  %s14172_s2 = sld [smem:[#allocation41_spill]] }
  0x20   : > { %12941 = dma.hbm_to_vmem [thread:$0]  (!%p13491_p5), %s344_s3, 3072, %s346_s22, [#allocation15], %s13391_s25, %s13391_s25, %s13392_s26  }
  0x21   : > { %s13393_s1 = smov [#allocation7]   ;;  %s306_s18 = sshll.u32 %s14154_s4, 4  ;;  %s307_s18 = int_to_ptr.hbm [resolvable:$true] %s306_s18 }
  0x22   : > { %s282_s13 = sshll.u32 %s13393_s1, 4  ;;  %s13394_s20 = smov [#allocation10]   ;;  %s283_s13 = int_to_ptr.vmem [resolvable:$true] %s282_s13 }
  0x23   : > { %s308_s3 = sshll.u32 %s13394_s20, 4  ;;  %s332_s15 = sshll.u32 %s14156_s6, 4  ;;  %s309_s3 = int_to_ptr.vmem [resolvable:$true] %s308_s3  ;;  %s333_s15 = int_to_ptr.hbm [resolvable:$true] %s332_s15 }
  0x24   : > { %12932 = dma.hbm_to_vmem [thread:$0]  (!%p13491_p5), %s307_s18, 96, %s309_s3, [#allocation9]  }
  0x25   : > { %s280_s29 = sshll.u32 %s14172_s2, 4  ;;  %s358_s25 = sshll.u32 %s14158_s8, 4  ;;  %s281_s29 = int_to_ptr.hbm [resolvable:$true] %s280_s29  ;;  %s359_s25 = int_to_ptr.hbm [resolvable:$true] %s358_s25 }
  0x26   : > { %12926 = dma.hbm_to_vmem [thread:$0]  (!%p13491_p5), %s281_s29, 192, %s283_s13, [#allocation6]  }
  0x27   : > { %s13395_s26 = smov [#allocation13]   ;;  %s13396_s28 = smov [#allocation16]  }
  0x28   : > { %s334_s27 = sshll.u32 %s13395_s26, 4  ;;  %s360_s29 = sshll.u32 %s13396_s28, 4  ;;  %s335_s27 = int_to_ptr.vmem [resolvable:$true] %s334_s27  ;;  %s361_s29 = int_to_ptr.vmem [resolvable:$true] %s360_s29 }
  0x29   : > { %12938 = dma.hbm_to_vmem [thread:$0]  (!%p13491_p5), %s333_s15, 48, %s335_s27, [#allocation12]  }
  0x2a   : > { %12944 = dma.hbm_to_vmem [thread:$0]  (!%p13491_p5), %s359_s25, 16, %s361_s29, [#allocation15]  }
  0x2b   : > { %s8170_s1 = sadd.s32 4294967294, %s13379_s12   ;;  %s13531_s13 = sadd.s32 1, %s13379_s12  }
  0x2c   : > { %s33_s14 = ssub.s32 %s13379_s12, %s13531_s13  ;;  %s36_s9 = sadd.s32 1, %s13375_s11 }
  0x2d   : > { %p34_p6 = scmp.eq.s32.totalorder %s33_s14, 0  ;;  %p43_p7 = scmp.ne.s32.totalorder %s13375_s11, %s13371_s10 }
  0x2e   : > { %p44_p8 = scmp.eq.s32.totalorder %s13379_s12, 0  ;;  %p49_p9 = scmp.ne.s32.totalorder %s13371_s10, %s13367_s30 }
  0x2f   : > { %s13542_s18 = scalar_select %p34_p6, %s13375_s11, %s36_s9  }
  0x30   : > { %p13544_p10 = por %p44_p8, %p43_p7  ;;  %p13550_p11 = por %p50_p1, %p49_p9 }
  0x31   : > { %p241_p12 = scmp.eq.s32.totalorder %s13475_s16, 2  ;;  %p247_p13 = scmp.eq.s32.totalorder %s8170_s1, 2 }
  0x32   : > { %p12961_p0 = scmp.lt.s32.totalorder %s13379_s12, 3  ;;  %s371_s3 = sand.u32 1, %s13375_s11  }
  0x33   : > { %p13557_p2 = por %p241_p12, %p43_p7  ;;  %p13561_p4 = por %p247_p13, %p49_p9 }
  0x34   : > { %s8181_s15 = sshll.u32 %s371_s3, 5  ;;  %s11946_s19 = sshll.u32 %s13379_s12, 5 }
  0x35   : > { %s381_s26 = scalar_lea.hbm %s14150_s0, %s11946_s19  ;;  %s375_s27 = scalar_lea.vmem [#allocation2], %s8181_s15 }
  0x36   : > { %s384_s28 = sshll.u32 %s375_s27, 4  ;;  %s382_s29 = sshll.u32 %s381_s26, 4  ;;  %s385_s28 = int_to_ptr.vmem [resolvable:$true] %s384_s28  ;;  %s383_s29 = int_to_ptr.hbm [resolvable:$true] %s382_s29 }
  0x37   : > { %p13571_p5 = pnand %p12961_p0, %p13544_p10  ;;  %s372_s14 = scalar_lea.sflag [#allocation3], %s371_s3 }
  0x38   : > { %s13267_s9 = sshra.s32 %s383_s29, 4  ;;  %s13274_s22 = scalar_lea.hbm %s14150_s0, 96  ;;  %s13268_s9 = int_to_ptr.hbm [resolvable:$true] %s13267_s9 }
  0x39   : > { %s13269_s2 = scalar_lea.hbm %s13268_s9, 32  ;;  %p13271_p7 = pneg %p13571_p5 }
  0x3a   : > { %p13270_p6 = scmp.ne.s32.totalorder %s13268_s9, %s13269_s2  ;;  %p13275_p10 = scmp.lt.s32.totalorder %s13268_s9, %s14150_s0 }
  0x3b   : > { %p13276_p12 = scmp.lt.s32.totalorder %s13274_s22, %s13269_s2 }
  0x3c   : > { %p13272_p8 = pnand %p13271_p7, %p13270_p6 }
  0x3d   : > { %p13277_p13 = por %p13276_p12, %p13275_p10 }
  0x3e   : > { %p13273_p9 = pneg %p13272_p8 }
  0x40   : > { %p13278_p0 = pnand %p13277_p13, %p13273_p9 }
  0x42   : > { %13281 = shalt.err (!%p13278_p0)
}
  0x43   : > { %s13397_s3 = smov 256   ;;  %s13398_s26 = smov 16  }
  0x44   : > { %12948 = dma.hbm_to_vmem [thread:$0]  (!%p13571_p5), %s383_s29, 512, %s385_s28, %s372_s14, %s13397_s3, %s13397_s3, %s13398_s26  }
  0x45   : > { %396 = sbr.rel (%p13480_p3) target bundleno = 1387 (0x56b), region = 56 }
  0x4a   : > { %s13588_s27 = sand.u32 1, %s13371_s10  }
  0x4b   : > { %s8186_s15 = sshll.u32 %s13588_s27, 5  ;;  %s399_s9 = scalar_lea.sflag [#allocation3], %s13588_s27 }
  0x4c   : > { %s13592_s2 = scalar_lea.vmem [#allocation2], %s8186_s15 }
  0x4d   : > { %13342 = dma.done.wait (%p13550_p11), %s399_s9, 512  }
  0x4e   : > { %13344 = vsyncadd (%p13550_p11), %s399_s9, 4294966784 }
  0x4f   : > { %13346 = dma.done.wait (%p50_p1), [#allocation6], 24768  }
  0x50   : > { %13348 = vsyncadd (%p50_p1), [#allocation6], 4294942528 }
  0x51   : > { %13350 = dma.done.wait (%p50_p1), [#allocation9], 73824  }
  0x52   : > { %13352 = vsyncadd (%p50_p1), [#allocation9], 4294893472 }
  0x53   : > { %13354 = dma.done.wait (%p50_p1), [#allocation12], 18480  }
  0x54   : > { %13356 = vsyncadd (%p50_p1), [#allocation12], 4294948816 }
  0x55   : > { %13358 = dma.done.wait (%p50_p1), [#allocation15], 3088  }
  0x56   : > { %13360 = vsyncadd (%p50_p1), [#allocation15], 4294964208  ;;  %v8534_v0 = vld [vmem:[#allocation5 + $0x2a0] sm:$0xf]  ;;  %v12037_v1 = vld [vmem:[#allocation5 + $0x2cc] sm:$0xf0] }
  0x57   : > { %v8918_v2 = vld [vmem:[#allocation5 + $0x5a0] sm:$0xf]  ;;  %v8535_v3 = vor.u32 %v12037_v1, %v8534_v0  ;;  %v12133_v4 = vld [vmem:[#allocation5 + $0x5cc] sm:$0xf0]  ;;  %v12031_v5 = vld [vmem:[#allocation5 + $0x2a4] sm:$0xf] }
  0x58   : > { %v8536_v6 = vld [vmem:[#allocation5 + $0x2d0] sm:$0xf0]  ;;  %v8919_v7 = vor.u32 %v12133_v4, %v8918_v2  ;;  %v12127_v9 = vld [vmem:[#allocation5 + $0x5a4] sm:$0xf]  ;;  %v8486_v11 = vld [vmem:[#allocation5 + $0x240] sm:$0xf] }
  0x59   : > { %v8539_v8 = vor.u32 %v12031_v5, %v8536_v6  ;;  %v8920_v10 = vld [vmem:[#allocation5 + $0x5d0] sm:$0xf0]  ;;  %1666 = vmatpush.bf16.msra.mxu0 %v8535_v3  ;;  %v12025_v13 = vld [vmem:[#allocation5 + $0x26c] sm:$0xf0]  ;;  %v8870_v14 = vld [vmem:[#allocation5 + $0x540] sm:$0xf] }
  0x5a   : > { %v8923_v12 = vor.u32 %v12127_v9, %v8920_v10  ;;  %v12121_v15 = vld [vmem:[#allocation5 + $0x56c] sm:$0xf0]  ;;  %1680 = vmatpush.bf16.msra.mxu1 %v8919_v7  ;;  %v8487_v16 = vor.u32 %v12025_v13, %v8486_v11  ;;  %v12019_v18 = vld [vmem:[#allocation5 + $0x244] sm:$0xf]  ;;  %v8488_v19 = vld [vmem:[#allocation5 + $0x270] sm:$0xf0] }
  0x5b   : > { %1694 = vmatpush.bf16.msra.mxu2 %v8539_v8  ;;  %v8871_v17 = vor.u32 %v12121_v15, %v8870_v14  ;;  %v12115_v20 = vld [vmem:[#allocation5 + $0x544] sm:$0xf]  ;;  %v8491_v21 = vor.u32 %v12019_v18, %v8488_v19  ;;  %v8872_v22 = vld [vmem:[#allocation5 + $0x570] sm:$0xf0]  ;;  %v8438_v23 = vld [vmem:[#allocation5 + $0x1e0] sm:$0xf] }
  0x5c   : > { %1708 = vmatpush.bf16.msra.mxu3 %v8923_v12  ;;  %v12013_v24 = vld [vmem:[#allocation5 + $0x20c] sm:$0xf0]  ;;  %v8875_v25 = vor.u32 %v12115_v20, %v8872_v22  ;;  %v8822_v26 = vld [vmem:[#allocation5 + $0x4e0] sm:$0xf]  ;;  %v12007_v28 = vld [vmem:[#allocation5 + $0x1e4] sm:$0xf] }
  0x5d   : > { %v12109_v27 = vld [vmem:[#allocation5 + $0x50c] sm:$0xf0]  ;;  %1667 = vmatpush.bf16.msra.mxu0 %v8487_v16  ;;  %v8439_v29 = vor.u32 %v12013_v24, %v8438_v23  ;;  %v8440_v30 = vld [vmem:[#allocation5 + $0x210] sm:$0xf0]  ;;  %v12103_v31 = vld [vmem:[#allocation5 + $0x4e4] sm:$0xf] }
  0x5e   : > { %v8824_v32 = vld [vmem:[#allocation5 + $0x510] sm:$0xf0]  ;;  %1681 = vmatpush.bf16.msra.mxu1 %v8871_v17  ;;  %v8823_v33 = vor.u32 %v12109_v27, %v8822_v26  ;;  %v8443_v34 = vor.u32 %v12007_v28, %v8440_v30  ;;  %v8390_v35 = vld [vmem:[#allocation5 + $0x180] sm:$0xf]  ;;  %v12001_v36 = vld [vmem:[#allocation5 + $0x1ac] sm:$0xf0] }
  0x5f   : > { %1695 = vmatpush.bf16.msra.mxu2 %v8491_v21  ;;  %v8774_v37 = vld [vmem:[#allocation5 + $0x480] sm:$0xf]  ;;  %v8827_v38 = vor.u32 %v12103_v31, %v8824_v32  ;;  %v12097_v39 = vld [vmem:[#allocation5 + $0x4ac] sm:$0xf0]  ;;  %v11995_v40 = vld [vmem:[#allocation5 + $0x184] sm:$0xf]  ;;  %v8391_v44 = vor.u32 %v12001_v36, %v8390_v35 }
  0x60   : > { %1709 = vmatpush.bf16.msra.mxu3 %v8875_v25  ;;  %v8392_v41 = vld [vmem:[#allocation5 + $0x1b0] sm:$0xf0]  ;;  %v12091_v42 = vld [vmem:[#allocation5 + $0x484] sm:$0xf]  ;;  %v8775_v45 = vor.u32 %v12097_v39, %v8774_v37  ;;  %v8342_v47 = vld [vmem:[#allocation5 + $0x120] sm:$0xf] }
  0x61   : > { %v8776_v43 = vld [vmem:[#allocation5 + $0x4b0] sm:$0xf0]  ;;  %1668 = vmatpush.bf16.msra.mxu0 %v8439_v29  ;;  %v8395_v46 = vor.u32 %v11995_v40, %v8392_v41  ;;  %v11989_v48 = vld [vmem:[#allocation5 + $0x14c] sm:$0xf0]  ;;  %v8726_v49 = vld [vmem:[#allocation5 + $0x420] sm:$0xf] }
  0x62   : > { %1682 = vmatpush.bf16.msra.mxu1 %v8823_v33  ;;  %v8779_v50 = vor.u32 %v12091_v42, %v8776_v43  ;;  %v12085_v51 = vld [vmem:[#allocation5 + $0x44c] sm:$0xf0]  ;;  %v11983_v52 = vld [vmem:[#allocation5 + $0x124] sm:$0xf]  ;;  %v8344_v53 = vld [vmem:[#allocation5 + $0x150] sm:$0xf0]  ;;  %v8343_v56 = vor.u32 %v11989_v48, %v8342_v47 }
  0x63   : > { %1696 = vmatpush.bf16.msra.mxu2 %v8443_v34  ;;  %v12079_v54 = vld [vmem:[#allocation5 + $0x424] sm:$0xf]  ;;  %v8728_v55 = vld [vmem:[#allocation5 + $0x450] sm:$0xf0]  ;;  %v8727_v57 = vor.u32 %v12085_v51, %v8726_v49  ;;  %v8347_v58 = vor.u32 %v11983_v52, %v8344_v53  ;;  %v8294_v59 = vld [vmem:[#allocation5 + $0xc0] sm:$0xf] }
  0x64   : > { %1710 = vmatpush.bf16.msra.mxu3 %v8827_v38  ;;  %v11977_v60 = vld [vmem:[#allocation5 + $0xec] sm:$0xf0]  ;;  %v8678_v61 = vld [vmem:[#allocation5 + $0x3c0] sm:$0xf]  ;;  %v8731_v62 = vor.u32 %v12079_v54, %v8728_v55  ;;  %v11971_v0 = vld [vmem:[#allocation5 + $0xc4] sm:$0xf] }
  0x65   : > { %1669 = vmatpush.bf16.msra.mxu0 %v8391_v44  ;;  %v12073_v63 = vld [vmem:[#allocation5 + $0x3ec] sm:$0xf0]  ;;  %v8296_v1 = vld [vmem:[#allocation5 + $0xf0] sm:$0xf0]  ;;  %v12067_v2 = vld [vmem:[#allocation5 + $0x3c4] sm:$0xf]  ;;  %v8295_v4 = vor.u32 %v11977_v60, %v8294_v59 }
  0x66   : > { %1683 = vmatpush.bf16.msra.mxu1 %v8775_v45  ;;  %v8680_v3 = vld [vmem:[#allocation5 + $0x3f0] sm:$0xf0]  ;;  %v8679_v5 = vor.u32 %v12073_v63, %v8678_v61  ;;  %v8299_v6 = vor.u32 %v11971_v0, %v8296_v1  ;;  %v8246_v7 = vld [vmem:[#allocation5 + $0x60] sm:$0xf]  ;;  %v11965_v8 = vld [vmem:[#allocation5 + $0x8c] sm:$0xf0] }
  0x67   : > { %1697 = vmatpush.bf16.msra.mxu2 %v8395_v46  ;;  %v8630_v9 = vld [vmem:[#allocation5 + $0x360] sm:$0xf]  ;;  %v8683_v10 = vor.u32 %v12067_v2, %v8680_v3  ;;  %v12061_v11 = vld [vmem:[#allocation5 + $0x38c] sm:$0xf0]  ;;  %v11959_v12 = vld [vmem:[#allocation5 + $0x64] sm:$0xf]  ;;  %v8247_v16 = vor.u32 %v11965_v8, %v8246_v7 }
  0x68   : > { %1711 = vmatpush.bf16.msra.mxu3 %v8779_v50  ;;  %v8248_v13 = vld [vmem:[#allocation5 + $0x90] sm:$0xf0]  ;;  %v12055_v14 = vld [vmem:[#allocation5 + $0x364] sm:$0xf]  ;;  %v8198_v17 = vld [vmem:[#allocation5] sm:$0xf]  ;;  %v8631_v19 = vor.u32 %v12061_v11, %v8630_v9 }
  0x69   : > { %1670 = vmatpush.bf16.msra.mxu0 %v8343_v56  ;;  %v8632_v15 = vld [vmem:[#allocation5 + $0x390] sm:$0xf0]  ;;  %v11953_v18 = vld [vmem:[#allocation5 + $0x2c] sm:$0xf0]  ;;  %v8251_v20 = vor.u32 %v11959_v12, %v8248_v13  ;;  %v8582_v21 = vld [vmem:[#allocation5 + $0x300] sm:$0xf] }
  0x6a   : > { %1684 = vmatpush.bf16.msra.mxu1 %v8727_v57  ;;  %v12049_v22 = vld [vmem:[#allocation5 + $0x32c] sm:$0xf0]  ;;  %v11947_v23 = vld [vmem:[#allocation5 + $0x4] sm:$0xf]  ;;  %v8635_v24 = vor.u32 %v12055_v14, %v8632_v15  ;;  %v8200_v25 = vld [vmem:[#allocation5 + $0x30] sm:$0xf0]  ;;  %v8199_v31 = vor.u32 %v11953_v18, %v8198_v17 }
  0x6b   : > { %1698 = vmatpush.bf16.msra.mxu2 %v8347_v58  ;;  %v12043_v26 = vld [vmem:[#allocation5 + $0x304] sm:$0xf]  ;;  %v8584_v27 = vld [vmem:[#allocation5 + $0x330] sm:$0xf0]  ;;  %v8542_v28 = vld [vmem:[#allocation5 + $0x2a8] sm:$0xf]  ;;  %v8583_v35 = vor.u32 %v12049_v22, %v8582_v21  ;;  %v8203_v36 = vor.u32 %v11947_v23, %v8200_v25 }
  0x6c   : > { %1712 = vmatpush.bf16.msra.mxu3 %v8731_v62  ;;  %v12038_v29 = vld [vmem:[#allocation5 + $0x2d4] sm:$0xf0]  ;;  %v8926_v30 = vld [vmem:[#allocation5 + $0x5a8] sm:$0xf]  ;;  %v12032_v33 = vld [vmem:[#allocation5 + $0x2ac] sm:$0xf]  ;;  %v8587_v39 = vor.u32 %v12043_v26, %v8584_v27 }
  0x6d   : > { %1671 = vmatpush.bf16.msra.mxu0 %v8295_v4  ;;  %v12134_v32 = vld [vmem:[#allocation5 + $0x5d4] sm:$0xf0]  ;;  %v8544_v34 = vld [vmem:[#allocation5 + $0x2d8] sm:$0xf0]  ;;  %v12128_v37 = vld [vmem:[#allocation5 + $0x5ac] sm:$0xf]  ;;  %v8543_v40 = vor.u32 %v12038_v29, %v8542_v28 }
  0x6e   : > { %1685 = vmatpush.bf16.msra.mxu1 %v8679_v5  ;;  %v8928_v38 = vld [vmem:[#allocation5 + $0x5d8] sm:$0xf0]  ;;  %v8494_v41 = vld [vmem:[#allocation5 + $0x248] sm:$0xf]  ;;  %v8927_v42 = vor.u32 %v12134_v32, %v8926_v30  ;;  %v8547_v43 = vor.u32 %v12032_v33, %v8544_v34  ;;  %v12026_v44 = vld [vmem:[#allocation5 + $0x274] sm:$0xf0] }
  0x6f   : > { %1699 = vmatpush.bf16.msra.mxu2 %v8299_v6  ;;  %v8878_v45 = vld [vmem:[#allocation5 + $0x548] sm:$0xf]  ;;  %v12122_v46 = vld [vmem:[#allocation5 + $0x574] sm:$0xf0]  ;;  %v8931_v47 = vor.u32 %v12128_v37, %v8928_v38  ;;  %v12020_v48 = vld [vmem:[#allocation5 + $0x24c] sm:$0xf]  ;;  %v8495_v54 = vor.u32 %v12026_v44, %v8494_v41 }
  0x70   : > { %1713 = vmatpush.bf16.msra.mxu3 %v8683_v10  ;;  %v8496_v49 = vld [vmem:[#allocation5 + $0x278] sm:$0xf0]  ;;  %v12116_v50 = vld [vmem:[#allocation5 + $0x54c] sm:$0xf]  ;;  %v480_v52 = vld [vmem:[%s13592_s2] sm:$0xff]  ;;  %v8879_v58 = vor.u32 %v12122_v46, %v8878_v45  ;;  %s8195_s17 = sshll.u32 %s13588_s27, 4 }
  0x71   : > { %1672 = vmatpush.bf16.msra.mxu0 %v8247_v16  ;;  %v8880_v51 = vld [vmem:[#allocation5 + $0x578] sm:$0xf0]  ;;  %v482_v53 = vld [vmem:[%s13592_s2 + $0x10] sm:$0xff]  ;;  %v8446_v55 = vld [vmem:[#allocation5 + $0x1e8] sm:$0xf]  ;;  %v8499_v59 = vor.u32 %v12020_v48, %v8496_v49  ;;  %s12883_s23 = sshll.u32 %s13475_s16, 4 }
  0x72   : > { %1686 = vmatpush.bf16.msra.mxu1 %v8631_v19  ;;  %v12014_v56 = vld [vmem:[#allocation5 + $0x214] sm:$0xf0]  ;;  %v13616_v57 = vpack.c.bf16 %v482_v53, %v480_v52  ;;  %v8830_v60 = vld [vmem:[#allocation5 + $0x4e8] sm:$0xf]  ;;  %v12008_v62 = vld [vmem:[#allocation5 + $0x1ec] sm:$0xf]  ;;  %v8883_v63 = vor.u32 %v12116_v50, %v8880_v51 }
  0x73   : > { %1700 = vmatpush.bf16.msra.mxu2 %v8251_v20  ;;  %v12110_v61 = vld [vmem:[#allocation5 + $0x514] sm:$0xf0]  ;;  %v8448_v0 = vld [vmem:[#allocation5 + $0x218] sm:$0xf0]  ;;  %v481_v1 = vld [vmem:[%s13592_s2 + $0x8] sm:$0xff]  ;;  %v8447_v6 = vor.u32 %v12014_v56, %v8446_v55  ;;  %s14213_s1 = sld [smem:[#allocation43_spill]] }
  0x74   : > { %1714 = vmatpush.bf16.msra.mxu3 %v8635_v24  ;;  %v483_v2 = vld [vmem:[%s13592_s2 + $0x18] sm:$0xff]  ;;  %v12104_v3 = vld [vmem:[#allocation5 + $0x4ec] sm:$0xf]  ;;  %v8831_v7 = vor.u32 %v12110_v61, %v8830_v60  ;;  %v8451_v8 = vor.u32 %v12008_v62, %v8448_v0  ;;  %v8398_v9 = vld [vmem:[#allocation5 + $0x188] sm:$0xf]  ;;  %s477_s19 = scalar_lea.vmem [#allocation17], %s8195_s17 }
  0x75   : > { %1673 = vmatpush.bf16.msra.mxu0 %v8199_v31  ;;  %v8832_v4 = vld [vmem:[#allocation5 + $0x518] sm:$0xf0]  ;;  %v13621_v5 = vpack.c.bf16 %v483_v2, %v481_v1  ;;  %v12002_v10 = vld [vmem:[#allocation5 + $0x1b4] sm:$0xf0]  ;;  %v8782_v11 = vld [vmem:[#allocation5 + $0x488] sm:$0xf] }
  0x76   : > { %1687 = vmatpush.bf16.msra.mxu1 %v8583_v35  ;;  %v8835_v12 = vor.u32 %v12104_v3, %v8832_v4  ;;  %v12098_v13 = vld [vmem:[#allocation5 + $0x4b4] sm:$0xf0]  ;;  %v11996_v14 = vld [vmem:[#allocation5 + $0x18c] sm:$0xf]  ;;  %v8400_v15 = vld [vmem:[#allocation5 + $0x1b8] sm:$0xf0]  ;;  %v8399_v18 = vor.u32 %v12002_v10, %v8398_v9 }
  0x77   : > { %1701 = vmatpush.bf16.msra.mxu2 %v8203_v36  ;;  %v12092_v16 = vld [vmem:[#allocation5 + $0x48c] sm:$0xf]  ;;  %v8784_v17 = vld [vmem:[#allocation5 + $0x4b8] sm:$0xf0]  ;;  %v8783_v19 = vor.u32 %v12098_v13, %v8782_v11  ;;  %v8403_v20 = vor.u32 %v11996_v14, %v8400_v15  ;;  %v8350_v21 = vld [vmem:[#allocation5 + $0x128] sm:$0xf] }
  0x78   : > { %1715 = vmatpush.bf16.msra.mxu3 %v8587_v39  ;;  %1674 = vmatmul.bf16.vlgmr.msra.gmra.mxu0 %v13616_v57  ;;  %v11990_v22 = vld [vmem:[#allocation5 + $0x154] sm:$0xf0]  ;;  %v8734_v23 = vld [vmem:[#allocation5 + $0x428] sm:$0xf]  ;;  %v8787_v24 = vor.u32 %v12092_v16, %v8784_v17  ;;  %v11984_v26 = vld [vmem:[#allocation5 + $0x12c] sm:$0xf] }
  0x79   : > { %1722 = vmatpush.bf16.msrb.mxu0 %v8543_v40  ;;  %1688 = vmatmul.bf16.vlgmr.msra.gmra.mxu1 %v13621_v5  ;;  %v12086_v25 = vld [vmem:[#allocation5 + $0x454] sm:$0xf0]  ;;  %v8352_v27 = vld [vmem:[#allocation5 + $0x158] sm:$0xf0]  ;;  %v12080_v28 = vld [vmem:[#allocation5 + $0x42c] sm:$0xf]  ;;  %v8351_v30 = vor.u32 %v11990_v22, %v8350_v21  ;;  %s8017_s14 = scalar_lea.hbm %s14213_s1, %s12883_s23 }
  0x7a   : > { %1736 = vmatpush.bf16.msrb.mxu1 %v8927_v42  ;;  %1702 = vmatmul.bf16.vlgmr.msra.gmra.mxu2 %v13616_v57  ;;  %v8736_v29 = vld [vmem:[#allocation5 + $0x458] sm:$0xf0]  ;;  %v8735_v31 = vor.u32 %v12086_v25, %v8734_v23  ;;  %v8355_v32 = vor.u32 %v11984_v26, %v8352_v27  ;;  %v8302_v33 = vld [vmem:[#allocation5 + $0xc8] sm:$0xf]  ;;  %v11978_v34 = vld [vmem:[#allocation5 + $0xf4] sm:$0xf0] }
  0x7b   : > { %1750 = vmatpush.bf16.msrb.mxu2 %v8547_v43  ;;  %1716 = vmatmul.bf16.vlgmr.msra.gmra.mxu3 %v13621_v5  ;;  %v8686_v35 = vld [vmem:[#allocation5 + $0x3c8] sm:$0xf]  ;;  %v8739_v36 = vor.u32 %v12080_v28, %v8736_v29  ;;  %v12074_v37 = vld [vmem:[#allocation5 + $0x3f4] sm:$0xf0]  ;;  %v11972_v38 = vld [vmem:[#allocation5 + $0xcc] sm:$0xf]  ;;  %v8303_v42 = vor.u32 %v11978_v34, %v8302_v33 }
  0x7c   : > { %1764 = vmatpush.bf16.msrb.mxu3 %v8931_v47  ;;  %v8304_v39 = vld [vmem:[#allocation5 + $0xf8] sm:$0xf0]  ;;  %v12068_v40 = vld [vmem:[#allocation5 + $0x3cc] sm:$0xf]  ;;  %v8687_v43 = vor.u32 %v12074_v37, %v8686_v35  ;;  %v8254_v45 = vld [vmem:[#allocation5 + $0x68] sm:$0xf] }
  0x7d   : > { %1723 = vmatpush.bf16.msrb.mxu0 %v8495_v54  ;;  %v8688_v41 = vld [vmem:[#allocation5 + $0x3f8] sm:$0xf0]  ;;  %v8307_v44 = vor.u32 %v11972_v38, %v8304_v39  ;;  %v11966_v46 = vld [vmem:[#allocation5 + $0x94] sm:$0xf0]  ;;  %v8638_v47 = vld [vmem:[#allocation5 + $0x368] sm:$0xf] }
  0x7e   : > { %1737 = vmatpush.bf16.msrb.mxu1 %v8879_v58  ;;  %v8691_v48 = vor.u32 %v12068_v40, %v8688_v41  ;;  %v12062_v49 = vld [vmem:[#allocation5 + $0x394] sm:$0xf0]  ;;  %v11960_v50 = vld [vmem:[#allocation5 + $0x6c] sm:$0xf]  ;;  %v8256_v51 = vld [vmem:[#allocation5 + $0x98] sm:$0xf0]  ;;  %v8255_v54 = vor.u32 %v11966_v46, %v8254_v45 }
  0x7f   : > { %1751 = vmatpush.bf16.msrb.mxu2 %v8499_v59  ;;  %v12056_v52 = vld [vmem:[#allocation5 + $0x36c] sm:$0xf]  ;;  %v8640_v53 = vld [vmem:[#allocation5 + $0x398] sm:$0xf0]  ;;  %v8206_v55 = vld [vmem:[#allocation5 + $0x8] sm:$0xf]  ;;  %v8639_v58 = vor.u32 %v12062_v49, %v8638_v47  ;;  %v8259_v59 = vor.u32 %v11960_v50, %v8256_v51 }
  0x80   : > { %1765 = vmatpush.bf16.msrb.mxu3 %v8883_v63  ;;  %v11954_v56 = vld [vmem:[#allocation5 + $0x34] sm:$0xf0]  ;;  %v8590_v60 = vld [vmem:[#allocation5 + $0x308] sm:$0xf]  ;;  %v11948_v62 = vld [vmem:[#allocation5 + $0xc] sm:$0xf]  ;;  %v8643_v63 = vor.u32 %v12056_v52, %v8640_v53 }
  0x81   : > { %1724 = vmatpush.bf16.msrb.mxu0 %v8447_v6  ;;  %v12050_v61 = vld [vmem:[#allocation5 + $0x334] sm:$0xf0]  ;;  %v8208_v0 = vld [vmem:[#allocation5 + $0x38] sm:$0xf0]  ;;  %v12044_v1 = vld [vmem:[#allocation5 + $0x30c] sm:$0xf] }
  0x82   : > { %1738 = vmatpush.bf16.msrb.mxu1 %v8831_v7  ;;  %v8592_v2 = vld [vmem:[#allocation5 + $0x338] sm:$0xf0]  ;;  %v8550_v3 = vld [vmem:[#allocation5 + $0x2b0] sm:$0xf]  ;;  %v12039_v4 = vld [vmem:[#allocation5 + $0x2dc] sm:$0xf0]  ;;  %v8207_v7 = vor.u32 %v11954_v56, %v8206_v55  ;;  %v8591_v11 = vor.u32 %v12050_v61, %v8590_v60 }
  0x83   : > { %1752 = vmatpush.bf16.msrb.mxu2 %v8451_v8  ;;  %v8934_v6 = vld [vmem:[#allocation5 + $0x5b0] sm:$0xf]  ;;  %v12135_v8 = vld [vmem:[#allocation5 + $0x5dc] sm:$0xf0]  ;;  %v12033_v9 = vld [vmem:[#allocation5 + $0x2b4] sm:$0xf]  ;;  %v8595_v15 = vor.u32 %v12044_v1, %v8592_v2  ;;  %v8551_v16 = vor.u32 %v12039_v4, %v8550_v3 }
  0x84   : > { %1766 = vmatpush.bf16.msrb.mxu3 %v8835_v12  ;;  %v8552_v10 = vld [vmem:[#allocation5 + $0x2e0] sm:$0xf0]  ;;  %v8211_v12 = vor.u32 %v11948_v62, %v8208_v0  ;;  %v12129_v13 = vld [vmem:[#allocation5 + $0x5b4] sm:$0xf]  ;;  %v8935_v17 = vor.u32 %v12135_v8, %v8934_v6  ;;  %v8886_v21 = vld [vmem:[#allocation5 + $0x550] sm:$0xf] }
  0x85   : > { %1725 = vmatpush.bf16.msrb.mxu0 %v8399_v18  ;;  %v8936_v14 = vld [vmem:[#allocation5 + $0x5e0] sm:$0xf0]  ;;  %v8555_v18 = vor.u32 %v12033_v9, %v8552_v10  ;;  %v12123_v23 = vld [vmem:[#allocation5 + $0x57c] sm:$0xf0]  ;;  %v12117_v26 = vld [vmem:[#allocation5 + $0x554] sm:$0xf] }
  0x86   : > { %1739 = vmatpush.bf16.msrb.mxu1 %v8783_v19  ;;  %v8502_v19 = vld [vmem:[#allocation5 + $0x250] sm:$0xf]  ;;  %v8939_v22 = vor.u32 %v12129_v13, %v8936_v14  ;;  %v8504_v25 = vld [vmem:[#allocation5 + $0x280] sm:$0xf0]  ;;  %v8887_v29 = vor.u32 %v12123_v23, %v8886_v21  ;;  %v12111_v35 = vld [vmem:[#allocation5 + $0x51c] sm:$0xf0] }
  0x87   : > { %1753 = vmatpush.bf16.msrb.mxu2 %v8403_v20  ;;  %v12027_v20 = vld [vmem:[#allocation5 + $0x27c] sm:$0xf0]  ;;  %v8888_v27 = vld [vmem:[#allocation5 + $0x580] sm:$0xf0]  ;;  %v8838_v33 = vld [vmem:[#allocation5 + $0x4f0] sm:$0xf] }
  0x88   : > { %1767 = vmatpush.bf16.msrb.mxu3 %v8787_v24  ;;  %v12021_v24 = vld [vmem:[#allocation5 + $0x254] sm:$0xf]  ;;  %v8503_v28 = vor.u32 %v12027_v20, %v8502_v19  ;;  %v8891_v34 = vor.u32 %v12117_v26, %v8888_v27  ;;  %v8456_v37 = vld [vmem:[#allocation5 + $0x220] sm:$0xf0]  ;;  %v8839_v41 = vor.u32 %v12111_v35, %v8838_v33  ;;  %v8790_v45 = vld [vmem:[#allocation5 + $0x490] sm:$0xf] }
  0x89   : > { %1726 = vmatpush.bf16.msrb.mxu0 %v8351_v30  ;;  %v8507_v30 = vor.u32 %v12021_v24, %v8504_v25  ;;  %v12105_v38 = vld [vmem:[#allocation5 + $0x4f4] sm:$0xf]  ;;  %v8840_v39 = vld [vmem:[#allocation5 + $0x520] sm:$0xf0]  ;;  %v12099_v47 = vld [vmem:[#allocation5 + $0x4bc] sm:$0xf0] }
  0x8a   : > { %1740 = vmatpush.bf16.msrb.mxu1 %v8735_v31  ;;  %v8454_v31 = vld [vmem:[#allocation5 + $0x1f0] sm:$0xf]  ;;  %v8843_v46 = vor.u32 %v12105_v38, %v8840_v39  ;;  %v8408_v49 = vld [vmem:[#allocation5 + $0x1c0] sm:$0xf0]  ;;  %v12093_v50 = vld [vmem:[#allocation5 + $0x494] sm:$0xf]  ;;  %v8791_v53 = vor.u32 %v12099_v47, %v8790_v45 }
  0x8b   : > { %1754 = vmatpush.bf16.msrb.mxu2 %v8355_v32  ;;  %v12015_v32 = vld [vmem:[#allocation5 + $0x21c] sm:$0xf0]  ;;  %v8792_v51 = vld [vmem:[#allocation5 + $0x4c0] sm:$0xf0]  ;;  %v8358_v55 = vld [vmem:[#allocation5 + $0x130] sm:$0xf] }
  0x8c   : > { %1768 = vmatpush.bf16.msrb.mxu3 %v8739_v36  ;;  %v12009_v36 = vld [vmem:[#allocation5 + $0x1f4] sm:$0xf]  ;;  %v8455_v40 = vor.u32 %v12015_v32, %v8454_v31  ;;  %v11991_v56 = vld [vmem:[#allocation5 + $0x15c] sm:$0xf0]  ;;  %v8360_v62 = vld [vmem:[#allocation5 + $0x160] sm:$0xf0] }
  0x8d   : > { %1727 = vmatpush.bf16.msrb.mxu0 %v8303_v42  ;;  %v8459_v42 = vor.u32 %v12009_v36, %v8456_v37  ;;  %v12087_v60 = vld [vmem:[#allocation5 + $0x45c] sm:$0xf0]  ;;  %v11985_v61 = vld [vmem:[#allocation5 + $0x134] sm:$0xf]  ;;  %v8744_v0 = vld [vmem:[#allocation5 + $0x460] sm:$0xf0]  ;;  %v8359_v1 = vor.u32 %v11991_v56, %v8358_v55 }
  0x8e   : > { %1741 = vmatpush.bf16.msrb.mxu1 %v8687_v43  ;;  %v8406_v43 = vld [vmem:[#allocation5 + $0x190] sm:$0xf]  ;;  %v8363_v3 = vor.u32 %v11985_v61, %v8360_v62  ;;  %v11979_v6 = vld [vmem:[#allocation5 + $0xfc] sm:$0xf0]  ;;  %v11973_v10 = vld [vmem:[#allocation5 + $0xd4] sm:$0xf] }
  0x8f   : > { %1755 = vmatpush.bf16.msrb.mxu2 %v8307_v44  ;;  %v12003_v44 = vld [vmem:[#allocation5 + $0x1bc] sm:$0xf0]  ;;  %v8310_v4 = vld [vmem:[#allocation5 + $0xd0] sm:$0xf]  ;;  %v8696_v13 = vld [vmem:[#allocation5 + $0x400] sm:$0xf0] }
  0x90   : > { %1769 = vmatpush.bf16.msrb.mxu3 %v8691_v48  ;;  %v11997_v48 = vld [vmem:[#allocation5 + $0x194] sm:$0xf]  ;;  %v8407_v52 = vor.u32 %v12003_v44, %v8406_v43  ;;  %v12075_v9 = vld [vmem:[#allocation5 + $0x3fc] sm:$0xf0]  ;;  %v8311_v14 = vor.u32 %v11979_v6, %v8310_v4  ;;  %v8646_v19 = vld [vmem:[#allocation5 + $0x370] sm:$0xf] }
  0x91   : > { %1728 = vmatpush.bf16.msrb.mxu0 %v8255_v54  ;;  %v8411_v54 = vor.u32 %v11997_v48, %v8408_v49  ;;  %v12063_v21 = vld [vmem:[#allocation5 + $0x39c] sm:$0xf0]  ;;  %v8264_v23 = vld [vmem:[#allocation5 + $0xa0] sm:$0xf0]  ;;  %v12057_v24 = vld [vmem:[#allocation5 + $0x374] sm:$0xf] }
  0x92   : > { %1742 = vmatpush.bf16.msrb.mxu1 %v8639_v58  ;;  %v8742_v58 = vld [vmem:[#allocation5 + $0x430] sm:$0xf]  ;;  %v8648_v25 = vld [vmem:[#allocation5 + $0x3a0] sm:$0xf0]  ;;  %v12051_v32 = vld [vmem:[#allocation5 + $0x33c] sm:$0xf0] }
  0x93   : > { %1756 = vmatpush.bf16.msrb.mxu2 %v8259_v59  ;;  %v8795_v59 = vor.u32 %v12093_v50, %v8792_v51  ;;  %v8743_v2 = vor.u32 %v12087_v60, %v8742_v58  ;;  %v8214_v27 = vld [vmem:[#allocation5 + $0x10] sm:$0xf]  ;;  %v11949_v33 = vld [vmem:[#allocation5 + $0x14] sm:$0xf]  ;;  %v8216_v35 = vld [vmem:[#allocation5 + $0x40] sm:$0xf0] }
  0x94   : > { %1770 = vmatpush.bf16.msrb.mxu3 %v8643_v63  ;;  %v12081_v63 = vld [vmem:[#allocation5 + $0x434] sm:$0xf]  ;;  %v8598_v31 = vld [vmem:[#allocation5 + $0x310] sm:$0xf]  ;;  %v8600_v37 = vld [vmem:[#allocation5 + $0x340] sm:$0xf0] }
  0x95   : > { %1729 = vmatpush.bf16.msrb.mxu0 %v8207_v7  ;;  %v8694_v7 = vld [vmem:[#allocation5 + $0x3d0] sm:$0xf]  ;;  %v8747_v8 = vor.u32 %v12081_v63, %v8744_v0  ;;  %v12045_v36 = vld [vmem:[#allocation5 + $0x314] sm:$0xf]  ;;  %v8558_v38 = vld [vmem:[#allocation5 + $0x2b8] sm:$0xf]  ;;  %v8599_v45 = vor.u32 %v12051_v32, %v8598_v31 }
  0x96   : > { %1743 = vmatpush.bf16.msrb.mxu1 %v8591_v11  ;;  %v8312_v11 = vld [vmem:[#allocation5 + $0x100] sm:$0xf0]  ;;  %v12040_v39 = vld [vmem:[#allocation5 + $0x2e4] sm:$0xf0]  ;;  %v12034_v43 = vld [vmem:[#allocation5 + $0x2bc] sm:$0xf]  ;;  %v8603_v49 = vor.u32 %v12045_v36, %v8600_v37 }
  0x97   : > { %1757 = vmatpush.bf16.msrb.mxu2 %v8211_v12  ;;  %v12069_v12 = vld [vmem:[#allocation5 + $0x3d4] sm:$0xf]  ;;  %v8560_v44 = vld [vmem:[#allocation5 + $0x2e8] sm:$0xf0]  ;;  %v12130_v47 = vld [vmem:[#allocation5 + $0x5bc] sm:$0xf]  ;;  %v8559_v50 = vor.u32 %v12040_v39, %v8558_v38 }
  0x98   : > { %1771 = vmatpush.bf16.msrb.mxu3 %v8595_v15  ;;  %1730 = vmatmul.bf16.vlgmr.msrb.gmra.mxu0 %v13616_v57  ;;  %v8695_v15 = vor.u32 %v12075_v9, %v8694_v7  ;;  %v8699_v20 = vor.u32 %v12069_v12, %v8696_v13  ;;  %v8944_v48 = vld [vmem:[#allocation5 + $0x5e8] sm:$0xf0]  ;;  %v8894_v55 = vld [vmem:[#allocation5 + $0x558] sm:$0xf]  ;;  %v12124_v58 = vld [vmem:[#allocation5 + $0x584] sm:$0xf0] }
  0x99   : > { %1778 = vmatpush.bf16.msra.mxu0 %v8551_v16  ;;  %1744 = vmatmul.bf16.vlgmr.msrb.gmra.mxu1 %v13621_v5  ;;  %v8315_v16 = vor.u32 %v11973_v10, %v8312_v11  ;;  %v8947_v56 = vor.u32 %v12130_v47, %v8944_v48  ;;  %v8512_v60 = vld [vmem:[#allocation5 + $0x288] sm:$0xf0]  ;;  %v12118_v61 = vld [vmem:[#allocation5 + $0x55c] sm:$0xf]  ;;  %v8895_v0 = vor.u32 %v12124_v58, %v8894_v55  ;;  %v8846_v4 = vld [vmem:[#allocation5 + $0x4f8] sm:$0xf] }
  0x9a   : > { %1792 = vmatpush.bf16.msra.mxu1 %v8935_v17  ;;  %1758 = vmatmul.bf16.vlgmr.msrb.gmra.mxu2 %v13616_v57  ;;  %v8262_v17 = vld [vmem:[#allocation5 + $0x70] sm:$0xf]  ;;  %v8896_v62 = vld [vmem:[#allocation5 + $0x588] sm:$0xf0]  ;;  %v12112_v7 = vld [vmem:[#allocation5 + $0x524] sm:$0xf0] }
  0x9b   : > { %1806 = vmatpush.bf16.msra.mxu2 %v8555_v18  ;;  %1772 = vmatmul.bf16.vlgmr.msrb.gmra.mxu3 %v13621_v5  ;;  %v11967_v18 = vld [vmem:[#allocation5 + $0x9c] sm:$0xf0]  ;;  %v8899_v6 = vor.u32 %v12118_v61, %v8896_v62  ;;  %v8464_v9 = vld [vmem:[#allocation5 + $0x228] sm:$0xf0]  ;;  %v12106_v10 = vld [vmem:[#allocation5 + $0x4fc] sm:$0xf]  ;;  %v8847_v13 = vor.u32 %v12112_v7, %v8846_v4 }
  0x9c   : > { %1820 = vmatpush.bf16.msra.mxu3 %v8939_v22  ;;  %v11961_v22 = vld [vmem:[#allocation5 + $0x74] sm:$0xf]  ;;  %v8263_v26 = vor.u32 %v11967_v18, %v8262_v17  ;;  %v8848_v11 = vld [vmem:[#allocation5 + $0x528] sm:$0xf0]  ;;  %v8798_v17 = vld [vmem:[#allocation5 + $0x498] sm:$0xf] }
  0x9d   : > { %1779 = vmatpush.bf16.msra.mxu0 %v8503_v28  ;;  %v11955_v28 = vld [vmem:[#allocation5 + $0x3c] sm:$0xf0]  ;;  %v8851_v18 = vor.u32 %v12106_v10, %v8848_v11  ;;  %v12088_v31 = vld [vmem:[#allocation5 + $0x464] sm:$0xf0]  ;;  %v11986_v32 = vld [vmem:[#allocation5 + $0x13c] sm:$0xf] }
  0x9e   : > { %1793 = vmatpush.bf16.msra.mxu1 %v8887_v29  ;;  %v8647_v29 = vor.u32 %v12063_v21, %v8646_v19  ;;  %v12100_v19 = vld [vmem:[#allocation5 + $0x4c4] sm:$0xf0]  ;;  %v8416_v21 = vld [vmem:[#allocation5 + $0x1c8] sm:$0xf0]  ;;  %v8318_v39 = vld [vmem:[#allocation5 + $0xd8] sm:$0xf] }
  0x9f   : > { %1807 = vmatpush.bf16.msra.mxu2 %v8507_v30  ;;  %v8267_v30 = vor.u32 %v11961_v22, %v8264_v23  ;;  %v12094_v22 = vld [vmem:[#allocation5 + $0x49c] sm:$0xf]  ;;  %v8800_v23 = vld [vmem:[#allocation5 + $0x4c8] sm:$0xf0]  ;;  %v12064_v55 = vld [vmem:[#allocation5 + $0x3a4] sm:$0xf0] }
  0xa0   : > { %1821 = vmatpush.bf16.msra.mxu3 %v8891_v34  ;;  %v8651_v34 = vor.u32 %v12057_v24, %v8648_v25  ;;  %v8799_v25 = vor.u32 %v12100_v19, %v8798_v17  ;;  %v8704_v47 = vld [vmem:[#allocation5 + $0x408] sm:$0xf0]  ;;  %v8222_v62 = vld [vmem:[#allocation5 + $0x18] sm:$0xf]  ;;  %v11950_v4 = vld [vmem:[#allocation5 + $0x1c] sm:$0xf] }
  0xa1   : > { %1780 = vmatpush.bf16.msra.mxu0 %v8455_v40  ;;  %v8942_v40 = vld [vmem:[#allocation5 + $0x5b8] sm:$0xf]  ;;  %v8272_v58 = vld [vmem:[#allocation5 + $0xa8] sm:$0xf0]  ;;  %v8566_v10 = vld [vmem:[#allocation5 + $0x2c0] sm:$0xf] }
  0xa2   : > { %1794 = vmatpush.bf16.msra.mxu1 %v8839_v41  ;;  %v8215_v41 = vor.u32 %v11955_v28, %v8214_v27  ;;  %v8366_v27 = vld [vmem:[#allocation5 + $0x138] sm:$0xf]  ;;  %v11992_v28 = vld [vmem:[#allocation5 + $0x164] sm:$0xf0]  ;;  %v8224_v7 = vld [vmem:[#allocation5 + $0x48] sm:$0xf0] }
  0xa3   : > { %1808 = vmatpush.bf16.msra.mxu2 %v8459_v42  ;;  %v12136_v42 = vld [vmem:[#allocation5 + $0x5e4] sm:$0xf0]  ;;  %v8367_v36 = vor.u32 %v11992_v28, %v8366_v27  ;;  %v12041_v11 = vld [vmem:[#allocation5 + $0x2ec] sm:$0xf0]  ;;  %v12131_v19 = vld [vmem:[#allocation5 + $0x5c4] sm:$0xf] }
  0xa4   : > { %1822 = vmatpush.bf16.msra.mxu3 %v8843_v46  ;;  %v8219_v46 = vor.u32 %v11949_v33, %v8216_v35  ;;  %v8943_v51 = vor.u32 %v12136_v42, %v8942_v40  ;;  %v8368_v33 = vld [vmem:[#allocation5 + $0x168] sm:$0xf0]  ;;  %v11980_v40 = vld [vmem:[#allocation5 + $0x104] sm:$0xf0]  ;;  %v8902_v27 = vld [vmem:[#allocation5 + $0x560] sm:$0xf] }
  0xa5   : > { %1781 = vmatpush.bf16.msra.mxu0 %v8407_v52  ;;  %v8563_v52 = vor.u32 %v12034_v43, %v8560_v44  ;;  %v8752_v35 = vld [vmem:[#allocation5 + $0x468] sm:$0xf0]  ;;  %v8371_v38 = vor.u32 %v11986_v32, %v8368_v33  ;;  %v12076_v43 = vld [vmem:[#allocation5 + $0x404] sm:$0xf0]  ;;  %v11974_v44 = vld [vmem:[#allocation5 + $0xdc] sm:$0xf]  ;;  %v8319_v48 = vor.u32 %v11980_v40, %v8318_v39 }
  0xa6   : > { %1795 = vmatpush.bf16.msra.mxu1 %v8791_v53  ;;  %v8510_v53 = vld [vmem:[#allocation5 + $0x258] sm:$0xf]  ;;  %v12119_v32 = vld [vmem:[#allocation5 + $0x564] sm:$0xf]  ;;  %v8904_v33 = vld [vmem:[#allocation5 + $0x590] sm:$0xf0] }
  0xa7   : > { %1809 = vmatpush.bf16.msra.mxu2 %v8411_v54  ;;  %v12028_v54 = vld [vmem:[#allocation5 + $0x284] sm:$0xf0]  ;;  %v8854_v39 = vld [vmem:[#allocation5 + $0x500] sm:$0xf]  ;;  %v8907_v40 = vor.u32 %v12119_v32, %v8904_v33  ;;  %s8018_s22 = sshll.u32 %s477_s19, 4  ;;  %s8020_s25 = sshll.u32 %s8017_s14, 4  ;;  %s8019_s22 = int_to_ptr.vmem [resolvable:$true] %s8018_s22  ;;  %s8021_s25 = int_to_ptr.hbm [resolvable:$true] %s8020_s25 }
  0xa8   : > { %1823 = vmatpush.bf16.msra.mxu3 %v8795_v59  ;;  %v12022_v59 = vld [vmem:[#allocation5 + $0x25c] sm:$0xf]  ;;  %v8511_v63 = vor.u32 %v12028_v54, %v8510_v53  ;;  %v8654_v53 = vld [vmem:[#allocation5 + $0x378] sm:$0xf]  ;;  %v8230_v33 = vld [vmem:[#allocation5 + $0x20] sm:$0xf] }
  0xa9   : > { %1782 = vmatpush.bf16.msra.mxu0 %v8359_v1  ;;  %v8515_v1 = vor.u32 %v12022_v59, %v8512_v60  ;;  %v12058_v59 = vld [vmem:[#allocation5 + $0x37c] sm:$0xf]  ;;  %v8656_v60 = vld [vmem:[#allocation5 + $0x3a8] sm:$0xf0]  ;;  %s8006_s16 = scalar_lea.sflag [#allocation4], %s13588_s27  ;;  %s13311_s20 = sshra.s32 %s8021_s25, 4  ;;  %s13312_s20 = int_to_ptr.hbm [resolvable:$true] %s13311_s20 }
  0xaa   : > { %1796 = vmatpush.bf16.msra.mxu1 %v8743_v2  ;;  %v8462_v2 = vld [vmem:[#allocation5 + $0x1f8] sm:$0xf]  ;;  %s13313_s3 = scalar_lea.hbm %s13312_s20, 16  ;;  %s13317_s9 = scalar_lea.hbm %s14213_s1, 48 }
  0xab   : > { %1810 = vmatpush.bf16.msra.mxu2 %v8363_v3  ;;  %v12016_v3 = vld [vmem:[#allocation5 + $0x224] sm:$0xf0]  ;;  %p13314_p1 = scmp.ne.s32.totalorder %s13312_s20, %s13313_s3  ;;  %p13318_p5 = scmp.lt.s32.totalorder %s13312_s20, %s14213_s1 }
  0xac   : > { %1824 = vmatpush.bf16.msra.mxu3 %v8747_v8  ;;  %v12010_v8 = vld [vmem:[#allocation5 + $0x1fc] sm:$0xf]  ;;  %v8463_v12 = vor.u32 %v12016_v3, %v8462_v2  ;;  %v8606_v2 = vld [vmem:[#allocation5 + $0x318] sm:$0xf]  ;;  %v12052_v3 = vld [vmem:[#allocation5 + $0x344] sm:$0xf0]  ;;  %p13319_p6 = scmp.lt.s32.totalorder %s13317_s9, %s13313_s3 }
  0xad   : > { %1783 = vmatpush.bf16.msra.mxu0 %v8311_v14  ;;  %v8467_v14 = vor.u32 %v12010_v8, %v8464_v9  ;;  %v12046_v8 = vld [vmem:[#allocation5 + $0x31c] sm:$0xf]  ;;  %v8608_v9 = vld [vmem:[#allocation5 + $0x348] sm:$0xf0]  ;;  %v8607_v17 = vor.u32 %v12052_v3, %v8606_v2  ;;  %v12089_v2 = vld [vmem:[#allocation5 + $0x46c] sm:$0xf0]  ;;  %p13315_p3 = pnand %p13314_p1, %p13557_p2 }
  0xae   : > { %1797 = vmatpush.bf16.msra.mxu1 %v8695_v15  ;;  %v8414_v15 = vld [vmem:[#allocation5 + $0x198] sm:$0xf]  ;;  %v11987_v3 = vld [vmem:[#allocation5 + $0x144] sm:$0xf]  ;;  %p13320_p7 = por %p13319_p6, %p13318_p5 }
  0xaf   : > { %1811 = vmatpush.bf16.msra.mxu2 %v8315_v16  ;;  %v12004_v16 = vld [vmem:[#allocation5 + $0x1c4] sm:$0xf0]  ;;  %p13316_p11 = pneg %p13315_p3 }
  0xb0   : > { %1825 = vmatpush.bf16.msra.mxu3 %v8699_v20  ;;  %v11998_v20 = vld [vmem:[#allocation5 + $0x19c] sm:$0xf]  ;;  %v8415_v24 = vor.u32 %v12004_v16, %v8414_v15  ;;  %v12035_v15 = vld [vmem:[#allocation5 + $0x2c4] sm:$0xf]  ;;  %v8568_v16 = vld [vmem:[#allocation5 + $0x2f0] sm:$0xf0] }
  0xb1   : > { %1784 = vmatpush.bf16.msra.mxu0 %v8263_v26  ;;  %v8419_v26 = vor.u32 %v11998_v20, %v8416_v21  ;;  %v8952_v20 = vld [vmem:[#allocation5 + $0x5f0] sm:$0xf0]  ;;  %v8611_v21 = vor.u32 %v12046_v8, %v8608_v9  ;;  %p13321_p8 = pnand %p13320_p7, %p13316_p11 }
  0xb2   : > { %1798 = vmatpush.bf16.msra.mxu1 %v8647_v29  ;;  %v8750_v29 = vld [vmem:[#allocation5 + $0x438] sm:$0xf]  ;;  %v8955_v28 = vor.u32 %v12131_v19, %v8952_v20  ;;  %v8712_v19 = vld [vmem:[#allocation5 + $0x410] sm:$0xf0] }
  0xb3   : > { %1812 = vmatpush.bf16.msra.mxu2 %v8267_v30  ;;  %v8803_v30 = vor.u32 %v12094_v22, %v8800_v23  ;;  %v8751_v37 = vor.u32 %v12088_v31, %v8750_v29  ;;  %v8567_v22 = vor.u32 %v12041_v11, %v8566_v10  ;;  %v12125_v29 = vld [vmem:[#allocation5 + $0x58c] sm:$0xf0]  ;;  %v8520_v31 = vld [vmem:[#allocation5 + $0x290] sm:$0xf0]  ;;  %v8326_v11 = vld [vmem:[#allocation5 + $0xe0] sm:$0xf] }
  0xb4   : > { %1826 = vmatpush.bf16.msra.mxu3 %v8651_v34  ;;  %v12082_v34 = vld [vmem:[#allocation5 + $0x43c] sm:$0xf] }
  0xb5   : > { %1785 = vmatpush.bf16.msra.mxu0 %v8215_v41  ;;  %v8702_v41 = vld [vmem:[#allocation5 + $0x3d8] sm:$0xf]  ;;  %v8755_v42 = vor.u32 %v12082_v34, %v8752_v35  ;;  %v8903_v35 = vor.u32 %v12125_v29, %v8902_v27  ;;  %v12065_v27 = vld [vmem:[#allocation5 + $0x3ac] sm:$0xf0]  ;;  %v8280_v29 = vld [vmem:[#allocation5 + $0xb0] sm:$0xf0] }
  0xb6   : > { %1799 = vmatpush.bf16.msra.mxu1 %v8599_v45  ;;  %v8320_v45 = vld [vmem:[#allocation5 + $0x108] sm:$0xf0] }
  0xb7   : > { %1813 = vmatpush.bf16.msra.mxu2 %v8219_v46  ;;  %v12070_v46 = vld [vmem:[#allocation5 + $0x3dc] sm:$0xf] }
  0xb8   : > { %1827 = vmatpush.bf16.msra.mxu3 %v8603_v49  ;;  %1786 = vmatmul.bf16.vlgmr.msra.gmra.mxu0 %v13616_v57  ;;  %v8703_v49 = vor.u32 %v12076_v43, %v8702_v41  ;;  %v8707_v54 = vor.u32 %v12070_v46, %v8704_v47  ;;  %v12113_v41 = vld [vmem:[#allocation5 + $0x52c] sm:$0xf0]  ;;  %v8472_v43 = vld [vmem:[#allocation5 + $0x230] sm:$0xf0] }
  0xb9   : > { %1834 = vmatpush.bf16.msrb.mxu0 %v8559_v50  ;;  %1800 = vmatmul.bf16.vlgmr.msra.gmra.mxu1 %v13621_v5  ;;  %v8323_v50 = vor.u32 %v11974_v44, %v8320_v45  ;;  %v12107_v44 = vld [vmem:[#allocation5 + $0x504] sm:$0xf]  ;;  %v8856_v45 = vld [vmem:[#allocation5 + $0x530] sm:$0xf0]  ;;  %v8855_v47 = vor.u32 %v12113_v41, %v8854_v39 }
  0xba   : > { %1848 = vmatpush.bf16.msrb.mxu1 %v8943_v51  ;;  %1814 = vmatmul.bf16.vlgmr.msra.gmra.mxu2 %v13616_v57  ;;  %v8270_v51 = vld [vmem:[#allocation5 + $0x78] sm:$0xf]  ;;  %v11951_v39 = vld [vmem:[#allocation5 + $0x24] sm:$0xf]  ;;  %v8232_v41 = vld [vmem:[#allocation5 + $0x50] sm:$0xf0] }
  0xbb   : > { %1862 = vmatpush.bf16.msrb.mxu2 %v8563_v52  ;;  %1828 = vmatmul.bf16.vlgmr.msra.gmra.mxu3 %v13621_v5  ;;  %v11968_v52 = vld [vmem:[#allocation5 + $0xa4] sm:$0xf0] }
  0xbc   : > { %1876 = vmatpush.bf16.msrb.mxu3 %v8947_v56  ;;  %v11962_v56 = vld [vmem:[#allocation5 + $0x7c] sm:$0xf]  ;;  %v8271_v61 = vor.u32 %v11968_v52, %v8270_v51  ;;  %v8806_v51 = vld [vmem:[#allocation5 + $0x4a0] sm:$0xf]  ;;  %v8859_v52 = vor.u32 %v12107_v44, %v8856_v45  ;;  %v8574_v44 = vld [vmem:[#allocation5 + $0x2c8] sm:$0xf] }
  0xbd   : > { %1835 = vmatpush.bf16.msrb.mxu0 %v8511_v63  ;;  %v11956_v63 = vld [vmem:[#allocation5 + $0x44] sm:$0xf0]  ;;  %v12042_v45 = vld [vmem:[#allocation5 + $0x2f4] sm:$0xf0] }
  0xbe   : > { %1849 = vmatpush.bf16.msrb.mxu1 %v8895_v0  ;;  %v8655_v0 = vor.u32 %v12064_v55, %v8654_v53  ;;  %v12101_v53 = vld [vmem:[#allocation5 + $0x4cc] sm:$0xf0]  ;;  %v8424_v55 = vld [vmem:[#allocation5 + $0x1d0] sm:$0xf0] }
  0xbf   : > { %1863 = vmatpush.bf16.msrb.mxu2 %v8515_v1  ;;  %v8275_v1 = vor.u32 %v11962_v56, %v8272_v58  ;;  %v12095_v56 = vld [vmem:[#allocation5 + $0x4a4] sm:$0xf]  ;;  %v8808_v58 = vld [vmem:[#allocation5 + $0x4d0] sm:$0xf0] }
  0xc0   : > { %1877 = vmatpush.bf16.msrb.mxu3 %v8899_v6  ;;  %v8659_v6 = vor.u32 %v12058_v59, %v8656_v60  ;;  %v8807_v60 = vor.u32 %v12101_v53, %v8806_v51  ;;  %v12132_v53 = vld [vmem:[#allocation5 + $0x5cc] sm:$0xf] }
  0xc1   : > { %1836 = vmatpush.bf16.msrb.mxu0 %v8463_v12  ;;  %v8950_v12 = vld [vmem:[#allocation5 + $0x5c0] sm:$0xf] }
  0xc2   : > { %1850 = vmatpush.bf16.msrb.mxu1 %v8847_v13  ;;  %v8223_v13 = vor.u32 %v11956_v63, %v8222_v62  ;;  %v8374_v62 = vld [vmem:[#allocation5 + $0x140] sm:$0xf]  ;;  %v11993_v63 = vld [vmem:[#allocation5 + $0x16c] sm:$0xf0] }
  0xc3   : > { %1864 = vmatpush.bf16.msrb.mxu2 %v8467_v14  ;;  %v12137_v14 = vld [vmem:[#allocation5 + $0x5ec] sm:$0xf0]  ;;  %v8375_v8 = vor.u32 %v11993_v63, %v8374_v62  ;;  %v8910_v62 = vld [vmem:[#allocation5 + $0x568] sm:$0xf] }
  0xc4   : > { %1878 = vmatpush.bf16.msrb.mxu3 %v8851_v18  ;;  %v8227_v18 = vor.u32 %v11950_v4, %v8224_v7  ;;  %v8951_v23 = vor.u32 %v12137_v14, %v8950_v12  ;;  %v8376_v4 = vld [vmem:[#allocation5 + $0x170] sm:$0xf0]  ;;  %v11981_v12 = vld [vmem:[#allocation5 + $0x10c] sm:$0xf0] }
  0xc5   : > { %1837 = vmatpush.bf16.msrb.mxu0 %v8415_v24  ;;  %v8571_v24 = vor.u32 %v12035_v15, %v8568_v16  ;;  %v8760_v7 = vld [vmem:[#allocation5 + $0x470] sm:$0xf0]  ;;  %v8379_v10 = vor.u32 %v11987_v3, %v8376_v4  ;;  %v12077_v15 = vld [vmem:[#allocation5 + $0x40c] sm:$0xf0]  ;;  %v11975_v16 = vld [vmem:[#allocation5 + $0xe4] sm:$0xf]  ;;  %v8327_v20 = vor.u32 %v11981_v12, %v8326_v11 }
  0xc6   : > { %1851 = vmatpush.bf16.msrb.mxu1 %v8799_v25  ;;  %v8518_v25 = vld [vmem:[#allocation5 + $0x260] sm:$0xf]  ;;  %v12120_v3 = vld [vmem:[#allocation5 + $0x56c] sm:$0xf]  ;;  %v8912_v4 = vld [vmem:[#allocation5 + $0x598] sm:$0xf0] }
  0xc7   : > { %1865 = vmatpush.bf16.msrb.mxu2 %v8419_v26  ;;  %v12029_v26 = vld [vmem:[#allocation5 + $0x28c] sm:$0xf0]  ;;  %v8862_v11 = vld [vmem:[#allocation5 + $0x508] sm:$0xf]  ;;  %v8915_v12 = vor.u32 %v12120_v3, %v8912_v4  ;;  %v8672_v3 = vld [vmem:[#allocation5 + $0x3b8] sm:$0xf0] }
  0xc8   : > { %1879 = vmatpush.bf16.msrb.mxu3 %v8803_v30  ;;  %v12023_v30 = vld [vmem:[#allocation5 + $0x264] sm:$0xf]  ;;  %v8519_v34 = vor.u32 %v12029_v26, %v8518_v25  ;;  %v8662_v25 = vld [vmem:[#allocation5 + $0x380] sm:$0xf] }
  0xc9   : > { %1838 = vmatpush.bf16.msrb.mxu0 %v8367_v36  ;;  %v8523_v36 = vor.u32 %v12023_v30, %v8520_v31  ;;  %v12059_v30 = vld [vmem:[#allocation5 + $0x384] sm:$0xf]  ;;  %v8664_v31 = vld [vmem:[#allocation5 + $0x3b0] sm:$0xf0] }
  0xca   : > { %1852 = vmatpush.bf16.msrb.mxu1 %v8751_v37  ;;  %v8470_v37 = vld [vmem:[#allocation5 + $0x200] sm:$0xf] }
  0xcb   : > { %1866 = vmatpush.bf16.msrb.mxu2 %v8371_v38  ;;  %v12017_v38 = vld [vmem:[#allocation5 + $0x22c] sm:$0xf0] }
  0xcc   : > { %1880 = vmatpush.bf16.msrb.mxu3 %v8755_v42  ;;  %v12011_v42 = vld [vmem:[#allocation5 + $0x204] sm:$0xf]  ;;  %v8471_v46 = vor.u32 %v12017_v38, %v8470_v37  ;;  %v8614_v37 = vld [vmem:[#allocation5 + $0x320] sm:$0xf]  ;;  %v12053_v38 = vld [vmem:[#allocation5 + $0x34c] sm:$0xf0] }
  0xcd   : > { %1839 = vmatpush.bf16.msrb.mxu0 %v8319_v48  ;;  %v8475_v48 = vor.u32 %v12011_v42, %v8472_v43  ;;  %v12047_v42 = vld [vmem:[#allocation5 + $0x324] sm:$0xf]  ;;  %v8616_v43 = vld [vmem:[#allocation5 + $0x350] sm:$0xf0]  ;;  %v8615_v51 = vor.u32 %v12053_v38, %v8614_v37  ;;  %v12090_v37 = vld [vmem:[#allocation5 + $0x474] sm:$0xf0] }
  0xce   : > { %1853 = vmatpush.bf16.msrb.mxu1 %v8703_v49  ;;  %v8422_v49 = vld [vmem:[#allocation5 + $0x1a0] sm:$0xf]  ;;  %v11988_v38 = vld [vmem:[#allocation5 + $0x14c] sm:$0xf] }
  0xcf   : > { %1867 = vmatpush.bf16.msrb.mxu2 %v8323_v50  ;;  %v12005_v50 = vld [vmem:[#allocation5 + $0x1cc] sm:$0xf0] }
  0xd0   : > { %1881 = vmatpush.bf16.msrb.mxu3 %v8707_v54  ;;  %v11999_v54 = vld [vmem:[#allocation5 + $0x1a4] sm:$0xf]  ;;  %v8423_v59 = vor.u32 %v12005_v50, %v8422_v49  ;;  %v12036_v49 = vld [vmem:[#allocation5 + $0x2cc] sm:$0xf]  ;;  %v8576_v50 = vld [vmem:[#allocation5 + $0x2f8] sm:$0xf0] }
  0xd1   : > { %1840 = vmatpush.bf16.msrb.mxu0 %v8271_v61  ;;  %v8427_v61 = vor.u32 %v11999_v54, %v8424_v55  ;;  %v8960_v54 = vld [vmem:[#allocation5 + $0x5f8] sm:$0xf0]  ;;  %v8619_v55 = vor.u32 %v12047_v42, %v8616_v43 }
  0xd2   : > { %1854 = vmatpush.bf16.msrb.mxu1 %v8655_v0  ;;  %v8758_v0 = vld [vmem:[#allocation5 + $0x440] sm:$0xf]  ;;  %v8963_v63 = vor.u32 %v12132_v53, %v8960_v54  ;;  %v8720_v53 = vld [vmem:[#allocation5 + $0x418] sm:$0xf0] }
  0xd3   : > { %1868 = vmatpush.bf16.msrb.mxu2 %v8275_v1  ;;  %v8811_v1 = vor.u32 %v12095_v56, %v8808_v58  ;;  %v8759_v9 = vor.u32 %v12089_v2, %v8758_v0  ;;  %v8575_v56 = vor.u32 %v12042_v45, %v8574_v44  ;;  %v12126_v0 = vld [vmem:[#allocation5 + $0x594] sm:$0xf0]  ;;  %v8528_v2 = vld [vmem:[#allocation5 + $0x298] sm:$0xf0]  ;;  %v8334_v45 = vld [vmem:[#allocation5 + $0xe8] sm:$0xf] }
  0xd4   : > { %1882 = vmatpush.bf16.msrb.mxu3 %v8659_v6  ;;  %v12083_v6 = vld [vmem:[#allocation5 + $0x444] sm:$0xf] }
  0xd5   : > { %1841 = vmatpush.bf16.msrb.mxu0 %v8223_v13  ;;  %v8710_v13 = vld [vmem:[#allocation5 + $0x3e0] sm:$0xf]  ;;  %v8763_v14 = vor.u32 %v12083_v6, %v8760_v7  ;;  %v8911_v7 = vor.u32 %v12126_v0, %v8910_v62  ;;  %v12066_v62 = vld [vmem:[#allocation5 + $0x3b4] sm:$0xf0]  ;;  %v8288_v0 = vld [vmem:[#allocation5 + $0xb8] sm:$0xf0] }
  0xd6   : > { %1855 = vmatpush.bf16.msrb.mxu1 %v8607_v17  ;;  %v8328_v17 = vld [vmem:[#allocation5 + $0x110] sm:$0xf0] }
  0xd7   : > { %1869 = vmatpush.bf16.msrb.mxu2 %v8227_v18  ;;  %v12071_v18 = vld [vmem:[#allocation5 + $0x3e4] sm:$0xf] }
  0xd8   : > { %1883 = vmatpush.bf16.msrb.mxu3 %v8611_v21  ;;  %1842 = vmatmul.bf16.vlgmr.msrb.gmra.mxu0 %v13616_v57  ;;  %v8711_v21 = vor.u32 %v12077_v15, %v8710_v13  ;;  %v8715_v26 = vor.u32 %v12071_v18, %v8712_v19  ;;  %v12114_v13 = vld [vmem:[#allocation5 + $0x534] sm:$0xf0]  ;;  %v8480_v15 = vld [vmem:[#allocation5 + $0x238] sm:$0xf0] }
  0xd9   : > { %1890 = vmatpush.bf16.msra.mxu0 %v8567_v22  ;;  %1856 = vmatmul.bf16.vlgmr.msrb.gmra.mxu1 %v13621_v5  ;;  %v8331_v22 = vor.u32 %v11975_v16, %v8328_v17  ;;  %v12108_v16 = vld [vmem:[#allocation5 + $0x50c] sm:$0xf]  ;;  %v8864_v17 = vld [vmem:[#allocation5 + $0x538] sm:$0xf0]  ;;  %v8863_v19 = vor.u32 %v12114_v13, %v8862_v11  ;;  %v8622_v11 = vld [vmem:[#allocation5 + $0x328] sm:$0xf] }
  0xda   : > { %1904 = vmatpush.bf16.msra.mxu1 %v8951_v23  ;;  %1870 = vmatmul.bf16.vlgmr.msrb.gmra.mxu2 %v13616_v57  ;;  %v8278_v23 = vld [vmem:[#allocation5 + $0x80] sm:$0xf]  ;;  %v11952_v13 = vld [vmem:[#allocation5 + $0x2c] sm:$0xf] }
  0xdb   : > { %1918 = vmatpush.bf16.msra.mxu2 %v8571_v24  ;;  %1884 = vmatmul.bf16.vlgmr.msrb.gmra.mxu3 %v13621_v5  ;;  %v11969_v24 = vld [vmem:[#allocation5 + $0xac] sm:$0xf0] }
  0xdc   : > { %1932 = vmatpush.bf16.msra.mxu3 %v8955_v28  ;;  %v11963_v28 = vld [vmem:[#allocation5 + $0x84] sm:$0xf]  ;;  %v8279_v32 = vor.u32 %v11969_v24, %v8278_v23  ;;  %v8814_v23 = vld [vmem:[#allocation5 + $0x4a8] sm:$0xf]  ;;  %v8867_v24 = vor.u32 %v12108_v16, %v8864_v17  ;;  %v12048_v16 = vld [vmem:[#allocation5 + $0x32c] sm:$0xf] }
  0xdd   : > { %1891 = vmatpush.bf16.msra.mxu0 %v8519_v34  ;;  %v11957_v34 = vld [vmem:[#allocation5 + $0x4c] sm:$0xf0]  ;;  %v8624_v17 = vld [vmem:[#allocation5 + $0x358] sm:$0xf0] }
  0xde   : > { %1905 = vmatpush.bf16.msra.mxu1 %v8903_v35  ;;  %v8663_v35 = vor.u32 %v12065_v27, %v8662_v25  ;;  %v12102_v25 = vld [vmem:[#allocation5 + $0x4d4] sm:$0xf0]  ;;  %v8432_v27 = vld [vmem:[#allocation5 + $0x1d8] sm:$0xf0] }
  0xdf   : > { %1919 = vmatpush.bf16.msra.mxu2 %v8523_v36  ;;  %v8283_v36 = vor.u32 %v11963_v28, %v8280_v29  ;;  %v12096_v28 = vld [vmem:[#allocation5 + $0x4ac] sm:$0xf]  ;;  %v8816_v29 = vld [vmem:[#allocation5 + $0x4d8] sm:$0xf0] }
  0xe0   : > { %1933 = vmatpush.bf16.msra.mxu3 %v8907_v40  ;;  %v8667_v40 = vor.u32 %v12059_v30, %v8664_v31  ;;  %v8815_v31 = vor.u32 %v12102_v25, %v8814_v23  ;;  %v12232_v23 = vld [vmem:[#allocation8 + $0x2e4] sm:$0xf0] }
  0xe1   : > { %1892 = vmatpush.bf16.msra.mxu0 %v8471_v46  ;;  %v8958_v46 = vld [vmem:[#allocation5 + $0x5c8] sm:$0xf]  ;;  %v12280_v25 = vld [vmem:[#allocation8 + $0x464] sm:$0xf0] }
  0xe2   : > { %1906 = vmatpush.bf16.msra.mxu1 %v8855_v47  ;;  %v8231_v47 = vor.u32 %v11957_v34, %v8230_v33  ;;  %v8382_v33 = vld [vmem:[#allocation5 + $0x148] sm:$0xf]  ;;  %v11994_v34 = vld [vmem:[#allocation5 + $0x174] sm:$0xf0] }
  0xe3   : > { %1920 = vmatpush.bf16.msra.mxu2 %v8475_v48  ;;  %v12138_v48 = vld [vmem:[#allocation5 + $0x5f4] sm:$0xf0]  ;;  %v8383_v42 = vor.u32 %v11994_v34, %v8382_v33 }
  0xe4   : > { %1934 = vmatpush.bf16.msra.mxu3 %v8859_v52  ;;  %v8235_v52 = vor.u32 %v11951_v39, %v8232_v41  ;;  %v8959_v58 = vor.u32 %v12138_v48, %v8958_v46  ;;  %v8384_v39 = vld [vmem:[#allocation5 + $0x178] sm:$0xf0]  ;;  %v11982_v46 = vld [vmem:[#allocation5 + $0x114] sm:$0xf0] }
  0xe5   : > { %1893 = vmatpush.bf16.msra.mxu0 %v8423_v59  ;;  %v8579_v59 = vor.u32 %v12036_v49, %v8576_v50  ;;  %v8768_v41 = vld [vmem:[#allocation5 + $0x478] sm:$0xf0]  ;;  %v8387_v44 = vor.u32 %v11988_v38, %v8384_v39  ;;  %v12078_v49 = vld [vmem:[#allocation5 + $0x414] sm:$0xf0]  ;;  %v11976_v50 = vld [vmem:[#allocation5 + $0xec] sm:$0xf]  ;;  %v8335_v54 = vor.u32 %v11982_v46, %v8334_v45 }
  0xe6   : > { %1907 = vmatpush.bf16.msra.mxu1 %v8807_v60  ;;  %v8526_v60 = vld [vmem:[#allocation5 + $0x268] sm:$0xf]  ;;  %v12226_v38 = vld [vmem:[#allocation8 + $0x2b4] sm:$0xf0]  ;;  %v9494_v39 = vld [vmem:[#allocation8 + $0x420] sm:$0xf] }
  0xe7   : > { %1921 = vmatpush.bf16.msra.mxu2 %v8427_v61  ;;  %v12030_v61 = vld [vmem:[#allocation5 + $0x294] sm:$0xf0]  ;;  %v9686_v46 = vld [vmem:[#allocation8 + $0x5a0] sm:$0xf] }
  0xe8   : > { %1935 = vmatpush.bf16.msra.mxu3 %v8811_v1  ;;  %v12024_v1 = vld [vmem:[#allocation5 + $0x26c] sm:$0xf]  ;;  %v8527_v6 = vor.u32 %v12030_v61, %v8526_v60  ;;  %v8670_v60 = vld [vmem:[#allocation5 + $0x388] sm:$0xf] }
  0xe9   : > { %1894 = vmatpush.bf16.msra.mxu0 %v8375_v8  ;;  %v8531_v8 = vor.u32 %v12024_v1, %v8528_v2  ;;  %v12060_v2 = vld [vmem:[#allocation5 + $0x38c] sm:$0xf] }
  0xea   : > { %1908 = vmatpush.bf16.msra.mxu1 %v8759_v9  ;;  %v8478_v9 = vld [vmem:[#allocation5 + $0x208] sm:$0xf] }
  0xeb   : > { %1922 = vmatpush.bf16.msra.mxu2 %v8379_v10  ;;  %v12018_v10 = vld [vmem:[#allocation5 + $0x234] sm:$0xf0] }
  0xec   : > { %1936 = vmatpush.bf16.msra.mxu3 %v8763_v14  ;;  %v12012_v14 = vld [vmem:[#allocation5 + $0x20c] sm:$0xf]  ;;  %v8479_v18 = vor.u32 %v12018_v10, %v8478_v9  ;;  %v8671_v9 = vor.u32 %v12066_v62, %v8670_v60  ;;  %v9662_v62 = vld [vmem:[#allocation8 + $0x570] sm:$0xf] }
  0xed   : > { %1895 = vmatpush.bf16.msra.mxu0 %v8327_v20  ;;  %v8483_v20 = vor.u32 %v12012_v14, %v8480_v15  ;;  %v8675_v14 = vor.u32 %v12060_v2, %v8672_v3  ;;  %v8240_v15 = vld [vmem:[#allocation5 + $0x58] sm:$0xf0]  ;;  %v9062_v3 = vld [vmem:[#allocation8 + $0xc0] sm:$0xf] }
  0xee   : > { %1909 = vmatpush.bf16.msra.mxu1 %v8711_v21  ;;  %v8430_v21 = vld [vmem:[#allocation5 + $0x1a8] sm:$0xf] }
  0xef   : > { %1923 = vmatpush.bf16.msra.mxu2 %v8331_v22  ;;  %v12006_v22 = vld [vmem:[#allocation5 + $0x1d4] sm:$0xf0] }
  0xf0   : > { %1937 = vmatpush.bf16.msra.mxu3 %v8715_v26  ;;  %v12000_v26 = vld [vmem:[#allocation5 + $0x1ac] sm:$0xf]  ;;  %v8431_v30 = vor.u32 %v12006_v22, %v8430_v21 }
  0xf1   : > { %1896 = vmatpush.bf16.msra.mxu0 %v8279_v32  ;;  %v8435_v32 = vor.u32 %v12000_v26, %v8432_v27 }
  0xf2   : > { %1910 = vmatpush.bf16.msra.mxu1 %v8663_v35  ;;  %v8766_v35 = vld [vmem:[#allocation5 + $0x448] sm:$0xf] }
  0xf3   : > { %1924 = vmatpush.bf16.msra.mxu2 %v8283_v36  ;;  %v8819_v36 = vor.u32 %v12096_v28, %v8816_v29  ;;  %v8767_v43 = vor.u32 %v12090_v37, %v8766_v35  ;;  %v8243_v28 = vor.u32 %v11952_v13, %v8240_v15  ;;  %v8627_v29 = vor.u32 %v12048_v16, %v8624_v17  ;;  %v9110_v35 = vld [vmem:[#allocation8 + $0x120] sm:$0xf]  ;;  %v12310_v15 = vld [vmem:[#allocation8 + $0x554] sm:$0xf0] }
  0xf4   : > { %1938 = vmatpush.bf16.msra.mxu3 %v8667_v40  ;;  %v12084_v40 = vld [vmem:[#allocation5 + $0x44c] sm:$0xf] }
  0xf5   : > { %1897 = vmatpush.bf16.msra.mxu0 %v8231_v47  ;;  %v8718_v47 = vld [vmem:[#allocation5 + $0x3e8] sm:$0xf]  ;;  %v8771_v48 = vor.u32 %v12084_v40, %v8768_v41  ;;  %v13642_v1 = vpop.f32.mrf.mxu0  ;;  %v9302_v37 = vld [vmem:[#allocation8 + $0x2a0] sm:$0xf]  ;;  %v12274_v40 = vld [vmem:[#allocation8 + $0x434] sm:$0xf0] }
  0xf6   : > { %1911 = vmatpush.bf16.msra.mxu1 %v8615_v51  ;;  %v8336_v51 = vld [vmem:[#allocation5 + $0x118] sm:$0xf0]  ;;  %v13644_v4 = vpop.f32.mrf.mxu1 }
  0xf7   : > { %1925 = vmatpush.bf16.msra.mxu2 %v8235_v52  ;;  %v12072_v52 = vld [vmem:[#allocation5 + $0x3ec] sm:$0xf] }
  0xf8   : > { %1939 = vmatpush.bf16.msra.mxu3 %v8619_v55  ;;  %1898 = vmatmul.bf16.vlgmr.msra.gmra.mxu0 %v13616_v57  ;;  %v8719_v55 = vor.u32 %v12078_v49, %v8718_v47  ;;  %v8723_v61 = vor.u32 %v12072_v52, %v8720_v53  ;;  %v12322_v47 = vld [vmem:[#allocation8 + $0x5b4] sm:$0xf0]  ;;  %v9495_v49 = vor.u32 %v12274_v40, %v9494_v39  ;;  %v9278_v52 = vld [vmem:[#allocation8 + $0x270] sm:$0xf]  ;;  %v12220_v53 = vld [vmem:[#allocation8 + $0x284] sm:$0xf0] }
  0xf9   : > { %1946 = vmatpush.bf16.msrb.mxu0 %v8575_v56  ;;  %1912 = vmatmul.bf16.vlgmr.msra.gmra.mxu1 %v13621_v5  ;;  %v8339_v56 = vor.u32 %v11976_v50, %v8336_v51  ;;  %v9086_v50 = vld [vmem:[#allocation8 + $0xf0] sm:$0xf]  ;;  %v12172_v51 = vld [vmem:[#allocation8 + $0x104] sm:$0xf0]  ;;  %v9398_v40 = vld [vmem:[#allocation8 + $0x360] sm:$0xf] }
  0xfa   : > { %1960 = vmatpush.bf16.msrb.mxu1 %v8959_v58  ;;  %1926 = vmatmul.bf16.vlgmr.msra.gmra.mxu2 %v13616_v57  ;;  %v8286_v58 = vld [vmem:[#allocation5 + $0x88] sm:$0xf]  ;;  %v9087_v60 = vor.u32 %v12172_v51, %v9086_v50 }
  0xfb   : > { %1974 = vmatpush.bf16.msrb.mxu2 %v8579_v59  ;;  %1940 = vmatmul.bf16.vlgmr.msra.gmra.mxu3 %v13621_v5  ;;  %v11970_v59 = vld [vmem:[#allocation5 + $0xb4] sm:$0xf0] }
  0xfc   : > { %1988 = vmatpush.bf16.msrb.mxu3 %v8963_v63  ;;  %v11964_v63 = vld [vmem:[#allocation5 + $0x8c] sm:$0xf] }
  0xfd   : > { %1947 = vmatpush.bf16.msrb.mxu0 %v8527_v6  ;;  %v8287_v6 = vor.u32 %v11970_v59, %v8286_v58  ;;  %v8291_v10 = vor.u32 %v11964_v63, %v8288_v0  ;;  %v13646_v21 = vpop.f32.mrf.mxu2  ;;  %v13650_v41 = vpop.f32.mrf.mxu0  ;;  %v9687_v59 = vor.u32 %v12322_v47, %v9686_v46  ;;  %v12316_v63 = vld [vmem:[#allocation8 + $0x584] sm:$0xf0]  ;;  %v9279_v0 = vor.u32 %v12220_v53, %v9278_v52  ;;  %v9590_v53 = vld [vmem:[#allocation8 + $0x4e0] sm:$0xf] }
  0xfe   : > { %1961 = vmatpush.bf16.msrb.mxu1 %v8911_v7  ;;  %v8238_v7 = vld [vmem:[#allocation5 + $0x28] sm:$0xf]  ;;  %v13648_v26 = vpop.f32.mrf.mxu3 }
  0xff   : > { %1975 = vmatpush.bf16.msrb.mxu2 %v8531_v8  ;;  %v11958_v8 = vld [vmem:[#allocation5 + $0x54] sm:$0xf0] }
 0x100   : > { %1989 = vmatpush.bf16.msrb.mxu3 %v8915_v12  ;;  %v12054_v12 = vld [vmem:[#allocation5 + $0x354] sm:$0xf0]  ;;  %v8239_v22 = vor.u32 %v11958_v8, %v8238_v7  ;;  %v9446_v7 = vld [vmem:[#allocation8 + $0x3c0] sm:$0xf]  ;;  %v12262_v8 = vld [vmem:[#allocation8 + $0x3d4] sm:$0xf0] }
 0x101   : > { %1948 = vmatpush.bf16.msrb.mxu0 %v8479_v18  ;;  %v9134_v18 = vld [vmem:[#allocation8 + $0x150] sm:$0xf]  ;;  %v8623_v27 = vor.u32 %v12054_v12, %v8622_v11  ;;  %v9663_v11 = vor.u32 %v12316_v63, %v9662_v62  ;;  %v9447_v17 = vor.u32 %v12262_v8, %v9446_v7  ;;  %v12196_v63 = vld [vmem:[#allocation8 + $0x1c4] sm:$0xf0] }
 0x102   : > { %1962 = vmatpush.bf16.msrb.mxu1 %v8863_v19  ;;  %v12184_v19 = vld [vmem:[#allocation8 + $0x164] sm:$0xf0]  ;;  %v9182_v62 = vld [vmem:[#allocation8 + $0x1b0] sm:$0xf] }
 0x103   : > { %1976 = vmatpush.bf16.msrb.mxu2 %v8483_v20  ;;  %v9326_v20 = vld [vmem:[#allocation8 + $0x2d0] sm:$0xf] }
 0x104   : > { %1990 = vmatpush.bf16.msrb.mxu3 %v8867_v24  ;;  %v9518_v24 = vld [vmem:[#allocation8 + $0x450] sm:$0xf]  ;;  %v9327_v33 = vor.u32 %v12232_v23, %v9326_v20  ;;  %v12160_v20 = vld [vmem:[#allocation8 + $0xa4] sm:$0xf0] }
 0x105   : > { %1949 = vmatpush.bf16.msrb.mxu0 %v8431_v30  ;;  %v9135_v30 = vor.u32 %v12184_v19, %v9134_v18  ;;  %v9519_v34 = vor.u32 %v12280_v25, %v9518_v24  ;;  %v9038_v19 = vld [vmem:[#allocation8 + $0x90] sm:$0xf]  ;;  %v12208_v23 = vld [vmem:[#allocation8 + $0x224] sm:$0xf0] }
 0x106   : > { %1963 = vmatpush.bf16.msrb.mxu1 %v8815_v31  ;;  %v9710_v31 = vld [vmem:[#allocation8 + $0x5d0] sm:$0xf]  ;;  %v12256_v25 = vld [vmem:[#allocation8 + $0x3a4] sm:$0xf0] }
 0x107   : > { %1977 = vmatpush.bf16.msrb.mxu2 %v8435_v32  ;;  %v12328_v32 = vld [vmem:[#allocation8 + $0x5e4] sm:$0xf0]  ;;  %v9422_v24 = vld [vmem:[#allocation8 + $0x390] sm:$0xf] }
 0x108   : > { %1991 = vmatpush.bf16.msrb.mxu3 %v8819_v36  ;;  %v12178_v36 = vld [vmem:[#allocation8 + $0x134] sm:$0xf0] }
 0x109   : > { %1950 = vmatpush.bf16.msrb.mxu0 %v8383_v42  ;;  %v13652_v42 = vpop.f32.mrf.mxu1  ;;  %v9111_v45 = vor.u32 %v12178_v36, %v9110_v35  ;;  %v9423_v35 = vor.u32 %v12256_v25, %v9422_v24 }
 0x10a   : > { %1964 = vmatpush.bf16.msrb.mxu1 %v8767_v43  ;;  %v13654_v43 = vld [vmem:[#allocation7] sm:$0xff] }
 0x10b   : > { %1978 = vmatpush.bf16.msrb.mxu2 %v8387_v44  ;;  %v9711_v44 = vor.u32 %v12328_v32, %v9710_v31  ;;  %v682_v58 = vperm.slane %v13654_v43, 0  ;;  %v9614_v31 = vld [vmem:[#allocation8 + $0x510] sm:$0xf]  ;;  %v12304_v32 = vld [vmem:[#allocation8 + $0x524] sm:$0xf0]  ;;  %v685_v46 = vperm.slane %v13654_v43, 3 }
 0x10c   : > { %1992 = vmatpush.bf16.msrb.mxu3 %v8771_v48  ;;  %v9303_v48 = vor.u32 %v12226_v38, %v9302_v37  ;;  %v12154_v37 = vld [vmem:[#allocation8 + $0x74] sm:$0xf0]  ;;  %v9206_v38 = vld [vmem:[#allocation8 + $0x1e0] sm:$0xf]  ;;  %v9615_v47 = vor.u32 %v12304_v32, %v9614_v31 }
 0x10d   : > { %1951 = vmatpush.bf16.msrb.mxu0 %v8335_v54  ;;  %v9470_v54 = vld [vmem:[#allocation8 + $0x3f0] sm:$0xf] }
 0x10e   : > { %1965 = vmatpush.bf16.msrb.mxu1 %v8719_v55  ;;  %v12268_v55 = vld [vmem:[#allocation8 + $0x404] sm:$0xf0] }
 0x10f   : > { %1979 = vmatpush.bf16.msrb.mxu2 %v8339_v56  ;;  %v13660_v56 = vpop.f32.mrf.mxu2  ;;  %v9471_v2 = vor.u32 %v12268_v55, %v9470_v54  ;;  %v12298_v54 = vld [vmem:[#allocation8 + $0x4f4] sm:$0xf0] }
 0x110   : > { %1993 = vmatpush.bf16.msrb.mxu3 %v8723_v61  ;;  %v13663_v61 = vpop.f32.mrf.mxu3 }
 0x111   : > { %1952 = vmatpush.bf16.msrb.mxu0 %v8287_v6  ;;  %v9254_v6 = vld [vmem:[#allocation8 + $0x240] sm:$0xf] }
 0x112   : > { %1966 = vmatpush.bf16.msrb.mxu1 %v8671_v9  ;;  %v683_v9 = vperm.slane %v13654_v43, 1 }
 0x113   : > { %1980 = vmatpush.bf16.msrb.mxu2 %v8291_v10  ;;  %v1676_v10 = vadd.f32 %v13642_v1, %v682_v58 }
 0x114   : > { %1994 = vmatpush.bf16.msrb.mxu3 %v8675_v14  ;;  %v9638_v14 = vld [vmem:[#allocation8 + $0x540] sm:$0xf]  ;;  %v1704_v1 = vadd.f32 %v13646_v21, %v683_v9  ;;  %v12202_v21 = vld [vmem:[#allocation8 + $0x1f4] sm:$0xf0]  ;;  %v1706_v55 = vadd.f32 %v13660_v56, %v683_v9  ;;  %v9566_v9 = vld [vmem:[#allocation8 + $0x4b0] sm:$0xf] }
 0x115   : > { %1953 = vmatpush.bf16.msrb.mxu0 %v8239_v22  ;;  %v1731_v13 = vpop.f32.mrf.mxu0  ;;  %v9230_v22 = vld [vmem:[#allocation8 + $0x210] sm:$0xf]  ;;  %v9207_v51 = vor.u32 %v12202_v21, %v9206_v38  ;;  %v9542_v21 = vld [vmem:[#allocation8 + $0x480] sm:$0xf] }
 0x116   : > { %1967 = vmatpush.bf16.msrb.mxu1 %v8623_v27  ;;  %v1745_v18 = vpop.f32.mrf.mxu1  ;;  %v684_v27 = vperm.slane %v13654_v43, 2 }
 0x117   : > { %1981 = vmatpush.bf16.msrb.mxu2 %v8243_v28  ;;  %v13670_v28 = vadd.f32 %v13644_v4, %v1676_v10  ;;  %v13673_v4 = vadd.f32 %v13648_v26, %v1704_v1  ;;  %v12292_v10 = vld [vmem:[#allocation8 + $0x4c4] sm:$0xf0] }
 0x118   : > { %1995 = vmatpush.bf16.msrb.mxu3 %v8627_v29  ;;  %1954 = vmatmul.bf16.vlgmr.msrb.gmra.mxu0 %v13616_v57  ;;  %v9639_v29 = vor.u32 %v12310_v15, %v9638_v14  ;;  %v9567_v25 = vor.u32 %v12292_v10, %v9566_v9  ;;  %v12376_v1 = vld [vmem:[#allocation8 + $0x764] sm:$0xf0]  ;;  %v9830_v10 = vld [vmem:[#allocation8 + $0x6c0] sm:$0xf] }
 0x119   : > { %5508 = vmatpush.bf16.msra.mxu0 %v9135_v30  ;;  %1968 = vmatmul.bf16.vlgmr.msrb.gmra.mxu1 %v13621_v5  ;;  %v9039_v30 = vor.u32 %v12160_v20, %v9038_v19 }
 0x11a   : > { %5522 = vmatpush.bf16.msra.mxu1 %v9327_v33  ;;  %1982 = vmatmul.bf16.vlgmr.msrb.gmra.mxu2 %v13616_v57  ;;  %v12166_v57 = vld [vmem:[#allocation8 + $0xd4] sm:$0xf0]  ;;  %v9014_v33 = vld [vmem:[#allocation8 + $0x60] sm:$0xf] }
 0x11b   : > { %5536 = vmatpush.bf16.msra.mxu2 %v9519_v34  ;;  %1996 = vmatmul.bf16.vlgmr.msrb.gmra.mxu3 %v13621_v5  ;;  %v12214_v5 = vld [vmem:[#allocation8 + $0x254] sm:$0xf0]  ;;  %v9063_v12 = vor.u32 %v12166_v57, %v9062_v3  ;;  %v9231_v34 = vor.u32 %v12208_v23, %v9230_v22  ;;  %v9015_v50 = vor.u32 %v12154_v37, %v9014_v33  ;;  %v2003_v3 = vmax.f32 %v13673_v4, 0.0  ;;  %v9902_v23 = vld [vmem:[#allocation8 + $0x750] sm:$0xf] }
 0x11c   : > { %5550 = vmatpush.bf16.msra.mxu3 %v9711_v44  ;;  %v9255_v16 = vor.u32 %v12214_v5, %v9254_v6  ;;  %v12250_v44 = vld [vmem:[#allocation8 + $0x374] sm:$0xf0]  ;;  %v9591_v5 = vor.u32 %v12298_v54, %v9590_v53  ;;  %v10286_v33 = vld [vmem:[#allocation8 + $0xa50] sm:$0xf]  ;;  %v10262_v53 = vld [vmem:[#allocation8 + $0xa20] sm:$0xf] }
 0x11d   : > { %5509 = vmatpush.bf16.msra.mxu0 %v9111_v45  ;;  %v1759_v36 = vpop.f32.mrf.mxu2  ;;  %v1678_v45 = vadd.f32 %v13650_v41, %v682_v58  ;;  %v1733_v52 = vpop.f32.mrf.mxu0  ;;  %v9399_v26 = vor.u32 %v12250_v44, %v9398_v40  ;;  %v8990_v58 = vld [vmem:[#allocation8 + $0x30] sm:$0xf]  ;;  %v12238_v22 = vld [vmem:[#allocation8 + $0x314] sm:$0xf0]  ;;  %v9903_v40 = vor.u32 %v12376_v1, %v9902_v23  ;;  %v12460_v4 = vld [vmem:[#allocation8 + $0xa04] sm:$0xf0] }
 0x11e   : > { %5523 = vmatpush.bf16.msra.mxu1 %v9303_v48  ;;  %v1773_v39 = vpop.f32.mrf.mxu3  ;;  %v2002_v48 = vmax.f32 %v13670_v28, 0.0  ;;  %v1747_v41 = vpop.f32.mrf.mxu1  ;;  %v1760_v6 = vadd.f32 %v1759_v36, %v685_v46  ;;  %v9806_v23 = vld [vmem:[#allocation8 + $0x690] sm:$0xf] }
 0x11f   : > { %5537 = vmatpush.bf16.msra.mxu2 %v9495_v49  ;;  %v1732_v49 = vadd.f32 %v1731_v13, %v684_v27  ;;  %v13681_v57 = vadd.f32 %v13652_v42, %v1678_v45  ;;  %v9183_v13 = vor.u32 %v12196_v63, %v9182_v62  ;;  %v9158_v42 = vld [vmem:[#allocation8 + $0x180] sm:$0xf]  ;;  %v9998_v1 = vld [vmem:[#allocation8 + $0x810] sm:$0xf] }
 0x120   : > { %5551 = vmatpush.bf16.msra.mxu3 %v9687_v59  ;;  %v1734_v59 = vadd.f32 %v1733_v52, %v684_v27  ;;  %v1774_v24 = vadd.f32 %v1773_v39, %v1760_v6  ;;  %v10094_v27 = vld [vmem:[#allocation8 + $0x8d0] sm:$0xf]  ;;  %v12286_v39 = vld [vmem:[#allocation8 + $0x494] sm:$0xf0]  ;;  %v9878_v45 = vld [vmem:[#allocation8 + $0x720] sm:$0xf] }
 0x121   : > { %5510 = vmatpush.bf16.msra.mxu0 %v9087_v60  ;;  %v12148_v60 = vld [vmem:[#allocation8 + $0x44] sm:$0xf0]  ;;  %v1746_v7 = vadd.f32 %v1745_v18, %v1732_v49  ;;  %v9350_v18 = vld [vmem:[#allocation8 + $0x300] sm:$0xf] }
 0x122   : > { %5524 = vmatpush.bf16.msra.mxu1 %v9279_v0  ;;  %v9374_v0 = vld [vmem:[#allocation8 + $0x330] sm:$0xf]  ;;  %v1748_v56 = vadd.f32 %v1747_v41, %v1734_v59  ;;  %v8991_v8 = vor.u32 %v12148_v60, %v8990_v58  ;;  %v9351_v38 = vor.u32 %v12238_v22, %v9350_v18  ;;  %v2005_v49 = vmax.f32 %v1774_v24, 0.0  ;;  %v12520_v59 = vld [vmem:[#allocation8 + $0xbe4] sm:$0xf0] }
 0x123   : > { %5538 = vmatpush.bf16.msra.mxu2 %v9471_v2  ;;  %v12244_v2 = vld [vmem:[#allocation8 + $0x344] sm:$0xf0]  ;;  %v9543_v58 = vor.u32 %v12286_v39, %v9542_v21  ;;  %v12346_v21 = vld [vmem:[#allocation8 + $0x674] sm:$0xf0] }
 0x124   : > { %5552 = vmatpush.bf16.msra.mxu3 %v9663_v11  ;;  %v8966_v11 = vld [vmem:[#allocation8] sm:$0xf]  ;;  %v9375_v14 = vor.u32 %v12244_v2, %v9374_v0  ;;  %v9854_v0 = vld [vmem:[#allocation8 + $0x6f0] sm:$0xf]  ;;  %v12364_v2 = vld [vmem:[#allocation8 + $0x704] sm:$0xf0] }
 0x125   : > { %5511 = vmatpush.bf16.msra.mxu0 %v9063_v12  ;;  %v1720_v12 = vadd.f32 %v13663_v61, %v1706_v55  ;;  %v1761_v15 = vpop.f32.mrf.mxu2  ;;  %v2016_v61 = vmax.f32 %v1748_v56, 0.0  ;;  %v12466_v55 = vld [vmem:[#allocation8 + $0xa34] sm:$0xf0]  ;;  %v12412_v6 = vld [vmem:[#allocation8 + $0x884] sm:$0xf0] }
 0x126   : > { %5525 = vmatpush.bf16.msra.mxu1 %v9255_v16  ;;  %v12142_v16 = vld [vmem:[#allocation8 + $0x14] sm:$0xf0]  ;;  %v1762_v19 = vadd.f32 %v1761_v15, %v685_v46  ;;  %v1775_v20 = vpop.f32.mrf.mxu3  ;;  %v10263_v28 = vor.u32 %v12466_v55, %v10262_v53  ;;  %v12352_v24 = vld [vmem:[#allocation8 + $0x6a4] sm:$0xf0] }
 0x127   : > { %5539 = vmatpush.bf16.msra.mxu2 %v9447_v17  ;;  %v12190_v17 = vld [vmem:[#allocation8 + $0x194] sm:$0xf0]  ;;  %v8967_v32 = vor.u32 %v12142_v16, %v8966_v11  ;;  %v2015_v36 = vmax.f32 %v1720_v12, 0.0  ;;  %v10022_v12 = vld [vmem:[#allocation8 + $0x840] sm:$0xf] }
 0x128   : > { %5553 = vmatpush.bf16.msra.mxu3 %v9639_v29  ;;  %v12424_v29 = vld [vmem:[#allocation8 + $0x8e4] sm:$0xf0]  ;;  %v1776_v31 = vadd.f32 %v1775_v20, %v1762_v19  ;;  %v9159_v37 = vor.u32 %v12190_v17, %v9158_v42  ;;  %v12370_v46 = vld [vmem:[#allocation8 + $0x734] sm:$0xf0]  ;;  %v10214_v16 = vld [vmem:[#allocation8 + $0x9c0] sm:$0xf] }
 0x129   : > { %5512 = vmatpush.bf16.msra.mxu0 %v9039_v30  ;;  %v2004_v30 = vmax.f32 %v1746_v7, 0.0  ;;  %v10095_v44 = vor.u32 %v12424_v29, %v10094_v27  ;;  %v13693_v60 = vpack.c.bf16 %v2015_v36, %v2003_v3  ;;  %v9879_v62 = vor.u32 %v12370_v46, %v9878_v45  ;;  %v10454_v3 = vld [vmem:[#allocation8 + $0xba0] sm:$0xf]  ;;  %v12514_v56 = vld [vmem:[#allocation8 + $0xbb4] sm:$0xf0] }
 0x12a   : > { %5526 = vmatpush.bf16.msra.mxu1 %v9231_v34  ;;  %v12472_v34 = vld [vmem:[#allocation8 + $0xa64] sm:$0xf0]  ;;  %v12358_v11 = vld [vmem:[#allocation8 + $0x6d4] sm:$0xf0]  ;;  %v10455_v15 = vor.u32 %v12514_v56, %v10454_v3  ;;  %v10430_v17 = vld [vmem:[#allocation8 + $0xb70] sm:$0xf] }
 0x12b   : > { %5540 = vmatpush.bf16.msra.mxu2 %v9423_v35  ;;  %v2014_v35 = vmax.f32 %v13681_v57, 0.0  ;;  %v10287_v52 = vor.u32 %v12472_v34, %v10286_v33  ;;  %v13685_v54 = vpack.c.bf16 %v2016_v61, %v2004_v30  ;;  %v10046_v57 = vld [vmem:[#allocation8 + $0x870] sm:$0xf]  ;;  %v12454_v42 = vld [vmem:[#allocation8 + $0x9d4] sm:$0xf0]  ;;  %v9831_v20 = vor.u32 %v12358_v11, %v9830_v10 }
 0x12c   : > { %5554 = vmatpush.bf16.msra.mxu3 %v9615_v47  ;;  %v10070_v47 = vld [vmem:[#allocation8 + $0x8a0] sm:$0xf]  ;;  %v10047_v9 = vor.u32 %v12412_v6, %v10046_v57  ;;  %v12508_v19 = vld [vmem:[#allocation8 + $0xb84] sm:$0xf0]  ;;  %v10215_v29 = vor.u32 %v12454_v42, %v10214_v16  ;;  %v10190_v61 = vld [vmem:[#allocation8 + $0x990] sm:$0xf] }
 0x12d   : > { %5513 = vmatpush.bf16.msra.mxu0 %v9015_v50  ;;  %v2017_v50 = vmax.f32 %v1776_v31, 0.0  ;;  %v13689_v41 = vpack.c.bf16 %v2014_v35, %v2002_v48  ;;  %v12400_v27 = vld [vmem:[#allocation8 + $0x824] sm:$0xf0]  ;;  %v10431_v30 = vor.u32 %v12508_v19, %v10430_v17  ;;  %v12502_v33 = vld [vmem:[#allocation8 + $0xb54] sm:$0xf0]  ;;  %v686_v34 = vperm.slane %v13654_v43, 4 }
 0x12e   : > { %5527 = vmatpush.bf16.msra.mxu1 %v9207_v51  ;;  %v12418_v51 = vld [vmem:[#allocation8 + $0x8b4] sm:$0xf0]  ;;  %v12448_v31 = vld [vmem:[#allocation8 + $0x9a4] sm:$0xf0]  ;;  %v9807_v35 = vor.u32 %v12352_v24, %v9806_v23  ;;  %v687_v36 = vperm.slane %v13654_v43, 5 }
 0x12f   : > { %5541 = vmatpush.bf16.msra.mxu2 %v9399_v26  ;;  %v10478_v26 = vld [vmem:[#allocation8 + $0xbd0] sm:$0xf]  ;;  %v10071_v63 = vor.u32 %v12418_v51, %v10070_v47  ;;  %v13696_v7 = vpack.c.bf16 %v2017_v50, %v2005_v49  ;;  %v10191_v45 = vor.u32 %v12448_v31, %v10190_v61  ;;  %v10166_v47 = vld [vmem:[#allocation8 + $0x960] sm:$0xf]  ;;  %v12442_v50 = vld [vmem:[#allocation8 + $0x974] sm:$0xf0] }
 0x130   : > { %5555 = vmatpush.bf16.msra.mxu3 %v9591_v5  ;;  %v10479_v48 = vor.u32 %v12520_v59, %v10478_v26  ;;  %v10238_v5 = vld [vmem:[#allocation8 + $0x9f0] sm:$0xf]  ;;  %v12388_v6 = vld [vmem:[#allocation8 + $0x7c4] sm:$0xf0]  ;;  %v10358_v3 = vld [vmem:[#allocation8 + $0xae0] sm:$0xf] }
 0x131   : > { %5514 = vmatpush.bf16.msra.mxu0 %v8991_v8  ;;  %v9855_v8 = vor.u32 %v12364_v2, %v9854_v0  ;;  %v10382_v51 = vld [vmem:[#allocation8 + $0xb10] sm:$0xf]  ;;  %v12490_v56 = vld [vmem:[#allocation8 + $0xaf4] sm:$0xf0]  ;;  %v9734_v10 = vld [vmem:[#allocation8 + $0x600] sm:$0xf] }
 0x132   : > { %5528 = vmatpush.bf16.msra.mxu1 %v9183_v13  ;;  %v12406_v13 = vld [vmem:[#allocation8 + $0x854] sm:$0xf0]  ;;  %v9950_v57 = vld [vmem:[#allocation8 + $0x7b0] sm:$0xf]  ;;  %v12568_v16 = vld [vmem:[#allocation8 + $0xd64] sm:$0xf0] }
 0x133   : > { %5542 = vmatpush.bf16.msra.mxu2 %v9375_v14  ;;  %v10239_v14 = vor.u32 %v12460_v4, %v10238_v5  ;;  %v10023_v22 = vor.u32 %v12406_v13, %v10022_v12  ;;  %v10142_v5 = vld [vmem:[#allocation8 + $0x930] sm:$0xf]  ;;  %v12436_v4 = vld [vmem:[#allocation8 + $0x944] sm:$0xf0]  ;;  %v9951_v13 = vor.u32 %v12388_v6, %v9950_v57  ;;  %v9926_v17 = vld [vmem:[#allocation8 + $0x780] sm:$0xf] }
 0x134   : > { %5556 = vmatpush.bf16.msra.mxu3 %v9567_v25  ;;  %v12382_v19 = vld [vmem:[#allocation8 + $0x794] sm:$0xf0]  ;;  %v10334_v61 = vld [vmem:[#allocation8 + $0xab0] sm:$0xf]  ;;  %v12484_v31 = vld [vmem:[#allocation8 + $0xac4] sm:$0xf0] }
 0x135   : > { %5515 = vmatpush.bf16.msra.mxu0 %v8967_v32  ;;  %v1787_v18 = vpop.f32.mrf.mxu0  ;;  %v10406_v32 = vld [vmem:[#allocation8 + $0xb40] sm:$0xf]  ;;  %v12556_v57 = vld [vmem:[#allocation8 + $0xd04] sm:$0xf0]  ;;  %v10814_v6 = vld [vmem:[#allocation8 + $0xe70] sm:$0xf] }
 0x136   : > { %5529 = vmatpush.bf16.msra.mxu1 %v9159_v37  ;;  %v1801_v25 = vpop.f32.mrf.mxu1  ;;  %v9999_v37 = vor.u32 %v12400_v27, %v9998_v1  ;;  %v10407_v46 = vor.u32 %v12502_v33, %v10406_v32  ;;  %v1788_v53 = vadd.f32 %v1787_v18, %v686_v34  ;;  %v10143_v18 = vor.u32 %v12436_v4, %v10142_v5  ;;  %v10118_v1 = vld [vmem:[#allocation8 + $0x900] sm:$0xf]  ;;  %v12430_v27 = vld [vmem:[#allocation8 + $0x914] sm:$0xf0] }
 0x137   : > { %5543 = vmatpush.bf16.msra.mxu2 %v9351_v38  ;;  %v9782_v38 = vld [vmem:[#allocation8 + $0x660] sm:$0xf] }
 0x138   : > { %5516 = vmatmul.bf16.vlgmr.msra.gmra.mxu0 %v13689_v41  ;;  %5557 = vmatpush.bf16.msra.mxu3 %v9543_v58  ;;  %v9783_v26 = vor.u32 %v12346_v21, %v9782_v38  ;;  %v12562_v21 = vld [vmem:[#allocation8 + $0xd34] sm:$0xf0]  ;;  %v10598_v4 = vld [vmem:[#allocation8 + $0xcc0] sm:$0xf] }
 0x139   : > { %5564 = vmatpush.bf16.msrb.mxu0 %v9903_v40  ;;  %5530 = vmatmul.bf16.vlgmr.msra.gmra.mxu1 %v13693_v60  ;;  %v9974_v40 = vld [vmem:[#allocation8 + $0x7e0] sm:$0xf] }
 0x13a   : > { %5578 = vmatpush.bf16.msrb.mxu1 %v10095_v44  ;;  %5544 = vmatmul.bf16.vlgmr.msra.gmra.mxu2 %v13685_v54  ;;  %v12394_v44 = vld [vmem:[#allocation8 + $0x7f4] sm:$0xf0] }
 0x13b   : > { %5592 = vmatpush.bf16.msrb.mxu2 %v10287_v52  ;;  %5558 = vmatmul.bf16.vlgmr.msra.gmra.mxu3 %v13696_v7  ;;  %v12496_v52 = vld [vmem:[#allocation8 + $0xb24] sm:$0xf0]  ;;  %v9975_v58 = vor.u32 %v12394_v44, %v9974_v40 }
 0x13c   : > { %5606 = vmatpush.bf16.msrb.mxu3 %v10479_v48  ;;  %v10383_v48 = vor.u32 %v12496_v52, %v10382_v51  ;;  %v12664_v40 = vld [vmem:[#allocation8 + $0x1064] sm:$0xf0]  ;;  %v10310_v51 = vld [vmem:[#allocation8 + $0xa80] sm:$0xf]  ;;  %v12478_v52 = vld [vmem:[#allocation8 + $0xa94] sm:$0xf0] }
 0x13d   : > { %5565 = vmatpush.bf16.msrb.mxu0 %v9879_v62  ;;  %v1815_v39 = vpop.f32.mrf.mxu2  ;;  %v1789_v59 = vpop.f32.mrf.mxu0  ;;  %v9758_v62 = vld [vmem:[#allocation8 + $0x630] sm:$0xf] }
 0x13e   : > { %5579 = vmatpush.bf16.msrb.mxu1 %v10071_v63  ;;  %v1829_v49 = vpop.f32.mrf.mxu3  ;;  %v1816_v55 = vadd.f32 %v1815_v39, %v687_v36  ;;  %v12340_v63 = vld [vmem:[#allocation8 + $0x644] sm:$0xf0]  ;;  %v1790_v0 = vadd.f32 %v1789_v59, %v686_v34  ;;  %v1803_v2 = vpop.f32.mrf.mxu1  ;;  %v11030_v59 = vld [vmem:[#allocation8 + $0x1020] sm:$0xf] }
 0x13f   : > { %5593 = vmatpush.bf16.msrb.mxu2 %v10263_v28  ;;  %v10167_v28 = vor.u32 %v12442_v50, %v10166_v47  ;;  %v9759_v12 = vor.u32 %v12340_v63, %v9758_v62  ;;  %v10119_v47 = vor.u32 %v12430_v27, %v10118_v1  ;;  %v12658_v63 = vld [vmem:[#allocation8 + $0x1034] sm:$0xf0]  ;;  %v12700_v1 = vld [vmem:[#allocation8 + $0x1184] sm:$0xf0] }
 0x140   : > { %5607 = vmatpush.bf16.msrb.mxu3 %v10455_v15  ;;  %v1830_v11 = vadd.f32 %v1829_v49, %v1816_v55  ;;  %v10670_v15 = vld [vmem:[#allocation8 + $0xd50] sm:$0xf]  ;;  %v10335_v49 = vor.u32 %v12484_v31, %v10334_v61  ;;  %v12592_v61 = vld [vmem:[#allocation8 + $0xe24] sm:$0xf0] }
 0x141   : > { %5566 = vmatpush.bf16.msrb.mxu0 %v9855_v8  ;;  %v1802_v8 = vadd.f32 %v1801_v25, %v1788_v53  ;;  %v12616_v25 = vld [vmem:[#allocation8 + $0xee4] sm:$0xf0]  ;;  %v10671_v38 = vor.u32 %v12568_v16, %v10670_v15  ;;  %v10622_v55 = vld [vmem:[#allocation8 + $0xcf0] sm:$0xf]  ;;  %v12598_v15 = vld [vmem:[#allocation8 + $0xe54] sm:$0xf0] }
 0x142   : > { %5580 = vmatpush.bf16.msrb.mxu1 %v10047_v9  ;;  %v1804_v9 = vadd.f32 %v1803_v2, %v1790_v0  ;;  %v2007_v32 = vmax.f32 %v1830_v11, 0.0  ;;  %v11246_v0 = vld [vmem:[#allocation8 + $0x11d0] sm:$0xf]  ;;  %v12712_v2 = vld [vmem:[#allocation8 + $0x11e4] sm:$0xf0] }
 0x143   : > { %5594 = vmatpush.bf16.msrb.mxu2 %v10239_v14  ;;  %v12334_v14 = vld [vmem:[#allocation8 + $0x614] sm:$0xf0]  ;;  %v11247_v5 = vor.u32 %v12712_v2, %v11246_v0  ;;  %v11222_v11 = vld [vmem:[#allocation8 + $0x11a0] sm:$0xf]  ;;  %v11150_v2 = vld [vmem:[#allocation8 + $0x1110] sm:$0xf] }
 0x144   : > { %5608 = vmatpush.bf16.msrb.mxu3 %v10431_v30  ;;  %v2018_v30 = vmax.f32 %v1804_v9, 0.0  ;;  %v9735_v34 = vor.u32 %v12334_v14, %v9734_v10  ;;  %v12652_v10 = vld [vmem:[#allocation8 + $0x1004] sm:$0xf0]  ;;  %v10790_v14 = vld [vmem:[#allocation8 + $0xe40] sm:$0xf] }
 0x145   : > { %5567 = vmatpush.bf16.msrb.mxu0 %v9831_v20  ;;  %v1817_v42 = vpop.f32.mrf.mxu2  ;;  %v10862_v20 = vld [vmem:[#allocation8 + $0xed0] sm:$0xf]  ;;  %v12634_v0 = vld [vmem:[#allocation8 + $0xf74] sm:$0xf0] }
 0x146   : > { %5581 = vmatpush.bf16.msrb.mxu1 %v10023_v22  ;;  %v10359_v22 = vor.u32 %v12490_v56, %v10358_v3  ;;  %v1818_v23 = vadd.f32 %v1817_v42, %v687_v36  ;;  %v1831_v24 = vpop.f32.mrf.mxu3  ;;  %v10863_v39 = vor.u32 %v12616_v25, %v10862_v20  ;;  %v11054_v36 = vld [vmem:[#allocation8 + $0x1050] sm:$0xf]  ;;  %v11031_v3 = vor.u32 %v12658_v63, %v11030_v59  ;;  %v10982_v20 = vld [vmem:[#allocation8 + $0xfc0] sm:$0xf] }
 0x147   : > { %5595 = vmatpush.bf16.msrb.mxu2 %v10215_v29  ;;  %v2006_v29 = vmax.f32 %v1802_v8, 0.0  ;;  %v11006_v56 = vld [vmem:[#allocation8 + $0xff0] sm:$0xf]  ;;  %v10623_v8 = vor.u32 %v12556_v57, %v10622_v55  ;;  %v688_v42 = vperm.slane %v13654_v43, 6  ;;  %v12688_v57 = vld [vmem:[#allocation8 + $0x1124] sm:$0xf0] }
 0x148   : > { %5609 = vmatpush.bf16.msrb.mxu3 %v10407_v46  ;;  %v1832_v33 = vadd.f32 %v1831_v24, %v1818_v23  ;;  %v12610_v46 = vld [vmem:[#allocation8 + $0xeb4] sm:$0xf0]  ;;  %v10791_v23 = vor.u32 %v12598_v15, %v10790_v14  ;;  %v11198_v25 = vld [vmem:[#allocation8 + $0x1170] sm:$0xf]  ;;  %v12181_v15 = vld [vmem:[#allocation8 + $0x154] sm:$0xf] }
 0x149   : > { %5568 = vmatpush.bf16.msrb.mxu0 %v9807_v35  ;;  %v9927_v35 = vor.u32 %v12382_v19, %v9926_v17  ;;  %v13703_v50 = vpack.c.bf16 %v2018_v30, %v2006_v29  ;;  %v10574_v17 = vld [vmem:[#allocation8 + $0xc90] sm:$0xf]  ;;  %v11007_v19 = vor.u32 %v12652_v10, %v11006_v56  ;;  %v12646_v24 = vld [vmem:[#allocation8 + $0xfd4] sm:$0xf0]  ;;  %v12544_v29 = vld [vmem:[#allocation8 + $0xca4] sm:$0xf0]  ;;  %v11199_v31 = vor.u32 %v12700_v1, %v11198_v25 }
 0x14a   : > { %5582 = vmatpush.bf16.msrb.mxu1 %v9999_v37  ;;  %v10646_v37 = vld [vmem:[#allocation8 + $0xd20] sm:$0xf]  ;;  %v2019_v44 = vmax.f32 %v1832_v33, 0.0  ;;  %v10766_v30 = vld [vmem:[#allocation8 + $0xe10] sm:$0xf] }
 0x14b   : > { %5596 = vmatpush.bf16.msrb.mxu2 %v10191_v45  ;;  %v10838_v45 = vld [vmem:[#allocation8 + $0xea0] sm:$0xf]  ;;  %v12526_v10 = vld [vmem:[#allocation8 + $0xc14] sm:$0xf0]  ;;  %v9328_v25 = vld [vmem:[#allocation8 + $0x2e8] sm:$0xf0] }
 0x14c   : > { %5610 = vmatpush.bf16.msrb.mxu3 %v10383_v48  ;;  %v13705_v53 = vpack.c.bf16 %v2019_v44, %v2007_v32  ;;  %v10839_v62 = vor.u32 %v12610_v46, %v10838_v45  ;;  %v10311_v48 = vor.u32 %v12478_v52, %v10310_v51  ;;  %v10550_v33 = vld [vmem:[#allocation8 + $0xc60] sm:$0xf]  ;;  %v12586_v45 = vld [vmem:[#allocation8 + $0xdf4] sm:$0xf0]  ;;  %v689_v46 = vperm.slane %v13654_v43, 7 }
 0x14d   : > { %5569 = vmatpush.bf16.msrb.mxu0 %v9783_v26  ;;  %v11055_v26 = vor.u32 %v12664_v40, %v11054_v36  ;;  %v12694_v36 = vld [vmem:[#allocation8 + $0x1154] sm:$0xf0]  ;;  %v10742_v44 = vld [vmem:[#allocation8 + $0xde0] sm:$0xf]  ;;  %v10526_v52 = vld [vmem:[#allocation8 + $0xc30] sm:$0xf] }
 0x14e   : > { %5583 = vmatpush.bf16.msrb.mxu1 %v9975_v58  ;;  %v10647_v58 = vor.u32 %v12562_v21, %v10646_v37  ;;  %v10575_v37 = vor.u32 %v12544_v29, %v10574_v17  ;;  %v12640_v21 = vld [vmem:[#allocation8 + $0xfa4] sm:$0xf0]  ;;  %v12538_v40 = vld [vmem:[#allocation8 + $0xc74] sm:$0xf0]  ;;  %v10743_v63 = vor.u32 %v12586_v45, %v10742_v44  ;;  %v12277_v44 = vld [vmem:[#allocation8 + $0x454] sm:$0xf] }
 0x14f   : > { %5597 = vmatpush.bf16.msrb.mxu2 %v10167_v28  ;;  %v12604_v28 = vld [vmem:[#allocation8 + $0xe84] sm:$0xf0]  ;;  %v12682_v17 = vld [vmem:[#allocation8 + $0x10f4] sm:$0xf0]  ;;  %v9520_v45 = vld [vmem:[#allocation8 + $0x468] sm:$0xf0] }
 0x150   : > { %5611 = vmatpush.bf16.msrb.mxu3 %v10359_v22  ;;  %v10815_v9 = vor.u32 %v12604_v28, %v10814_v6  ;;  %v12532_v43 = vld [vmem:[#allocation8 + $0xc44] sm:$0xf0] }
 0x151   : > { %5570 = vmatpush.bf16.msrb.mxu0 %v9759_v12  ;;  %v12706_v12 = vld [vmem:[#allocation8 + $0x11b4] sm:$0xf0] }
 0x152   : > { %5584 = vmatpush.bf16.msrb.mxu1 %v9951_v13  ;;  %v12550_v13 = vld [vmem:[#allocation8 + $0xcd4] sm:$0xf0]  ;;  %v11223_v16 = vor.u32 %v12706_v12, %v11222_v11  ;;  %v10910_v12 = vld [vmem:[#allocation8 + $0xf30] sm:$0xf] }
 0x153   : > { %5598 = vmatpush.bf16.msrb.mxu2 %v10143_v18  ;;  %v10599_v22 = vor.u32 %v12550_v13, %v10598_v4  ;;  %v10527_v13 = vor.u32 %v12532_v43, %v10526_v52  ;;  %v9304_v52 = vld [vmem:[#allocation8 + $0x2b8] sm:$0xf0] }
 0x154   : > { %5612 = vmatpush.bf16.msrb.mxu3 %v10335_v49  ;;  %v9496_v43 = vld [vmem:[#allocation8 + $0x438] sm:$0xf0] }
 0x155   : > { %5571 = vmatpush.bf16.msrb.mxu0 %v9735_v34  ;;  %v1843_v18 = vpop.f32.mrf.mxu0  ;;  %v10983_v34 = vor.u32 %v12646_v24, %v10982_v20  ;;  %v10694_v20 = vld [vmem:[#allocation8 + $0xd80] sm:$0xf]  ;;  %v12229_v24 = vld [vmem:[#allocation8 + $0x2d4] sm:$0xf] }
 0x156   : > { %5585 = vmatpush.bf16.msrb.mxu1 %v9927_v35  ;;  %v1857_v27 = vpop.f32.mrf.mxu1  ;;  %v1844_v32 = vadd.f32 %v1843_v18, %v688_v42  ;;  %v10958_v35 = vld [vmem:[#allocation8 + $0xf90] sm:$0xf]  ;;  %v12574_v18 = vld [vmem:[#allocation8 + $0xd94] sm:$0xf0] }
 0x157   : > { %5599 = vmatpush.bf16.msrb.mxu2 %v10119_v47  ;;  %v10959_v55 = vor.u32 %v12640_v21, %v10958_v35  ;;  %v12175_v35 = vld [vmem:[#allocation8 + $0x124] sm:$0xf]  ;;  %v12676_v21 = vld [vmem:[#allocation8 + $0x10c4] sm:$0xf0] }
 0x158   : > { %5572 = vmatmul.bf16.vlgmr.msrb.gmra.mxu0 %v13703_v50  ;;  %5613 = vmatpush.bf16.msrb.mxu3 %v10311_v48  ;;  %v1858_v49 = vadd.f32 %v1857_v27, %v1844_v32  ;;  %v10718_v48 = vld [vmem:[#allocation8 + $0xdb0] sm:$0xf] }
 0x159   : > { %5620 = vmatpush.bf16.msra.mxu0 %v10671_v38  ;;  %5586 = vmatmul.bf16.vlgmr.msrb.gmra.mxu1 %v13705_v53  ;;  %v10767_v38 = vor.u32 %v12592_v61, %v10766_v30  ;;  %v10886_v61 = vld [vmem:[#allocation8 + $0xf00] sm:$0xf] }
 0x15a   : > { %5634 = vmatpush.bf16.msra.mxu1 %v10863_v39  ;;  %v11174_v39 = vld [vmem:[#allocation8 + $0x1140] sm:$0xf]  ;;  %v2008_v56 = vmax.f32 %v1858_v49, 0.0 }
 0x15b   : > { %5648 = vmatpush.bf16.msra.mxu2 %v11055_v26  ;;  %v11175_v47 = vor.u32 %v12694_v36, %v11174_v39  ;;  %v10934_v26 = vld [vmem:[#allocation8 + $0xf60] sm:$0xf]  ;;  %v9112_v36 = vld [vmem:[#allocation8 + $0x138] sm:$0xf0] }
 0x15c   : > { %5662 = vmatpush.bf16.msra.mxu3 %v11247_v5  ;;  %v12580_v5 = vld [vmem:[#allocation8 + $0xdc4] sm:$0xf0]  ;;  %v10935_v11 = vor.u32 %v12634_v0, %v10934_v26  ;;  %v12670_v0 = vld [vmem:[#allocation8 + $0x1094] sm:$0xf0] }
 0x15d   : > { %5621 = vmatpush.bf16.msra.mxu0 %v10647_v58  ;;  %v1871_v51 = vpop.f32.mrf.mxu2  ;;  %v1845_v59 = vpop.f32.mrf.mxu0  ;;  %v10719_v14 = vor.u32 %v12580_v5, %v10718_v48  ;;  %v9280_v5 = vld [vmem:[#allocation8 + $0x288] sm:$0xf0] }
 0x15e   : > { %5635 = vmatpush.bf16.msra.mxu1 %v10839_v62  ;;  %v1885_v58 = vpop.f32.mrf.mxu3  ;;  %v10551_v62 = vor.u32 %v12538_v40, %v10550_v33  ;;  %v1846_v6 = vadd.f32 %v1845_v59, %v688_v42  ;;  %v1859_v28 = vpop.f32.mrf.mxu1  ;;  %v1872_v4 = vadd.f32 %v1871_v51, %v689_v46  ;;  %v11126_v42 = vld [vmem:[#allocation8 + $0x10e0] sm:$0xf]  ;;  %v9331_v40 = vor.u32 %v12229_v24, %v9328_v25  ;;  %v12223_v51 = vld [vmem:[#allocation8 + $0x2a4] sm:$0xf]  ;;  %v12169_v59 = vld [vmem:[#allocation8 + $0xf4] sm:$0xf] }
 0x15f   : > { %5649 = vmatpush.bf16.msra.mxu2 %v11031_v3  ;;  %v11151_v3 = vor.u32 %v12688_v57, %v11150_v2  ;;  %v11127_v1 = vor.u32 %v12682_v17, %v11126_v42  ;;  %v9115_v2 = vor.u32 %v12175_v35, %v9112_v36  ;;  %v9307_v57 = vor.u32 %v12223_v51, %v9304_v52  ;;  %v9688_v42 = vld [vmem:[#allocation8 + $0x5b8] sm:$0xf0]  ;;  %v12259_v25 = vld [vmem:[#allocation8 + $0x3c4] sm:$0xf]  ;;  %v9232_v35 = vld [vmem:[#allocation8 + $0x228] sm:$0xf0] }
 0x160   : > { %5663 = vmatpush.bf16.msra.mxu3 %v11223_v16  ;;  %v12628_v16 = vld [vmem:[#allocation8 + $0xf44] sm:$0xf0]  ;;  %v9064_v17 = vld [vmem:[#allocation8 + $0xd8] sm:$0xf0] }
 0x161   : > { %5622 = vmatpush.bf16.msra.mxu0 %v10623_v8  ;;  %v1860_v8 = vadd.f32 %v1859_v28, %v1846_v6  ;;  %v10911_v30 = vor.u32 %v12628_v16, %v10910_v12  ;;  %v12217_v6 = vld [vmem:[#allocation8 + $0x274] sm:$0xf]  ;;  %v12271_v28 = vld [vmem:[#allocation8 + $0x424] sm:$0xf]  ;;  %v9640_v51 = vld [vmem:[#allocation8 + $0x558] sm:$0xf0] }
 0x162   : > { %5636 = vmatpush.bf16.msra.mxu1 %v10815_v9  ;;  %v10502_v9 = vld [vmem:[#allocation8 + $0xc00] sm:$0xf]  ;;  %v12265_v12 = vld [vmem:[#allocation8 + $0x3f4] sm:$0xf]  ;;  %v12319_v16 = vld [vmem:[#allocation8 + $0x5a4] sm:$0xf] }
 0x163   : > { %5650 = vmatpush.bf16.msra.mxu2 %v11007_v19  ;;  %v2020_v19 = vmax.f32 %v1860_v8, 0.0  ;;  %v10503_v33 = vor.u32 %v12526_v10, %v10502_v9  ;;  %v13717_v9 = vld [vmem:[#allocation7 + $0x8] sm:$0xf]  ;;  %v12163_v10 = vld [vmem:[#allocation8 + $0xc4] sm:$0xf] }
 0x164   : > { %5664 = vmatpush.bf16.msra.mxu3 %v11199_v31  ;;  %v9016_v52 = vld [vmem:[#allocation8 + $0x78] sm:$0xf0] }
 0x165   : > { %5623 = vmatpush.bf16.msra.mxu0 %v10599_v22  ;;  %v1886_v22 = vadd.f32 %v1885_v58, %v1872_v4  ;;  %v13711_v27 = vpack.c.bf16 %v2020_v19, %v2008_v56  ;;  %v1873_v29 = vpop.f32.mrf.mxu2  ;;  %v9088_v58 = vld [vmem:[#allocation8 + $0x108] sm:$0xf0]  ;;  %v12211_v19 = vld [vmem:[#allocation8 + $0x244] sm:$0xf] }
 0x166   : > { %5637 = vmatpush.bf16.msra.mxu1 %v10791_v23  ;;  %v9136_v23 = vld [vmem:[#allocation8 + $0x168] sm:$0xf0]  ;;  %v1874_v31 = vadd.f32 %v1873_v29, %v689_v46  ;;  %v1887_v32 = vpop.f32.mrf.mxu3 }
 0x167   : > { %5651 = vmatpush.bf16.msra.mxu2 %v10983_v34  ;;  %v10695_v34 = vor.u32 %v12574_v18, %v10694_v20  ;;  %v9139_v39 = vor.u32 %v12181_v15, %v9136_v23  ;;  %v9712_v56 = vld [vmem:[#allocation8 + $0x5e8] sm:$0xf0]  ;;  %v9256_v20 = vld [vmem:[#allocation8 + $0x258] sm:$0xf0]  ;;  %v9691_v18 = vor.u32 %v12319_v16, %v9688_v42  ;;  %v12157_v23 = vld [vmem:[#allocation8 + $0x94] sm:$0xf] }
 0x168   : > { %5665 = vmatpush.bf16.msra.mxu3 %v11175_v47  ;;  %5600 = vmatmul.bf16.vlgmr.msrb.gmra.mxu2 %v13711_v27  ;;  %v2009_v47 = vmax.f32 %v1886_v22, 0.0  ;;  %v1888_v49 = vadd.f32 %v1887_v32, %v1874_v31  ;;  %v9472_v15 = vld [vmem:[#allocation8 + $0x408] sm:$0xf0]  ;;  %v690_v22 = vperm.slane %v13717_v9, 0  ;;  %v9259_v29 = vor.u32 %v12211_v19, %v9256_v20  ;;  %v12139_v16 = vld [vmem:[#allocation8 + $0x4] sm:$0xf] }
 0x169   : > { %5624 = vmatpush.bf16.msra.mxu0 %v10575_v37  ;;  %v12622_v37 = vld [vmem:[#allocation8 + $0xf14] sm:$0xf0]  ;;  %v9475_v24 = vor.u32 %v12265_v12, %v9472_v15  ;;  %v9664_v31 = vld [vmem:[#allocation8 + $0x588] sm:$0xf0] }
 0x16a   : > { %5638 = vmatpush.bf16.msra.mxu1 %v10767_v38  ;;  %v11102_v38 = vld [vmem:[#allocation8 + $0x10b0] sm:$0xf]  ;;  %v2021_v26 = vmax.f32 %v1888_v49, 0.0  ;;  %v12307_v49 = vld [vmem:[#allocation8 + $0x544] sm:$0xf] }
 0x16b   : > { %5652 = vmatpush.bf16.msra.mxu2 %v10959_v55  ;;  %v11103_v46 = vor.u32 %v12676_v21, %v11102_v38  ;;  %v10887_v55 = vor.u32 %v12622_v37, %v10886_v61  ;;  %v12313_v61 = vld [vmem:[#allocation8 + $0x574] sm:$0xf] }
 0x16c   : > { %5666 = vmatpush.bf16.msra.mxu3 %v11151_v3  ;;  %v13714_v48 = vpack.c.bf16 %v2021_v26, %v2009_v47  ;;  %v12325_v3 = vld [vmem:[#allocation8 + $0x5d4] sm:$0xf]  ;;  %v9667_v38 = vor.u32 %v12313_v61, %v9664_v31  ;;  %v9424_v47 = vld [vmem:[#allocation8 + $0x3a8] sm:$0xf0]  ;;  %v9643_v26 = vor.u32 %v12307_v49, %v9640_v51  ;;  %v12367_v51 = vld [vmem:[#allocation8 + $0x724] sm:$0xf] }
 0x16d   : > { %5625 = vmatpush.bf16.msra.mxu0 %v10551_v62  ;;  %v9523_v62 = vor.u32 %v12277_v44, %v9520_v45  ;;  %v9715_v8 = vor.u32 %v12325_v3, %v9712_v56  ;;  %v8992_v56 = vld [vmem:[#allocation8 + $0x48] sm:$0xf0]  ;;  %v12373_v61 = vld [vmem:[#allocation8 + $0x754] sm:$0xf] }
 0x16e   : > { %5639 = vmatpush.bf16.msra.mxu1 %v10743_v63  ;;  %v11078_v63 = vld [vmem:[#allocation8 + $0x1080] sm:$0xf]  ;;  %5614 = vmatmul.bf16.vlgmr.msrb.gmra.mxu3 %v13714_v48  ;;  %v9904_v31 = vld [vmem:[#allocation8 + $0x768] sm:$0xf0] }
 0x16f   : > { %5653 = vmatpush.bf16.msra.mxu2 %v10935_v11  ;;  %v11079_v4 = vor.u32 %v12670_v0, %v11078_v63  ;;  %v9499_v11 = vor.u32 %v12271_v28, %v9496_v43  ;;  %v12247_v0 = vld [vmem:[#allocation8 + $0x364] sm:$0xf]  ;;  %v9400_v28 = vld [vmem:[#allocation8 + $0x378] sm:$0xf0]  ;;  %v12301_v43 = vld [vmem:[#allocation8 + $0x514] sm:$0xf]  ;;  %v9907_v49 = vor.u32 %v12373_v61, %v9904_v31 }
 0x170   : > { %5667 = vmatpush.bf16.msra.mxu3 %v11127_v1  ;;  %v9067_v1 = vor.u32 %v12163_v10, %v9064_v17  ;;  %v9184_v10 = vld [vmem:[#allocation8 + $0x1c8] sm:$0xf0]  ;;  %v9403_v42 = vor.u32 %v12247_v0, %v9400_v28  ;;  %v12241_v17 = vld [vmem:[#allocation8 + $0x334] sm:$0xf]  ;;  %v12283_v0 = vld [vmem:[#allocation8 + $0x484] sm:$0xf] }
 0x171   : > { %5626 = vmatpush.bf16.msra.mxu0 %v10527_v13  ;;  %v9091_v13 = vor.u32 %v12169_v59, %v9088_v58  ;;  %v691_v58 = vperm.slane %v13717_v9, 1  ;;  %v12361_v28 = vld [vmem:[#allocation8 + $0x6f4] sm:$0xf]  ;;  %v10000_v61 = vld [vmem:[#allocation8 + $0x828] sm:$0xf0] }
 0x172   : > { %5640 = vmatpush.bf16.msra.mxu1 %v10719_v14  ;;  %v9283_v14 = vor.u32 %v12217_v6, %v9280_v5  ;;  %v9616_v5 = vld [vmem:[#allocation8 + $0x528] sm:$0xf0] }
 0x173   : > { %5654 = vmatpush.bf16.msra.mxu2 %v10911_v30  ;;  %v9448_v30 = vld [vmem:[#allocation8 + $0x3d8] sm:$0xf0] }
 0x174   : > { %5668 = vmatpush.bf16.msra.mxu3 %v11103_v46  ;;  %v9451_v36 = vor.u32 %v12259_v25, %v9448_v30  ;;  %v12199_v46 = vld [vmem:[#allocation8 + $0x1e4] sm:$0xf]  ;;  %v9592_v25 = vld [vmem:[#allocation8 + $0x4f8] sm:$0xf0] }
 0x175   : > { %5627 = vmatpush.bf16.msra.mxu0 %v10503_v33  ;;  %v1899_v32 = vpop.f32.mrf.mxu0  ;;  %v9040_v33 = vld [vmem:[#allocation8 + $0xa8] sm:$0xf0] }
 0x176   : > { %5641 = vmatpush.bf16.msra.mxu1 %v10695_v34  ;;  %v12205_v34 = vld [vmem:[#allocation8 + $0x214] sm:$0xf]  ;;  %v1913_v37 = vpop.f32.mrf.mxu1  ;;  %v1900_v21 = vadd.f32 %v1899_v32, %v690_v22  ;;  %v9043_v44 = vor.u32 %v12157_v23, %v9040_v33  ;;  %v9376_v23 = vld [vmem:[#allocation8 + $0x348] sm:$0xf0] }
 0x177   : > { %5655 = vmatpush.bf16.msra.mxu2 %v10887_v55  ;;  %v9235_v45 = vor.u32 %v12205_v34, %v9232_v35  ;;  %v9208_v55 = vld [vmem:[#allocation8 + $0x1f8] sm:$0xf0]  ;;  %v9379_v34 = vor.u32 %v12241_v17, %v9376_v23  ;;  %v12235_v35 = vld [vmem:[#allocation8 + $0x304] sm:$0xf]  ;;  %v9808_v17 = vld [vmem:[#allocation8 + $0x6a8] sm:$0xf0] }
 0x178   : > { %5669 = vmatpush.bf16.msra.mxu3 %v11079_v4  ;;  %v1914_v59 = vadd.f32 %v1913_v37, %v1900_v21  ;;  %v9211_v6 = vor.u32 %v12199_v46, %v9208_v55  ;;  %v10024_v23 = vld [vmem:[#allocation8 + $0x858] sm:$0xf0] }
 0x179   : > { %5676 = vmatpush.bf16.msrb.mxu0 %v9139_v39  ;;  %v12151_v39 = vld [vmem:[#allocation8 + $0x64] sm:$0xf] }
 0x17a   : > { %5690 = vmatpush.bf16.msrb.mxu1 %v9331_v40  ;;  %v12253_v40 = vld [vmem:[#allocation8 + $0x394] sm:$0xf] }
 0x17b   : > { %5704 = vmatpush.bf16.msrb.mxu2 %v9523_v62  ;;  %v12145_v62 = vld [vmem:[#allocation8 + $0x34] sm:$0xf]  ;;  %v9427_v63 = vor.u32 %v12253_v40, %v9424_v47 }
 0x17c   : > { %5718 = vmatpush.bf16.msrb.mxu3 %v9715_v8  ;;  %v12193_v8 = vld [vmem:[#allocation8 + $0x1b4] sm:$0xf]  ;;  %v8995_v20 = vor.u32 %v12145_v62, %v8992_v56  ;;  %v10096_v62 = vld [vmem:[#allocation8 + $0x8e8] sm:$0xf0]  ;;  %v10072_v56 = vld [vmem:[#allocation8 + $0x8b8] sm:$0xf0] }
 0x17d   : > { %5677 = vmatpush.bf16.msrb.mxu0 %v9115_v2  ;;  %v1927_v2 = vpop.f32.mrf.mxu2  ;;  %v1901_v4 = vpop.f32.mrf.mxu0  ;;  %v12289_v40 = vld [vmem:[#allocation8 + $0x4b4] sm:$0xf] }
 0x17e   : > { %5691 = vmatpush.bf16.msrb.mxu1 %v9307_v57  ;;  %v9019_v57 = vor.u32 %v12151_v39, %v9016_v52  ;;  %v1941_v3 = vpop.f32.mrf.mxu3  ;;  %v1915_v12 = vpop.f32.mrf.mxu1  ;;  %v1928_v15 = vadd.f32 %v1927_v2, %v691_v58  ;;  %v9880_v52 = vld [vmem:[#allocation8 + $0x738] sm:$0xf0] }
 0x17f   : > { %5705 = vmatpush.bf16.msrb.mxu2 %v9499_v11  ;;  %v1902_v11 = vadd.f32 %v1901_v4, %v690_v22  ;;  %v9160_v22 = vld [vmem:[#allocation8 + $0x198] sm:$0xf0] }
 0x180   : > { %5719 = vmatpush.bf16.msrb.mxu3 %v9691_v18  ;;  %v9187_v18 = vor.u32 %v12193_v8, %v9184_v10  ;;  %v1942_v33 = vadd.f32 %v1941_v3, %v1928_v15  ;;  %v9544_v2 = vld [vmem:[#allocation8 + $0x498] sm:$0xf0]  ;;  %v12415_v3 = vld [vmem:[#allocation8 + $0x8a4] sm:$0xf] }
 0x181   : > { %5678 = vmatpush.bf16.msrb.mxu0 %v9091_v13  ;;  %v9619_v13 = vor.u32 %v12301_v43, %v9616_v5  ;;  %v1916_v19 = vadd.f32 %v1915_v12, %v1902_v11  ;;  %v9856_v43 = vld [vmem:[#allocation8 + $0x708] sm:$0xf0]  ;;  %v9547_v5 = vor.u32 %v12283_v0, %v9544_v2  ;;  %v10075_v10 = vor.u32 %v12415_v3, %v10072_v56  ;;  %v12355_v11 = vld [vmem:[#allocation8 + $0x6c4] sm:$0xf]  ;;  %v9832_v12 = vld [vmem:[#allocation8 + $0x6d8] sm:$0xf0] }
 0x182   : > { %5692 = vmatpush.bf16.msrb.mxu1 %v9283_v14  ;;  %v2010_v14 = vmax.f32 %v1914_v59, 0.0  ;;  %v2011_v55 = vmax.f32 %v1942_v33, 0.0  ;;  %v12421_v59 = vld [vmem:[#allocation8 + $0x8d4] sm:$0xf]  ;;  %v9859_v8 = vor.u32 %v12361_v28, %v9856_v43  ;;  %v9835_v15 = vor.u32 %v12355_v11, %v9832_v12  ;;  %v10264_v11 = vld [vmem:[#allocation8 + $0xa38] sm:$0xf0] }
 0x183   : > { %5706 = vmatpush.bf16.msrb.mxu2 %v9475_v24  ;;  %v12295_v24 = vld [vmem:[#allocation8 + $0x4e4] sm:$0xf]  ;;  %v2022_v30 = vmax.f32 %v1916_v19, 0.0  ;;  %v12565_v2 = vld [vmem:[#allocation8 + $0xd54] sm:$0xf] }
 0x184   : > { %5720 = vmatpush.bf16.msrb.mxu3 %v9667_v38  ;;  %v9595_v32 = vor.u32 %v12295_v24, %v9592_v25  ;;  %v692_v24 = vperm.slane %v13717_v9, 2  ;;  %v12379_v12 = vld [vmem:[#allocation8 + $0x784] sm:$0xf] }
 0x185   : > { %5679 = vmatpush.bf16.msrb.mxu0 %v9067_v1  ;;  %v8968_v1 = vld [vmem:[#allocation8 + $0x18] sm:$0xf0]  ;;  %v13721_v37 = vpack.c.bf16 %v2022_v30, %v2010_v14  ;;  %v1929_v38 = vpop.f32.mrf.mxu2  ;;  %v10048_v14 = vld [vmem:[#allocation8 + $0x888] sm:$0xf0]  ;;  %v12397_v30 = vld [vmem:[#allocation8 + $0x814] sm:$0xf] }
 0x186   : > { %5693 = vmatpush.bf16.msrb.mxu1 %v9259_v29  ;;  %v12187_v29 = vld [vmem:[#allocation8 + $0x184] sm:$0xf]  ;;  %v8971_v21 = vor.u32 %v12139_v16, %v8968_v1  ;;  %v1943_v47 = vpop.f32.mrf.mxu3 }
 0x187   : > { %5707 = vmatpush.bf16.msrb.mxu2 %v9451_v36  ;;  %v9163_v39 = vor.u32 %v12187_v29, %v9160_v22  ;;  %v9352_v36 = vld [vmem:[#allocation8 + $0x318] sm:$0xf0]  ;;  %5628 = vmatmul.bf16.vlgmr.msra.gmra.mxu0 %v13721_v37  ;;  %v12343_v29 = vld [vmem:[#allocation8 + $0x664] sm:$0xf] }
 0x188   : > { %5721 = vmatpush.bf16.msrb.mxu3 %v9643_v26  ;;  %v9784_v22 = vld [vmem:[#allocation8 + $0x678] sm:$0xf0] }
 0x189   : > { %5680 = vmatpush.bf16.msrb.mxu0 %v9043_v44  ;;  %v9568_v44 = vld [vmem:[#allocation8 + $0x4c8] sm:$0xf0] }
 0x18a   : > { %5694 = vmatpush.bf16.msrb.mxu1 %v9235_v45  ;;  %v1930_v45 = vadd.f32 %v1929_v38, %v691_v58  ;;  %v9571_v46 = vor.u32 %v12289_v40, %v9568_v44  ;;  %v9883_v58 = vor.u32 %v12367_v51, %v9880_v52  ;;  %v12337_v38 = vld [vmem:[#allocation8 + $0x634] sm:$0xf]  ;;  %v12391_v40 = vld [vmem:[#allocation8 + $0x7e4] sm:$0xf]  ;;  %v9976_v44 = vld [vmem:[#allocation8 + $0x7f8] sm:$0xf0] }
 0x18b   : > { %5708 = vmatpush.bf16.msrb.mxu2 %v9427_v63  ;;  %v9355_v63 = vor.u32 %v12235_v35, %v9352_v36  ;;  %v10003_v35 = vor.u32 %v12397_v30, %v10000_v61  ;;  %v12331_v52 = vld [vmem:[#allocation8 + $0x604] sm:$0xf]  ;;  %v10240_v30 = vld [vmem:[#allocation8 + $0xa08] sm:$0xf0] }
 0x18c   : > { %5722 = vmatpush.bf16.msrb.mxu3 %v9619_v13  ;;  %v1944_v26 = vadd.f32 %v1943_v47, %v1930_v45  ;;  %v12409_v13 = vld [vmem:[#allocation8 + $0x874] sm:$0xf] }
 0x18d   : > { %5681 = vmatpush.bf16.msrb.mxu0 %v9019_v57  ;;  %v10051_v16 = vor.u32 %v12409_v13, %v10048_v14 }
 0x18e   : > { %5695 = vmatpush.bf16.msrb.mxu1 %v9211_v6  ;;  %v2023_v57 = vmax.f32 %v1944_v26, 0.0  ;;  %v10099_v6 = vor.u32 %v12421_v59, %v10096_v62  ;;  %v9979_v26 = vor.u32 %v12391_v40, %v9976_v44  ;;  %v12469_v59 = vld [vmem:[#allocation8 + $0xa54] sm:$0xf]  ;;  %v10288_v62 = vld [vmem:[#allocation8 + $0xa68] sm:$0xf0] }
 0x18f   : > { %5709 = vmatpush.bf16.msrb.mxu2 %v9403_v42  ;;  %v12349_v42 = vld [vmem:[#allocation8 + $0x694] sm:$0xf]  ;;  %v10291_v43 = vor.u32 %v12469_v59, %v10288_v62  ;;  %v12511_v40 = vld [vmem:[#allocation8 + $0xba4] sm:$0xf]  ;;  %v10456_v44 = vld [vmem:[#allocation8 + $0xbb8] sm:$0xf0] }
 0x190   : > { %5723 = vmatpush.bf16.msrb.mxu3 %v9595_v32  ;;  %v13724_v4 = vpack.c.bf16 %v2023_v57, %v2011_v55  ;;  %v9811_v25 = vor.u32 %v12349_v42, %v9808_v17  ;;  %v9787_v32 = vor.u32 %v12343_v29, %v9784_v22  ;;  %v10672_v57 = vld [vmem:[#allocation8 + $0xd68] sm:$0xf0]  ;;  %v10648_v42 = vld [vmem:[#allocation8 + $0xd38] sm:$0xf0]  ;;  %v12457_v22 = vld [vmem:[#allocation8 + $0x9f4] sm:$0xf] }
 0x191   : > { %5682 = vmatpush.bf16.msrb.mxu0 %v8995_v20  ;;  %v12601_v59 = vld [vmem:[#allocation8 + $0xe74] sm:$0xf]  ;;  %v10816_v62 = vld [vmem:[#allocation8 + $0xe88] sm:$0xf0] }
 0x192   : > { %5696 = vmatpush.bf16.msrb.mxu1 %v9187_v18  ;;  %v12403_v18 = vld [vmem:[#allocation8 + $0x844] sm:$0xf] }
 0x193   : > { %5710 = vmatpush.bf16.msrb.mxu2 %v9379_v34  ;;  %5642 = vmatmul.bf16.vlgmr.msra.gmra.mxu1 %v13724_v4  ;;  %v10027_v1 = vor.u32 %v12403_v18, %v10024_v23 }
 0x194   : > { %5724 = vmatpush.bf16.msrb.mxu3 %v9571_v46  ;;  %v9736_v46 = vld [vmem:[#allocation8 + $0x618] sm:$0xf0] }
 0x195   : > { %5683 = vmatpush.bf16.msrb.mxu0 %v8971_v21  ;;  %v1955_v19 = vpop.f32.mrf.mxu0  ;;  %v9760_v21 = vld [vmem:[#allocation8 + $0x648] sm:$0xf0]  ;;  %v9739_v28 = vor.u32 %v12331_v52, %v9736_v46  ;;  %v12547_v46 = vld [vmem:[#allocation8 + $0xcc4] sm:$0xf] }
 0x196   : > { %5697 = vmatpush.bf16.msrb.mxu1 %v9163_v39  ;;  %v1969_v20 = vpop.f32.mrf.mxu1  ;;  %v1956_v31 = vadd.f32 %v1955_v19, %v692_v24  ;;  %v693_v39 = vperm.slane %v13717_v9, 3  ;;  %v9763_v51 = vor.u32 %v12337_v38, %v9760_v21  ;;  %v9952_v9 = vld [vmem:[#allocation8 + $0x7c8] sm:$0xf0]  ;;  %v12613_v19 = vld [vmem:[#allocation8 + $0xed4] sm:$0xf] }
 0x197   : > { %5711 = vmatpush.bf16.msrb.mxu2 %v9355_v63  ;;  %v12385_v63 = vld [vmem:[#allocation8 + $0x7b4] sm:$0xf]  ;;  %v12607_v38 = vld [vmem:[#allocation8 + $0xea4] sm:$0xf]  ;;  %v10840_v21 = vld [vmem:[#allocation8 + $0xeb8] sm:$0xf0] }
 0x198   : > { %5725 = vmatpush.bf16.msrb.mxu3 %v9547_v5  ;;  %5684 = vmatmul.bf16.vlgmr.msrb.gmra.mxu0 %v13689_v41  ;;  %v1970_v45 = vadd.f32 %v1969_v20, %v1956_v31  ;;  %v9955_v56 = vor.u32 %v12385_v63, %v9952_v9  ;;  %v10864_v20 = vld [vmem:[#allocation8 + $0xee8] sm:$0xf0]  ;;  %v10843_v52 = vor.u32 %v12607_v38, %v10840_v21  ;;  %v12505_v9 = vld [vmem:[#allocation8 + $0xb74] sm:$0xf] }
 0x199   : > { %5732 = vmatpush.bf16.msra.mxu0 %v9907_v49  ;;  %v12529_v38 = vld [vmem:[#allocation8 + $0xc34] sm:$0xf]  ;;  %v10528_v21 = vld [vmem:[#allocation8 + $0xc48] sm:$0xf0] }
 0x19a   : > { %5746 = vmatpush.bf16.msra.mxu1 %v10099_v6 }
 0x19d   : > { %5733 = vmatpush.bf16.msra.mxu0 %v9883_v58  ;;  %v1983_v33 = vpop.f32.mrf.mxu2  ;;  %v1957_v36 = vpop.f32.mrf.mxu0  ;;  %v2012_v58 = vmax.f32 %v1970_v45, 0.0 }
 0x19e   : > { %5747 = vmatpush.bf16.msra.mxu1 %v10075_v10  ;;  %v1997_v34 = vpop.f32.mrf.mxu3  ;;  %v1958_v47 = vadd.f32 %v1957_v36, %v692_v24  ;;  %v1971_v49 = vpop.f32.mrf.mxu1  ;;  %v1984_v0 = vadd.f32 %v1983_v33, %v693_v39  ;;  %v12463_v10 = vld [vmem:[#allocation8 + $0xa24] sm:$0xf]  ;;  %v12517_v24 = vld [vmem:[#allocation8 + $0xbd4] sm:$0xf]  ;;  %v10243_v36 = vor.u32 %v12457_v22, %v10240_v30 }
 0x19f   : > { %v10267_v23 = vor.u32 %v12463_v10, %v10264_v11  ;;  %v12553_v33 = vld [vmem:[#allocation8 + $0xcf4] sm:$0xf]  ;;  %v12595_v10 = vld [vmem:[#allocation8 + $0xe44] sm:$0xf]  ;;  %v10792_v11 = vld [vmem:[#allocation8 + $0xe58] sm:$0xf0] }
 0x1a0   : > { %v1972_v55 = vadd.f32 %v1971_v49, %v1958_v47  ;;  %v1998_v13 = vadd.f32 %v1997_v34, %v1984_v0  ;;  %v10624_v34 = vld [vmem:[#allocation8 + $0xd08] sm:$0xf0]  ;;  %v13737_v47 = vld [vmem:[#allocation10] sm:$0x3f]  ;;  %v12493_v30 = vld [vmem:[#allocation8 + $0xb14] sm:$0xf] }
 0x1a1   : > { %5734 = vmatpush.bf16.msra.mxu0 %v9859_v8  ;;  %v10675_v8 = vor.u32 %v12565_v2, %v10672_v57  ;;  %v10627_v45 = vor.u32 %v12553_v33, %v10624_v34  ;;  %v12451_v49 = vld [vmem:[#allocation8 + $0x9c4] sm:$0xf]  ;;  %v14162_v63 = vperm.slane %v13737_v47, 0  ;;  %v10432_v2 = vld [vmem:[#allocation8 + $0xb88] sm:$0xf0] }
 0x1a2   : > { %5748 = vmatpush.bf16.msra.mxu1 %v10051_v16  ;;  %v2024_v6 = vmax.f32 %v1972_v55, 0.0  ;;  %v12559_v16 = vld [vmem:[#allocation8 + $0xd24] sm:$0xf]  ;;  %v2013_v61 = vmax.f32 %v1998_v13, 0.0  ;;  %v10600_v55 = vld [vmem:[#allocation8 + $0xcd8] sm:$0xf0] }
 0x1a3   : > { %5698 = vmatmul.bf16.vlgmr.msrb.gmra.mxu1 %v13693_v60  ;;  %v10651_v29 = vor.u32 %v12559_v16, %v10648_v42  ;;  %v10603_v57 = vor.u32 %v12547_v46, %v10600_v55  ;;  %v10144_v33 = vld [vmem:[#allocation8 + $0x948] sm:$0xf0]  ;;  %v12427_v46 = vld [vmem:[#allocation8 + $0x904] sm:$0xf]  ;;  %v10531_v55 = vor.u32 %v12529_v38, %v10528_v21  ;;  %v9094_v21 = vld [vmem:[#allocation8 + $0xf8] sm:$0xf] }
 0x1a4   : > { %v13731_v5 = vpack.c.bf16 %v2024_v6, %v2012_v58  ;;  %v12445_v58 = vld [vmem:[#allocation8 + $0x994] sm:$0xf]  ;;  %v10192_v6 = vld [vmem:[#allocation8 + $0x9a8] sm:$0xf0] }
 0x1a5   : > { %5735 = vmatpush.bf16.msra.mxu0 %v9835_v15  ;;  %v1985_v3 = vpop.f32.mrf.mxu2  ;;  %v9928_v15 = vld [vmem:[#allocation8 + $0x798] sm:$0xf0]  ;;  %v10195_v13 = vor.u32 %v12445_v58, %v10192_v6  ;;  %v12577_v58 = vld [vmem:[#allocation8 + $0xdb4] sm:$0xf] }
 0x1a6   : > { %5749 = vmatpush.bf16.msra.mxu1 %v10027_v1  ;;  %v1986_v14 = vadd.f32 %v1985_v3, %v693_v39  ;;  %v1999_v17 = vpop.f32.mrf.mxu3  ;;  %5656 = vmatmul.bf16.vlgmr.msra.gmra.mxu2 %v13731_v5  ;;  %v9931_v1 = vor.u32 %v12379_v12, %v9928_v15  ;;  %v10576_v3 = vld [vmem:[#allocation8 + $0xca8] sm:$0xf0]  ;;  %v10408_v15 = vld [vmem:[#allocation8 + $0xb58] sm:$0xf0] }
 0x1a7   : > { %5760 = vmatpush.bf16.msra.mxu2 %v10291_v43  ;;  %v12541_v43 = vld [vmem:[#allocation8 + $0xc94] sm:$0xf] }
 0x1a8   : > { %v2000_v18 = vadd.f32 %v1999_v17, %v1986_v14  ;;  %v12499_v14 = vld [vmem:[#allocation8 + $0xb44] sm:$0xf]  ;;  %v10579_v42 = vor.u32 %v12541_v43, %v10576_v3  ;;  %v10720_v43 = vld [vmem:[#allocation8 + $0xdc8] sm:$0xf0]  ;;  %v9142_v3 = vld [vmem:[#allocation8 + $0x158] sm:$0xf] }
 0x1a9   : > { %5736 = vmatpush.bf16.msra.mxu0 %v9811_v25  ;;  %v10480_v25 = vld [vmem:[#allocation8 + $0xbe8] sm:$0xf0]  ;;  %v12439_v17 = vld [vmem:[#allocation8 + $0x964] sm:$0xf] }
 0x1aa   : > { %5750 = vmatpush.bf16.msra.mxu1 %v10003_v35  ;;  %v2025_v31 = vmax.f32 %v2000_v18, 0.0  ;;  %v10483_v35 = vor.u32 %v12517_v24, %v10480_v25  ;;  %v10795_v18 = vor.u32 %v12595_v10, %v10792_v11  ;;  %v10552_v24 = vld [vmem:[#allocation8 + $0xc78] sm:$0xf0]  ;;  %v10411_v25 = vor.u32 %v12499_v14, %v10408_v15  ;;  %v12481_v10 = vld [vmem:[#allocation8 + $0xab4] sm:$0xf] }
 0x1ab   : > { %5761 = vmatpush.bf16.msra.mxu2 %v10267_v23  ;;  %v12535_v23 = vld [vmem:[#allocation8 + $0xc64] sm:$0xf]  ;;  %v10336_v11 = vld [vmem:[#allocation8 + $0xac8] sm:$0xf0]  ;;  %v10723_v15 = vor.u32 %v12577_v58, %v10720_v43  ;;  %v9286_v58 = vld [vmem:[#allocation8 + $0x278] sm:$0xf] }
 0x1ac   : > { %v13735_v39 = vpack.c.bf16 %v2025_v31, %v2013_v61  ;;  %v10384_v61 = vld [vmem:[#allocation8 + $0xb28] sm:$0xf0]  ;;  %v10555_v31 = vor.u32 %v12535_v23, %v10552_v24  ;;  %v12655_v14 = vld [vmem:[#allocation8 + $0x1024] sm:$0xf]  ;;  %v9118_v23 = vld [vmem:[#allocation8 + $0x128] sm:$0xf] }
 0x1ad   : > { %5737 = vmatpush.bf16.msra.mxu0 %v9787_v32  ;;  %v10867_v32 = vor.u32 %v12613_v19, %v10864_v20  ;;  %v10168_v19 = vld [vmem:[#allocation8 + $0x978] sm:$0xf0]  ;;  %v12179_v24 = vld [vmem:[#allocation8 + $0x13c] sm:$0xf0] }
 0x1ae   : > { %5751 = vmatpush.bf16.msra.mxu1 %v9979_v26  ;;  %5670 = vmatmul.bf16.vlgmr.msra.gmra.mxu3 %v13735_v39  ;;  %v10459_v26 = vor.u32 %v12511_v40, %v10456_v44  ;;  %v10171_v22 = vor.u32 %v12439_v17, %v10168_v19  ;;  %v10387_v40 = vor.u32 %v12493_v30, %v10384_v61  ;;  %v12583_v44 = vld [vmem:[#allocation8 + $0xde4] sm:$0xf]  ;;  %v12709_v30 = vld [vmem:[#allocation8 + $0x11d4] sm:$0xf]  ;;  %v11248_v61 = vld [vmem:[#allocation8 + $0x11e8] sm:$0xf0] }
 0x1af   : > { %5774 = vmatpush.bf16.msra.mxu3 %v10483_v35  ;;  %5762 = vmatpush.bf16.msra.mxu2 %v10243_v36  ;;  %v12475_v17 = vld [vmem:[#allocation8 + $0xa84] sm:$0xf] }
 0x1b0   : > { %v12571_v19 = vld [vmem:[#allocation8 + $0xd84] sm:$0xf] }
 0x1b1   : > { %5738 = vmatpush.bf16.msra.mxu0 %v9763_v51  ;;  %v10216_v51 = vld [vmem:[#allocation8 + $0x9d8] sm:$0xf0] }
 0x1b2   : > { %5752 = vmatpush.bf16.msra.mxu1 %v9955_v56  ;;  %v10219_v0 = vor.u32 %v12451_v49, %v10216_v51  ;;  %v12487_v51 = vld [vmem:[#allocation8 + $0xae4] sm:$0xf] }
 0x1b3   : > { %5775 = vmatpush.bf16.msra.mxu3 %v10459_v26  ;;  %v10120_v26 = vld [vmem:[#allocation8 + $0x918] sm:$0xf0] }
 0x1b4   : > { %5763 = vmatpush.bf16.msra.mxu2 %v10219_v0 }
 0x1b5   : > { %5739 = vmatpush.bf16.msra.mxu0 %v9739_v28  ;;  %v10819_v28 = vor.u32 %v12601_v59, %v10816_v62  ;;  %v5517_v56 = vpop.f32.mrf.mxu0  ;;  %v12523_v59 = vld [vmem:[#allocation8 + $0xc04] sm:$0xf]  ;;  %v10504_v62 = vld [vmem:[#allocation8 + $0xc18] sm:$0xf0] }
 0x1b6   : > { %5753 = vmatpush.bf16.msra.mxu1 %v9931_v1  ;;  %v5518_v12 = vadd.f32 %v5517_v56, %v14162_v63  ;;  %v5531_v16 = vpop.f32.mrf.mxu1  ;;  %5712 = vmatmul.bf16.vlgmr.msrb.gmra.mxu2 %v13685_v54  ;;  %v12589_v1 = vld [vmem:[#allocation8 + $0xe14] sm:$0xf]  ;;  %v12185_v56 = vld [vmem:[#allocation8 + $0x16c] sm:$0xf0] }
 0x1b8   : > { %5740 = vmatmul.bf16.vlgmr.msra.gmra.mxu0 %v13703_v50  ;;  %v5532_v20 = vadd.f32 %v5531_v16, %v5518_v12  ;;  %5764 = vmatpush.bf16.msra.mxu2 %v10195_v13  ;;  %v10507_v12 = vor.u32 %v12523_v59, %v10504_v62  ;;  %v9143_v16 = vor.u32 %v12185_v56, %v9142_v3  ;;  %v12643_v59 = vld [vmem:[#allocation8 + $0xfc4] sm:$0xf]  ;;  %v10984_v62 = vld [vmem:[#allocation8 + $0xfd8] sm:$0xf0]  ;;  %v12697_v3 = vld [vmem:[#allocation8 + $0x1174] sm:$0xf] }
 0x1b9   : > { %5788 = vmatpush.bf16.msrb.mxu0 %v10675_v8  ;;  %5754 = vmatmul.bf16.vlgmr.msra.gmra.mxu1 %v13705_v53  ;;  %v10435_v8 = vor.u32 %v12505_v9, %v10432_v2  ;;  %v12661_v2 = vld [vmem:[#allocation8 + $0x1054] sm:$0xf]  ;;  %v10987_v43 = vor.u32 %v12643_v59, %v10984_v62  ;;  %v11200_v56 = vld [vmem:[#allocation8 + $0x1188] sm:$0xf0]  ;;  %v12679_v62 = vld [vmem:[#allocation8 + $0x10e4] sm:$0xf] }
 0x1ba   : > { %5802 = vmatpush.bf16.msrb.mxu1 %v10867_v32  ;;  %v12433_v32 = vld [vmem:[#allocation8 + $0x934] sm:$0xf] }
 0x1bb   : > { %5776 = vmatpush.bf16.msra.mxu3 %v10435_v8  ;;  %v10147_v49 = vor.u32 %v12433_v32, %v10144_v33  ;;  %v10123_v8 = vor.u32 %v12427_v46, %v10120_v26  ;;  %v9119_v32 = vor.u32 %v12179_v24, %v9118_v23  ;;  %v12649_v33 = vld [vmem:[#allocation8 + $0xff4] sm:$0xf]  ;;  %v12703_v46 = vld [vmem:[#allocation8 + $0x11a4] sm:$0xf]  ;;  %v11176_v23 = vld [vmem:[#allocation8 + $0x1158] sm:$0xf0] }
 0x1bc   : > { %5765 = vmatpush.bf16.msra.mxu2 %v10171_v22 }
 0x1bd   : > { %5789 = vmatpush.bf16.msrb.mxu0 %v10651_v29  ;;  %v10768_v29 = vld [vmem:[#allocation8 + $0xe28] sm:$0xf0]  ;;  %v5545_v34 = vpop.f32.mrf.mxu2 }
 0x1be   : > { %5803 = vmatpush.bf16.msrb.mxu1 %v10843_v52  ;;  %v10771_v35 = vor.u32 %v12589_v1, %v10768_v29  ;;  %v5546_v36 = vadd.f32 %v5545_v34, %v5532_v20  ;;  %v10360_v52 = vld [vmem:[#allocation8 + $0xaf8] sm:$0xf0]  ;;  %v5559_v0 = vpop.f32.mrf.mxu3  ;;  %5726 = vmatmul.bf16.vlgmr.msrb.gmra.mxu3 %v13696_v7  ;;  %v10339_v20 = vor.u32 %v12481_v10, %v10336_v11  ;;  %v9334_v1 = vld [vmem:[#allocation8 + $0x2d8] sm:$0xf]  ;;  %v12233_v29 = vld [vmem:[#allocation8 + $0x2ec] sm:$0xf0] }
 0x1bf   : > { %5777 = vmatpush.bf16.msra.mxu3 %v10411_v25  ;;  %v10312_v25 = vld [vmem:[#allocation8 + $0xa98] sm:$0xf0]  ;;  %v11008_v34 = vld [vmem:[#allocation8 + $0x1008] sm:$0xf0]  ;;  %v9335_v38 = vor.u32 %v12233_v29, %v9334_v1  ;;  %v12637_v10 = vld [vmem:[#allocation8 + $0xf94] sm:$0xf] }
 0x1c0   : > { %v13746_v6 = vadd.f32 %v5559_v0, %v5546_v36  ;;  %5766 = vmatpush.bf16.msra.mxu2 %v10147_v49  ;;  %v12173_v36 = vld [vmem:[#allocation8 + $0x10c] sm:$0xf0]  ;;  %v13750_v49 = vpop.f32.mrf.mxu0  ;;  %v10960_v11 = vld [vmem:[#allocation8 + $0xfa8] sm:$0xf0]  ;;  %v12631_v1 = vld [vmem:[#allocation8 + $0xf64] sm:$0xf] }
 0x1c1   : > { %5790 = vmatpush.bf16.msrb.mxu0 %v10627_v45  ;;  %v10744_v45 = vld [vmem:[#allocation8 + $0xdf8] sm:$0xf0]  ;;  %v9095_v26 = vor.u32 %v12173_v36, %v9094_v21  ;;  %v11152_v21 = vld [vmem:[#allocation8 + $0x1128] sm:$0xf0]  ;;  %v12625_v36 = vld [vmem:[#allocation8 + $0xf34] sm:$0xf] }
 0x1c2   : > { %5804 = vmatpush.bf16.msrb.mxu1 %v10819_v28  ;;  %v10747_v9 = vor.u32 %v12583_v44, %v10744_v45  ;;  %v10363_v28 = vor.u32 %v12487_v51, %v10360_v52  ;;  %v9310_v44 = vld [vmem:[#allocation8 + $0x2a8] sm:$0xf]  ;;  %v12227_v45 = vld [vmem:[#allocation8 + $0x2bc] sm:$0xf0]  ;;  %v13752_v51 = vpop.f32.mrf.mxu1  ;;  %v11011_v52 = vor.u32 %v12649_v33, %v11008_v34  ;;  %v10936_v29 = vld [vmem:[#allocation8 + $0xf78] sm:$0xf0] }
 0x1c3   : > { %5778 = vmatpush.bf16.msra.mxu3 %v10387_v40  ;;  %v11251_v40 = vor.u32 %v12709_v30, %v11248_v61  ;;  %v9311_v0 = vor.u32 %v12227_v45, %v9310_v44  ;;  %v9022_v30 = vld [vmem:[#allocation8 + $0x68] sm:$0xf]  ;;  %v12155_v61 = vld [vmem:[#allocation8 + $0x7c] sm:$0xf0]  ;;  %v9238_v33 = vld [vmem:[#allocation8 + $0x218] sm:$0xf] }
 0x1c4   : > { %5767 = vmatpush.bf16.msra.mxu2 %v10123_v8  ;;  %v12209_v34 = vld [vmem:[#allocation8 + $0x22c] sm:$0xf0]  ;;  %v8998_v45 = vld [vmem:[#allocation8 + $0x38] sm:$0xf] }
 0x1c5   : > { %5791 = vmatpush.bf16.msrb.mxu0 %v10603_v57  ;;  %v11056_v57 = vld [vmem:[#allocation8 + $0x1068] sm:$0xf0]  ;;  %v9239_v44 = vor.u32 %v12209_v34, %v9238_v33  ;;  %v12425_v33 = vld [vmem:[#allocation8 + $0x8ec] sm:$0xf0] }
 0x1c6   : > { %5805 = vmatpush.bf16.msrb.mxu1 %v10795_v18  ;;  %v11059_v13 = vor.u32 %v12661_v2, %v11056_v57  ;;  %v10696_v18 = vld [vmem:[#allocation8 + $0xd98] sm:$0xf0]  ;;  %v12167_v2 = vld [vmem:[#allocation8 + $0xdc] sm:$0xf0] }
 0x1c7   : > { %5779 = vmatpush.bf16.msra.mxu3 %v10363_v28  ;;  %5768 = vmatmul.bf16.vlgmr.msra.gmra.mxu2 %v13711_v27  ;;  %v12221_v28 = vld [vmem:[#allocation8 + $0x28c] sm:$0xf0] }
 0x1c8   : > { %5816 = vmatpush.bf16.msrb.mxu2 %v11059_v13  ;;  %v9046_v13 = vld [vmem:[#allocation8 + $0x98] sm:$0xf] }
 0x1c9   : > { %5792 = vmatpush.bf16.msrb.mxu0 %v10579_v42  ;;  %v11032_v42 = vld [vmem:[#allocation8 + $0x1038] sm:$0xf0] }
 0x1ca   : > { %5806 = vmatpush.bf16.msrb.mxu1 %v10771_v35  ;;  %v11035_v22 = vor.u32 %v12655_v14, %v11032_v42  ;;  %v10315_v35 = vor.u32 %v12475_v17, %v10312_v25  ;;  %v12161_v14 = vld [vmem:[#allocation8 + $0xac] sm:$0xf0]  ;;  %v12215_v42 = vld [vmem:[#allocation8 + $0x25c] sm:$0xf0] }
 0x1cb   : > { %5780 = vmatpush.bf16.msra.mxu3 %v10339_v20  ;;  %v10963_v20 = vor.u32 %v12637_v10, %v10960_v11  ;;  %v9047_v25 = vor.u32 %v12161_v14, %v9046_v13  ;;  %v12197_v11 = vld [vmem:[#allocation8 + $0x1cc] sm:$0xf0] }
 0x1cc   : > { %5817 = vmatpush.bf16.msrb.mxu2 %v11035_v22  ;;  %v12377_v13 = vld [vmem:[#allocation8 + $0x76c] sm:$0xf0] }
 0x1cd   : > { %5793 = vmatpush.bf16.msrb.mxu0 %v10555_v31  ;;  %v10699_v31 = vor.u32 %v12571_v19, %v10696_v18  ;;  %v12691_v18 = vld [vmem:[#allocation8 + $0x1144] sm:$0xf] }
 0x1ce   : > { %5807 = vmatpush.bf16.msrb.mxu1 %v10747_v9  ;;  %v9070_v9 = vld [vmem:[#allocation8 + $0xc8] sm:$0xf] }
 0x1cf   : > { %5781 = vmatpush.bf16.msra.mxu3 %v10315_v35  ;;  %v9071_v8 = vor.u32 %v12167_v2, %v9070_v9  ;;  %v10939_v35 = vor.u32 %v12631_v1, %v10936_v29  ;;  %v12619_v9 = vld [vmem:[#allocation8 + $0xf04] sm:$0xf]  ;;  %v12191_v29 = vld [vmem:[#allocation8 + $0x19c] sm:$0xf0] }
 0x1d0   : > { %5818 = vmatpush.bf16.msrb.mxu2 %v11011_v52  ;;  %v12149_v52 = vld [vmem:[#allocation8 + $0x4c] sm:$0xf0] }
 0x1d1   : > { %5794 = vmatpush.bf16.msrb.mxu0 %v10531_v55  ;;  %v11224_v55 = vld [vmem:[#allocation8 + $0x11b8] sm:$0xf0]  ;;  %v8999_v2 = vor.u32 %v12149_v52, %v8998_v45  ;;  %v9862_v52 = vld [vmem:[#allocation8 + $0x6f8] sm:$0xf] }
 0x1d2   : > { %5808 = vmatpush.bf16.msrb.mxu1 %v10723_v15  ;;  %v11227_v57 = vor.u32 %v12703_v46, %v11224_v55  ;;  %5782 = vmatmul.bf16.vlgmr.msra.gmra.mxu3 %v13714_v48  ;;  %v11203_v15 = vor.u32 %v12697_v3, %v11200_v56  ;;  %v9214_v55 = vld [vmem:[#allocation8 + $0x1e8] sm:$0xf]  ;;  %v9526_v3 = vld [vmem:[#allocation8 + $0x458] sm:$0xf]  ;;  %v12281_v56 = vld [vmem:[#allocation8 + $0x46c] sm:$0xf0] }
 0x1d3   : > { %5830 = vmatpush.bf16.msrb.mxu3 %v11251_v40  ;;  %v10912_v40 = vld [vmem:[#allocation8 + $0xf48] sm:$0xf0] }
 0x1d4   : > { %5819 = vmatpush.bf16.msrb.mxu2 %v10987_v43  ;;  %v10915_v59 = vor.u32 %v12625_v36, %v10912_v40  ;;  %v9478_v36 = vld [vmem:[#allocation8 + $0x3f8] sm:$0xf]  ;;  %v12269_v40 = vld [vmem:[#allocation8 + $0x40c] sm:$0xf0] }
 0x1d5   : > { %5795 = vmatpush.bf16.msrb.mxu0 %v10507_v12  ;;  %v9287_v12 = vor.u32 %v12221_v28, %v9286_v58  ;;  %v5573_v17 = vpop.f32.mrf.mxu0  ;;  %v8974_v58 = vld [vmem:[#allocation8 + $0x8] sm:$0xf]  ;;  %v12143_v28 = vld [vmem:[#allocation8 + $0x1c] sm:$0xf0] }
 0x1d6   : > { %5809 = vmatpush.bf16.msrb.mxu1 %v10699_v31  ;;  %v5587_v19 = vpop.f32.mrf.mxu1  ;;  %v5574_v24 = vadd.f32 %v5573_v17, %v13746_v6  ;;  %v9023_v6 = vor.u32 %v12155_v61, %v9022_v30  ;;  %v9527_v17 = vor.u32 %v12281_v56, %v9526_v3  ;;  %v12371_v30 = vld [vmem:[#allocation8 + $0x73c] sm:$0xf0]  ;;  %v11080_v61 = vld [vmem:[#allocation8 + $0x1098] sm:$0xf0]  ;;  %v9838_v3 = vld [vmem:[#allocation8 + $0x6c8] sm:$0xf] }
 0x1d7   : > { %5831 = vmatpush.bf16.msrb.mxu3 %v11227_v57  ;;  %v10888_v57 = vld [vmem:[#allocation8 + $0xf18] sm:$0xf0]  ;;  %v12359_v56 = vld [vmem:[#allocation8 + $0x6dc] sm:$0xf0] }
 0x1d8   : > { %5796 = vmatmul.bf16.vlgmr.msrb.gmra.mxu0 %v13721_v37  ;;  %v13757_v31 = vadd.f32 %v5587_v19, %v5574_v24  ;;  %5820 = vmatpush.bf16.msrb.mxu2 %v10963_v20  ;;  %v10891_v14 = vor.u32 %v12619_v9, %v10888_v57  ;;  %v9502_v19 = vld [vmem:[#allocation8 + $0x428] sm:$0xf]  ;;  %v12667_v24 = vld [vmem:[#allocation8 + $0x1084] sm:$0xf] }
 0x1d9   : > { %5844 = vmatpush.bf16.msra.mxu0 %v9143_v16  ;;  %5810 = vmatmul.bf16.vlgmr.msrb.gmra.mxu1 %v13724_v4  ;;  %v9262_v16 = vld [vmem:[#allocation8 + $0x248] sm:$0xf] }
 0x1da   : > { %5858 = vmatpush.bf16.msra.mxu1 %v9335_v38  ;;  %v9263_v22 = vor.u32 %v12215_v42, %v9262_v16  ;;  %v12685_v38 = vld [vmem:[#allocation8 + $0x1114] sm:$0xf]  ;;  %v11104_v16 = vld [vmem:[#allocation8 + $0x10c8] sm:$0xf0]  ;;  %v8975_v42 = vor.u32 %v12143_v28, %v8974_v58  ;;  %v9694_v9 = vld [vmem:[#allocation8 + $0x5a8] sm:$0xf] }
 0x1db   : > { %5832 = vmatpush.bf16.msrb.mxu3 %v11203_v15  ;;  %v11155_v46 = vor.u32 %v12685_v38, %v11152_v21  ;;  %v12673_v15 = vld [vmem:[#allocation8 + $0x10b4] sm:$0xf]  ;;  %v12329_v38 = vld [vmem:[#allocation8 + $0x5ec] sm:$0xf0]  ;;  %v9454_v58 = vld [vmem:[#allocation8 + $0x3c8] sm:$0xf] }
 0x1dc   : > { %5821 = vmatpush.bf16.msrb.mxu2 %v10939_v35  ;;  %v11107_v1 = vor.u32 %v12673_v15, %v11104_v16  ;;  %v9718_v35 = vld [vmem:[#allocation8 + $0x5d8] sm:$0xf]  ;;  %v12263_v28 = vld [vmem:[#allocation8 + $0x3dc] sm:$0xf0]  ;;  %v9839_v15 = vor.u32 %v12359_v56, %v9838_v3  ;;  %v9598_v3 = vld [vmem:[#allocation8 + $0x4e8] sm:$0xf] }
 0x1dd   : > { %5845 = vmatpush.bf16.msra.mxu0 %v9119_v32  ;;  %v11179_v32 = vor.u32 %v12691_v18, %v11176_v23  ;;  %v12275_v23 = vld [vmem:[#allocation8 + $0x43c] sm:$0xf0]  ;;  %v9430_v16 = vld [vmem:[#allocation8 + $0x398] sm:$0xf] }
 0x1de   : > { %5859 = vmatpush.bf16.msra.mxu1 %v9311_v0  ;;  %v11128_v0 = vld [vmem:[#allocation8 + $0x10f8] sm:$0xf0]  ;;  %v9503_v34 = vor.u32 %v12275_v23, %v9502_v19  ;;  %v9814_v19 = vld [vmem:[#allocation8 + $0x698] sm:$0xf]  ;;  %v12299_v56 = vld [vmem:[#allocation8 + $0x4fc] sm:$0xf0] }
 0x1df   : > { %5833 = vmatpush.bf16.msrb.mxu3 %v11179_v32  ;;  %v11131_v10 = vor.u32 %v12679_v62, %v11128_v0  ;;  %v10102_v32 = vld [vmem:[#allocation8 + $0x8d8] sm:$0xf]  ;;  %v13761_v62 = vpop.f32.mrf.mxu2  ;;  %v9479_v0 = vor.u32 %v12269_v40, %v9478_v36  ;;  %v12401_v40 = vld [vmem:[#allocation8 + $0x82c] sm:$0xf0] }
 0x1e0   : > { %5822 = vmatpush.bf16.msrb.mxu2 %v10915_v59  ;;  %v10103_v45 = vor.u32 %v12425_v33, %v10102_v32  ;;  %v12419_v59 = vld [vmem:[#allocation8 + $0x8bc] sm:$0xf0]  ;;  %v9406_v33 = vld [vmem:[#allocation8 + $0x368] sm:$0xf]  ;;  %v10006_v36 = vld [vmem:[#allocation8 + $0x818] sm:$0xf] }
 0x1e1   : > { %5846 = vmatpush.bf16.msra.mxu0 %v9095_v26  ;;  %v12203_v26 = vld [vmem:[#allocation8 + $0x1fc] sm:$0xf0] }
 0x1e2   : > { %5860 = vmatpush.bf16.msra.mxu1 %v9287_v12  ;;  %v9215_v43 = vor.u32 %v12203_v26, %v9214_v55  ;;  %v9910_v12 = vld [vmem:[#allocation8 + $0x758] sm:$0xf]  ;;  %v9719_v55 = vor.u32 %v12329_v38, %v9718_v35  ;;  %v10078_v26 = vld [vmem:[#allocation8 + $0x8a8] sm:$0xf] }
 0x1e3   : > { %5834 = vmatpush.bf16.msrb.mxu3 %v11155_v46  ;;  %v9911_v18 = vor.u32 %v12377_v13, %v9910_v12  ;;  %v12365_v46 = vld [vmem:[#allocation8 + $0x70c] sm:$0xf0]  ;;  %v9455_v12 = vor.u32 %v12263_v28, %v9454_v58  ;;  %v9670_v13 = vld [vmem:[#allocation8 + $0x578] sm:$0xf]  ;;  %v9790_v38 = vld [vmem:[#allocation8 + $0x668] sm:$0xf] }
 0x1e4   : > { %5823 = vmatpush.bf16.msrb.mxu2 %v10891_v14  ;;  %v9863_v57 = vor.u32 %v12365_v46, %v9862_v52  ;;  %v12317_v14 = vld [vmem:[#allocation8 + $0x58c] sm:$0xf0]  ;;  %v12395_v58 = vld [vmem:[#allocation8 + $0x7fc] sm:$0xf0] }
 0x1e5   : > { %5847 = vmatpush.bf16.msra.mxu0 %v9071_v8  ;;  %v9190_v8 = vld [vmem:[#allocation8 + $0x1b8] sm:$0xf]  ;;  %v9671_v23 = vor.u32 %v12317_v14, %v9670_v13  ;;  %v12305_v52 = vld [vmem:[#allocation8 + $0x52c] sm:$0xf0]  ;;  %v12335_v13 = vld [vmem:[#allocation8 + $0x61c] sm:$0xf0] }
 0x1e6   : > { %5861 = vmatpush.bf16.msra.mxu1 %v9263_v22  ;;  %v9191_v20 = vor.u32 %v12197_v11, %v9190_v8  ;;  %v9886_v22 = vld [vmem:[#allocation8 + $0x728] sm:$0xf]  ;;  %v12413_v11 = vld [vmem:[#allocation8 + $0x88c] sm:$0xf0] }
 0x1e7   : > { %5835 = vmatpush.bf16.msrb.mxu3 %v11131_v10  ;;  %5824 = vmatmul.bf16.vlgmr.msrb.gmra.mxu2 %v13731_v5  ;;  %v10054_v10 = vld [vmem:[#allocation8 + $0x878] sm:$0xf] }
 0x1e8   : > { %5872 = vmatpush.bf16.msra.mxu2 %v9527_v17  ;;  %v10055_v17 = vor.u32 %v12413_v11, %v10054_v10  ;;  %v12239_v11 = vld [vmem:[#allocation8 + $0x31c] sm:$0xf0] }
 0x1e9   : > { %5848 = vmatpush.bf16.msra.mxu0 %v9047_v25  ;;  %v9166_v25 = vld [vmem:[#allocation8 + $0x188] sm:$0xf] }
 0x1ea   : > { %5862 = vmatpush.bf16.msra.mxu1 %v9239_v44  ;;  %v9167_v21 = vor.u32 %v12191_v29, %v9166_v25  ;;  %v11083_v44 = vor.u32 %v12667_v24, %v11080_v61  ;;  %v10030_v24 = vld [vmem:[#allocation8 + $0x848] sm:$0xf]  ;;  %v12407_v25 = vld [vmem:[#allocation8 + $0x85c] sm:$0xf0] }
 0x1eb   : > { %5836 = vmatpush.bf16.msrb.mxu3 %v11107_v1  ;;  %v5601_v1 = vpop.f32.mrf.mxu2  ;;  %v10031_v35 = vor.u32 %v12407_v25, %v10030_v24  ;;  %v9574_v25 = vld [vmem:[#allocation8 + $0x4b8] sm:$0xf] }
 0x1ec   : > { %5873 = vmatpush.bf16.msra.mxu2 %v9503_v34  ;;  %v5602_v61 = vadd.f32 %v5601_v1, %v13757_v31  ;;  %v12251_v34 = vld [vmem:[#allocation8 + $0x37c] sm:$0xf0]  ;;  %v10007_v31 = vor.u32 %v12401_v40, %v10006_v36  ;;  %v12293_v1 = vld [vmem:[#allocation8 + $0x4cc] sm:$0xf0]  ;;  %v13770_v40 = vpop.f32.mrf.mxu0 }
 0x1ed   : > { %5849 = vmatpush.bf16.msra.mxu0 %v9023_v6  ;;  %v9887_v6 = vor.u32 %v12371_v30, %v9886_v22  ;;  %v9646_v22 = vld [vmem:[#allocation8 + $0x548] sm:$0xf]  ;;  %v12311_v30 = vld [vmem:[#allocation8 + $0x55c] sm:$0xf0] }
 0x1ee   : > { %5863 = vmatpush.bf16.msra.mxu1 %v9215_v43  ;;  %v10079_v43 = vor.u32 %v12419_v59, %v10078_v26  ;;  %v12245_v26 = vld [vmem:[#allocation8 + $0x34c] sm:$0xf0]  ;;  %v9766_v59 = vld [vmem:[#allocation8 + $0x638] sm:$0xf]  ;;  %v12563_v36 = vld [vmem:[#allocation8 + $0xd3c] sm:$0xf0] }
 0x1ef   : > { %5837 = vmatpush.bf16.msrb.mxu3 %v11083_v44  ;;  %v9407_v44 = vor.u32 %v12251_v34, %v9406_v33  ;;  %v12467_v33 = vld [vmem:[#allocation8 + $0xa3c] sm:$0xf0]  ;;  %v9550_v34 = vld [vmem:[#allocation8 + $0x488] sm:$0xf] }
 0x1f0   : > { %5874 = vmatpush.bf16.msra.mxu2 %v9479_v0  ;;  %v12341_v0 = vld [vmem:[#allocation8 + $0x64c] sm:$0xf0] }
 0x1f1   : > { %5850 = vmatpush.bf16.msra.mxu0 %v8999_v2  ;;  %v12323_v2 = vld [vmem:[#allocation8 + $0x5bc] sm:$0xf0]  ;;  %v9767_v10 = vor.u32 %v12341_v0, %v9766_v59  ;;  %v10246_v0 = vld [vmem:[#allocation8 + $0x9f8] sm:$0xf] }
 0x1f2   : > { %5864 = vmatpush.bf16.msra.mxu1 %v9191_v20  ;;  %v9695_v8 = vor.u32 %v12323_v2, %v9694_v9  ;;  %5838 = vmatmul.bf16.vlgmr.msrb.gmra.mxu3 %v13735_v39  ;;  %v12353_v20 = vld [vmem:[#allocation8 + $0x6ac] sm:$0xf0] }
 0x1f3   : > { %5886 = vmatpush.bf16.msra.mxu3 %v9719_v55  ;;  %v9815_v32 = vor.u32 %v12353_v20, %v9814_v19  ;;  %v9382_v55 = vld [vmem:[#allocation8 + $0x338] sm:$0xf]  ;;  %v12389_v19 = vld [vmem:[#allocation8 + $0x7cc] sm:$0xf0] }
 0x1f4   : > { %5875 = vmatpush.bf16.msra.mxu2 %v9455_v12  ;;  %v9742_v12 = vld [vmem:[#allocation8 + $0x608] sm:$0xf]  ;;  %v10678_v20 = vld [vmem:[#allocation8 + $0xd58] sm:$0xf] }
 0x1f5   : > { %5851 = vmatpush.bf16.msra.mxu0 %v8975_v42  ;;  %v12257_v42 = vld [vmem:[#allocation8 + $0x3ac] sm:$0xf0] }
 0x1f6   : > { %5865 = vmatpush.bf16.msra.mxu1 %v9167_v21  ;;  %v9431_v29 = vor.u32 %v12257_v42, %v9430_v16  ;;  %v12347_v21 = vld [vmem:[#allocation8 + $0x67c] sm:$0xf0]  ;;  %v12473_v16 = vld [vmem:[#allocation8 + $0xa6c] sm:$0xf0]  ;;  %v9958_v42 = vld [vmem:[#allocation8 + $0x7b8] sm:$0xf] }
 0x1f7   : > { %5887 = vmatpush.bf16.msra.mxu3 %v9695_v8  ;;  %v9791_v46 = vor.u32 %v12347_v21, %v9790_v38  ;;  %v9358_v8 = vld [vmem:[#allocation8 + $0x308] sm:$0xf]  ;;  %v9575_v38 = vor.u32 %v12293_v1, %v9574_v25  ;;  %v12383_v21 = vld [vmem:[#allocation8 + $0x79c] sm:$0xf0]  ;;  %v12605_v25 = vld [vmem:[#allocation8 + $0xe8c] sm:$0xf0] }
 0x1f8   : > { %5852 = vmatmul.bf16.vlgmr.msra.gmra.mxu0 %v13689_v41  ;;  %5876 = vmatpush.bf16.msra.mxu2 %v9431_v29  ;;  %v9359_v24 = vor.u32 %v12239_v11, %v9358_v8  ;;  %v9743_v29 = vor.u32 %v12335_v13, %v9742_v12  ;;  %v12611_v8 = vld [vmem:[#allocation8 + $0xebc] sm:$0xf0]  ;;  %v10462_v11 = vld [vmem:[#allocation8 + $0xba8] sm:$0xf] }
 0x1f9   : > { %5900 = vmatpush.bf16.msrb.mxu0 %v9911_v18  ;;  %5866 = vmatmul.bf16.vlgmr.msra.gmra.mxu1 %v13693_v60  ;;  %v13765_v18 = vpop.f32.mrf.mxu3  ;;  %v12515_v12 = vld [vmem:[#allocation8 + $0xbbc] sm:$0xf0] }
 0x1fa   : > { %5914 = vmatpush.bf16.msrb.mxu1 %v10103_v45  ;;  %v9622_v45 = vld [vmem:[#allocation8 + $0x518] sm:$0xf] }
 0x1fb   : > { %5888 = vmatpush.bf16.msra.mxu3 %v9671_v23  ;;  %v9623_v2 = vor.u32 %v12305_v52, %v9622_v45  ;;  %v12569_v23 = vld [vmem:[#allocation8 + $0xd6c] sm:$0xf0]  ;;  %v10870_v45 = vld [vmem:[#allocation8 + $0xed8] sm:$0xf] }
 0x1fc   : > { %5877 = vmatpush.bf16.msra.mxu2 %v9407_v44  ;;  %v12287_v44 = vld [vmem:[#allocation8 + $0x49c] sm:$0xf0]  ;;  %v12617_v52 = vld [vmem:[#allocation8 + $0xeec] sm:$0xf0] }
 0x1fd   : > { %5901 = vmatpush.bf16.msrb.mxu0 %v9887_v6  ;;  %v9647_v6 = vor.u32 %v12311_v30, %v9646_v22  ;;  %v10270_v30 = vld [vmem:[#allocation8 + $0xa28] sm:$0xf] }
 0x1fe   : > { %5915 = vmatpush.bf16.msrb.mxu1 %v10079_v43  ;;  %v9383_v43 = vor.u32 %v12245_v26, %v9382_v55  ;;  %v10486_v55 = vld [vmem:[#allocation8 + $0xbd8] sm:$0xf]  ;;  %v12521_v26 = vld [vmem:[#allocation8 + $0xbec] sm:$0xf0] }
 0x1ff   : > { %5889 = vmatpush.bf16.msra.mxu3 %v9647_v6  ;;  %v10654_v6 = vld [vmem:[#allocation8 + $0xd28] sm:$0xf] }
 0x200   : > { %5878 = vmatpush.bf16.msra.mxu2 %v9383_v43  ;;  %v10655_v59 = vor.u32 %v12563_v36, %v10654_v6  ;;  %v12557_v43 = vld [vmem:[#allocation8 + $0xd0c] sm:$0xf0]  ;;  %v10798_v6 = vld [vmem:[#allocation8 + $0xe48] sm:$0xf]  ;;  %v12599_v36 = vld [vmem:[#allocation8 + $0xe5c] sm:$0xf0] }
 0x201   : > { %5902 = vmatpush.bf16.msrb.mxu0 %v9863_v57  ;;  %v5615_v9 = vpop.f32.mrf.mxu3  ;;  %v9982_v57 = vld [vmem:[#allocation8 + $0x7e8] sm:$0xf] }
 0x202   : > { %5916 = vmatpush.bf16.msrb.mxu1 %v10055_v17  ;;  %v13768_v28 = vadd.f32 %v5615_v9, %v5602_v61  ;;  %v9983_v14 = vor.u32 %v12395_v58, %v9982_v57  ;;  %v9599_v17 = vor.u32 %v12299_v56, %v9598_v3  ;;  %v9959_v61 = vor.u32 %v12389_v19, %v9958_v42  ;;  %v12461_v9 = vld [vmem:[#allocation8 + $0xa0c] sm:$0xf0]  ;;  %v10630_v58 = vld [vmem:[#allocation8 + $0xcf8] sm:$0xf]  ;;  %v10846_v56 = vld [vmem:[#allocation8 + $0xea8] sm:$0xf] }
 0x203   : > { %5890 = vmatpush.bf16.msra.mxu3 %v9623_v2  ;;  %v9551_v2 = vor.u32 %v12287_v44, %v9550_v34  ;;  %v10871_v57 = vor.u32 %v12617_v52, %v10870_v45  ;;  %v10487_v3 = vor.u32 %v12521_v26, %v10486_v55  ;;  %v10631_v13 = vor.u32 %v12557_v43, %v10630_v58  ;;  %v12551_v19 = vld [vmem:[#allocation8 + $0xcdc] sm:$0xf0]  ;;  %v12593_v58 = vld [vmem:[#allocation8 + $0xe2c] sm:$0xf0] }
 0x204   : > { %5879 = vmatpush.bf16.msra.mxu2 %v9359_v24  ;;  %v10847_v42 = vor.u32 %v12611_v8, %v10846_v56  ;;  %v10822_v24 = vld [vmem:[#allocation8 + $0xe78] sm:$0xf]  ;;  %v12503_v45 = vld [vmem:[#allocation8 + $0xb5c] sm:$0xf0]  ;;  %v12497_v8 = vld [vmem:[#allocation8 + $0xb2c] sm:$0xf0] }
 0x205   : > { %5903 = vmatpush.bf16.msrb.mxu0 %v9839_v15  ;;  %v10294_v15 = vld [vmem:[#allocation8 + $0xa58] sm:$0xf]  ;;  %v10823_v34 = vor.u32 %v12605_v25, %v10822_v24  ;;  %v12443_v55 = vld [vmem:[#allocation8 + $0x97c] sm:$0xf0]  ;;  %v10126_v25 = vld [vmem:[#allocation8 + $0x908] sm:$0xf] }
 0x206   : > { %5917 = vmatpush.bf16.msrb.mxu1 %v10031_v35  ;;  %v10295_v22 = vor.u32 %v12473_v16, %v10294_v15  ;;  %v9934_v35 = vld [vmem:[#allocation8 + $0x788] sm:$0xf]  ;;  %v12455_v15 = vld [vmem:[#allocation8 + $0x9dc] sm:$0xf0]  ;;  %v13774_v16 = vpop.f32.mrf.mxu1  ;;  %v10390_v56 = vld [vmem:[#allocation8 + $0xb18] sm:$0xf] }
 0x207   : > { %5891 = vmatpush.bf16.msra.mxu3 %v9599_v17  ;;  %5880 = vmatmul.bf16.vlgmr.msra.gmra.mxu2 %v13685_v54  ;;  %v10606_v17 = vld [vmem:[#allocation8 + $0xcc8] sm:$0xf]  ;;  %v12491_v24 = vld [vmem:[#allocation8 + $0xafc] sm:$0xf0] }
 0x208   : > { %5928 = vmatpush.bf16.msrb.mxu2 %v10295_v22  ;;  %v10438_v22 = vld [vmem:[#allocation8 + $0xb78] sm:$0xf] }
 0x209   : > { %5904 = vmatpush.bf16.msrb.mxu0 %v9815_v32  ;;  %v10679_v32 = vor.u32 %v12569_v23, %v10678_v20  ;;  %v5629_v20 = vpop.f32.mrf.mxu0  ;;  %v10463_v23 = vor.u32 %v12515_v12, %v10462_v11  ;;  %v10150_v11 = vld [vmem:[#allocation8 + $0x938] sm:$0xf]  ;;  %v12437_v12 = vld [vmem:[#allocation8 + $0x94c] sm:$0xf0] }
 0x20a   : > { %5918 = vmatpush.bf16.msrb.mxu1 %v10007_v31  ;;  %v9935_v31 = vor.u32 %v12383_v21, %v9934_v35  ;;  %v5630_v1 = vadd.f32 %v5629_v20, %v13768_v28  ;;  %v10582_v35 = vld [vmem:[#allocation8 + $0xc98] sm:$0xf]  ;;  %v10414_v28 = vld [vmem:[#allocation8 + $0xb48] sm:$0xf]  ;;  %v10151_v20 = vor.u32 %v12437_v12, %v10150_v11  ;;  %v9120_v11 = vld [vmem:[#allocation8 + $0x140] sm:$0xf0] }
 0x20b   : > { %5892 = vmatpush.bf16.msra.mxu3 %v9575_v38  ;;  %v12545_v38 = vld [vmem:[#allocation8 + $0xcac] sm:$0xf0]  ;;  %v12479_v12 = vld [vmem:[#allocation8 + $0xa9c] sm:$0xf0] }
 0x20c   : > { %v10583_v52 = vor.u32 %v12545_v38, %v10582_v35  ;;  %v10726_v35 = vld [vmem:[#allocation8 + $0xdb8] sm:$0xf] }
 0x20d   : > { %5905 = vmatpush.bf16.msrb.mxu0 %v9791_v46  ;;  %v10271_v46 = vor.u32 %v12467_v33, %v10270_v30  ;;  %v12509_v30 = vld [vmem:[#allocation8 + $0xb8c] sm:$0xf0] }
 0x20e   : > { %5919 = vmatpush.bf16.msrb.mxu1 %v9983_v14  ;;  %v10222_v14 = vld [vmem:[#allocation8 + $0x9c8] sm:$0xf]  ;;  %v12449_v33 = vld [vmem:[#allocation8 + $0x9ac] sm:$0xf0]  ;;  %v10439_v21 = vor.u32 %v12509_v30, %v10438_v22  ;;  %v12527_v30 = vld [vmem:[#allocation8 + $0xc1c] sm:$0xf0] }
 0x20f   : > { %5929 = vmatpush.bf16.msrb.mxu2 %v10271_v46  ;;  %5893 = vmatpush.bf16.msra.mxu3 %v9551_v2  ;;  %v10174_v46 = vld [vmem:[#allocation8 + $0x968] sm:$0xf]  ;;  %v10415_v2 = vor.u32 %v12503_v45, %v10414_v28  ;;  %v10342_v28 = vld [vmem:[#allocation8 + $0xab8] sm:$0xf]  ;;  %v12485_v45 = vld [vmem:[#allocation8 + $0xacc] sm:$0xf0] }
 0x210   : > { %v5643_v26 = vpop.f32.mrf.mxu1  ;;  %v10510_v22 = vld [vmem:[#allocation8 + $0xc08] sm:$0xf] }
 0x211   : > { %5906 = vmatpush.bf16.msrb.mxu0 %v9767_v10  ;;  %v10247_v10 = vor.u32 %v12461_v9, %v10246_v0  ;;  %v12539_v0 = vld [vmem:[#allocation8 + $0xc7c] sm:$0xf0]  ;;  %v13779_v9 = vadd.f32 %v5643_v26, %v5630_v1  ;;  %v13781_v43 = vpop.f32.mrf.mxu0 }
 0x212   : > { %5920 = vmatpush.bf16.msrb.mxu1 %v9959_v61  ;;  %5894 = vmatmul.bf16.vlgmr.msra.gmra.mxu3 %v13696_v7  ;;  %v10607_v61 = vor.u32 %v12551_v19, %v10606_v17  ;;  %v10750_v17 = vld [vmem:[#allocation8 + $0xde8] sm:$0xf]  ;;  %v12587_v19 = vld [vmem:[#allocation8 + $0xdfc] sm:$0xf0] }
 0x213   : > { %5942 = vmatpush.bf16.msrb.mxu3 %v10487_v3  ;;  %5930 = vmatpush.bf16.msrb.mxu2 %v10247_v10  ;;  %v10175_v3 = vor.u32 %v12443_v55, %v10174_v46  ;;  %v10511_v55 = vor.u32 %v12527_v30, %v10510_v22 }
 0x215   : > { %5907 = vmatpush.bf16.msrb.mxu0 %v9743_v29  ;;  %v10223_v29 = vor.u32 %v12455_v15, %v10222_v14  ;;  %v10534_v14 = vld [vmem:[#allocation8 + $0xc38] sm:$0xf]  ;;  %v12533_v15 = vld [vmem:[#allocation8 + $0xc4c] sm:$0xf0] }
 0x216   : > { %5921 = vmatpush.bf16.msrb.mxu1 %v9935_v31  ;;  %v10799_v31 = vor.u32 %v12599_v36, %v10798_v6  ;;  %v10535_v1 = vor.u32 %v12533_v15, %v10534_v14  ;;  %v12182_v6 = vld [vmem:[#allocation8 + $0x15c] sm:$0xf]  ;;  %v9144_v36 = vld [vmem:[#allocation8 + $0x170] sm:$0xf0] }
 0x217   : > { %5943 = vmatpush.bf16.msrb.mxu3 %v10463_v23  ;;  %5931 = vmatpush.bf16.msrb.mxu2 %v10223_v29  ;;  %v10366_v23 = vld [vmem:[#allocation8 + $0xae8] sm:$0xf]  ;;  %v12431_v29 = vld [vmem:[#allocation8 + $0x91c] sm:$0xf0]  ;;  %v9336_v14 = vld [vmem:[#allocation8 + $0x2f0] sm:$0xf0] }
 0x218   : > { %5908 = vmatmul.bf16.vlgmr.msrb.gmra.mxu0 %v13703_v50  ;;  %v10367_v38 = vor.u32 %v12491_v24, %v10366_v23 }
 0x219   : > { %5956 = vmatpush.bf16.msra.mxu0 %v10679_v32  ;;  %5922 = vmatmul.bf16.vlgmr.msrb.gmra.mxu1 %v13705_v53  ;;  %v10198_v32 = vld [vmem:[#allocation8 + $0x998] sm:$0xf] }
 0x21a   : > { %5970 = vmatpush.bf16.msra.mxu1 %v10871_v57  ;;  %v10199_v44 = vor.u32 %v12449_v33, %v10198_v32  ;;  %v10774_v57 = vld [vmem:[#allocation8 + $0xe18] sm:$0xf]  ;;  %v10751_v32 = vor.u32 %v12587_v19, %v10750_v17  ;;  %v12713_v19 = vld [vmem:[#allocation8 + $0x11ec] sm:$0xf0] }
 0x21b   : > { %5944 = vmatpush.bf16.msrb.mxu3 %v10439_v21  ;;  %v11062_v33 = vld [vmem:[#allocation8 + $0x1058] sm:$0xf]  ;;  %v12581_v21 = vld [vmem:[#allocation8 + $0xdcc] sm:$0xf0] }
 0x21c   : > { %5932 = vmatpush.bf16.msrb.mxu2 %v10199_v44  ;;  %v10127_v44 = vor.u32 %v12431_v29, %v10126_v25  ;;  %v11254_v17 = vld [vmem:[#allocation8 + $0x11d8] sm:$0xf] }
 0x21d   : > { %5957 = vmatpush.bf16.msra.mxu0 %v10655_v59  ;;  %v10558_v59 = vld [vmem:[#allocation8 + $0xc68] sm:$0xf]  ;;  %v11014_v25 = vld [vmem:[#allocation8 + $0xff8] sm:$0xf] }
 0x21e   : > { %5971 = vmatpush.bf16.msra.mxu1 %v10847_v42  ;;  %v10559_v10 = vor.u32 %v12539_v0, %v10558_v59  ;;  %v10391_v42 = vor.u32 %v12497_v8, %v10390_v56  ;;  %v5685_v59 = vpop.f32.mrf.mxu0  ;;  %v10727_v0 = vor.u32 %v12581_v21, %v10726_v35  ;;  %v10343_v56 = vor.u32 %v12485_v45, %v10342_v28  ;;  %v12575_v8 = vld [vmem:[#allocation8 + $0xd9c] sm:$0xf0]  ;;  %v12224_v35 = vld [vmem:[#allocation8 + $0x2ac] sm:$0xf]  ;;  %v10990_v28 = vld [vmem:[#allocation8 + $0xfc8] sm:$0xf] }
 0x21f   : > { %5945 = vmatpush.bf16.msrb.mxu3 %v10415_v2  ;;  %v9147_v2 = vor.u32 %v12182_v6, %v9144_v36  ;;  %v11230_v6 = vld [vmem:[#allocation8 + $0x11a8] sm:$0xf]  ;;  %v12707_v36 = vld [vmem:[#allocation8 + $0x11bc] sm:$0xf0] }
 0x220   : > { %5933 = vmatpush.bf16.msrb.mxu2 %v10175_v3  ;;  %v10702_v3 = vld [vmem:[#allocation8 + $0xd88] sm:$0xf]  ;;  %v12647_v45 = vld [vmem:[#allocation8 + $0xfdc] sm:$0xf0] }
 0x221   : > { %5958 = vmatpush.bf16.msra.mxu0 %v10631_v13  ;;  %v10775_v13 = vor.u32 %v12593_v58, %v10774_v57  ;;  %v12659_v57 = vld [vmem:[#allocation8 + $0x103c] sm:$0xf0]  ;;  %v10318_v58 = vld [vmem:[#allocation8 + $0xa88] sm:$0xf]  ;;  %v10703_v23 = vor.u32 %v12575_v8, %v10702_v3  ;;  %v11206_v3 = vld [vmem:[#allocation8 + $0x1178] sm:$0xf] }
 0x222   : > { %5972 = vmatpush.bf16.msra.mxu1 %v10823_v34  ;;  %v12665_v34 = vld [vmem:[#allocation8 + $0x106c] sm:$0xf0]  ;;  %v10319_v22 = vor.u32 %v12479_v12, %v10318_v58  ;;  %v10991_v58 = vor.u32 %v12647_v45, %v10990_v28 }
 0x223   : > { %5946 = vmatpush.bf16.msrb.mxu3 %v10391_v42  ;;  %v11063_v26 = vor.u32 %v12665_v34, %v11062_v33  ;;  %v9096_v33 = vld [vmem:[#allocation8 + $0x110] sm:$0xf0]  ;;  %v11255_v34 = vor.u32 %v12713_v19, %v11254_v17  ;;  %v9264_v17 = vld [vmem:[#allocation8 + $0x260] sm:$0xf0]  ;;  %v12689_v28 = vld [vmem:[#allocation8 + $0x112c] sm:$0xf0] }
 0x224   : > { %5934 = vmatpush.bf16.msrb.mxu2 %v10151_v20 }
 0x225   : > { %5959 = vmatpush.bf16.msra.mxu0 %v10607_v61  ;;  %v13783_v61 = vpop.f32.mrf.mxu1 }
 0x226   : > { %5973 = vmatpush.bf16.msra.mxu1 %v10799_v31  ;;  %v11038_v31 = vld [vmem:[#allocation8 + $0x1028] sm:$0xf] }
 0x227   : > { %5947 = vmatpush.bf16.msrb.mxu3 %v10367_v38  ;;  %v11039_v42 = vor.u32 %v12659_v57, %v11038_v31  ;;  %v9312_v38 = vld [vmem:[#allocation8 + $0x2c0] sm:$0xf0]  ;;  %v12164_v31 = vld [vmem:[#allocation8 + $0xcc] sm:$0xf]  ;;  %v9288_v57 = vld [vmem:[#allocation8 + $0x290] sm:$0xf0] }
 0x228   : > { %5935 = vmatpush.bf16.msrb.mxu2 %v10127_v44 }
 0x229   : > { %5960 = vmatpush.bf16.msra.mxu0 %v10583_v52  ;;  %v13785_v52 = vld [vmem:[#allocation10] sm:$0x3f] }
 0x22a   : > { %5974 = vmatpush.bf16.msra.mxu1 %v10775_v13  ;;  %v14161_v46 = vperm.slane %v13785_v52, 1  ;;  %v12230_v13 = vld [vmem:[#allocation8 + $0x2dc] sm:$0xf] }
 0x22b   : > { %5948 = vmatpush.bf16.msrb.mxu3 %v10343_v56  ;;  %5936 = vmatmul.bf16.vlgmr.msrb.gmra.mxu2 %v13711_v27  ;;  %v9339_v30 = vor.u32 %v12230_v13, %v9336_v14  ;;  %v12701_v56 = vld [vmem:[#allocation8 + $0x118c] sm:$0xf0]  ;;  %v12158_v13 = vld [vmem:[#allocation8 + $0x9c] sm:$0xf]  ;;  %v9048_v14 = vld [vmem:[#allocation8 + $0xb0] sm:$0xf0] }
 0x22c   : > { %v5686_v15 = vadd.f32 %v5685_v59, %v14161_v46  ;;  %5984 = vmatpush.bf16.msra.mxu2 %v11063_v26  ;;  %v9315_v26 = vor.u32 %v12224_v35, %v9312_v38  ;;  %v9072_v59 = vld [vmem:[#allocation8 + $0xe0] sm:$0xf0] }
 0x22d   : > { %5961 = vmatpush.bf16.msra.mxu0 %v10559_v10  ;;  %v12176_v10 = vld [vmem:[#allocation8 + $0x12c] sm:$0xf]  ;;  %v5699_v20 = vpop.f32.mrf.mxu1  ;;  %v9075_v8 = vor.u32 %v12164_v31, %v9072_v59  ;;  %v12629_v31 = vld [vmem:[#allocation8 + $0xf4c] sm:$0xf0]  ;;  %v10272_v46 = vld [vmem:[#allocation8 + $0xa40] sm:$0xf0] }
 0x22e   : > { %5975 = vmatpush.bf16.msra.mxu1 %v10751_v32  ;;  %v9123_v24 = vor.u32 %v12176_v10, %v9120_v11  ;;  %v13790_v29 = vadd.f32 %v5699_v20, %v5686_v15  ;;  %v12170_v32 = vld [vmem:[#allocation8 + $0xfc] sm:$0xf]  ;;  %v10966_v10 = vld [vmem:[#allocation8 + $0xf98] sm:$0xf]  ;;  %v12641_v11 = vld [vmem:[#allocation8 + $0xfac] sm:$0xf0]  ;;  %v11207_v15 = vor.u32 %v12701_v56, %v11206_v3 }
 0x22f   : > { %v9099_v44 = vor.u32 %v12170_v32, %v9096_v33  ;;  %5949 = vmatpush.bf16.msrb.mxu3 %v10319_v22  ;;  %v10967_v19 = vor.u32 %v12641_v11, %v10966_v10  ;;  %v11182_v20 = vld [vmem:[#allocation8 + $0x1148] sm:$0xf]  ;;  %v12635_v22 = vld [vmem:[#allocation8 + $0xf7c] sm:$0xf0]  ;;  %v12152_v33 = vld [vmem:[#allocation8 + $0x6c] sm:$0xf] }
 0x230   : > { %5985 = vmatpush.bf16.msra.mxu2 %v11039_v42  ;;  %v12212_v42 = vld [vmem:[#allocation8 + $0x24c] sm:$0xf]  ;;  %v9216_v3 = vld [vmem:[#allocation8 + $0x200] sm:$0xf0]  ;;  %v11134_v56 = vld [vmem:[#allocation8 + $0x10e8] sm:$0xf] }
 0x231   : > { %5962 = vmatpush.bf16.msra.mxu0 %v10535_v1  ;;  %v12653_v1 = vld [vmem:[#allocation8 + $0x100c] sm:$0xf0]  ;;  %v9267_v32 = vor.u32 %v12212_v42, %v9264_v17  ;;  %v10894_v10 = vld [vmem:[#allocation8 + $0xf08] sm:$0xf] }
 0x232   : > { %5976 = vmatpush.bf16.msra.mxu1 %v10727_v0  ;;  %v11015_v21 = vor.u32 %v12653_v1, %v11014_v25  ;;  %v11231_v0 = vor.u32 %v12707_v36, %v11230_v6  ;;  %5950 = vmatmul.bf16.vlgmr.msrb.gmra.mxu3 %v13714_v48  ;;  %v9051_v25 = vor.u32 %v12158_v13, %v9048_v14  ;;  %v10942_v1 = vld [vmem:[#allocation8 + $0xf68] sm:$0xf]  ;;  %v9240_v6 = vld [vmem:[#allocation8 + $0x230] sm:$0xf0]  ;;  %v12623_v13 = vld [vmem:[#allocation8 + $0xf1c] sm:$0xf0] }
 0x233   : > { %5998 = vmatpush.bf16.msra.mxu3 %v11255_v34  ;;  %v9024_v34 = vld [vmem:[#allocation8 + $0x80] sm:$0xf0]  ;;  %v10943_v36 = vor.u32 %v12635_v22, %v10942_v1  ;;  %v12140_v14 = vld [vmem:[#allocation8 + $0xc] sm:$0xf]  ;;  %v9192_v22 = vld [vmem:[#allocation8 + $0x1d0] sm:$0xf0] }
 0x234   : > { %5986 = vmatpush.bf16.msra.mxu2 %v11015_v21  ;;  %v12206_v21 = vld [vmem:[#allocation8 + $0x21c] sm:$0xf]  ;;  %v9027_v45 = vor.u32 %v12152_v33, %v9024_v34  ;;  %v10895_v33 = vor.u32 %v12623_v13, %v10894_v10  ;;  %v11110_v34 = vld [vmem:[#allocation8 + $0x10b8] sm:$0xf] }
 0x235   : > { %5963 = vmatpush.bf16.msra.mxu0 %v10511_v55  ;;  %v13794_v55 = vpop.f32.mrf.mxu2  ;;  %v9243_v59 = vor.u32 %v12206_v21, %v9240_v6  ;;  %v13805_v21 = vpop.f32.mrf.mxu0 }
 0x236   : > { %5977 = vmatpush.bf16.msra.mxu1 %v10703_v23  ;;  %v12695_v23 = vld [vmem:[#allocation8 + $0x115c] sm:$0xf0] }
 0x237   : > { %5999 = vmatpush.bf16.msra.mxu3 %v11231_v0  ;;  %v11183_v38 = vor.u32 %v12695_v23, %v11182_v20  ;;  %v12146_v0 = vld [vmem:[#allocation8 + $0x3c] sm:$0xf]  ;;  %v9528_v23 = vld [vmem:[#allocation8 + $0x470] sm:$0xf0] }
 0x238   : > { %5964 = vmatmul.bf16.vlgmr.msra.gmra.mxu0 %v13721_v37  ;;  %5987 = vmatpush.bf16.msra.mxu2 %v10991_v58  ;;  %v12200_v58 = vld [vmem:[#allocation8 + $0x1ec] sm:$0xf]  ;;  %v12278_v20 = vld [vmem:[#allocation8 + $0x45c] sm:$0xf] }
 0x239   : > { %6012 = vmatpush.bf16.msrb.mxu0 %v9147_v2  ;;  %v12218_v2 = vld [vmem:[#allocation8 + $0x27c] sm:$0xf]  ;;  %5978 = vmatmul.bf16.vlgmr.msra.gmra.mxu1 %v13724_v4  ;;  %v9531_v6 = vor.u32 %v12278_v20, %v9528_v23  ;;  %v9480_v20 = vld [vmem:[#allocation8 + $0x410] sm:$0xf0] }
 0x23a   : > { %6026 = vmatpush.bf16.msrb.mxu1 %v9339_v30  ;;  %v9291_v12 = vor.u32 %v12218_v2, %v9288_v57  ;;  %v9000_v2 = vld [vmem:[#allocation8 + $0x50] sm:$0xf0] }
 0x23b   : > { %6000 = vmatpush.bf16.msra.mxu3 %v11207_v15  ;;  %v8976_v15 = vld [vmem:[#allocation8 + $0x20] sm:$0xf0] }
 0x23c   : > { %5988 = vmatpush.bf16.msra.mxu2 %v10967_v19  ;;  %v9219_v19 = vor.u32 %v12200_v58, %v9216_v3  ;;  %v12671_v58 = vld [vmem:[#allocation8 + $0x109c] sm:$0xf0]  ;;  %v12422_v3 = vld [vmem:[#allocation8 + $0x8dc] sm:$0xf] }
 0x23d   : > { %6013 = vmatpush.bf16.msrb.mxu0 %v9123_v24  ;;  %v13798_v24 = vpop.f32.mrf.mxu3  ;;  %v5657_v30 = vpop.f32.mrf.mxu2 }
 0x23e   : > { %6027 = vmatpush.bf16.msrb.mxu1 %v9315_v26  ;;  %v5658_v35 = vadd.f32 %v5657_v30, %v13779_v9  ;;  %v10918_v26 = vld [vmem:[#allocation8 + $0xf38] sm:$0xf]  ;;  %v12374_v30 = vld [vmem:[#allocation8 + $0x75c] sm:$0xf] }
 0x23f   : > { %6001 = vmatpush.bf16.msra.mxu3 %v11183_v38  ;;  %v10919_v9 = vor.u32 %v12629_v31, %v10918_v26  ;;  %v12677_v38 = vld [vmem:[#allocation8 + $0x10cc] sm:$0xf0]  ;;  %v11086_v26 = vld [vmem:[#allocation8 + $0x1088] sm:$0xf]  ;;  %v12188_v31 = vld [vmem:[#allocation8 + $0x18c] sm:$0xf] }
 0x240   : > { %5989 = vmatpush.bf16.msra.mxu2 %v10943_v36  ;;  %v12272_v36 = vld [vmem:[#allocation8 + $0x42c] sm:$0xf] }
 0x241   : > { %6014 = vmatpush.bf16.msrb.mxu0 %v9099_v44  ;;  %v11158_v44 = vld [vmem:[#allocation8 + $0x1118] sm:$0xf] }
 0x242   : > { %6028 = vmatpush.bf16.msrb.mxu1 %v9291_v12  ;;  %v11159_v57 = vor.u32 %v12689_v28, %v11158_v44  ;;  %v9003_v12 = vor.u32 %v12146_v0, %v9000_v2  ;;  %v9168_v0 = vld [vmem:[#allocation8 + $0x1a0] sm:$0xf0]  ;;  %v12368_v2 = vld [vmem:[#allocation8 + $0x72c] sm:$0xf] }
 0x244   : > { %6002 = vmatpush.bf16.msra.mxu3 %v11159_v57  ;;  %5990 = vmatpush.bf16.msra.mxu2 %v10919_v9  ;;  %v9888_v57 = vld [vmem:[#allocation8 + $0x740] sm:$0xf0]  ;;  %v10104_v9 = vld [vmem:[#allocation8 + $0x8f0] sm:$0xf0] }
 0x245   : > { %6015 = vmatpush.bf16.msrb.mxu0 %v9075_v8  ;;  %v12683_v8 = vld [vmem:[#allocation8 + $0x10fc] sm:$0xf0]  ;;  %v5671_v11 = vpop.f32.mrf.mxu3  ;;  %v13803_v17 = vpop.f32.mrf.mxu2 }
 0x246   : > { %6029 = vmatpush.bf16.msrb.mxu1 %v9267_v32  ;;  %v13801_v42 = vadd.f32 %v5671_v11, %v5658_v35  ;;  %14179 = vst [vmem:[#allocation25_spill] sm:$0xff] %v13803_v17  ;;  %v11135_v1 = vor.u32 %v12683_v8, %v11134_v56  ;;  %v9912_v32 = vld [vmem:[#allocation8 + $0x770] sm:$0xf0]  ;;  %v8979_v35 = vor.u32 %v12140_v14, %v8976_v15  ;;  %v13807_v56 = vpop.f32.mrf.mxu1  ;;  %v12326_v11 = vld [vmem:[#allocation8 + $0x5dc] sm:$0xf] }
 0x247   : > { %v9915_v28 = vor.u32 %v12374_v30, %v9912_v32  ;;  %v9171_v14 = vor.u32 %v12188_v31, %v9168_v0  ;;  %v9891_v15 = vor.u32 %v12368_v2, %v9888_v57  ;;  %v9864_v30 = vld [vmem:[#allocation8 + $0x710] sm:$0xf0]  ;;  %v9840_v31 = vld [vmem:[#allocation8 + $0x6e0] sm:$0xf0]  ;;  %v12410_v0 = vld [vmem:[#allocation8 + $0x87c] sm:$0xf] }
 0x248   : > { %14178 = vst [vmem:[#allocation24_spill] sm:$0xff] %v13801_v42  ;;  %6003 = vmatpush.bf16.msra.mxu3 %v11135_v1  ;;  %5991 = vmatpush.bf16.msra.mxu2 %v10895_v33  ;;  %v10107_v1 = vor.u32 %v12422_v3, %v10104_v9  ;;  %v12416_v33 = vld [vmem:[#allocation8 + $0x8ac] sm:$0xf]  ;;  %v10056_v2 = vld [vmem:[#allocation8 + $0x890] sm:$0xf0] }
 0x249   : > { %6016 = vmatpush.bf16.msrb.mxu0 %v9051_v25  ;;  %v12194_v25 = vld [vmem:[#allocation8 + $0x1bc] sm:$0xf]  ;;  %v9672_v9 = vld [vmem:[#allocation8 + $0x590] sm:$0xf0]  ;;  %v9936_v42 = vld [vmem:[#allocation8 + $0x7a0] sm:$0xf0] }
 0x24a   : > { %6030 = vmatpush.bf16.msrb.mxu1 %v9243_v59  ;;  %v9195_v44 = vor.u32 %v12194_v25, %v9192_v22  ;;  %v11111_v59 = vor.u32 %v12677_v38, %v11110_v34  ;;  %v11087_v25 = vor.u32 %v12671_v58, %v11086_v26  ;;  %v12362_v22 = vld [vmem:[#allocation8 + $0x6fc] sm:$0xf]  ;;  %v10080_v34 = vld [vmem:[#allocation8 + $0x8c0] sm:$0xf0]  ;;  %v12356_v26 = vld [vmem:[#allocation8 + $0x6cc] sm:$0xf] }
 0x24b   : > { %5992 = vmatmul.bf16.vlgmr.msra.gmra.mxu2 %v13731_v5  ;;  %v12314_v3 = vld [vmem:[#allocation8 + $0x57c] sm:$0xf]  ;;  %v9126_v17 = vld [vmem:[#allocation8 + $0x130] sm:$0xf] }
 0x24c   : > { %6040 = vmatpush.bf16.msrb.mxu2 %v9531_v6  ;;  %6004 = vmatpush.bf16.msra.mxu3 %v11111_v59  ;;  %v9696_v6 = vld [vmem:[#allocation8 + $0x5c0] sm:$0xf0] }
 0x24d   : > { %6017 = vmatpush.bf16.msrb.mxu0 %v9027_v45  ;;  %v9504_v45 = vld [vmem:[#allocation8 + $0x440] sm:$0xf0]  ;;  %v13809_v8 = vpop.f32.mrf.mxu3  ;;  %v5713_v13 = vpop.f32.mrf.mxu2 }
 0x24e   : > { %6031 = vmatpush.bf16.msrb.mxu1 %v9219_v19  ;;  %14180 = vst [vmem:[#allocation26_spill] sm:$0xff] %v13809_v8  ;;  %v9507_v10 = vor.u32 %v12272_v36, %v9504_v45  ;;  %v12266_v19 = vld [vmem:[#allocation8 + $0x3fc] sm:$0xf]  ;;  %v5714_v23 = vadd.f32 %v5713_v13, %v13790_v29  ;;  %v9867_v36 = vor.u32 %v12362_v22, %v9864_v30  ;;  %v9456_v29 = vld [vmem:[#allocation8 + $0x3e0] sm:$0xf0] }
 0x24f   : > { %v9483_v38 = vor.u32 %v12266_v19, %v9480_v20  ;;  %v10083_v45 = vor.u32 %v12416_v33, %v10080_v34  ;;  %v12254_v13 = vld [vmem:[#allocation8 + $0x39c] sm:$0xf]  ;;  %v10059_v19 = vor.u32 %v12410_v0, %v10056_v2  ;;  %v9675_v22 = vor.u32 %v12314_v3, %v9672_v9  ;;  %v12404_v30 = vld [vmem:[#allocation8 + $0x84c] sm:$0xf]  ;;  %v9648_v34 = vld [vmem:[#allocation8 + $0x560] sm:$0xf0] }
 0x250   : > { %6041 = vmatpush.bf16.msrb.mxu2 %v9507_v10  ;;  %6005 = vmatpush.bf16.msra.mxu3 %v11087_v25  ;;  %v12350_v20 = vld [vmem:[#allocation8 + $0x69c] sm:$0xf]  ;;  %v9816_v25 = vld [vmem:[#allocation8 + $0x6b0] sm:$0xf0]  ;;  %v12308_v33 = vld [vmem:[#allocation8 + $0x54c] sm:$0xf] }
 0x251   : > { %6018 = vmatpush.bf16.msrb.mxu0 %v9003_v12  ;;  %v9720_v12 = vld [vmem:[#allocation8 + $0x5f0] sm:$0xf0]  ;;  %v12560_v8 = vld [vmem:[#allocation8 + $0xd2c] sm:$0xf] }
 0x252   : > { %6032 = vmatpush.bf16.msrb.mxu1 %v9195_v44  ;;  %v9723_v32 = vor.u32 %v12326_v11, %v9720_v12  ;;  %v12260_v44 = vld [vmem:[#allocation8 + $0x3cc] sm:$0xf]  ;;  %v9843_v12 = vor.u32 %v12356_v26, %v9840_v31  ;;  %v9651_v26 = vor.u32 %v12308_v33, %v9648_v34  ;;  %v10008_v31 = vld [vmem:[#allocation8 + $0x830] sm:$0xf0] }
 0x253   : > { %v9459_v58 = vor.u32 %v12260_v44, %v9456_v29  ;;  %6006 = vmatmul.bf16.vlgmr.msra.gmra.mxu3 %v13735_v39  ;;  %v12344_v29 = vld [vmem:[#allocation8 + $0x66c] sm:$0xf] }
 0x254   : > { %6054 = vmatpush.bf16.msrb.mxu3 %v9723_v32  ;;  %6042 = vmatpush.bf16.msrb.mxu2 %v9483_v38  ;;  %v10032_v32 = vld [vmem:[#allocation8 + $0x860] sm:$0xf0]  ;;  %v9819_v38 = vor.u32 %v12350_v20, %v9816_v25  ;;  %v12392_v25 = vld [vmem:[#allocation8 + $0x7ec] sm:$0xf] }
 0x255   : > { %6019 = vmatpush.bf16.msrb.mxu0 %v8979_v35  ;;  %v12320_v35 = vld [vmem:[#allocation8 + $0x5ac] sm:$0xf]  ;;  %v5727_v57 = vpop.f32.mrf.mxu3  ;;  %v13816_v11 = vpop.f32.mrf.mxu2  ;;  %v10035_v44 = vor.u32 %v12404_v30, %v10032_v32 }
 0x256   : > { %6033 = vmatpush.bf16.msrb.mxu1 %v9171_v14  ;;  %v9699_v59 = vor.u32 %v12320_v35, %v9696_v6  ;;  %v5728_v10 = vadd.f32 %v5727_v57, %v5714_v23  ;;  %v9432_v14 = vld [vmem:[#allocation8 + $0x3b0] sm:$0xf0]  ;;  %v12248_v6 = vld [vmem:[#allocation8 + $0x36c] sm:$0xf]  ;;  %v12302_v57 = vld [vmem:[#allocation8 + $0x51c] sm:$0xf] }
 0x257   : > { %v9435_v23 = vor.u32 %v12254_v13, %v9432_v14  ;;  %v12296_v32 = vld [vmem:[#allocation8 + $0x4ec] sm:$0xf] }
 0x258   : > { %6020 = vmatmul.bf16.vlgmr.msrb.gmra.mxu0 %v13689_v41  ;;  %6055 = vmatpush.bf16.msrb.mxu3 %v9699_v59  ;;  %v12236_v33 = vld [vmem:[#allocation8 + $0x30c] sm:$0xf] }
 0x259   : > { %6068 = vmatpush.bf16.msra.mxu0 %v9915_v28  ;;  %v5741_v28 = vpop.f32.mrf.mxu0  ;;  %6034 = vmatmul.bf16.vlgmr.msrb.gmra.mxu1 %v13693_v60 }
 0x25a   : > { %6082 = vmatpush.bf16.msra.mxu1 %v10107_v1  ;;  %v5742_v1 = vadd.f32 %v5741_v28, %v5728_v10  ;;  %6043 = vmatpush.bf16.msrb.mxu2 %v9459_v58  ;;  %v12398_v28 = vld [vmem:[#allocation8 + $0x81c] sm:$0xf]  ;;  %v9624_v58 = vld [vmem:[#allocation8 + $0x530] sm:$0xf0] }
 0x25b   : > { %v12242_v10 = vld [vmem:[#allocation8 + $0x33c] sm:$0xf]  ;;  %v10011_v14 = vor.u32 %v12398_v28, %v10008_v31  ;;  %v9627_v20 = vor.u32 %v12302_v57, %v9624_v58  ;;  %v9960_v28 = vld [vmem:[#allocation8 + $0x7d0] sm:$0xf0] }
 0x25c   : > { %6056 = vmatpush.bf16.msrb.mxu3 %v9675_v22  ;;  %v12566_v31 = vld [vmem:[#allocation8 + $0xd5c] sm:$0xf]  ;;  %v10680_v57 = vld [vmem:[#allocation8 + $0xd70] sm:$0xf0] }
 0x25d   : > { %6069 = vmatpush.bf16.msra.mxu0 %v9891_v15  ;;  %v5755_v15 = vpop.f32.mrf.mxu1  ;;  %v13820_v0 = vpop.f32.mrf.mxu3 }
 0x25e   : > { %6083 = vmatpush.bf16.msra.mxu1 %v10083_v45  ;;  %v5756_v35 = vadd.f32 %v5755_v15, %v5742_v1  ;;  %v9792_v45 = vld [vmem:[#allocation8 + $0x680] sm:$0xf0]  ;;  %6044 = vmatpush.bf16.msrb.mxu2 %v9435_v23  ;;  %v5769_v3 = vpop.f32.mrf.mxu2  ;;  %v12338_v15 = vld [vmem:[#allocation8 + $0x63c] sm:$0xf] }
 0x25f   : > { %v9795_v9 = vor.u32 %v12344_v29, %v9792_v45  ;;  %v9984_v1 = vld [vmem:[#allocation8 + $0x800] sm:$0xf0]  ;;  %v10296_v29 = vld [vmem:[#allocation8 + $0xa70] sm:$0xf0]  ;;  %v12386_v45 = vld [vmem:[#allocation8 + $0x7bc] sm:$0xf] }
 0x260   : > { %v5770_v13 = vadd.f32 %v5769_v3, %v5756_v35  ;;  %6057 = vmatpush.bf16.msrb.mxu3 %v9651_v26  ;;  %v9600_v23 = vld [vmem:[#allocation8 + $0x500] sm:$0xf0] }
 0x261   : > { %6070 = vmatpush.bf16.msra.mxu0 %v9867_v36  ;;  %v9408_v36 = vld [vmem:[#allocation8 + $0x380] sm:$0xf0]  ;;  %v13818_v59 = vpop.f32.mrf.mxu0  ;;  %v9603_v26 = vor.u32 %v12296_v32, %v9600_v23  ;;  %v12380_v32 = vld [vmem:[#allocation8 + $0x78c] sm:$0xf] }
 0x262   : > { %6084 = vmatpush.bf16.msra.mxu1 %v10059_v19  ;;  %v9411_v2 = vor.u32 %v12248_v6, %v9408_v36  ;;  %v9768_v19 = vld [vmem:[#allocation8 + $0x650] sm:$0xf0]  ;;  %v12332_v6 = vld [vmem:[#allocation8 + $0x60c] sm:$0xf]  ;;  %v9744_v35 = vld [vmem:[#allocation8 + $0x620] sm:$0xf0]  ;;  %v9987_v36 = vor.u32 %v12392_v25, %v9984_v1  ;;  %v9963_v25 = vor.u32 %v12386_v45, %v9960_v28  ;;  %v10683_v1 = vor.u32 %v12566_v31, %v10680_v57 }
 0x263   : > { %v9771_v34 = vor.u32 %v12338_v15, %v9768_v19  ;;  %v9747_v15 = vor.u32 %v12332_v6, %v9744_v35  ;;  %v12518_v35 = vld [vmem:[#allocation8 + $0xbdc] sm:$0xf]  ;;  %v10248_v28 = vld [vmem:[#allocation8 + $0xa10] sm:$0xf0] }
 0x264   : > { %6045 = vmatpush.bf16.msrb.mxu2 %v9411_v2  ;;  %6058 = vmatpush.bf16.msrb.mxu3 %v9627_v20  ;;  %v12284_v20 = vld [vmem:[#allocation8 + $0x48c] sm:$0xf] }
 0x265   : > { %6071 = vmatpush.bf16.msra.mxu0 %v9843_v12  ;;  %v9384_v12 = vld [vmem:[#allocation8 + $0x350] sm:$0xf0]  ;;  %v13822_v22 = vpop.f32.mrf.mxu1  ;;  %v5783_v58 = vpop.f32.mrf.mxu3 }
 0x266   : > { %6085 = vmatpush.bf16.msra.mxu1 %v10035_v44  ;;  %v9387_v30 = vor.u32 %v12242_v10, %v9384_v12  ;;  %v12470_v44 = vld [vmem:[#allocation8 + $0xa5c] sm:$0xf]  ;;  %v5784_v12 = vadd.f32 %v5783_v58, %v5770_v13  ;;  %v10632_v58 = vld [vmem:[#allocation8 + $0xd10] sm:$0xf0] }
 0x267   : > { %v12290_v10 = vld [vmem:[#allocation8 + $0x4bc] sm:$0xf]  ;;  %v10299_v19 = vor.u32 %v12470_v44, %v10296_v29  ;;  %v9939_v29 = vor.u32 %v12380_v32, %v9936_v42 }
 0x268   : > { %6046 = vmatpush.bf16.msrb.mxu2 %v9387_v30  ;;  %6059 = vmatpush.bf16.msrb.mxu3 %v9603_v26  ;;  %v10656_v30 = vld [vmem:[#allocation8 + $0xd40] sm:$0xf0]  ;;  %v12614_v13 = vld [vmem:[#allocation8 + $0xedc] sm:$0xf] }
 0x269   : > { %6072 = vmatpush.bf16.msra.mxu0 %v9819_v38  ;;  %v9360_v38 = vld [vmem:[#allocation8 + $0x320] sm:$0xf0]  ;;  %v5797_v2 = vpop.f32.mrf.mxu0  ;;  %v10659_v45 = vor.u32 %v12560_v8, %v10656_v30  ;;  %v12458_v26 = vld [vmem:[#allocation8 + $0x9fc] sm:$0xf]  ;;  %v12452_v8 = vld [vmem:[#allocation8 + $0x9cc] sm:$0xf] }
 0x26a   : > { %6086 = vmatpush.bf16.msra.mxu1 %v10011_v14  ;;  %v9363_v3 = vor.u32 %v12236_v33, %v9360_v38  ;;  %v12464_v14 = vld [vmem:[#allocation8 + $0xa2c] sm:$0xf]  ;;  %v5798_v23 = vadd.f32 %v5797_v2, %v5784_v12  ;;  %v9552_v38 = vld [vmem:[#allocation8 + $0x4a0] sm:$0xf0]  ;;  %v12554_v2 = vld [vmem:[#allocation8 + $0xcfc] sm:$0xf] }
 0x26b   : > { %v10275_v6 = vor.u32 %v12464_v14, %v10272_v46  ;;  %v9555_v31 = vor.u32 %v12284_v20, %v9552_v38  ;;  %v12512_v12 = vld [vmem:[#allocation8 + $0xbac] sm:$0xf]  ;;  %v12602_v32 = vld [vmem:[#allocation8 + $0xe7c] sm:$0xf]  ;;  %v10440_v38 = vld [vmem:[#allocation8 + $0xb90] sm:$0xf0] }
 0x26c   : > { %6047 = vmatpush.bf16.msrb.mxu2 %v9363_v3  ;;  %v12608_v3 = vld [vmem:[#allocation8 + $0xeac] sm:$0xf] }
 0x26d   : > { %6073 = vmatpush.bf16.msra.mxu0 %v9795_v9  ;;  %v9576_v9 = vld [vmem:[#allocation8 + $0x4d0] sm:$0xf0]  ;;  %v5811_v33 = vpop.f32.mrf.mxu1 }
 0x26e   : > { %6087 = vmatpush.bf16.msra.mxu1 %v9987_v36  ;;  %v9579_v63 = vor.u32 %v12290_v10, %v9576_v9  ;;  %v10488_v36 = vld [vmem:[#allocation8 + $0xbf0] sm:$0xf0]  ;;  %v13824_v44 = vadd.f32 %v5811_v33, %v5798_v23  ;;  %v10848_v10 = vld [vmem:[#allocation8 + $0xec0] sm:$0xf0]  ;;  %v10251_v9 = vor.u32 %v12458_v26, %v10248_v28  ;;  %v12506_v33 = vld [vmem:[#allocation8 + $0xb7c] sm:$0xf] }
 0x26f   : > { %6048 = vmatmul.bf16.vlgmr.msrb.gmra.mxu2 %v13685_v54  ;;  %v10491_v46 = vor.u32 %v12518_v35, %v10488_v36  ;;  %v10851_v14 = vor.u32 %v12608_v3, %v10848_v10  ;;  %v10824_v23 = vld [vmem:[#allocation8 + $0xe90] sm:$0xf0]  ;;  %v12446_v35 = vld [vmem:[#allocation8 + $0x99c] sm:$0xf]  ;;  %v10443_v28 = vor.u32 %v12506_v33, %v10440_v38  ;;  %v10416_v3 = vld [vmem:[#allocation8 + $0xb60] sm:$0xf0] }
 0x270   : > { %6096 = vmatpush.bf16.msra.mxu2 %v10299_v19  ;;  %6060 = vmatpush.bf16.msrb.mxu3 %v9579_v63  ;;  %v10635_v63 = vor.u32 %v12554_v2, %v10632_v58  ;;  %v10224_v19 = vld [vmem:[#allocation8 + $0x9e0] sm:$0xf0]  ;;  %v10200_v36 = vld [vmem:[#allocation8 + $0x9b0] sm:$0xf0]  ;;  %v14163_v2 = vperm.slane %v13785_v52, 2 }
 0x271   : > { %6074 = vmatpush.bf16.msra.mxu0 %v9771_v34  ;;  %v10872_v34 = vld [vmem:[#allocation8 + $0xef0] sm:$0xf0]  ;;  %v13828_v42 = vpop.f32.mrf.mxu0  ;;  %v10227_v30 = vor.u32 %v12452_v8, %v10224_v19  ;;  %v10203_v58 = vor.u32 %v12446_v35, %v10200_v36  ;;  %v12536_v8 = vld [vmem:[#allocation8 + $0xc6c] sm:$0xf]  ;;  %v10560_v19 = vld [vmem:[#allocation8 + $0xc80] sm:$0xf0] }
 0x272   : > { %6088 = vmatpush.bf16.msra.mxu1 %v9963_v25  ;;  %v10875_v57 = vor.u32 %v12614_v13, %v10872_v34  ;;  %14181 = vst [vmem:[#allocation27_spill] sm:$0xff] %v13828_v42  ;;  %v12548_v25 = vld [vmem:[#allocation8 + $0xccc] sm:$0xf]  ;;  %v13833_v34 = vpop.f32.mrf.mxu2  ;;  %v10584_v26 = vld [vmem:[#allocation8 + $0xcb0] sm:$0xf0]  ;;  %v10563_v35 = vor.u32 %v12536_v8, %v10560_v19 }
 0x273   : > { %v10392_v33 = vld [vmem:[#allocation8 + $0xb30] sm:$0xf0]  ;;  %v12434_v36 = vld [vmem:[#allocation8 + $0x93c] sm:$0xf]  ;;  %v10128_v19 = vld [vmem:[#allocation8 + $0x920] sm:$0xf0] }
 0x274   : > { %6097 = vmatpush.bf16.msra.mxu2 %v10275_v6  ;;  %6061 = vmatpush.bf16.msrb.mxu3 %v9555_v31  ;;  %v12596_v31 = vld [vmem:[#allocation8 + $0xe4c] sm:$0xf]  ;;  %v10704_v42 = vld [vmem:[#allocation8 + $0xda0] sm:$0xf0] }
 0x275   : > { %6075 = vmatpush.bf16.msra.mxu0 %v9747_v15  ;;  %v10464_v15 = vld [vmem:[#allocation8 + $0xbc0] sm:$0xf0]  ;;  %v13831_v13 = vpop.f32.mrf.mxu1 }
 0x276   : > { %6089 = vmatpush.bf16.msra.mxu1 %v9939_v29  ;;  %v10467_v20 = vor.u32 %v12512_v12, %v10464_v15  ;;  %14182 = vst [vmem:[#allocation28_spill] sm:$0xff] %v13831_v13  ;;  %v10827_v29 = vor.u32 %v12602_v32, %v10824_v23  ;;  %v12440_v12 = vld [vmem:[#allocation8 + $0x96c] sm:$0xf]  ;;  %v10176_v15 = vld [vmem:[#allocation8 + $0x980] sm:$0xf0] }
 0x277   : > { %6062 = vmatmul.bf16.vlgmr.msrb.gmra.mxu3 %v13696_v7  ;;  %v10179_v23 = vor.u32 %v12440_v12, %v10176_v15  ;;  %v12488_v12 = vld [vmem:[#allocation8 + $0xaec] sm:$0xf]  ;;  %v10368_v15 = vld [vmem:[#allocation8 + $0xb00] sm:$0xf0] }
 0x278   : > { %6076 = vmatmul.bf16.vlgmr.msra.gmra.mxu0 %v13703_v50  ;;  %6110 = vmatpush.bf16.msra.mxu3 %v10491_v46  ;;  %v12500_v46 = vld [vmem:[#allocation8 + $0xb4c] sm:$0xf]  ;;  %v11040_v13 = vld [vmem:[#allocation8 + $0x1040] sm:$0xf0] }
 0x279   : > { %6124 = vmatpush.bf16.msrb.mxu0 %v10683_v1  ;;  %v10608_v1 = vld [vmem:[#allocation8 + $0xce0] sm:$0xf0]  ;;  %6090 = vmatmul.bf16.vlgmr.msra.gmra.mxu1 %v13705_v53  ;;  %v5853_v10 = vpop.f32.mrf.mxu0 }
 0x27a   : > { %6138 = vmatpush.bf16.msrb.mxu1 %v10875_v57  ;;  %6098 = vmatpush.bf16.msra.mxu2 %v10251_v9  ;;  %v10611_v6 = vor.u32 %v12548_v25, %v10608_v1  ;;  %v10800_v57 = vld [vmem:[#allocation8 + $0xe60] sm:$0xf0]  ;;  %v12590_v25 = vld [vmem:[#allocation8 + $0xe1c] sm:$0xf]  ;;  %v10776_v1 = vld [vmem:[#allocation8 + $0xe30] sm:$0xf0]  ;;  %v5854_v32 = vadd.f32 %v5853_v10, %v14163_v2  ;;  %v5825_v38 = vpop.f32.mrf.mxu2 }
 0x27b   : > { %v12524_v2 = vld [vmem:[#allocation8 + $0xc0c] sm:$0xf] }
 0x27c   : > { %6111 = vmatpush.bf16.msra.mxu3 %v10467_v20  ;;  %v13837_v20 = vpop.f32.mrf.mxu3 }
 0x27d   : > { %6125 = vmatpush.bf16.msrb.mxu0 %v10659_v45  ;;  %v12542_v45 = vld [vmem:[#allocation8 + $0xc9c] sm:$0xf] }
 0x27e   : > { %6139 = vmatpush.bf16.msrb.mxu1 %v10851_v14  ;;  %6099 = vmatpush.bf16.msra.mxu2 %v10227_v30  ;;  %v10587_v9 = vor.u32 %v12542_v45, %v10584_v26  ;;  %v10419_v14 = vor.u32 %v12500_v46, %v10416_v3  ;;  %v12494_v30 = vld [vmem:[#allocation8 + $0xb1c] sm:$0xf]  ;;  %v5826_v45 = vadd.f32 %v5825_v38, %v13824_v44  ;;  %v10752_v3 = vld [vmem:[#allocation8 + $0xe00] sm:$0xf0]  ;;  %v12186_v38 = vld [vmem:[#allocation8 + $0x174] sm:$0xf0] }
 0x27f   : > { %v10395_v46 = vor.u32 %v12494_v30, %v10392_v33  ;;  %v10512_v44 = vld [vmem:[#allocation8 + $0xc20] sm:$0xf0]  ;;  %v10728_v30 = vld [vmem:[#allocation8 + $0xdd0] sm:$0xf0]  ;;  %v9150_v33 = vld [vmem:[#allocation8 + $0x160] sm:$0xf] }
 0x280   : > { %6112 = vmatpush.bf16.msra.mxu3 %v10443_v28  ;;  %v10779_v28 = vor.u32 %v12590_v25, %v10776_v1  ;;  %v11064_v25 = vld [vmem:[#allocation8 + $0x1070] sm:$0xf0]  ;;  %v12578_v1 = vld [vmem:[#allocation8 + $0xdbc] sm:$0xf] }
 0x281   : > { %6126 = vmatpush.bf16.msrb.mxu0 %v10635_v63  ;;  %v10803_v63 = vor.u32 %v12596_v31, %v10800_v57  ;;  %v12530_v31 = vld [vmem:[#allocation8 + $0xc3c] sm:$0xf]  ;;  %v10536_v57 = vld [vmem:[#allocation8 + $0xc50] sm:$0xf0] }
 0x282   : > { %6140 = vmatpush.bf16.msrb.mxu1 %v10827_v29  ;;  %6100 = vmatpush.bf16.msra.mxu2 %v10203_v58  ;;  %v10152_v29 = vld [vmem:[#allocation8 + $0x950] sm:$0xf0]  ;;  %v12584_v58 = vld [vmem:[#allocation8 + $0xdec] sm:$0xf]  ;;  %v10539_v8 = vor.u32 %v12530_v31, %v10536_v57  ;;  %v10515_v31 = vor.u32 %v12524_v2, %v10512_v44 }
 0x283   : > { %v10155_v10 = vor.u32 %v12434_v36, %v10152_v29  ;;  %v12482_v36 = vld [vmem:[#allocation8 + $0xabc] sm:$0xf]  ;;  %v10344_v29 = vld [vmem:[#allocation8 + $0xad0] sm:$0xf0] }
 0x284   : > { %6113 = vmatpush.bf16.msra.mxu3 %v10419_v14  ;;  %v10371_v14 = vor.u32 %v12488_v12, %v10368_v15  ;;  %v12572_v12 = vld [vmem:[#allocation8 + $0xd8c] sm:$0xf]  ;;  %v10347_v15 = vor.u32 %v12482_v36, %v10344_v29  ;;  %v11256_v44 = vld [vmem:[#allocation8 + $0x11f0] sm:$0xf0] }
 0x285   : > { %6127 = vmatpush.bf16.msrb.mxu0 %v10611_v6  ;;  %v5867_v6 = vpop.f32.mrf.mxu1  ;;  %v12704_v29 = vld [vmem:[#allocation8 + $0x11ac] sm:$0xf] }
 0x286   : > { %v13842_v26 = vadd.f32 %v5867_v6, %v5854_v32  ;;  %6141 = vmatpush.bf16.msrb.mxu1 %v10803_v63  ;;  %6101 = vmatpush.bf16.msra.mxu2 %v10179_v23  ;;  %v10755_v32 = vor.u32 %v12584_v58, %v10752_v3  ;;  %v12662_v63 = vld [vmem:[#allocation8 + $0x105c] sm:$0xf]  ;;  %v5839_v23 = vpop.f32.mrf.mxu3  ;;  %v10731_v58 = vor.u32 %v12578_v1, %v10728_v30  ;;  %v11016_v1 = vld [vmem:[#allocation8 + $0x1010] sm:$0xf0] }
 0x287   : > { %v11067_v57 = vor.u32 %v12662_v63, %v11064_v25  ;;  %v9151_v3 = vor.u32 %v12186_v38, %v9150_v33  ;;  %v12650_v25 = vld [vmem:[#allocation8 + $0xffc] sm:$0xf]  ;;  %v9102_v33 = vld [vmem:[#allocation8 + $0x100] sm:$0xf]  ;;  %v12174_v38 = vld [vmem:[#allocation8 + $0x114] sm:$0xf0] }
 0x288   : > { %6114 = vmatpush.bf16.msra.mxu3 %v10395_v46  ;;  %v12476_v46 = vld [vmem:[#allocation8 + $0xa8c] sm:$0xf]  ;;  %v11019_v36 = vor.u32 %v12650_v25, %v11016_v1  ;;  %v12162_v25 = vld [vmem:[#allocation8 + $0xb4] sm:$0xf0] }
 0x289   : > { %6128 = vmatpush.bf16.msrb.mxu0 %v10587_v9  ;;  %v12428_v9 = vld [vmem:[#allocation8 + $0x90c] sm:$0xf] }
 0x28a   : > { %6142 = vmatpush.bf16.msrb.mxu1 %v10779_v28  ;;  %6102 = vmatpush.bf16.msra.mxu2 %v10155_v10  ;;  %v10131_v6 = vor.u32 %v12428_v9, %v10128_v19  ;;  %v12656_v28 = vld [vmem:[#allocation8 + $0x102c] sm:$0xf]  ;;  %v12180_v10 = vld [vmem:[#allocation8 + $0x144] sm:$0xf0]  ;;  %v10320_v9 = vld [vmem:[#allocation8 + $0xaa0] sm:$0xf0] }
 0x28b   : > { %v9342_v19 = vld [vmem:[#allocation8 + $0x2e0] sm:$0xf]  ;;  %v11043_v2 = vor.u32 %v12656_v28, %v11040_v13  ;;  %v9127_v63 = vor.u32 %v12180_v10, %v9126_v17  ;;  %v12228_v13 = vld [vmem:[#allocation8 + $0x2c4] sm:$0xf0]  ;;  %v9103_v17 = vor.u32 %v12174_v38, %v9102_v33  ;;  %v12692_v38 = vld [vmem:[#allocation8 + $0x114c] sm:$0xf] }
 0x28c   : > { %6115 = vmatpush.bf16.msra.mxu3 %v10371_v14  ;;  %v10323_v14 = vor.u32 %v12476_v46, %v10320_v9  ;;  %v12698_v9 = vld [vmem:[#allocation8 + $0x117c] sm:$0xf] }
 0x28d   : > { %6129 = vmatpush.bf16.msrb.mxu0 %v10563_v35  ;;  %v13844_v35 = vadd.f32 %v5839_v23, %v5826_v45  ;;  %v12234_v45 = vld [vmem:[#allocation8 + $0x2f4] sm:$0xf0] }
 0x28e   : > { %6143 = vmatpush.bf16.msrb.mxu1 %v10755_v32  ;;  %6103 = vmatpush.bf16.msra.mxu2 %v10131_v6  ;;  %v10707_v32 = vor.u32 %v12572_v12, %v10704_v42  ;;  %v9343_v30 = vor.u32 %v12234_v45, %v9342_v19  ;;  %v9318_v6 = vld [vmem:[#allocation8 + $0x2b0] sm:$0xf]  ;;  %v12644_v42 = vld [vmem:[#allocation8 + $0xfcc] sm:$0xf]  ;;  %v9294_v12 = vld [vmem:[#allocation8 + $0x280] sm:$0xf]  ;;  %v13849_v45 = vpop.f32.mrf.mxu2 }
 0x28f   : > { %14183 = vst [vmem:[#allocation29_spill] sm:$0xff] %v13844_v35  ;;  %v9319_v28 = vor.u32 %v12228_v13, %v9318_v6  ;;  %v11208_v19 = vld [vmem:[#allocation8 + $0x1190] sm:$0xf0]  ;;  %v12632_v13 = vld [vmem:[#allocation8 + $0xf6c] sm:$0xf] }
 0x290   : > { %6116 = vmatpush.bf16.msra.mxu3 %v10347_v15  ;;  %v12222_v15 = vld [vmem:[#allocation8 + $0x294] sm:$0xf0]  ;;  %14184 = vst [vmem:[#allocation30_spill] sm:$0xff] %v13849_v45  ;;  %v11211_v1 = vor.u32 %v12698_v9, %v11208_v19  ;;  %v12626_v9 = vld [vmem:[#allocation8 + $0xf3c] sm:$0xf] }
 0x291   : > { %6130 = vmatpush.bf16.msrb.mxu0 %v10539_v8  ;;  %v12710_v8 = vld [vmem:[#allocation8 + $0x11dc] sm:$0xf]  ;;  %6104 = vmatmul.bf16.vlgmr.msra.gmra.mxu2 %v13711_v27  ;;  %v10920_v19 = vld [vmem:[#allocation8 + $0xf50] sm:$0xf0]  ;;  %v12276_v45 = vld [vmem:[#allocation8 + $0x444] sm:$0xf0] }
 0x292   : > { %6152 = vmatpush.bf16.msrb.mxu2 %v11067_v57  ;;  %6144 = vmatpush.bf16.msrb.mxu1 %v10731_v58  ;;  %v11259_v23 = vor.u32 %v12710_v8, %v11256_v44  ;;  %v10992_v57 = vld [vmem:[#allocation8 + $0xfe0] sm:$0xf0]  ;;  %v9078_v58 = vld [vmem:[#allocation8 + $0xd0] sm:$0xf]  ;;  %v12638_v8 = vld [vmem:[#allocation8 + $0xf9c] sm:$0xf] }
 0x293   : > { %v10995_v10 = vor.u32 %v12644_v42, %v10992_v57  ;;  %v10968_v44 = vld [vmem:[#allocation8 + $0xfb0] sm:$0xf0]  ;;  %v9246_v57 = vld [vmem:[#allocation8 + $0x220] sm:$0xf] }
 0x294   : > { %6117 = vmatpush.bf16.msra.mxu3 %v10323_v14  ;;  %v9270_v14 = vld [vmem:[#allocation8 + $0x250] sm:$0xf]  ;;  %v10971_v33 = vor.u32 %v12638_v8, %v10968_v44  ;;  %v11112_v35 = vld [vmem:[#allocation8 + $0x10d0] sm:$0xf0] }
 0x295   : > { %6131 = vmatpush.bf16.msrb.mxu0 %v10515_v31  ;;  %v11232_v31 = vld [vmem:[#allocation8 + $0x11c0] sm:$0xf0] }
 0x296   : > { %6153 = vmatpush.bf16.msrb.mxu2 %v11043_v2  ;;  %6145 = vmatpush.bf16.msrb.mxu1 %v10707_v32  ;;  %v11235_v46 = vor.u32 %v12704_v29, %v11232_v31  ;;  %v9295_v32 = vor.u32 %v12222_v15, %v9294_v12  ;;  %v9030_v31 = vld [vmem:[#allocation8 + $0x70] sm:$0xf]  ;;  %v11160_v12 = vld [vmem:[#allocation8 + $0x1130] sm:$0xf0]  ;;  %v5881_v15 = vpop.f32.mrf.mxu2 }
 0x297   : > { %6118 = vmatmul.bf16.vlgmr.msra.gmra.mxu3 %v13714_v48  ;;  %v5882_v8 = vadd.f32 %v5881_v15, %v13842_v26  ;;  %v12144_v26 = vld [vmem:[#allocation8 + $0x24] sm:$0xf0]  ;;  %v12378_v15 = vld [vmem:[#allocation8 + $0x774] sm:$0xf0] }
 0x298   : > { %6132 = vmatmul.bf16.vlgmr.msrb.gmra.mxu0 %v13721_v37  ;;  %6166 = vmatpush.bf16.msrb.mxu3 %v11259_v23  ;;  %v11184_v23 = vld [vmem:[#allocation8 + $0x1160] sm:$0xf0] }
 0x299   : > { %6180 = vmatpush.bf16.msra.mxu0 %v9151_v3  ;;  %v12168_v3 = vld [vmem:[#allocation8 + $0xe4] sm:$0xf0]  ;;  %6146 = vmatmul.bf16.vlgmr.msrb.gmra.mxu1 %v13724_v4  ;;  %v11187_v42 = vor.u32 %v12692_v38, %v11184_v23  ;;  %v12680_v38 = vld [vmem:[#allocation8 + $0x10ec] sm:$0xf]  ;;  %v11136_v23 = vld [vmem:[#allocation8 + $0x1100] sm:$0xf0] }
 0x29a   : > { %6194 = vmatpush.bf16.msra.mxu1 %v9343_v30  ;;  %6154 = vmatpush.bf16.msrb.mxu2 %v11019_v36  ;;  %v9079_v2 = vor.u32 %v12168_v3, %v9078_v58  ;;  %v12216_v30 = vld [vmem:[#allocation8 + $0x264] sm:$0xf0]  ;;  %v10944_v36 = vld [vmem:[#allocation8 + $0xf80] sm:$0xf0]  ;;  %v13852_v58 = vpop.f32.mrf.mxu3 }
 0x29b   : > { %v9271_v29 = vor.u32 %v12216_v30, %v9270_v14  ;;  %14185 = vst [vmem:[#allocation31_spill] sm:$0xff] %v13852_v58  ;;  %v10947_v3 = vor.u32 %v12632_v13, %v10944_v36  ;;  %v12204_v14 = vld [vmem:[#allocation8 + $0x204] sm:$0xf0]  ;;  %v13857_v30 = vpop.f32.mrf.mxu1  ;;  %v10896_v36 = vld [vmem:[#allocation8 + $0xf20] sm:$0xf0] }
 0x29c   : > { %6167 = vmatpush.bf16.msrb.mxu3 %v11235_v46  ;;  %v12686_v46 = vld [vmem:[#allocation8 + $0x111c] sm:$0xf]  ;;  %14187 = vst [vmem:[#allocation33_spill] sm:$0xff] %v13857_v30  ;;  %v9510_v58 = vld [vmem:[#allocation8 + $0x430] sm:$0xf] }
 0x29d   : > { %6181 = vmatpush.bf16.msra.mxu0 %v9127_v63  ;;  %v9054_v63 = vld [vmem:[#allocation8 + $0xa0] sm:$0xf] }
 0x29e   : > { %6195 = vmatpush.bf16.msra.mxu1 %v9319_v28  ;;  %6155 = vmatpush.bf16.msrb.mxu2 %v10995_v10  ;;  %v9055_v6 = vor.u32 %v12162_v25, %v9054_v63  ;;  %v12210_v28 = vld [vmem:[#allocation8 + $0x234] sm:$0xf0]  ;;  %v11163_v25 = vor.u32 %v12686_v46, %v11160_v12  ;;  %v9918_v12 = vld [vmem:[#allocation8 + $0x760] sm:$0xf] }
 0x29f   : > { %v9247_v44 = vor.u32 %v12210_v28, %v9246_v57  ;;  %v12150_v63 = vld [vmem:[#allocation8 + $0x54] sm:$0xf0]  ;;  %v11139_v28 = vor.u32 %v12680_v38, %v11136_v23  ;;  %v9174_v38 = vld [vmem:[#allocation8 + $0x190] sm:$0xf] }
 0x2a0   : > { %6168 = vmatpush.bf16.msrb.mxu3 %v11211_v1  ;;  %v9222_v1 = vld [vmem:[#allocation8 + $0x1f0] sm:$0xf]  ;;  %v12282_v57 = vld [vmem:[#allocation8 + $0x474] sm:$0xf0] }
 0x2a1   : > { %6182 = vmatpush.bf16.msra.mxu0 %v9103_v17  ;;  %v12156_v17 = vld [vmem:[#allocation8 + $0x84] sm:$0xf0]  ;;  %v12198_v46 = vld [vmem:[#allocation8 + $0x1d4] sm:$0xf0] }
 0x2a2   : > { %6196 = vmatpush.bf16.msra.mxu1 %v9295_v32  ;;  %6156 = vmatpush.bf16.msrb.mxu2 %v10971_v33  ;;  %v9031_v10 = vor.u32 %v12156_v17, %v9030_v31  ;;  %v9006_v32 = vld [vmem:[#allocation8 + $0x40] sm:$0xf]  ;;  %v10923_v33 = vor.u32 %v12626_v9, %v10920_v19  ;;  %v8982_v31 = vld [vmem:[#allocation8 + $0x10] sm:$0xf]  ;;  %v12674_v19 = vld [vmem:[#allocation8 + $0x10bc] sm:$0xf] }
 0x2a3   : > { %v9007_v13 = vor.u32 %v12150_v63, %v9006_v32  ;;  %v9534_v17 = vld [vmem:[#allocation8 + $0x460] sm:$0xf]  ;;  %v8983_v32 = vor.u32 %v12144_v26, %v8982_v31  ;;  %v11115_v30 = vor.u32 %v12674_v19, %v11112_v35  ;;  %v12426_v31 = vld [vmem:[#allocation8 + $0x8f4] sm:$0xf0]  ;;  %v9511_v26 = vor.u32 %v12276_v45, %v9510_v58  ;;  %v10086_v58 = vld [vmem:[#allocation8 + $0x8b0] sm:$0xf] }
 0x2a4   : > { %6169 = vmatpush.bf16.msrb.mxu3 %v11187_v42  ;;  %v9198_v42 = vld [vmem:[#allocation8 + $0x1c0] sm:$0xf]  ;;  %v9535_v63 = vor.u32 %v12282_v57, %v9534_v17  ;;  %v12330_v17 = vld [vmem:[#allocation8 + $0x5f4] sm:$0xf0]  ;;  %v12420_v19 = vld [vmem:[#allocation8 + $0x8c4] sm:$0xf0] }
 0x2a5   : > { %6183 = vmatpush.bf16.msra.mxu0 %v9079_v2  ;;  %v13854_v2 = vpop.f32.mrf.mxu0  ;;  %v9486_v35 = vld [vmem:[#allocation8 + $0x400] sm:$0xf] }
 0x2a6   : > { %14186 = vst [vmem:[#allocation32_spill] sm:$0xff] %v13854_v2  ;;  %6197 = vmatpush.bf16.msra.mxu1 %v9271_v29  ;;  %6157 = vmatpush.bf16.msrb.mxu2 %v10947_v3  ;;  %v9223_v29 = vor.u32 %v12204_v14, %v9222_v1  ;;  %v5895_v3 = vpop.f32.mrf.mxu3  ;;  %v9199_v1 = vor.u32 %v12198_v46, %v9198_v42  ;;  %v12192_v2 = vld [vmem:[#allocation8 + $0x1a4] sm:$0xf0]  ;;  %v12270_v46 = vld [vmem:[#allocation8 + $0x414] sm:$0xf0] }
 0x2a7   : > { %v9919_v14 = vor.u32 %v12378_v15, %v9918_v12  ;;  %v9175_v42 = vor.u32 %v12192_v2, %v9174_v38 }
 0x2a8   : > { %6170 = vmatpush.bf16.msrb.mxu3 %v11163_v25  ;;  %v12668_v25 = vld [vmem:[#allocation8 + $0x108c] sm:$0xf] }
 0x2a9   : > { %6184 = vmatpush.bf16.msra.mxu0 %v9055_v6  ;;  %v12620_v6 = vld [vmem:[#allocation8 + $0xf0c] sm:$0xf] }
 0x2aa   : > { %6198 = vmatpush.bf16.msra.mxu1 %v9247_v44  ;;  %6158 = vmatpush.bf16.msrb.mxu2 %v10923_v33  ;;  %v10899_v9 = vor.u32 %v12620_v6, %v10896_v36  ;;  %v9894_v33 = vld [vmem:[#allocation8 + $0x730] sm:$0xf]  ;;  %v12372_v6 = vld [vmem:[#allocation8 + $0x744] sm:$0xf0]  ;;  %v5923_v36 = vpop.f32.mrf.mxu1 }
 0x2ac   : > { %6171 = vmatpush.bf16.msrb.mxu3 %v11139_v28  ;;  %v9895_v28 = vor.u32 %v12372_v6, %v9894_v33  ;;  %v12414_v33 = vld [vmem:[#allocation8 + $0x894] sm:$0xf0] }
 0x2ad   : > { %6185 = vmatpush.bf16.msra.mxu0 %v9031_v10  ;;  %v5896_v10 = vadd.f32 %v5895_v3, %v5882_v8  ;;  %v5909_v44 = vpop.f32.mrf.mxu0  ;;  %v11088_v8 = vld [vmem:[#allocation8 + $0x10a0] sm:$0xf0]  ;;  %v9870_v3 = vld [vmem:[#allocation8 + $0x700] sm:$0xf] }
 0x2ae   : > { %6199 = vmatpush.bf16.msra.mxu1 %v9223_v29  ;;  %6159 = vmatpush.bf16.msrb.mxu2 %v10899_v9  ;;  %v9726_v29 = vld [vmem:[#allocation8 + $0x5e0] sm:$0xf]  ;;  %v11091_v12 = vor.u32 %v12668_v25, %v11088_v8  ;;  %v12366_v9 = vld [vmem:[#allocation8 + $0x714] sm:$0xf0]  ;;  %v12360_v25 = vld [vmem:[#allocation8 + $0x6e4] sm:$0xf0] }
 0x2af   : > { %v5910_v23 = vadd.f32 %v5909_v44, %v5896_v10  ;;  %v9727_v45 = vor.u32 %v12330_v17, %v9726_v29  ;;  %v9487_v10 = vor.u32 %v12270_v46, %v9486_v35  ;;  %v9871_v2 = vor.u32 %v12366_v9, %v9870_v3  ;;  %v9462_v44 = vld [vmem:[#allocation8 + $0x3d0] sm:$0xf]  ;;  %v12318_v8 = vld [vmem:[#allocation8 + $0x594] sm:$0xf0]  ;;  %v12312_v9 = vld [vmem:[#allocation8 + $0x564] sm:$0xf0] }
 0x2b0   : > { %6172 = vmatpush.bf16.msrb.mxu3 %v11115_v30  ;;  %v12264_v30 = vld [vmem:[#allocation8 + $0x3e4] sm:$0xf0]  ;;  %v12258_v29 = vld [vmem:[#allocation8 + $0x3b4] sm:$0xf0]  ;;  %v10038_v46 = vld [vmem:[#allocation8 + $0x850] sm:$0xf] }
 0x2b1   : > { %6186 = vmatpush.bf16.msra.mxu0 %v9007_v13  ;;  %v10110_v13 = vld [vmem:[#allocation8 + $0x8e0] sm:$0xf]  ;;  %v13859_v57 = vadd.f32 %v5923_v36, %v5910_v23  ;;  %6160 = vmatmul.bf16.vlgmr.msrb.gmra.mxu2 %v13731_v5  ;;  %v9463_v6 = vor.u32 %v12264_v30, %v9462_v44  ;;  %v9654_v3 = vld [vmem:[#allocation8 + $0x550] sm:$0xf]  ;;  %v12402_v30 = vld [vmem:[#allocation8 + $0x834] sm:$0xf0] }
 0x2b2   : > { %6208 = vmatpush.bf16.msra.mxu2 %v9535_v63  ;;  %6200 = vmatpush.bf16.msra.mxu1 %v9199_v1  ;;  %v10111_v15 = vor.u32 %v12426_v31, %v10110_v13  ;;  %v12324_v63 = vld [vmem:[#allocation8 + $0x5c4] sm:$0xf0]  ;;  %v10087_v1 = vor.u32 %v12420_v19, %v10086_v58  ;;  %v10062_v23 = vld [vmem:[#allocation8 + $0x880] sm:$0xf]  ;;  %v13864_v13 = vpop.f32.mrf.mxu2  ;;  %v9414_v58 = vld [vmem:[#allocation8 + $0x370] sm:$0xf] }
 0x2b3   : > { %v9678_v36 = vld [vmem:[#allocation8 + $0x580] sm:$0xf]  ;;  %14188 = vst [vmem:[#allocation34_spill] sm:$0xff] %v13864_v13  ;;  %v10063_v17 = vor.u32 %v12414_v33, %v10062_v23  ;;  %v12252_v19 = vld [vmem:[#allocation8 + $0x384] sm:$0xf0] }
 0x2b4   : > { %6173 = vmatpush.bf16.msrb.mxu3 %v11091_v12  ;;  %v9679_v35 = vor.u32 %v12318_v8, %v9678_v36  ;;  %v12408_v12 = vld [vmem:[#allocation8 + $0x864] sm:$0xf0]  ;;  %v10014_v44 = vld [vmem:[#allocation8 + $0x820] sm:$0xf]  ;;  %v12246_v36 = vld [vmem:[#allocation8 + $0x354] sm:$0xf0] }
 0x2b5   : > { %6187 = vmatpush.bf16.msra.mxu0 %v8983_v32  ;;  %v9702_v32 = vld [vmem:[#allocation8 + $0x5b0] sm:$0xf]  ;;  %v13869_v8 = vpop.f32.mrf.mxu0  ;;  %v12384_v13 = vld [vmem:[#allocation8 + $0x7a4] sm:$0xf0] }
 0x2b6   : > { %6209 = vmatpush.bf16.msra.mxu2 %v9511_v26  ;;  %6201 = vmatpush.bf16.msra.mxu1 %v9175_v42  ;;  %v9703_v38 = vor.u32 %v12324_v63, %v9702_v32  ;;  %v9438_v26 = vld [vmem:[#allocation8 + $0x3a0] sm:$0xf]  ;;  %v9798_v32 = vld [vmem:[#allocation8 + $0x670] sm:$0xf]  ;;  %v12348_v63 = vld [vmem:[#allocation8 + $0x684] sm:$0xf0] }
 0x2b7   : > { %6174 = vmatmul.bf16.vlgmr.msrb.gmra.mxu3 %v13735_v39  ;;  %v9822_v42 = vld [vmem:[#allocation8 + $0x6a0] sm:$0xf]  ;;  %v9799_v33 = vor.u32 %v12348_v63, %v9798_v32  ;;  %14190 = vst [vmem:[#allocation36_spill] sm:$0xff] %v13869_v8  ;;  %v12474_v63 = vld [vmem:[#allocation8 + $0xa74] sm:$0xf0] }
 0x2b8   : > { %6188 = vmatmul.bf16.vlgmr.msra.gmra.mxu0 %v13689_v41  ;;  %6222 = vmatpush.bf16.msra.mxu3 %v9727_v45  ;;  %v10302_v32 = vld [vmem:[#allocation8 + $0xa60] sm:$0xf]  ;;  %v12468_v8 = vld [vmem:[#allocation8 + $0xa44] sm:$0xf0] }
 0x2b9   : > { %6236 = vmatpush.bf16.msrb.mxu0 %v9919_v14  ;;  %v9846_v14 = vld [vmem:[#allocation8 + $0x6d0] sm:$0xf]  ;;  %6202 = vmatmul.bf16.vlgmr.msra.gmra.mxu1 %v13693_v60 }
 0x2ba   : > { %6250 = vmatpush.bf16.msrb.mxu1 %v10111_v15  ;;  %6210 = vmatpush.bf16.msra.mxu2 %v9487_v10  ;;  %v9847_v31 = vor.u32 %v12360_v25, %v9846_v14  ;;  %v9439_v15 = vor.u32 %v12258_v29, %v9438_v26  ;;  %v10039_v10 = vor.u32 %v12408_v12, %v10038_v46  ;;  %v9630_v25 = vld [vmem:[#allocation8 + $0x520] sm:$0xf]  ;;  %v5937_v23 = vpop.f32.mrf.mxu2  ;;  %v13872_v46 = vpop.f32.mrf.mxu1 }
 0x2bb   : > { %v9415_v14 = vor.u32 %v12252_v19, %v9414_v58  ;;  %v10015_v26 = vor.u32 %v12402_v30, %v10014_v44  ;;  %v9774_v29 = vld [vmem:[#allocation8 + $0x640] sm:$0xf]  ;;  %14191 = vst [vmem:[#allocation37_spill] sm:$0xff] %v13872_v46  ;;  %v12240_v58 = vld [vmem:[#allocation8 + $0x324] sm:$0xf0] }
 0x2bc   : > { %6223 = vmatpush.bf16.msra.mxu3 %v9703_v38  ;;  %v12306_v38 = vld [vmem:[#allocation8 + $0x534] sm:$0xf0]  ;;  %v9750_v19 = vld [vmem:[#allocation8 + $0x610] sm:$0xf] }
 0x2bd   : > { %6237 = vmatpush.bf16.msrb.mxu0 %v9895_v28  ;;  %v12354_v28 = vld [vmem:[#allocation8 + $0x6b4] sm:$0xf0]  ;;  %v10278_v46 = vld [vmem:[#allocation8 + $0xa30] sm:$0xf] }
 0x2be   : > { %6251 = vmatpush.bf16.msrb.mxu1 %v10087_v1  ;;  %6211 = vmatpush.bf16.msra.mxu2 %v9463_v6  ;;  %v9823_v45 = vor.u32 %v12354_v28, %v9822_v42  ;;  %v13867_v1 = vpop.f32.mrf.mxu3  ;;  %v9390_v6 = vld [vmem:[#allocation8 + $0x340] sm:$0xf]  ;;  %v9631_v42 = vor.u32 %v12306_v38, %v9630_v25  ;;  %v9990_v28 = vld [vmem:[#allocation8 + $0x7f0] sm:$0xf]  ;;  %v12390_v30 = vld [vmem:[#allocation8 + $0x7d4] sm:$0xf0] }
 0x2bf   : > { %14189 = vst [vmem:[#allocation35_spill] sm:$0xff] %v13867_v1  ;;  %v9391_v12 = vor.u32 %v12246_v36, %v9390_v6  ;;  %v10686_v25 = vld [vmem:[#allocation8 + $0xd60] sm:$0xf]  ;;  %v12570_v38 = vld [vmem:[#allocation8 + $0xd74] sm:$0xf0] }
 0x2c0   : > { %6224 = vmatpush.bf16.msra.mxu3 %v9679_v35  ;;  %v12396_v35 = vld [vmem:[#allocation8 + $0x804] sm:$0xf0]  ;;  %v9582_v6 = vld [vmem:[#allocation8 + $0x4c0] sm:$0xf]  ;;  %v12294_v36 = vld [vmem:[#allocation8 + $0x4d4] sm:$0xf0] }
 0x2c1   : > { %6238 = vmatpush.bf16.msrb.mxu0 %v9871_v2  ;;  %v9655_v2 = vor.u32 %v12312_v9, %v9654_v3  ;;  %v12300_v3 = vld [vmem:[#allocation8 + $0x504] sm:$0xf0]  ;;  %v9366_v9 = vld [vmem:[#allocation8 + $0x310] sm:$0xf]  ;;  %v9583_v1 = vor.u32 %v12294_v36, %v9582_v6  ;;  %v12558_v6 = vld [vmem:[#allocation8 + $0xd14] sm:$0xf0] }
 0x2c2   : > { %6252 = vmatpush.bf16.msrb.mxu1 %v10063_v17  ;;  %6212 = vmatpush.bf16.msra.mxu2 %v9439_v15  ;;  %v12342_v17 = vld [vmem:[#allocation8 + $0x654] sm:$0xf0]  ;;  %v9606_v15 = vld [vmem:[#allocation8 + $0x4f0] sm:$0xf]  ;;  %v12612_v36 = vld [vmem:[#allocation8 + $0xec4] sm:$0xf0] }
 0x2c3   : > { %v9607_v44 = vor.u32 %v12300_v3, %v9606_v15  ;;  %v9942_v15 = vld [vmem:[#allocation8 + $0x790] sm:$0xf] }
 0x2c4   : > { %6225 = vmatpush.bf16.msra.mxu3 %v9655_v2  ;;  %v9966_v2 = vld [vmem:[#allocation8 + $0x7c0] sm:$0xf] }
 0x2c5   : > { %6239 = vmatpush.bf16.msrb.mxu0 %v9847_v31  ;;  %v5938_v31 = vadd.f32 %v5937_v23, %v13859_v57  ;;  %v12336_v57 = vld [vmem:[#allocation8 + $0x624] sm:$0xf0]  ;;  %v9367_v23 = vor.u32 %v12240_v58, %v9366_v9  ;;  %v5979_v58 = vpop.f32.mrf.mxu1 }
 0x2c6   : > { %6253 = vmatpush.bf16.msrb.mxu1 %v10039_v10  ;;  %6213 = vmatpush.bf16.msra.mxu2 %v9415_v14  ;;  %v9991_v10 = vor.u32 %v12396_v35, %v9990_v28  ;;  %v5951_v14 = vpop.f32.mrf.mxu3  ;;  %v9967_v28 = vor.u32 %v12390_v30, %v9966_v2  ;;  %v10687_v35 = vor.u32 %v12570_v38, %v10686_v25  ;;  %v12564_v9 = vld [vmem:[#allocation8 + $0xd44] sm:$0xf0]  ;;  %v10254_v30 = vld [vmem:[#allocation8 + $0xa00] sm:$0xf]  ;;  %v12462_v25 = vld [vmem:[#allocation8 + $0xa14] sm:$0xf0] }
 0x2c7   : > { %v9943_v2 = vor.u32 %v12384_v13, %v9942_v15 }
 0x2c8   : > { %6226 = vmatpush.bf16.msra.mxu3 %v9631_v42  ;;  %v9558_v42 = vld [vmem:[#allocation8 + $0x490] sm:$0xf] }
 0x2c9   : > { %6240 = vmatpush.bf16.msrb.mxu0 %v9823_v45  ;;  %v9775_v45 = vor.u32 %v12342_v17, %v9774_v29  ;;  %v9751_v29 = vor.u32 %v12336_v57, %v9750_v19  ;;  %v10303_v17 = vor.u32 %v12474_v63, %v10302_v32  ;;  %v12618_v19 = vld [vmem:[#allocation8 + $0xef4] sm:$0xf0]  ;;  %v10279_v57 = vor.u32 %v12468_v8, %v10278_v46  ;;  %v10854_v46 = vld [vmem:[#allocation8 + $0xeb0] sm:$0xf] }
 0x2ca   : > { %6254 = vmatpush.bf16.msrb.mxu1 %v10015_v26  ;;  %6214 = vmatpush.bf16.msra.mxu2 %v9391_v12  ;;  %v5965_v26 = vpop.f32.mrf.mxu0  ;;  %v10662_v12 = vld [vmem:[#allocation8 + $0xd30] sm:$0xf]  ;;  %v12522_v32 = vld [vmem:[#allocation8 + $0xbf4] sm:$0xf0] }
 0x2cc   : > { %6227 = vmatpush.bf16.msra.mxu3 %v9607_v44  ;;  %v10663_v44 = vor.u32 %v12564_v9, %v10662_v12  ;;  %v12606_v12 = vld [vmem:[#allocation8 + $0xe94] sm:$0xf0] }
 0x2cd   : > { %6241 = vmatpush.bf16.msrb.mxu0 %v9799_v33  ;;  %v5952_v33 = vadd.f32 %v5951_v14, %v5938_v31  ;;  %v12288_v31 = vld [vmem:[#allocation8 + $0x4a4] sm:$0xf0] }
 0x2ce   : > { %6255 = vmatpush.bf16.msrb.mxu1 %v9991_v10  ;;  %6215 = vmatpush.bf16.msra.mxu2 %v9367_v23  ;;  %v10494_v10 = vld [vmem:[#allocation8 + $0xbe0] sm:$0xf]  ;;  %v9559_v38 = vor.u32 %v12288_v31, %v9558_v42  ;;  %v12552_v42 = vld [vmem:[#allocation8 + $0xce4] sm:$0xf0]  ;;  %v12510_v31 = vld [vmem:[#allocation8 + $0xb94] sm:$0xf0] }
 0x2cf   : > { %v5966_v3 = vadd.f32 %v5965_v26, %v5952_v33  ;;  %v10638_v23 = vld [vmem:[#allocation8 + $0xd00] sm:$0xf]  ;;  %v10495_v8 = vor.u32 %v12522_v32, %v10494_v10  ;;  %v10255_v33 = vor.u32 %v12462_v25, %v10254_v30  ;;  %v10230_v26 = vld [vmem:[#allocation8 + $0x9d0] sm:$0xf]  ;;  %v12450_v10 = vld [vmem:[#allocation8 + $0x9b4] sm:$0xf0] }
 0x2d0   : > { %6228 = vmatpush.bf16.msra.mxu3 %v9583_v1  ;;  %v10639_v13 = vor.u32 %v12558_v6, %v10638_v23  ;;  %v12456_v1 = vld [vmem:[#allocation8 + $0x9e4] sm:$0xf0]  ;;  %v10806_v25 = vld [vmem:[#allocation8 + $0xe50] sm:$0xf] }
 0x2d1   : > { %6242 = vmatpush.bf16.msrb.mxu0 %v9775_v45  ;;  %v10878_v45 = vld [vmem:[#allocation8 + $0xee0] sm:$0xf]  ;;  %v13874_v63 = vadd.f32 %v5979_v58, %v5966_v3  ;;  %6216 = vmatmul.bf16.vlgmr.msra.gmra.mxu2 %v13685_v54  ;;  %v10231_v9 = vor.u32 %v12456_v1, %v10230_v26  ;;  %v10422_v23 = vld [vmem:[#allocation8 + $0xb50] sm:$0xf]  ;;  %v12504_v6 = vld [vmem:[#allocation8 + $0xb64] sm:$0xf0] }
 0x2d2   : > { %6264 = vmatpush.bf16.msrb.mxu2 %v10303_v17  ;;  %6256 = vmatpush.bf16.msrb.mxu1 %v9967_v28  ;;  %v10879_v14 = vor.u32 %v12618_v19, %v10878_v45  ;;  %v12516_v17 = vld [vmem:[#allocation8 + $0xbc4] sm:$0xf0]  ;;  %v10855_v28 = vor.u32 %v12612_v36, %v10854_v46  ;;  %v10830_v3 = vld [vmem:[#allocation8 + $0xe80] sm:$0xf]  ;;  %v13879_v45 = vpop.f32.mrf.mxu2  ;;  %v10182_v46 = vld [vmem:[#allocation8 + $0x970] sm:$0xf] }
 0x2d3   : > { %v10446_v58 = vld [vmem:[#allocation8 + $0xb80] sm:$0xf]  ;;  %v10831_v32 = vor.u32 %v12606_v12, %v10830_v3  ;;  %v12444_v36 = vld [vmem:[#allocation8 + $0x984] sm:$0xf0]  ;;  %v12594_v1 = vld [vmem:[#allocation8 + $0xe34] sm:$0xf0] }
 0x2d4   : > { %6229 = vmatpush.bf16.msra.mxu3 %v9559_v38  ;;  %v10447_v30 = vor.u32 %v12510_v31, %v10446_v58  ;;  %v12600_v38 = vld [vmem:[#allocation8 + $0xe64] sm:$0xf0]  ;;  %v10782_v26 = vld [vmem:[#allocation8 + $0xe20] sm:$0xf]  ;;  %v12438_v58 = vld [vmem:[#allocation8 + $0x954] sm:$0xf0] }
 0x2d5   : > { %6243 = vmatpush.bf16.msrb.mxu0 %v9751_v29  ;;  %v10470_v29 = vld [vmem:[#allocation8 + $0xbb0] sm:$0xf] }
 0x2d6   : > { %6265 = vmatpush.bf16.msrb.mxu2 %v10279_v57  ;;  %6257 = vmatpush.bf16.msrb.mxu1 %v9943_v2  ;;  %v10471_v15 = vor.u32 %v12516_v17, %v10470_v29  ;;  %v10206_v57 = vld [vmem:[#allocation8 + $0x9a0] sm:$0xf]  ;;  %v10566_v29 = vld [vmem:[#allocation8 + $0xc70] sm:$0xf]  ;;  %v12540_v17 = vld [vmem:[#allocation8 + $0xc84] sm:$0xf0] }
 0x2d7   : > { %6230 = vmatmul.bf16.vlgmr.msra.gmra.mxu3 %v13696_v7  ;;  %v10590_v2 = vld [vmem:[#allocation8 + $0xca0] sm:$0xf]  ;;  %v10567_v12 = vor.u32 %v12540_v17, %v10566_v29 }
 0x2d8   : > { %6244 = vmatmul.bf16.vlgmr.msrb.gmra.mxu0 %v13703_v50  ;;  %6278 = vmatpush.bf16.msrb.mxu3 %v10495_v8  ;;  %v10734_v29 = vld [vmem:[#allocation8 + $0xdc0] sm:$0xf] }
 0x2d9   : > { %6292 = vmatpush.bf16.msra.mxu0 %v10687_v35  ;;  %v10614_v35 = vld [vmem:[#allocation8 + $0xcd0] sm:$0xf]  ;;  %6258 = vmatmul.bf16.vlgmr.msrb.gmra.mxu1 %v13705_v53 }
 0x2da   : > { %6306 = vmatpush.bf16.msra.mxu1 %v10879_v14  ;;  %6266 = vmatpush.bf16.msrb.mxu2 %v10255_v33  ;;  %v10615_v19 = vor.u32 %v12552_v42, %v10614_v35  ;;  %v10207_v14 = vor.u32 %v12450_v10, %v10206_v57  ;;  %v10807_v33 = vor.u32 %v12600_v38, %v10806_v25  ;;  %v10398_v42 = vld [vmem:[#allocation8 + $0xb20] sm:$0xf]  ;;  %v5993_v3 = vpop.f32.mrf.mxu2  ;;  %v12534_v10 = vld [vmem:[#allocation8 + $0xc54] sm:$0xf0]  ;;  %v10374_v25 = vld [vmem:[#allocation8 + $0xaf0] sm:$0xf] }
 0x2db   : > { %v10183_v35 = vor.u32 %v12444_v36, %v10182_v46  ;;  %v5994_v31 = vadd.f32 %v5993_v3, %v13874_v63  ;;  %v10542_v57 = vld [vmem:[#allocation8 + $0xc40] sm:$0xf]  ;;  %v12492_v38 = vld [vmem:[#allocation8 + $0xb04] sm:$0xf0]  ;;  %v12486_v3 = vld [vmem:[#allocation8 + $0xad4] sm:$0xf0] }
 0x2dc   : > { %6279 = vmatpush.bf16.msrb.mxu3 %v10471_v15  ;;  %v12498_v15 = vld [vmem:[#allocation8 + $0xb34] sm:$0xf0]  ;;  %v12528_v46 = vld [vmem:[#allocation8 + $0xc24] sm:$0xf0]  ;;  %v11070_v36 = vld [vmem:[#allocation8 + $0x1060] sm:$0xf]  ;;  %v10375_v17 = vor.u32 %v12492_v38, %v10374_v25 }
 0x2dd   : > { %6293 = vmatpush.bf16.msra.mxu0 %v10663_v44  ;;  %v12546_v44 = vld [vmem:[#allocation8 + $0xcb4] sm:$0xf0]  ;;  %v12576_v38 = vld [vmem:[#allocation8 + $0xda4] sm:$0xf0] }
 0x2de   : > { %6307 = vmatpush.bf16.msra.mxu1 %v10855_v28  ;;  %6267 = vmatpush.bf16.msrb.mxu2 %v10231_v9  ;;  %v10591_v8 = vor.u32 %v12546_v44, %v10590_v2  ;;  %v13882_v28 = vpop.f32.mrf.mxu3  ;;  %v10158_v9 = vld [vmem:[#allocation8 + $0x940] sm:$0xf]  ;;  %v10758_v2 = vld [vmem:[#allocation8 + $0xdf0] sm:$0xf]  ;;  %v12588_v44 = vld [vmem:[#allocation8 + $0xe04] sm:$0xf0] }
 0x2df   : > { %14192 = vst [vmem:[#allocation38_spill] sm:$0xff] %v13882_v28  ;;  %v10759_v63 = vor.u32 %v12588_v44, %v10758_v2  ;;  %v12660_v2 = vld [vmem:[#allocation8 + $0x1044] sm:$0xf0]  ;;  %v10710_v44 = vld [vmem:[#allocation8 + $0xd90] sm:$0xf] }
 0x2e0   : > { %6280 = vmatpush.bf16.msrb.mxu3 %v10447_v30  ;;  %v10159_v30 = vor.u32 %v12438_v58, %v10158_v9  ;;  %v12177_v28 = vld [vmem:[#allocation8 + $0x134] sm:$0xf] }
 0x2e1   : > { %6294 = vmatpush.bf16.msra.mxu0 %v10639_v13  ;;  %v10423_v13 = vor.u32 %v12504_v6, %v10422_v23  ;;  %v10543_v23 = vor.u32 %v12534_v10, %v10542_v57  ;;  %v12432_v6 = vld [vmem:[#allocation8 + $0x924] sm:$0xf0] }
 0x2e2   : > { %6308 = vmatpush.bf16.msra.mxu1 %v10831_v32  ;;  %6268 = vmatpush.bf16.msrb.mxu2 %v10207_v14  ;;  %v10399_v32 = vor.u32 %v12498_v15, %v10398_v42  ;;  %v10134_v14 = vld [vmem:[#allocation8 + $0x910] sm:$0xf]  ;;  %v10350_v15 = vld [vmem:[#allocation8 + $0xac0] sm:$0xf] }
 0x2e3   : > { %v10135_v42 = vor.u32 %v12432_v6, %v10134_v14  ;;  %v10351_v25 = vor.u32 %v12486_v3, %v10350_v15  ;;  %v12480_v14 = vld [vmem:[#allocation8 + $0xaa4] sm:$0xf0]  ;;  %v12231_v6 = vld [vmem:[#allocation8 + $0x2e4] sm:$0xf]  ;;  %v9320_v15 = vld [vmem:[#allocation8 + $0x2c8] sm:$0xf0] }
 0x2e4   : > { %6281 = vmatpush.bf16.msrb.mxu3 %v10423_v13  ;;  %v12582_v13 = vld [vmem:[#allocation8 + $0xdd4] sm:$0xf0] }
 0x2e5   : > { %6295 = vmatpush.bf16.msra.mxu0 %v10615_v19  ;;  %v10783_v19 = vor.u32 %v12594_v1, %v10782_v26  ;;  %v12183_v26 = vld [vmem:[#allocation8 + $0x164] sm:$0xf]  ;;  %v9152_v1 = vld [vmem:[#allocation8 + $0x178] sm:$0xf0]  ;;  %v10735_v57 = vor.u32 %v12582_v13, %v10734_v29  ;;  %v12654_v29 = vld [vmem:[#allocation8 + $0x1014] sm:$0xf0] }
 0x2e6   : > { %6309 = vmatpush.bf16.msra.mxu1 %v10807_v33  ;;  %6269 = vmatpush.bf16.msrb.mxu2 %v10183_v35  ;;  %v12666_v33 = vld [vmem:[#allocation8 + $0x1074] sm:$0xf0]  ;;  %v6007_v35 = vpop.f32.mrf.mxu3  ;;  %v9155_v10 = vor.u32 %v12183_v26, %v9152_v1  ;;  %v12171_v26 = vld [vmem:[#allocation8 + $0x104] sm:$0xf]  ;;  %v9104_v1 = vld [vmem:[#allocation8 + $0x118] sm:$0xf0] }
 0x2e7   : > { %v11071_v58 = vor.u32 %v12666_v33, %v11070_v36  ;;  %v11022_v33 = vld [vmem:[#allocation8 + $0x1000] sm:$0xf] }
 0x2e8   : > { %6282 = vmatpush.bf16.msrb.mxu3 %v10399_v32  ;;  %v10326_v32 = vld [vmem:[#allocation8 + $0xa90] sm:$0xf]  ;;  %v11023_v3 = vor.u32 %v12654_v29, %v11022_v33  ;;  %v12213_v29 = vld [vmem:[#allocation8 + $0x254] sm:$0xf] }
 0x2e9   : > { %6296 = vmatpush.bf16.msra.mxu0 %v10591_v8  ;;  %v10518_v8 = vld [vmem:[#allocation8 + $0xc10] sm:$0xf] }
 0x2ea   : > { %6310 = vmatpush.bf16.msra.mxu1 %v10783_v19  ;;  %6270 = vmatpush.bf16.msrb.mxu2 %v10159_v30  ;;  %v10519_v9 = vor.u32 %v12528_v46, %v10518_v8  ;;  %v11046_v19 = vld [vmem:[#allocation8 + $0x1030] sm:$0xf]  ;;  %v9128_v30 = vld [vmem:[#allocation8 + $0x148] sm:$0xf0]  ;;  %v11262_v8 = vld [vmem:[#allocation8 + $0x11e0] sm:$0xf] }
 0x2eb   : > { %v12714_v46 = vld [vmem:[#allocation8 + $0x11f4] sm:$0xf0]  ;;  %v9131_v36 = vor.u32 %v12177_v28, %v9128_v30  ;;  %v9107_v28 = vor.u32 %v12171_v26, %v9104_v1  ;;  %v11190_v26 = vld [vmem:[#allocation8 + $0x1150] sm:$0xf]  ;;  %v12696_v1 = vld [vmem:[#allocation8 + $0x1164] sm:$0xf0] }
 0x2ec   : > { %6283 = vmatpush.bf16.msrb.mxu3 %v10375_v17  ;;  %v10327_v17 = vor.u32 %v12480_v14, %v10326_v32  ;;  %v9080_v32 = vld [vmem:[#allocation8 + $0xe8] sm:$0xf0]  ;;  %v11214_v14 = vld [vmem:[#allocation8 + $0x1180] sm:$0xf] }
 0x2ed   : > { %6297 = vmatpush.bf16.msra.mxu0 %v10567_v12  ;;  %v13885_v12 = vadd.f32 %v6007_v35, %v5994_v31  ;;  %v9344_v31 = vld [vmem:[#allocation8 + $0x2f8] sm:$0xf0]  ;;  %v11263_v35 = vor.u32 %v12714_v46, %v11262_v8  ;;  %v12642_v8 = vld [vmem:[#allocation8 + $0xfb4] sm:$0xf0] }
 0x2ee   : > { %6311 = vmatpush.bf16.msra.mxu1 %v10759_v63  ;;  %6271 = vmatpush.bf16.msrb.mxu2 %v10135_v42  ;;  %v10711_v63 = vor.u32 %v12576_v38, %v10710_v44  ;;  %v9347_v13 = vor.u32 %v12231_v6, %v9344_v31  ;;  %v12225_v42 = vld [vmem:[#allocation8 + $0x2b4] sm:$0xf]  ;;  %v9296_v38 = vld [vmem:[#allocation8 + $0x298] sm:$0xf0]  ;;  %v12702_v6 = vld [vmem:[#allocation8 + $0x1194] sm:$0xf0] }
 0x2ef   : > { %14193 = vst [vmem:[#allocation39_spill] sm:$0xff] %v13885_v12  ;;  %v11215_v33 = vor.u32 %v12702_v6, %v11214_v14  ;;  %v12147_v14 = vld [vmem:[#allocation8 + $0x44] sm:$0xf]  ;;  %v9008_v6 = vld [vmem:[#allocation8 + $0x58] sm:$0xf0] }
 0x2f0   : > { %6284 = vmatpush.bf16.msrb.mxu3 %v10351_v25  ;;  %v12219_v25 = vld [vmem:[#allocation8 + $0x284] sm:$0xf]  ;;  %v11342_v12 = vld [vmem:[#allocation11 + $0x90] sm:$0xf] }
 0x2f1   : > { %6298 = vmatpush.bf16.msra.mxu0 %v10543_v23  ;;  %v11047_v23 = vor.u32 %v12660_v2, %v11046_v19  ;;  %6272 = vmatmul.bf16.vlgmr.msrb.gmra.mxu2 %v13711_v27  ;;  %v10998_v19 = vld [vmem:[#allocation8 + $0xfd0] sm:$0xf]  ;;  %v12165_v2 = vld [vmem:[#allocation8 + $0xd4] sm:$0xf]  ;;  %v9299_v46 = vor.u32 %v12219_v25, %v9296_v38  ;;  %v10926_v25 = vld [vmem:[#allocation8 + $0xf40] sm:$0xf] }
 0x2f2   : > { %6320 = vmatpush.bf16.msra.mxu2 %v11071_v58  ;;  %6312 = vmatpush.bf16.msra.mxu1 %v10735_v57  ;;  %v12708_v58 = vld [vmem:[#allocation8 + $0x11c4] sm:$0xf0]  ;;  %v9083_v31 = vor.u32 %v12165_v2, %v9080_v32  ;;  %v11166_v2 = vld [vmem:[#allocation8 + $0x1120] sm:$0xf]  ;;  %v12690_v32 = vld [vmem:[#allocation8 + $0x1134] sm:$0xf0] }
 0x2f3   : > { %v12648_v57 = vld [vmem:[#allocation8 + $0xfe4] sm:$0xf0]  ;;  %v12630_v38 = vld [vmem:[#allocation8 + $0xf54] sm:$0xf0] }
 0x2f4   : > { %6285 = vmatpush.bf16.msrb.mxu3 %v10327_v17  ;;  %v10999_v30 = vor.u32 %v12648_v57, %v10998_v19  ;;  %v9272_v17 = vld [vmem:[#allocation8 + $0x268] sm:$0xf0]  ;;  %v12207_v19 = vld [vmem:[#allocation8 + $0x224] sm:$0xf]  ;;  %v9248_v57 = vld [vmem:[#allocation8 + $0x238] sm:$0xf0] }
 0x2f5   : > { %6299 = vmatpush.bf16.msra.mxu0 %v10519_v9  ;;  %v11238_v9 = vld [vmem:[#allocation8 + $0x11b0] sm:$0xf] }
 0x2f6   : > { %6321 = vmatpush.bf16.msra.mxu2 %v11047_v23  ;;  %6313 = vmatpush.bf16.msra.mxu1 %v10711_v63  ;;  %v11239_v44 = vor.u32 %v12708_v58, %v11238_v9  ;;  %v10974_v23 = vld [vmem:[#allocation8 + $0xfa0] sm:$0xf]  ;;  %v12159_v63 = vld [vmem:[#allocation8 + $0xa4] sm:$0xf]  ;;  %v12153_v9 = vld [vmem:[#allocation8 + $0x74] sm:$0xf] }
 0x2f7   : > { %6286 = vmatmul.bf16.vlgmr.msrb.gmra.mxu3 %v13714_v48  ;;  %v9032_v58 = vld [vmem:[#allocation8 + $0x88] sm:$0xf0] }
 0x2f8   : > { %6300 = vmatmul.bf16.vlgmr.msra.gmra.mxu0 %v13721_v37  ;;  %6334 = vmatpush.bf16.msra.mxu3 %v11263_v35 }
 0x2f9   : > { %6348 = vmatpush.bf16.msrb.mxu0 %v9155_v10  ;;  %v9323_v10 = vor.u32 %v12225_v42, %v9320_v15  ;;  %6314 = vmatmul.bf16.vlgmr.msra.gmra.mxu1 %v13724_v4  ;;  %v10950_v42 = vld [vmem:[#allocation8 + $0xf70] sm:$0xf]  ;;  %v12636_v15 = vld [vmem:[#allocation8 + $0xf84] sm:$0xf0] }
 0x2fa   : > { %6362 = vmatpush.bf16.msrb.mxu1 %v9347_v13  ;;  %6322 = vmatpush.bf16.msra.mxu2 %v11023_v3  ;;  %v10975_v13 = vor.u32 %v12642_v8, %v10974_v23  ;;  %v9275_v3 = vor.u32 %v12213_v29, %v9272_v17  ;;  %v12201_v23 = vld [vmem:[#allocation8 + $0x1f4] sm:$0xf]  ;;  %v9224_v8 = vld [vmem:[#allocation8 + $0x208] sm:$0xf0]  ;;  %v9011_v29 = vor.u32 %v12147_v14, %v9008_v6  ;;  %v12624_v17 = vld [vmem:[#allocation8 + $0xf24] sm:$0xf0] }
 0x2fb   : > { %v11094_v14 = vld [vmem:[#allocation8 + $0x1090] sm:$0xf]  ;;  %v12189_v6 = vld [vmem:[#allocation8 + $0x194] sm:$0xf] }
 0x2fc   : > { %6335 = vmatpush.bf16.msra.mxu3 %v11239_v44  ;;  %v9035_v44 = vor.u32 %v12153_v9, %v9032_v58  ;;  %v9200_v9 = vld [vmem:[#allocation8 + $0x1d8] sm:$0xf0]  ;;  %v12375_v58 = vld [vmem:[#allocation8 + $0x764] sm:$0xf] }
 0x2fd   : > { %6349 = vmatpush.bf16.msrb.mxu0 %v9131_v36  ;;  %v9056_v36 = vld [vmem:[#allocation8 + $0xb8] sm:$0xf0] }
 0x2fe   : > { %6363 = vmatpush.bf16.msrb.mxu1 %v9323_v10  ;;  %6323 = vmatpush.bf16.msra.mxu2 %v10999_v30  ;;  %v9059_v35 = vor.u32 %v12159_v63, %v9056_v36  ;;  %v10951_v10 = vor.u32 %v12636_v15, %v10950_v42  ;;  %v9251_v30 = vor.u32 %v12207_v19, %v9248_v57  ;;  %v11142_v63 = vld [vmem:[#allocation8 + $0x10f0] sm:$0xf]  ;;  %v12684_v36 = vld [vmem:[#allocation8 + $0x1104] sm:$0xf0]  ;;  %v9536_v42 = vld [vmem:[#allocation8 + $0x478] sm:$0xf0] }
 0x2ff   : > { %v12195_v15 = vld [vmem:[#allocation8 + $0x1c4] sm:$0xf]  ;;  %v11118_v57 = vld [vmem:[#allocation8 + $0x10c0] sm:$0xf] }
 0x300   : > { %6336 = vmatpush.bf16.msra.mxu3 %v11215_v33  ;;  %v10902_v33 = vld [vmem:[#allocation8 + $0xf10] sm:$0xf] }
 0x301   : > { %6350 = vmatpush.bf16.msrb.mxu0 %v9107_v28  ;;  %v11191_v28 = vor.u32 %v12696_v1, %v11190_v26  ;;  %v8984_v26 = vld [vmem:[#allocation8 + $0x28] sm:$0xf0]  ;;  %v9227_v1 = vor.u32 %v12201_v23, %v9224_v8  ;;  %v10903_v19 = vor.u32 %v12624_v17, %v10902_v33  ;;  %v12369_v8 = vld [vmem:[#allocation8 + $0x734] sm:$0xf]  ;;  %v10112_v33 = vld [vmem:[#allocation8 + $0x8f8] sm:$0xf0] }
 0x302   : > { %6364 = vmatpush.bf16.msrb.mxu1 %v9299_v46  ;;  %6324 = vmatpush.bf16.msra.mxu2 %v10975_v13  ;;  %v10927_v46 = vor.u32 %v12630_v38, %v10926_v25  ;;  %v12141_v13 = vld [vmem:[#allocation8 + $0x14] sm:$0xf]  ;;  %v9203_v25 = vor.u32 %v12195_v15, %v9200_v9  ;;  %v9176_v23 = vld [vmem:[#allocation8 + $0x1a8] sm:$0xf0]  ;;  %v12327_v17 = vld [vmem:[#allocation8 + $0x5e4] sm:$0xf] }
 0x303   : > { %v12363_v9 = vld [vmem:[#allocation8 + $0x704] sm:$0xf] }
 0x304   : > { %6337 = vmatpush.bf16.msra.mxu3 %v11191_v28  ;;  %v9920_v28 = vld [vmem:[#allocation8 + $0x778] sm:$0xf0] }
 0x305   : > { %6351 = vmatpush.bf16.msrb.mxu0 %v9083_v31  ;;  %v11167_v31 = vor.u32 %v12690_v32, %v11166_v2  ;;  %v8987_v2 = vor.u32 %v12141_v13, %v8984_v26  ;;  %v9923_v38 = vor.u32 %v12375_v58, %v9920_v28  ;;  %v9728_v13 = vld [vmem:[#allocation8 + $0x5f8] sm:$0xf0]  ;;  %v9179_v26 = vor.u32 %v12189_v6, %v9176_v23  ;;  %v9848_v6 = vld [vmem:[#allocation8 + $0x6e8] sm:$0xf0] }
 0x306   : > { %6365 = vmatpush.bf16.msrb.mxu1 %v9275_v3  ;;  %6325 = vmatpush.bf16.msra.mxu2 %v10951_v10  ;;  %v11143_v3 = vor.u32 %v12684_v36, %v11142_v63  ;;  %v12678_v10 = vld [vmem:[#allocation8 + $0x10d4] sm:$0xf0]  ;;  %v9896_v63 = vld [vmem:[#allocation8 + $0x748] sm:$0xf0]  ;;  %v12423_v36 = vld [vmem:[#allocation8 + $0x8e4] sm:$0xf]  ;;  %v9731_v28 = vor.u32 %v12327_v17, %v9728_v13 }
 0x307   : > { %v9872_v58 = vld [vmem:[#allocation8 + $0x718] sm:$0xf0]  ;;  %v12351_v13 = vld [vmem:[#allocation8 + $0x6a4] sm:$0xf] }
 0x308   : > { %6338 = vmatpush.bf16.msra.mxu3 %v11167_v31  ;;  %v11119_v31 = vor.u32 %v12678_v10, %v11118_v57  ;;  %v10088_v57 = vld [vmem:[#allocation8 + $0x8c8] sm:$0xf0]  ;;  %v10064_v23 = vld [vmem:[#allocation8 + $0x898] sm:$0xf0] }
 0x309   : > { %6352 = vmatpush.bf16.msrb.mxu0 %v9059_v35  ;;  %v12279_v35 = vld [vmem:[#allocation8 + $0x464] sm:$0xf] }
 0x30a   : > { %6366 = vmatpush.bf16.msrb.mxu1 %v9251_v30  ;;  %6326 = vmatpush.bf16.msra.mxu2 %v10927_v46  ;;  %v9539_v32 = vor.u32 %v12279_v35, %v9536_v42  ;;  %v9512_v30 = vld [vmem:[#allocation8 + $0x448] sm:$0xf0]  ;;  %v12672_v46 = vld [vmem:[#allocation8 + $0x10a4] sm:$0xf0]  ;;  %v12267_v35 = vld [vmem:[#allocation8 + $0x404] sm:$0xf] }
 0x30b   : > { %v9488_v42 = vld [vmem:[#allocation8 + $0x418] sm:$0xf0]  ;;  %v11095_v15 = vor.u32 %v12672_v46, %v11094_v14  ;;  %v12357_v14 = vld [vmem:[#allocation8 + $0x6d4] sm:$0xf] }
 0x30c   : > { %6339 = vmatpush.bf16.msra.mxu3 %v11143_v3  ;;  %v10115_v3 = vor.u32 %v12423_v36, %v10112_v33  ;;  %v9491_v10 = vor.u32 %v12267_v35, %v9488_v42  ;;  %v9680_v46 = vld [vmem:[#allocation8 + $0x598] sm:$0xf0]  ;;  %v9851_v36 = vor.u32 %v12357_v14, %v9848_v6  ;;  %v12255_v33 = vld [vmem:[#allocation8 + $0x3a4] sm:$0xf]  ;;  %v12405_v35 = vld [vmem:[#allocation8 + $0x854] sm:$0xf] }
 0x30d   : > { %6353 = vmatpush.bf16.msrb.mxu0 %v9035_v44  ;;  %v12273_v44 = vld [vmem:[#allocation8 + $0x434] sm:$0xf]  ;;  %v10040_v42 = vld [vmem:[#allocation8 + $0x868] sm:$0xf0]  ;;  %v12243_v6 = vld [vmem:[#allocation8 + $0x344] sm:$0xf] }
 0x30e   : > { %6367 = vmatpush.bf16.msrb.mxu1 %v9227_v1  ;;  %6327 = vmatpush.bf16.msra.mxu2 %v10903_v19  ;;  %v9899_v1 = vor.u32 %v12369_v8, %v9896_v63  ;;  %v12417_v19 = vld [vmem:[#allocation8 + $0x8b4] sm:$0xf]  ;;  %v12315_v63 = vld [vmem:[#allocation8 + $0x584] sm:$0xf] }
 0x310   : > { %6340 = vmatpush.bf16.msra.mxu3 %v11119_v31 }
 0x311   : > { %6354 = vmatpush.bf16.msrb.mxu0 %v9011_v29  ;;  %v9515_v29 = vor.u32 %v12273_v44, %v9512_v30  ;;  %6328 = vmatmul.bf16.vlgmr.msra.gmra.mxu2 %v13731_v5  ;;  %v9875_v44 = vor.u32 %v12363_v9, %v9872_v58  ;;  %v10091_v30 = vor.u32 %v12417_v19, %v10088_v57  ;;  %v12249_v58 = vld [vmem:[#allocation8 + $0x374] sm:$0xf] }
 0x312   : > { %6376 = vmatpush.bf16.msrb.mxu2 %v9539_v32  ;;  %6368 = vmatpush.bf16.msrb.mxu1 %v9203_v25  ;;  %v9704_v32 = vld [vmem:[#allocation8 + $0x5c8] sm:$0xf0]  ;;  %v12261_v25 = vld [vmem:[#allocation8 + $0x3d4] sm:$0xf]  ;;  %v10043_v19 = vor.u32 %v12405_v35, %v10040_v42 }
 0x313   : > { %v12345_v57 = vld [vmem:[#allocation8 + $0x674] sm:$0xf]  ;;  %v9752_v42 = vld [vmem:[#allocation8 + $0x628] sm:$0xf0] }
 0x314   : > { %6341 = vmatpush.bf16.msra.mxu3 %v11095_v15  ;;  %v12309_v15 = vld [vmem:[#allocation8 + $0x554] sm:$0xf] }
 0x315   : > { %6355 = vmatpush.bf16.msrb.mxu0 %v8987_v2  ;;  %v12321_v2 = vld [vmem:[#allocation8 + $0x5b4] sm:$0xf] }
 0x316   : > { %6377 = vmatpush.bf16.msrb.mxu2 %v9515_v29  ;;  %6369 = vmatpush.bf16.msrb.mxu1 %v9179_v26  ;;  %v9707_v31 = vor.u32 %v12321_v2, %v9704_v32  ;;  %v9440_v29 = vld [vmem:[#allocation8 + $0x3b8] sm:$0xf0]  ;;  %v12399_v32 = vld [vmem:[#allocation8 + $0x824] sm:$0xf]  ;;  %v12333_v35 = vld [vmem:[#allocation8 + $0x614] sm:$0xf] }
 0x317   : > { %6342 = vmatmul.bf16.vlgmr.msra.gmra.mxu3 %v13735_v39  ;;  %v9824_v26 = vld [vmem:[#allocation8 + $0x6b8] sm:$0xf0] }
 0x318   : > { %6356 = vmatmul.bf16.vlgmr.msrb.gmra.mxu0 %v13689_v41  ;;  %6390 = vmatpush.bf16.msrb.mxu3 %v9731_v28  ;;  %v12411_v41 = vld [vmem:[#allocation8 + $0x884] sm:$0xf]  ;;  %v9827_v9 = vor.u32 %v12351_v13, %v9824_v26  ;;  %v9416_v28 = vld [vmem:[#allocation8 + $0x388] sm:$0xf0]  ;;  %v12237_v13 = vld [vmem:[#allocation8 + $0x314] sm:$0xf] }
 0x319   : > { %6404 = vmatpush.bf16.msra.mxu0 %v9923_v38  ;;  %v9464_v38 = vld [vmem:[#allocation8 + $0x3e8] sm:$0xf0]  ;;  %6370 = vmatmul.bf16.vlgmr.msrb.gmra.mxu1 %v13693_v60  ;;  %v10067_v17 = vor.u32 %v12411_v41, %v10064_v23  ;;  %v9443_v60 = vor.u32 %v12255_v33, %v9440_v29  ;;  %v12339_v23 = vld [vmem:[#allocation8 + $0x644] sm:$0xf]  ;;  %v12297_v29 = vld [vmem:[#allocation8 + $0x4f4] sm:$0xf] }
 0x31a   : > { %6418 = vmatpush.bf16.msra.mxu1 %v10115_v3  ;;  %6378 = vmatpush.bf16.msrb.mxu2 %v9491_v10  ;;  %v9467_v8 = vor.u32 %v12261_v25, %v9464_v38  ;;  %v9656_v3 = vld [vmem:[#allocation8 + $0x568] sm:$0xf0]  ;;  %v9419_v25 = vor.u32 %v12249_v58, %v9416_v28  ;;  %v12303_v38 = vld [vmem:[#allocation8 + $0x524] sm:$0xf]  ;;  %v9968_v28 = vld [vmem:[#allocation8 + $0x7d8] sm:$0xf0] }
 0x31b   : > { %v9800_v10 = vld [vmem:[#allocation8 + $0x688] sm:$0xf0]  ;;  %v9659_v2 = vor.u32 %v12309_v15, %v9656_v3  ;;  %v12471_v15 = vld [vmem:[#allocation8 + $0xa64] sm:$0xf]  ;;  %v10304_v3 = vld [vmem:[#allocation8 + $0xa78] sm:$0xf0] }
 0x31c   : > { %6391 = vmatpush.bf16.msrb.mxu3 %v9707_v31  ;;  %v9803_v14 = vor.u32 %v12345_v57, %v9800_v10  ;;  %v9392_v31 = vld [vmem:[#allocation8 + $0x358] sm:$0xf0] }
 0x31d   : > { %6405 = vmatpush.bf16.msra.mxu0 %v9899_v1  ;;  %v9683_v1 = vor.u32 %v12315_v63, %v9680_v46  ;;  %v12393_v46 = vld [vmem:[#allocation8 + $0x7f4] sm:$0xf]  ;;  %v9395_v33 = vor.u32 %v12243_v6, %v9392_v31  ;;  %v10688_v57 = vld [vmem:[#allocation8 + $0xd78] sm:$0xf0]  ;;  %v10280_v6 = vld [vmem:[#allocation8 + $0xa48] sm:$0xf0] }
 0x31e   : > { %6419 = vmatpush.bf16.msra.mxu1 %v10091_v30  ;;  %6379 = vmatpush.bf16.msrb.mxu2 %v9467_v8  ;;  %v9632_v30 = vld [vmem:[#allocation8 + $0x538] sm:$0xf0]  ;;  %v12285_v31 = vld [vmem:[#allocation8 + $0x494] sm:$0xf] }
 0x31f   : > { %v9776_v8 = vld [vmem:[#allocation8 + $0x658] sm:$0xf0]  ;;  %v9635_v63 = vor.u32 %v12303_v38, %v9632_v30  ;;  %v12465_v38 = vld [vmem:[#allocation8 + $0xa34] sm:$0xf] }
 0x320   : > { %6392 = vmatpush.bf16.msrb.mxu3 %v9683_v1  ;;  %v9779_v26 = vor.u32 %v12339_v23, %v9776_v8  ;;  %v9368_v1 = vld [vmem:[#allocation8 + $0x328] sm:$0xf0] }
 0x321   : > { %6406 = vmatpush.bf16.msra.mxu0 %v9875_v44  ;;  %v10016_v44 = vld [vmem:[#allocation8 + $0x838] sm:$0xf0]  ;;  %v9371_v10 = vor.u32 %v12237_v13, %v9368_v1  ;;  %v9944_v8 = vld [vmem:[#allocation8 + $0x7a8] sm:$0xf0]  ;;  %v12519_v13 = vld [vmem:[#allocation8 + $0xbe4] sm:$0xf] }
 0x322   : > { %6420 = vmatpush.bf16.msra.mxu1 %v10067_v17  ;;  %6380 = vmatpush.bf16.msrb.mxu2 %v9443_v60  ;;  %v10019_v41 = vor.u32 %v12399_v32, %v10016_v44  ;;  %v9608_v17 = vld [vmem:[#allocation8 + $0x508] sm:$0xf0]  ;;  %v9584_v32 = vld [vmem:[#allocation8 + $0x4d8] sm:$0xf0]  ;;  %v9755_v44 = vor.u32 %v12333_v35, %v9752_v42  ;;  %v12459_v42 = vld [vmem:[#allocation8 + $0xa04] sm:$0xf] }
 0x323   : > { %v9611_v58 = vor.u32 %v12297_v29, %v9608_v17  ;;  %v10880_v29 = vld [vmem:[#allocation8 + $0xef8] sm:$0xf0]  ;;  %v10283_v17 = vor.u32 %v12465_v38, %v10280_v6  ;;  %v12453_v38 = vld [vmem:[#allocation8 + $0x9d4] sm:$0xf]  ;;  %v10616_v6 = vld [vmem:[#allocation8 + $0xce8] sm:$0xf0] }
 0x324   : > { %6393 = vmatpush.bf16.msrb.mxu3 %v9659_v2  ;;  %v12291_v2 = vld [vmem:[#allocation8 + $0x4c4] sm:$0xf] }
 0x325   : > { %6407 = vmatpush.bf16.msra.mxu0 %v9851_v36  ;;  %v9992_v36 = vld [vmem:[#allocation8 + $0x808] sm:$0xf0]  ;;  %v9587_v23 = vor.u32 %v12291_v2, %v9584_v32  ;;  %v12513_v32 = vld [vmem:[#allocation8 + $0xbb4] sm:$0xf] }
 0x326   : > { %6421 = vmatpush.bf16.msra.mxu1 %v10043_v19  ;;  %6381 = vmatpush.bf16.msrb.mxu2 %v9419_v25  ;;  %v9995_v60 = vor.u32 %v12393_v46, %v9992_v36  ;;  %v12567_v19 = vld [vmem:[#allocation8 + $0xd64] sm:$0xf]  ;;  %v10307_v25 = vor.u32 %v12471_v15, %v10304_v3  ;;  %v10664_v46 = vld [vmem:[#allocation8 + $0xd48] sm:$0xf0] }
 0x327   : > { %v9560_v36 = vld [vmem:[#allocation8 + $0x4a8] sm:$0xf0] }
 0x328   : > { %6394 = vmatpush.bf16.msrb.mxu3 %v9635_v63  ;;  %v12561_v63 = vld [vmem:[#allocation8 + $0xd34] sm:$0xf]  ;;  %v9563_v15 = vor.u32 %v12285_v31, %v9560_v36  ;;  %v13899_v31 = vpop.f32.mrf.mxu1  ;;  %v10448_v36 = vld [vmem:[#allocation8 + $0xb98] sm:$0xf0] }
 0x329   : > { %6408 = vmatpush.bf16.msra.mxu0 %v9827_v9  ;;  %v12387_v9 = vld [vmem:[#allocation8 + $0x7c4] sm:$0xf]  ;;  %v10667_v35 = vor.u32 %v12561_v63, %v10664_v46 }
 0x32a   : > { %6422 = vmatpush.bf16.msra.mxu1 %v10019_v41  ;;  %6382 = vmatpush.bf16.msrb.mxu2 %v9395_v33  ;;  %v9971_v30 = vor.u32 %v12387_v9, %v9968_v28  ;;  %v12381_v41 = vld [vmem:[#allocation8 + $0x794] sm:$0xf]  ;;  %v12615_v33 = vld [vmem:[#allocation8 + $0xee4] sm:$0xf]  ;;  %v13896_v28 = vpop.f32.mrf.mxu0 }
 0x32b   : > { %v9947_v1 = vor.u32 %v12381_v41, %v9944_v8  ;;  %v10883_v3 = vor.u32 %v12615_v33, %v10880_v29  ;;  %v12555_v9 = vld [vmem:[#allocation8 + $0xd04] sm:$0xf]  ;;  %v10832_v8 = vld [vmem:[#allocation8 + $0xe98] sm:$0xf0] }
 0x32c   : > { %6395 = vmatpush.bf16.msrb.mxu3 %v9611_v58  ;;  %v10640_v58 = vld [vmem:[#allocation8 + $0xd18] sm:$0xf0]  ;;  %v12507_v46 = vld [vmem:[#allocation8 + $0xb84] sm:$0xf] }
 0x32d   : > { %6409 = vmatpush.bf16.msra.mxu0 %v9803_v14  ;;  %v10691_v14 = vor.u32 %v12567_v19, %v10688_v57  ;;  %v12609_v57 = vld [vmem:[#allocation8 + $0xeb4] sm:$0xf]  ;;  %v12447_v29 = vld [vmem:[#allocation8 + $0x9a4] sm:$0xf] }
 0x32e   : > { %6423 = vmatpush.bf16.msra.mxu1 %v9995_v60  ;;  %6383 = vmatpush.bf16.msrb.mxu2 %v9371_v10  ;;  %v10256_v60 = vld [vmem:[#allocation8 + $0xa18] sm:$0xf0]  ;;  %v10856_v10 = vld [vmem:[#allocation8 + $0xec8] sm:$0xf0] }
 0x32f   : > { %v10259_v2 = vor.u32 %v12459_v42, %v10256_v60  ;;  %v10451_v42 = vor.u32 %v12507_v46, %v10448_v36  ;;  %v12597_v60 = vld [vmem:[#allocation8 + $0xe54] sm:$0xf]  ;;  %v12531_v36 = vld [vmem:[#allocation8 + $0xc44] sm:$0xf] }
 0x330   : > { %6396 = vmatpush.bf16.msrb.mxu3 %v9587_v23  ;;  %v12603_v23 = vld [vmem:[#allocation8 + $0xe84] sm:$0xf] }
 0x331   : > { %6410 = vmatpush.bf16.msra.mxu0 %v9779_v26  ;;  %v10496_v26 = vld [vmem:[#allocation8 + $0xbf8] sm:$0xf0]  ;;  %6384 = vmatmul.bf16.vlgmr.msrb.gmra.mxu2 %v13685_v54  ;;  %v10232_v54 = vld [vmem:[#allocation8 + $0x9e8] sm:$0xf0] }
 0x332   : > { %6432 = vmatpush.bf16.msra.mxu2 %v10307_v25  ;;  %6424 = vmatpush.bf16.msra.mxu1 %v9971_v30  ;;  %v10499_v19 = vor.u32 %v12519_v13, %v10496_v26  ;;  %v10643_v25 = vor.u32 %v12555_v9, %v10640_v58  ;;  %v10859_v30 = vor.u32 %v12609_v57, %v10856_v10  ;;  %v12543_v26 = vld [vmem:[#allocation8 + $0xca4] sm:$0xf]  ;;  %v10424_v9 = vld [vmem:[#allocation8 + $0xb68] sm:$0xf0]  ;;  %v13907_v58 = vpop.f32.mrf.mxu3 }
 0x333   : > { %v10235_v63 = vor.u32 %v12453_v38, %v10232_v54  ;;  %v10835_v13 = vor.u32 %v12603_v23, %v10832_v8  ;;  %v10184_v57 = vld [vmem:[#allocation8 + $0x988] sm:$0xf0]  ;;  %v12591_v54 = vld [vmem:[#allocation8 + $0xe24] sm:$0xf] }
 0x334   : > { %6397 = vmatpush.bf16.msrb.mxu3 %v9563_v15  ;;  %v12435_v8 = vld [vmem:[#allocation8 + $0x944] sm:$0xf] }
 0x335   : > { %6411 = vmatpush.bf16.msra.mxu0 %v9755_v44  ;;  %v10472_v44 = vld [vmem:[#allocation8 + $0xbc8] sm:$0xf0] }
 0x336   : > { %6433 = vmatpush.bf16.msra.mxu2 %v10283_v17  ;;  %6425 = vmatpush.bf16.msra.mxu1 %v9947_v1  ;;  %v10475_v41 = vor.u32 %v12513_v32, %v10472_v44  ;;  %v10208_v17 = vld [vmem:[#allocation8 + $0x9b8] sm:$0xf0]  ;;  %v10568_v32 = vld [vmem:[#allocation8 + $0xc88] sm:$0xf0]  ;;  %v13909_v44 = vpop.f32.mrf.mxu1 }
 0x337   : > { %6398 = vmatmul.bf16.vlgmr.msrb.gmra.mxu3 %v13696_v7  ;;  %v10592_v1 = vld [vmem:[#allocation8 + $0xcb8] sm:$0xf0]  ;;  %v10211_v15 = vor.u32 %v12447_v29, %v10208_v17  ;;  %v12585_v17 = vld [vmem:[#allocation8 + $0xdf4] sm:$0xf] }
 0x338   : > { %6412 = vmatmul.bf16.vlgmr.msra.gmra.mxu0 %v13703_v50  ;;  %v13901_v50 = vpop.f32.mrf.mxu2  ;;  %6446 = vmatpush.bf16.msra.mxu3 %v10499_v19  ;;  %v10595_v7 = vor.u32 %v12543_v26, %v10592_v1  ;;  %v12441_v19 = vld [vmem:[#allocation8 + $0x974] sm:$0xf] }
 0x339   : > { %6460 = vmatpush.bf16.msrb.mxu0 %v10691_v14  ;;  %v12549_v14 = vld [vmem:[#allocation8 + $0xcd4] sm:$0xf]  ;;  %6426 = vmatmul.bf16.vlgmr.msra.gmra.mxu1 %v13705_v53  ;;  %v10808_v53 = vld [vmem:[#allocation8 + $0xe68] sm:$0xf0] }
 0x33a   : > { %6474 = vmatpush.bf16.msrb.mxu1 %v10883_v3  ;;  %6434 = vmatpush.bf16.msra.mxu2 %v10259_v2  ;;  %v10619_v33 = vor.u32 %v12549_v14, %v10616_v6  ;;  %v12501_v3 = vld [vmem:[#allocation8 + $0xb54] sm:$0xf]  ;;  %v10811_v10 = vor.u32 %v12597_v60, %v10808_v53  ;;  %v10187_v14 = vor.u32 %v12441_v19, %v10184_v57  ;;  %v12495_v6 = vld [vmem:[#allocation8 + $0xb24] sm:$0xf]  ;;  %v14194_v53 = vperm.slane %v13737_v47, 0 }
 0x33b   : > { %v12537_v2 = vld [vmem:[#allocation8 + $0xc74] sm:$0xf]  ;;  %v10427_v38 = vor.u32 %v12501_v3, %v10424_v9  ;;  %v13918_v9 = vpop.f32.mrf.mxu3  ;;  %v10136_v19 = vld [vmem:[#allocation8 + $0x928] sm:$0xf0] }
 0x33c   : > { %6447 = vmatpush.bf16.msra.mxu3 %v10475_v41  ;;  %v10400_v41 = vld [vmem:[#allocation8 + $0xb38] sm:$0xf0]  ;;  %v10571_v23 = vor.u32 %v12537_v2, %v10568_v32  ;;  %v12489_v1 = vld [vmem:[#allocation8 + $0xaf4] sm:$0xf]  ;;  %v12663_v32 = vld [vmem:[#allocation8 + $0x1064] sm:$0xf] }
 0x33d   : > { %6461 = vmatpush.bf16.msrb.mxu0 %v10667_v35  ;;  %v13905_v35 = vpop.f32.mrf.mxu0  ;;  %v10403_v29 = vor.u32 %v12495_v6, %v10400_v41  ;;  %v12429_v60 = vld [vmem:[#allocation8 + $0x914] sm:$0xf]  ;;  %v11354_v47 = vld [vmem:[#allocation11 + $0xa8] sm:$0xf]  ;;  %v12737_v6 = vld [vmem:[#allocation11 + $0xb0] sm:$0xf0] }
 0x33e   : > { %6475 = vmatpush.bf16.msrb.mxu1 %v10859_v30  ;;  %6435 = vmatpush.bf16.msra.mxu2 %v10235_v63  ;;  %v10784_v30 = vld [vmem:[#allocation8 + $0xe38] sm:$0xf0]  ;;  %v12525_v57 = vld [vmem:[#allocation8 + $0xc14] sm:$0xf]  ;;  %v12483_v41 = vld [vmem:[#allocation8 + $0xac4] sm:$0xf] }
 0x33f   : > { %v10160_v63 = vld [vmem:[#allocation8 + $0x958] sm:$0xf0]  ;;  %v10787_v46 = vor.u32 %v12591_v54, %v10784_v30  ;;  %v12579_v54 = vld [vmem:[#allocation8 + $0xdc4] sm:$0xf] }
 0x340   : > { %6448 = vmatpush.bf16.msra.mxu3 %v10451_v42  ;;  %v10163_v26 = vor.u32 %v12435_v8, %v10160_v63  ;;  %v10376_v42 = vld [vmem:[#allocation8 + $0xb08] sm:$0xf0]  ;;  %v10352_v8 = vld [vmem:[#allocation8 + $0xad8] sm:$0xf0]  ;;  %v13921_v63 = vpop.f32.mrf.mxu1 }
 0x341   : > { %6462 = vmatpush.bf16.msrb.mxu0 %v10643_v25  ;;  %v13911_v25 = vpop.f32.mrf.mxu2  ;;  %v10379_v30 = vor.u32 %v12489_v1, %v10376_v42  ;;  %v11048_v42 = vld [vmem:[#allocation8 + $0x1048] sm:$0xf0] }
 0x342   : > { %6476 = vmatpush.bf16.msrb.mxu1 %v10835_v13  ;;  %6436 = vmatpush.bf16.msra.mxu2 %v10211_v15  ;;  %v10760_v13 = vld [vmem:[#allocation8 + $0xe08] sm:$0xf0]  ;;  %v5520_v15 = vadd.f32 %v13750_v49, %v14194_v53  ;;  %v10139_v49 = vor.u32 %v12429_v60, %v10136_v19  ;;  %v12477_v60 = vld [vmem:[#allocation8 + $0xa94] sm:$0xf] }
 0x343   : > { %v10763_v2 = vor.u32 %v12585_v17, %v10760_v13  ;;  %v12657_v17 = vld [vmem:[#allocation8 + $0x1034] sm:$0xf]  ;;  %v10712_v19 = vld [vmem:[#allocation8 + $0xda8] sm:$0xf0] }
 0x344   : > { %6449 = vmatpush.bf16.msra.mxu3 %v10427_v38  ;;  %v11072_v38 = vld [vmem:[#allocation8 + $0x1078] sm:$0xf0]  ;;  %v12573_v53 = vld [vmem:[#allocation8 + $0xd94] sm:$0xf] }
 0x345   : > { %6463 = vmatpush.bf16.msrb.mxu0 %v10619_v33  ;;  %v10544_v33 = vld [vmem:[#allocation8 + $0xc58] sm:$0xf0]  ;;  %v13916_v3 = vpop.f32.mrf.mxu0 }
 0x346   : > { %6477 = vmatpush.bf16.msrb.mxu1 %v10811_v10  ;;  %6437 = vmatpush.bf16.msra.mxu2 %v10187_v14  ;;  %v10520_v10 = vld [vmem:[#allocation8 + $0xc28] sm:$0xf0]  ;;  %v10736_v14 = vld [vmem:[#allocation8 + $0xdd8] sm:$0xf0] }
 0x347   : > { %v10739_v1 = vor.u32 %v12579_v54, %v10736_v14  ;;  %v12711_v54 = vld [vmem:[#allocation8 + $0x11e4] sm:$0xf]  ;;  %v11264_v14 = vld [vmem:[#allocation8 + $0x11f8] sm:$0xf0] }
 0x348   : > { %6450 = vmatpush.bf16.msra.mxu3 %v10403_v29  ;;  %v14195_v29 = vperm.slane %v13785_v52, 1 }
 0x349   : > { %6464 = vmatpush.bf16.msrb.mxu0 %v10595_v7  ;;  %v10547_v7 = vor.u32 %v12531_v36, %v10544_v33  ;;  %v13923_v36 = vpop.f32.mrf.mxu2  ;;  %v11075_v33 = vor.u32 %v12663_v32, %v11072_v38  ;;  %v11450_v32 = vld [vmem:[#allocation11 + $0x168] sm:$0xf]  ;;  %v12761_v38 = vld [vmem:[#allocation11 + $0x170] sm:$0xf0] }
 0x34a   : > { %6478 = vmatpush.bf16.msrb.mxu1 %v10787_v46  ;;  %6438 = vmatpush.bf16.msra.mxu2 %v10163_v26  ;;  %v10523_v46 = vor.u32 %v12525_v57, %v10520_v10  ;;  %v5688_v13 = vadd.f32 %v13805_v21, %v14195_v29  ;;  %v11355_v26 = vor.u32 %v12737_v6, %v11354_v47  ;;  %v10328_v10 = vld [vmem:[#allocation8 + $0xaa8] sm:$0xf0]  ;;  %v12651_v6 = vld [vmem:[#allocation8 + $0x1004] sm:$0xf]  ;;  %v11438_v29 = vld [vmem:[#allocation11 + $0x150] sm:$0xf] }
 0x34c   : > { %6451 = vmatpush.bf16.msra.mxu3 %v10379_v30  ;;  %v5702_v57 = vadd.f32 %v13807_v56, %v5688_v13  ;;  %v10715_v30 = vor.u32 %v12573_v53, %v10712_v19  ;;  %v12645_v53 = vld [vmem:[#allocation8 + $0xfd4] sm:$0xf] }
 0x34d   : > { %6465 = vmatpush.bf16.msrb.mxu0 %v10571_v23  ;;  %v5534_v23 = vadd.f32 %v13752_v51, %v5520_v15  ;;  %v10355_v15 = vor.u32 %v12483_v41, %v10352_v8  ;;  %v13930_v21 = vpop.f32.mrf.mxu0  ;;  %v11024_v41 = vld [vmem:[#allocation8 + $0x1018] sm:$0xf0]  ;;  %v10331_v8 = vor.u32 %v12477_v60, %v10328_v10 }
 0x34e   : > { %6479 = vmatpush.bf16.msrb.mxu1 %v10763_v2  ;;  %6439 = vmatpush.bf16.msra.mxu2 %v10139_v49  ;;  %v11051_v2 = vor.u32 %v12657_v17, %v11048_v42  ;;  %v13934_v49 = vpop.f32.mrf.mxu3  ;;  %v11240_v42 = vld [vmem:[#allocation8 + $0x11c8] sm:$0xf0] }
 0x34f   : > { %v5548_v51 = vadd.f32 %v13761_v62, %v5534_v23  ;;  %v5716_v62 = vadd.f32 %v13816_v11, %v5702_v57  ;;  %v11451_v23 = vor.u32 %v12761_v38, %v11450_v32  ;;  %v11267_v11 = vor.u32 %v12711_v54, %v11264_v14  ;;  %v12755_v57 = vld [vmem:[#allocation11 + $0x140] sm:$0xf0]  ;;  %v12699_v38 = vld [vmem:[#allocation8 + $0x1184] sm:$0xf] }
 0x350   : > { %6452 = vmatpush.bf16.msra.mxu3 %v10355_v15  ;;  %v12728_v15 = vld [vmem:[#allocation11 + $0x68] sm:$0xf0]  ;;  %v12639_v14 = vld [vmem:[#allocation8 + $0xfa4] sm:$0xf] }
 0x351   : > { %6466 = vmatpush.bf16.msrb.mxu0 %v10547_v7  ;;  %v12734_v7 = vld [vmem:[#allocation11 + $0x98] sm:$0xf0]  ;;  %v5562_v56 = vadd.f32 %v13765_v18, %v5548_v51  ;;  %6440 = vmatmul.bf16.vlgmr.msra.gmra.mxu2 %v13711_v27  ;;  %v5730_v17 = vadd.f32 %v13820_v0, %v5716_v62  ;;  %v13942_v18 = vpop.f32.mrf.mxu2  ;;  %v12705_v27 = vld [vmem:[#allocation8 + $0x11b4] sm:$0xf]  ;;  %v11000_v0 = vld [vmem:[#allocation8 + $0xfe8] sm:$0xf0] }
 0x352   : > { %6488 = vmatpush.bf16.msrb.mxu2 %v11075_v33  ;;  %6480 = vmatpush.bf16.msrb.mxu1 %v10739_v1  ;;  %v11343_v47 = vor.u32 %v12734_v7, %v11342_v12  ;;  %v12731_v33 = vld [vmem:[#allocation11 + $0x80] sm:$0xf0]  ;;  %v12758_v12 = vld [vmem:[#allocation11 + $0x158] sm:$0xf0]  ;;  %v13940_v1 = vpop.f32.mrf.mxu1  ;;  %v11318_v51 = vld [vmem:[#allocation11 + $0x60] sm:$0xf]  ;;  %v11243_v19 = vor.u32 %v12705_v27, %v11240_v42  ;;  %v11003_v32 = vor.u32 %v12645_v53, %v11000_v0 }
 0x353   : > { %v5576_v13 = vadd.f32 %v13770_v40, %v5562_v56  ;;  %v5744_v40 = vadd.f32 %v13818_v59, %v5730_v17  ;;  %v11426_v7 = vld [vmem:[#allocation11 + $0x138] sm:$0xf]  ;;  %v11319_v54 = vor.u32 %v12728_v15, %v11318_v51  ;;  %v11294_v42 = vld [vmem:[#allocation11 + $0x30] sm:$0xf]  ;;  %v11402_v0 = vld [vmem:[#allocation11 + $0x108] sm:$0xf] }
 0x354   : > { %6453 = vmatpush.bf16.msra.mxu3 %v10331_v8  ;;  %v10976_v62 = vld [vmem:[#allocation8 + $0xfb8] sm:$0xf0]  ;;  %v11414_v8 = vld [vmem:[#allocation11 + $0x120] sm:$0xf] }
 0x355   : > { %6467 = vmatpush.bf16.msrb.mxu0 %v10523_v46  ;;  %v11330_v46 = vld [vmem:[#allocation11 + $0x78] sm:$0xf]  ;;  %v5590_v10 = vadd.f32 %v13774_v16, %v5576_v13  ;;  %v11427_v16 = vor.u32 %v12755_v57, %v11426_v7  ;;  %v12687_v15 = vld [vmem:[#allocation8 + $0x1124] sm:$0xf]  ;;  %v14196_v57 = vld [vmem:[#allocation25_spill] sm:$0xff] }
 0x356   : > { %6489 = vmatpush.bf16.msrb.mxu2 %v11051_v2  ;;  %6481 = vmatpush.bf16.msrb.mxu1 %v10715_v30  ;;  %v11331_v60 = vor.u32 %v12731_v33, %v11330_v46  ;;  %v11216_v2 = vld [vmem:[#allocation8 + $0x1198] sm:$0xf0]  ;;  %v13949_v30 = vpop.f32.mrf.mxu0  ;;  %v10979_v46 = vor.u32 %v12639_v14, %v10976_v62  ;;  %v12693_v33 = vld [vmem:[#allocation8 + $0x1154] sm:$0xf] }
 0x357   : > { %6454 = vmatmul.bf16.vlgmr.msra.gmra.mxu3 %v13714_v48  ;;  %v5604_v59 = vadd.f32 %v13794_v55, %v5590_v10  ;;  %v11219_v56 = vor.u32 %v12699_v38, %v11216_v2  ;;  %v12752_v48 = vld [vmem:[#allocation11 + $0x128] sm:$0xf0]  ;;  %v11192_v55 = vld [vmem:[#allocation8 + $0x1168] sm:$0xf0]  ;;  %v10928_v7 = vld [vmem:[#allocation8 + $0xf58] sm:$0xf0] }
 0x358   : > { %6468 = vmatmul.bf16.vlgmr.msrb.gmra.mxu0 %v13721_v37  ;;  %v11439_v37 = vor.u32 %v12758_v12, %v11438_v29  ;;  %6502 = vmatpush.bf16.msrb.mxu3 %v11267_v11  ;;  %v12633_v29 = vld [vmem:[#allocation8 + $0xf74] sm:$0xf]  ;;  %v10952_v12 = vld [vmem:[#allocation8 + $0xf88] sm:$0xf0]  ;;  %v11415_v27 = vor.u32 %v12752_v48, %v11414_v8  ;;  %v11195_v53 = vor.u32 %v12693_v33, %v11192_v55  ;;  %v11282_v38 = vld [vmem:[#allocation11 + $0x18] sm:$0xf] }
 0x359   : > { %7502 = vmatpush.bf16.msra.mxu0 %v11355_v26  ;;  %v11027_v26 = vor.u32 %v12651_v6, %v11024_v41  ;;  %6482 = vmatmul.bf16.vlgmr.msrb.gmra.mxu1 %v13724_v4  ;;  %v11306_v6 = vld [vmem:[#allocation11 + $0x48] sm:$0xf]  ;;  %v12725_v4 = vld [vmem:[#allocation11 + $0x50] sm:$0xf0]  ;;  %v5758_v41 = vadd.f32 %v13822_v22, %v5744_v40  ;;  %v13959_v22 = vpop.f32.mrf.mxu2  ;;  %v10955_v51 = vor.u32 %v12633_v29, %v10952_v12  ;;  %v12719_v2 = vld [vmem:[#allocation11 + $0x20] sm:$0xf0] }
 0x35a   : > { %7516 = vmatpush.bf16.msra.mxu1 %v11451_v23  ;;  %v5618_v23 = vadd.f32 %v13798_v24, %v5604_v59  ;;  %v11307_v11 = vor.u32 %v12725_v4, %v11306_v6  ;;  %v12722_v24 = vld [vmem:[#allocation11 + $0x38] sm:$0xf0]  ;;  %v11390_v62 = vld [vmem:[#allocation11 + $0xf0] sm:$0xf]  ;;  %v14199_v4 = vperm.slane %v13785_v52, 2  ;;  %v11283_v55 = vor.u32 %v12719_v2, %v11282_v38 }
 0x35b   : > { %6490 = vmatpush.bf16.msrb.mxu2 %v11027_v26  ;;  %v5772_v17 = vadd.f32 %v13833_v34, %v5758_v41  ;;  %v13957_v26 = vpop.f32.mrf.mxu1  ;;  %v12749_v34 = vld [vmem:[#allocation11 + $0x110] sm:$0xf0]  ;;  %v11295_v40 = vor.u32 %v12722_v24, %v11294_v42  ;;  %v12746_v59 = vld [vmem:[#allocation11 + $0xf8] sm:$0xf0]  ;;  %v14200_v41 = vld [vmem:[#allocation32_spill] sm:$0xff] }
 0x35c   : > { %6503 = vmatpush.bf16.msrb.mxu3 %v11243_v19  ;;  %v5632_v13 = vadd.f32 %v13781_v43, %v5618_v23  ;;  %v11168_v43 = vld [vmem:[#allocation8 + $0x1138] sm:$0xf0]  ;;  %v12627_v19 = vld [vmem:[#allocation8 + $0xf44] sm:$0xf]  ;;  %v12681_v23 = vld [vmem:[#allocation8 + $0x10f4] sm:$0xf]  ;;  %v11391_v52 = vor.u32 %v12746_v59, %v11390_v62 }
 0x35d   : > { %7503 = vmatpush.bf16.msra.mxu0 %v11343_v47  ;;  %v13951_v47 = vpop.f32.mrf.mxu3  ;;  %v10931_v48 = vor.u32 %v12627_v19, %v10928_v7  ;;  %v12621_v33 = vld [vmem:[#allocation8 + $0xf14] sm:$0xf]  ;;  %v11546_v24 = vld [vmem:[#allocation11 + $0x228] sm:$0xf]  ;;  %v12675_v2 = vld [vmem:[#allocation8 + $0x10c4] sm:$0xf] }
 0x35e   : > { %7517 = vmatpush.bf16.msra.mxu1 %v11439_v37  ;;  %v5646_v37 = vadd.f32 %v13783_v61, %v5632_v13  ;;  %v11171_v61 = vor.u32 %v12687_v15, %v11168_v43  ;;  %v12716_v29 = vld [vmem:[#allocation11 + $0x8] sm:$0xf0]  ;;  %v11738_v15 = vld [vmem:[#allocation11 + $0x3a8] sm:$0xf]  ;;  %v12833_v43 = vld [vmem:[#allocation11 + $0x3b0] sm:$0xf0] }
 0x35f   : > { %6491 = vmatpush.bf16.msrb.mxu2 %v11003_v32  ;;  %v13964_v32 = vpop.f32.mrf.mxu0  ;;  %v14201_v12 = vld [vmem:[#allocation33_spill] sm:$0xff]  ;;  %v13982_v59 = vld [vmem:[#allocation10] sm:$0x3f] }
 0x360   : > { %6504 = vmatpush.bf16.msrb.mxu3 %v11219_v56  ;;  %v5660_v10 = vadd.f32 %v14196_v57, %v5646_v37  ;;  %v5856_v56 = vadd.f32 %v14200_v41, %v14199_v4  ;;  %v14204_v57 = vld [vmem:[#allocation34_spill] sm:$0xff]  ;;  %v14206_v4 = vld [vmem:[#allocation35_spill] sm:$0xff] }
 0x361   : > { %7504 = vmatpush.bf16.msra.mxu0 %v11331_v60  ;;  %v5786_v60 = vadd.f32 %v13837_v20, %v5772_v17  ;;  %v11403_v20 = vor.u32 %v12749_v34, %v11402_v0  ;;  %v10904_v17 = vld [vmem:[#allocation8 + $0xf28] sm:$0xf0]  ;;  %v13976_v42 = vpop.f32.mrf.mxu2 }
 0x362   : > { %7518 = vmatpush.bf16.msra.mxu1 %v11427_v16  ;;  %v14198_v16 = vld [vmem:[#allocation26_spill] sm:$0xff]  ;;  %v5870_v13 = vadd.f32 %v14201_v12, %v5856_v56  ;;  %v14202_v0 = vld [vmem:[#allocation28_spill] sm:$0xff]  ;;  %v10907_v38 = vor.u32 %v12621_v33, %v10904_v17  ;;  %v14207_v33 = vld [vmem:[#allocation31_spill] sm:$0xff] }
 0x363   : > { %6492 = vmatpush.bf16.msrb.mxu2 %v10979_v46  ;;  %v5674_v6 = vadd.f32 %v14198_v16, %v5660_v10  ;;  %v11144_v46 = vld [vmem:[#allocation8 + $0x1108] sm:$0xf0] }
 0x364   : > { %6505 = vmatpush.bf16.msrb.mxu3 %v11195_v53  ;;  %v11378_v53 = vld [vmem:[#allocation11 + $0xd8] sm:$0xf]  ;;  %v11147_v37 = vor.u32 %v12681_v23, %v11144_v46  ;;  %v5884_v10 = vadd.f32 %v14204_v57, %v5870_v13  ;;  %v12782_v23 = vld [vmem:[#allocation11 + $0x218] sm:$0xf0]  ;;  %v11366_v46 = vld [vmem:[#allocation11 + $0xc0] sm:$0xf] }
 0x365   : > { %7505 = vmatpush.bf16.msra.mxu0 %v11319_v54  ;;  %v14197_v54 = vld [vmem:[#allocation27_spill] sm:$0xff]  ;;  %v13971_v8 = vpop.f32.mrf.mxu3  ;;  %v6522_v7 = vmax.f32 %v5674_v6, 0.0  ;;  %v11534_v6 = vld [vmem:[#allocation11 + $0x210] sm:$0xf] }
 0x366   : > { %7519 = vmatpush.bf16.msra.mxu1 %v11415_v27  ;;  %v5800_v14 = vadd.f32 %v14197_v54, %v5786_v60  ;;  %v13974_v27 = vpop.f32.mrf.mxu1  ;;  %v12785_v60 = vld [vmem:[#allocation11 + $0x230] sm:$0xf0]  ;;  %v5898_v41 = vadd.f32 %v14206_v4, %v5884_v10  ;;  %v12779_v57 = vld [vmem:[#allocation11 + $0x200] sm:$0xf0] }
 0x367   : > { %6493 = vmatpush.bf16.msrb.mxu2 %v10955_v51  ;;  %v12743_v51 = vld [vmem:[#allocation11 + $0xe0] sm:$0xf0]  ;;  %v14205_v54 = vld [vmem:[#allocation30_spill] sm:$0xff]  ;;  %v11547_v16 = vor.u32 %v12785_v60, %v11546_v24 }
 0x368   : > { %v5814_v34 = vadd.f32 %v14202_v0, %v5800_v14  ;;  %6506 = vmatpush.bf16.msrb.mxu3 %v11171_v61  ;;  %v2619_v14 = vperm.slane %v13982_v59, 3  ;;  %v11379_v56 = vor.u32 %v12743_v51, %v11378_v53  ;;  %v12740_v0 = vld [vmem:[#allocation11 + $0xc8] sm:$0xf0]  ;;  %v11096_v24 = vld [vmem:[#allocation8 + $0x10a8] sm:$0xf0] }
 0x369   : > { %7506 = vmatpush.bf16.msra.mxu0 %v11307_v11  ;;  %v11270_v11 = vld [vmem:[#allocation11] sm:$0xf]  ;;  %v12809_v51 = vld [vmem:[#allocation11 + $0x2f0] sm:$0xf0] }
 0x36a   : > { %7520 = vmatpush.bf16.msra.mxu1 %v11403_v20  ;;  %v11120_v20 = vld [vmem:[#allocation8 + $0x10d8] sm:$0xf0]  ;;  %v5828_v62 = vadd.f32 %v14205_v54, %v5814_v34  ;;  %v11271_v61 = vor.u32 %v12716_v29, %v11270_v11  ;;  %v6024_v12 = vadd.f32 %v13916_v3, %v2619_v14  ;;  %v11726_v34 = vld [vmem:[#allocation11 + $0x390] sm:$0xf]  ;;  %v13990_v11 = vpop.f32.mrf.mxu0  ;;  %v6022_v60 = vadd.f32 %v13905_v35, %v2619_v14  ;;  %v12827_v54 = vld [vmem:[#allocation11 + $0x380] sm:$0xf0]  ;;  %v14002_v14 = vpop.f32.mrf.mxu2 }
 0x36b   : > { %6494 = vmatpush.bf16.msrb.mxu2 %v10931_v48  ;;  %v11739_v48 = vor.u32 %v12833_v43, %v11738_v15  ;;  %v11123_v13 = vor.u32 %v12675_v2, %v11120_v20  ;;  %v11535_v3 = vor.u32 %v12782_v23, %v11534_v6  ;;  %v14208_v15 = vld [vmem:[#allocation36_spill] sm:$0xff]  ;;  %v11714_v20 = vld [vmem:[#allocation11 + $0x378] sm:$0xf]  ;;  %v14210_v6 = vld [vmem:[#allocation37_spill] sm:$0xff] }
 0x36c   : > { %v5842_v17 = vadd.f32 %v14207_v33, %v5828_v62  ;;  %6507 = vmatpush.bf16.msrb.mxu3 %v11147_v37  ;;  %v6038_v53 = vadd.f32 %v13921_v63, %v6024_v12  ;;  %v11642_v37 = vld [vmem:[#allocation11 + $0x2e8] sm:$0xf]  ;;  %v5912_v43 = vadd.f32 %v14208_v15, %v5898_v41  ;;  %v6036_v2 = vadd.f32 %v13909_v44, %v6022_v60  ;;  %v12803_v60 = vld [vmem:[#allocation11 + $0x2c0] sm:$0xf0] }
 0x36d   : > { %7507 = vmatpush.bf16.msra.mxu0 %v11295_v40  ;;  %v14203_v40 = vld [vmem:[#allocation24_spill] sm:$0xff]  ;;  %v13992_v29 = vpop.f32.mrf.mxu3  ;;  %v11715_v33 = vor.u32 %v12827_v54, %v11714_v20  ;;  %v12770_v20 = vld [vmem:[#allocation11 + $0x1b8] sm:$0xf0] }
 0x36e   : > { %v6516_v19 = vmax.f32 %v14203_v40, 0.0  ;;  %7521 = vmatpush.bf16.msra.mxu1 %v11391_v52  ;;  %v12830_v40 = vld [vmem:[#allocation11 + $0x398] sm:$0xf0]  ;;  %v12669_v52 = vld [vmem:[#allocation8 + $0x1094] sm:$0xf]  ;;  %v6052_v35 = vadd.f32 %v13923_v36, %v6038_v53  ;;  %v14000_v62 = vpop.f32.mrf.mxu1  ;;  %v6050_v41 = vadd.f32 %v13911_v25, %v6036_v2  ;;  %v5926_v23 = vadd.f32 %v14210_v6, %v5912_v43 }
 0x36f   : > { %6495 = vmatpush.bf16.msrb.mxu2 %v10907_v38  ;;  %v11727_v10 = vor.u32 %v12830_v40, %v11726_v34  ;;  %v6523_v38 = vmax.f32 %v5842_v17, 0.0  ;;  %v11099_v63 = vor.u32 %v12669_v52, %v11096_v24  ;;  %v12824_v25 = vld [vmem:[#allocation11 + $0x368] sm:$0xf0]  ;;  %v11618_v24 = vld [vmem:[#allocation11 + $0x2b8] sm:$0xf] }
 0x370   : > { %6508 = vmatpush.bf16.msrb.mxu3 %v11123_v13  ;;  %v6066_v44 = vadd.f32 %v13934_v49, %v6052_v35  ;;  %v6064_v12 = vadd.f32 %v13918_v9, %v6050_v41  ;;  %v11702_v13 = vld [vmem:[#allocation11 + $0x360] sm:$0xf]  ;;  %v5940_v49 = vadd.f32 %v13879_v45, %v5926_v23  ;;  %v14211_v53 = vld [vmem:[#allocation38_spill] sm:$0xff]  ;;  %v11690_v43 = vld [vmem:[#allocation11 + $0x348] sm:$0xf] }
 0x371   : > { %7508 = vmatpush.bf16.msra.mxu0 %v11283_v55  ;;  %v13988_v55 = vpack.c.bf16 %v6522_v7, %v6516_v19  ;;  %v11367_v19 = vor.u32 %v12740_v0, %v11366_v46  ;;  %v11522_v7 = vld [vmem:[#allocation11 + $0x1f8] sm:$0xf]  ;;  %v11510_v46 = vld [vmem:[#allocation11 + $0x1e0] sm:$0xf]  ;;  %v12773_v45 = vld [vmem:[#allocation11 + $0x1d0] sm:$0xf0] }
 0x372   : > { %7522 = vmatpush.bf16.msra.mxu1 %v11379_v56  ;;  %6496 = vmatmul.bf16.vlgmr.msrb.gmra.mxu2 %v13731_v5  ;;  %v11523_v36 = vor.u32 %v12779_v57, %v11522_v7  ;;  %v11630_v56 = vld [vmem:[#allocation11 + $0x2d0] sm:$0xf]  ;;  %v12806_v5 = vld [vmem:[#allocation11 + $0x2d8] sm:$0xf0]  ;;  %v14013_v0 = vpop.f32.mrf.mxu0  ;;  %v6080_v40 = vadd.f32 %v13949_v30, %v6066_v44  ;;  %v6078_v15 = vadd.f32 %v13930_v21, %v6064_v12  ;;  %v12821_v30 = vld [vmem:[#allocation11 + $0x350] sm:$0xf0]  ;;  %v14024_v7 = vpop.f32.mrf.mxu2 }
 0x373   : > { %7530 = vmatpush.bf16.msra.mxu2 %v11547_v16  ;;  %v14209_v16 = vld [vmem:[#allocation29_spill] sm:$0xff]  ;;  %v11631_v34 = vor.u32 %v12806_v5, %v11630_v56  ;;  %v11619_v57 = vor.u32 %v12803_v60, %v11618_v24  ;;  %v11606_v2 = vld [vmem:[#allocation11 + $0x2a0] sm:$0xf]  ;;  %v11691_v21 = vor.u32 %v12821_v30, %v11690_v43  ;;  %v11594_v56 = vld [vmem:[#allocation11 + $0x288] sm:$0xf] }
 0x374   : > { %v6517_v4 = vmax.f32 %v14209_v16, 0.0  ;;  %6509 = vmatpush.bf16.msrb.mxu3 %v11099_v63  ;;  %v11486_v63 = vld [vmem:[#allocation11 + $0x1b0] sm:$0xf]  ;;  %v6092_v54 = vadd.f32 %v13940_v1, %v6078_v15  ;;  %v11474_v1 = vld [vmem:[#allocation11 + $0x198] sm:$0xf] }
 0x375   : > { %7509 = vmatpush.bf16.msra.mxu0 %v11271_v61  ;;  %v11643_v61 = vor.u32 %v12809_v51, %v11642_v37  ;;  %v14018_v9 = vpop.f32.mrf.mxu3  ;;  %v11498_v37 = vld [vmem:[#allocation11 + $0x1c8] sm:$0xf]  ;;  %v11703_v51 = vor.u32 %v12824_v25, %v11702_v13  ;;  %v11678_v16 = vld [vmem:[#allocation11 + $0x330] sm:$0xf]  ;;  %v11462_v24 = vld [vmem:[#allocation11 + $0x180] sm:$0xf] }
 0x376   : > { %7523 = vmatpush.bf16.msra.mxu1 %v11367_v19  ;;  %v14009_v17 = vpack.c.bf16 %v6523_v38, %v6517_v4  ;;  %v14022_v19 = vpop.f32.mrf.mxu1  ;;  %v11499_v38 = vor.u32 %v12773_v45, %v11498_v37  ;;  %v12818_v4 = vld [vmem:[#allocation11 + $0x338] sm:$0xf0]  ;;  %v11582_v25 = vld [vmem:[#allocation11 + $0x270] sm:$0xf]  ;;  %v12736_v60 = vld [vmem:[#allocation11 + $0xac] sm:$0xf] }
 0x377   : > { %7531 = vmatpush.bf16.msra.mxu2 %v11535_v3  ;;  %v5954_v3 = vadd.f32 %v14211_v53, %v5940_v49  ;;  %6510 = vmatmul.bf16.vlgmr.msrb.gmra.mxu3 %v13735_v39  ;;  %v12800_v39 = vld [vmem:[#allocation11 + $0x2a8] sm:$0xf0]  ;;  %v12794_v49 = vld [vmem:[#allocation11 + $0x278] sm:$0xf0]  ;;  %v11654_v37 = vld [vmem:[#allocation11 + $0x300] sm:$0xf] }
 0x378   : > { %7510 = vmatmul.bf16.vlgmr.msra.gmra.mxu0 %v13988_v55  ;;  %7544 = vmatpush.bf16.msra.mxu3 %v11643_v61  ;;  %v11607_v41 = vor.u32 %v12800_v39, %v11606_v2  ;;  %v11583_v45 = vor.u32 %v12794_v49, %v11582_v25  ;;  %v11548_v15 = vld [vmem:[#allocation11 + $0x234] sm:$0xf0] }
 0x379   : > { %7558 = vmatpush.bf16.msrb.mxu0 %v11739_v48  ;;  %v12776_v48 = vld [vmem:[#allocation11 + $0x1e8] sm:$0xf0]  ;;  %7524 = vmatmul.bf16.vlgmr.msra.gmra.mxu1 %v14009_v17  ;;  %v5968_v35 = vadd.f32 %v13896_v28, %v5954_v3  ;;  %v12797_v28 = vld [vmem:[#allocation11 + $0x290] sm:$0xf0]  ;;  %v11356_v3 = vld [vmem:[#allocation11 + $0xb4] sm:$0xf0] }
 0x37a   : > { %v11511_v52 = vor.u32 %v12776_v48, %v11510_v46  ;;  %v14033_v6 = vpop.f32.mrf.mxu0  ;;  %v11679_v46 = vor.u32 %v12818_v4, %v11678_v16  ;;  %v11595_v12 = vor.u32 %v12797_v28, %v11594_v56  ;;  %v11570_v30 = vld [vmem:[#allocation11 + $0x258] sm:$0xf]  ;;  %v11359_v2 = vor.u32 %v12736_v60, %v11356_v3  ;;  %v12788_v56 = vld [vmem:[#allocation11 + $0x248] sm:$0xf0] }
 0x37b   : > { %7532 = vmatpush.bf16.msra.mxu2 %v11523_v36  ;;  %v11487_v36 = vor.u32 %v12770_v20, %v11486_v63  ;;  %v5982_v5 = vadd.f32 %v13899_v31, %v5968_v35  ;;  %v12733_v20 = vld [vmem:[#allocation11 + $0x94] sm:$0xf] }
 0x37c   : > { %7545 = vmatpush.bf16.msra.mxu3 %v11631_v34 }
 0x37d   : > { %7559 = vmatpush.bf16.msrb.mxu0 %v11727_v10  ;;  %v6094_v10 = vadd.f32 %v13957_v26, %v6080_v40  ;;  %v6106_v26 = vadd.f32 %v13942_v18, %v6092_v54  ;;  %v14035_v23 = vpop.f32.mrf.mxu3  ;;  %v12815_v18 = vld [vmem:[#allocation11 + $0x320] sm:$0xf0] }
 0x37e   : > { %v14041_v40 = vpop.f32.mrf.mxu1 }
 0x37f   : > { %7533 = vmatpush.bf16.msra.mxu2 %v11511_v52  ;;  %v6108_v61 = vadd.f32 %v13959_v22, %v6094_v10  ;;  %v12767_v22 = vld [vmem:[#allocation11 + $0x1a0] sm:$0xf0]  ;;  %v6120_v48 = vadd.f32 %v13951_v47, %v6106_v26  ;;  %v14043_v52 = vpop.f32.mrf.mxu2  ;;  %v12764_v47 = vld [vmem:[#allocation11 + $0x188] sm:$0xf0]  ;;  %v11536_v26 = vld [vmem:[#allocation11 + $0x21c] sm:$0xf0] }
 0x380   : > { %7546 = vmatpush.bf16.msra.mxu3 %v11619_v57  ;;  %v11475_v31 = vor.u32 %v12767_v22, %v11474_v1  ;;  %v11463_v43 = vor.u32 %v12764_v47, %v11462_v24  ;;  %v12791_v57 = vld [vmem:[#allocation11 + $0x260] sm:$0xf0]  ;;  %v12760_v1 = vld [vmem:[#allocation11 + $0x16c] sm:$0xf]  ;;  %v11452_v22 = vld [vmem:[#allocation11 + $0x174] sm:$0xf0] }
 0x381   : > { %7560 = vmatpush.bf16.msrb.mxu0 %v11715_v33  ;;  %v6122_v44 = vadd.f32 %v13971_v8, %v6108_v61  ;;  %v11666_v33 = vld [vmem:[#allocation11 + $0x318] sm:$0xf]  ;;  %v5996_v8 = vadd.f32 %v13901_v50, %v5982_v5  ;;  %v6134_v50 = vadd.f32 %v13964_v32, %v6120_v48  ;;  %v2620_v32 = vperm.slane %v13982_v59, 4  ;;  %v11558_v59 = vld [vmem:[#allocation11 + $0x240] sm:$0xf] }
 0x382   : > { %v11667_v53 = vor.u32 %v12815_v18, %v11666_v33  ;;  %v11571_v4 = vor.u32 %v12791_v57, %v11570_v30  ;;  %v12730_v48 = vld [vmem:[#allocation11 + $0x7c] sm:$0xf]  ;;  %v11559_v18 = vor.u32 %v12788_v56, %v11558_v59  ;;  %v11455_v49 = vor.u32 %v12760_v1, %v11452_v22  ;;  %v12724_v57 = vld [vmem:[#allocation11 + $0x4c] sm:$0xf]  ;;  %v11404_v1 = vld [vmem:[#allocation11 + $0x114] sm:$0xf0] }
 0x383   : > { %7534 = vmatpush.bf16.msra.mxu2 %v11499_v38  ;;  %v6136_v13 = vadd.f32 %v13990_v11, %v6122_v44  ;;  %v6010_v34 = vadd.f32 %v13907_v58, %v5996_v8  ;;  %v12812_v11 = vld [vmem:[#allocation11 + $0x308] sm:$0xf0]  ;;  %v14047_v38 = vpop.f32.mrf.mxu0  ;;  %v6148_v35 = vadd.f32 %v13974_v27, %v6134_v50  ;;  %v12778_v8 = vld [vmem:[#allocation11 + $0x1fc] sm:$0xf]  ;;  %v11320_v50 = vld [vmem:[#allocation11 + $0x6c] sm:$0xf0] }
 0x384   : > { %7547 = vmatpush.bf16.msra.mxu3 %v11607_v41  ;;  %v11655_v39 = vor.u32 %v12812_v11, %v11654_v37  ;;  %v12781_v41 = vld [vmem:[#allocation11 + $0x214] sm:$0xf] }
 0x385   : > { %7561 = vmatpush.bf16.msrb.mxu0 %v11703_v51  ;;  %v12784_v51 = vld [vmem:[#allocation11 + $0x22c] sm:$0xf]  ;;  %v6150_v58 = vadd.f32 %v14000_v62, %v6136_v13  ;;  %v6524_v10 = vmax.f32 %v6010_v34, 0.0  ;;  %v14212_v62 = vld [vmem:[#allocation39_spill] sm:$0xff]  ;;  %v6233_v16 = vpop.f32.mrf.mxu3  ;;  %v6162_v44 = vadd.f32 %v13976_v42, %v6148_v35  ;;  %v11539_v33 = vor.u32 %v12781_v41, %v11536_v26  ;;  %v12757_v34 = vld [vmem:[#allocation11 + $0x154] sm:$0xf] }
 0x386   : > { %v11551_v54 = vor.u32 %v12784_v51, %v11548_v15  ;;  %v6518_v61 = vmax.f32 %v14212_v62, 0.0  ;;  %v12772_v35 = vld [vmem:[#allocation11 + $0x1cc] sm:$0xf]  ;;  %v12769_v26 = vld [vmem:[#allocation11 + $0x1b4] sm:$0xf] }
 0x387   : > { %7535 = vmatpush.bf16.msra.mxu2 %v11487_v36  ;;  %v6164_v63 = vadd.f32 %v14002_v14, %v6150_v58  ;;  %v14057_v14 = vpop.f32.mrf.mxu1  ;;  %v14059_v28 = vpop.f32.mrf.mxu2  ;;  %v6176_v42 = vadd.f32 %v13992_v29, %v6162_v44  ;;  %v11440_v29 = vld [vmem:[#allocation11 + $0x15c] sm:$0xf0] }
 0x388   : > { %7548 = vmatpush.bf16.msra.mxu3 %v11595_v12  ;;  %v14055_v27 = vpack.c.bf16 %v6524_v10, %v6518_v61  ;;  %v11524_v12 = vld [vmem:[#allocation11 + $0x204] sm:$0xf0]  ;;  %v11443_v58 = vor.u32 %v12757_v34, %v11440_v29  ;;  %v11308_v10 = vld [vmem:[#allocation11 + $0x54] sm:$0xf0]  ;;  %v12721_v61 = vld [vmem:[#allocation11 + $0x34] sm:$0xf] }
 0x389   : > { %7562 = vmatpush.bf16.msrb.mxu0 %v11691_v21  ;;  %v11344_v21 = vld [vmem:[#allocation11 + $0x9c] sm:$0xf0]  ;;  %v6178_v36 = vadd.f32 %v14018_v9, %v6164_v63  ;;  %v11332_v9 = vld [vmem:[#allocation11 + $0x84] sm:$0xf0]  ;;  %v6519_v24 = vmax.f32 %v6176_v42, 0.0  ;;  %v11527_v3 = vor.u32 %v12778_v8, %v11524_v12 }
 0x38a   : > { %v11347_v5 = vor.u32 %v12733_v20, %v11344_v21  ;;  %v11500_v63 = vld [vmem:[#allocation11 + $0x1d4] sm:$0xf0]  ;;  %v11311_v20 = vor.u32 %v12724_v57, %v11308_v10  ;;  %v12751_v21 = vld [vmem:[#allocation11 + $0x124] sm:$0xf]  ;;  %v11488_v44 = vld [vmem:[#allocation11 + $0x1bc] sm:$0xf0] }
 0x38b   : > { %7536 = vmatpush.bf16.msra.mxu2 %v11475_v31  ;;  %v6192_v31 = vadd.f32 %v14033_v6, %v2620_v32  ;;  %v6525_v25 = vmax.f32 %v6178_v36, 0.0  ;;  %v6247_v37 = vpop.f32.mrf.mxu0  ;;  %v11512_v6 = vld [vmem:[#allocation11 + $0x1ec] sm:$0xf0]  ;;  %v12718_v42 = vld [vmem:[#allocation11 + $0x1c] sm:$0xf] }
 0x38c   : > { %7549 = vmatpush.bf16.msra.mxu3 %v11583_v45  ;;  %v12766_v8 = vld [vmem:[#allocation11 + $0x19c] sm:$0xf]  ;;  %v11476_v12 = vld [vmem:[#allocation11 + $0x1a4] sm:$0xf0]  ;;  %v12715_v29 = vld [vmem:[#allocation11 + $0x4] sm:$0xf] }
 0x38d   : > { %7563 = vmatpush.bf16.msrb.mxu0 %v11679_v46  ;;  %v6190_v46 = vadd.f32 %v14013_v0, %v2620_v32  ;;  %v11335_v0 = vor.u32 %v12730_v48, %v11332_v9  ;;  %v6206_v47 = vadd.f32 %v14041_v40, %v6192_v31  ;;  %v6287_v11 = vpop.f32.mrf.mxu3  ;;  %v14068_v45 = vpack.c.bf16 %v6525_v25, %v6519_v24  ;;  %v11284_v48 = vld [vmem:[#allocation11 + $0x24] sm:$0xf0]  ;;  %v12832_v24 = vld [vmem:[#allocation11 + $0x3ac] sm:$0xf] }
 0x38e   : > { %v11491_v9 = vor.u32 %v12769_v26, %v11488_v44  ;;  %v11287_v25 = vor.u32 %v12718_v42, %v11284_v48  ;;  %v11362_v26 = vld [vmem:[#allocation11 + $0xb0] sm:$0xf]  ;;  %v12738_v44 = vld [vmem:[#allocation11 + $0xb8] sm:$0xf0] }
 0x38f   : > { %7537 = vmatpush.bf16.msra.mxu2 %v11463_v43  ;;  %v6204_v13 = vadd.f32 %v14022_v19, %v6190_v46  ;;  %v12775_v19 = vld [vmem:[#allocation11 + $0x1e4] sm:$0xf]  ;;  %v6220_v15 = vadd.f32 %v14043_v52, %v6206_v47  ;;  %v11428_v43 = vld [vmem:[#allocation11 + $0x144] sm:$0xf0]  ;;  %v6275_v32 = vpop.f32.mrf.mxu2  ;;  %v11479_v47 = vor.u32 %v12766_v8, %v11476_v12  ;;  %v11692_v8 = vld [vmem:[#allocation11 + $0x354] sm:$0xf0] }
 0x390   : > { %7550 = vmatpush.bf16.msra.mxu3 %v11571_v4  ;;  %v11503_v4 = vor.u32 %v12772_v35, %v11500_v63  ;;  %v11368_v35 = vld [vmem:[#allocation11 + $0xcc] sm:$0xf0] }
 0x391   : > { %7564 = vmatpush.bf16.msrb.mxu0 %v11667_v53  ;;  %v6218_v60 = vadd.f32 %v14024_v7, %v6204_v13  ;;  %v12727_v53 = vld [vmem:[#allocation11 + $0x64] sm:$0xf]  ;;  %v12754_v7 = vld [vmem:[#allocation11 + $0x13c] sm:$0xf]  ;;  %v6234_v30 = vadd.f32 %v6233_v16, %v6220_v15  ;;  %v11296_v16 = vld [vmem:[#allocation11 + $0x3c] sm:$0xf0] }
 0x392   : > { %7538 = vmatmul.bf16.vlgmr.msra.gmra.mxu2 %v14055_v27  ;;  %v11323_v40 = vor.u32 %v12727_v53, %v11320_v50  ;;  %v11431_v52 = vor.u32 %v12754_v7, %v11428_v43  ;;  %v12763_v53 = vld [vmem:[#allocation11 + $0x184] sm:$0xf]  ;;  %v11464_v50 = vld [vmem:[#allocation11 + $0x18c] sm:$0xf0]  ;;  %v11380_v15 = vld [vmem:[#allocation11 + $0xe4] sm:$0xf0] }
 0x393   : > { %7586 = vmatpush.bf16.msrb.mxu2 %v11359_v2  ;;  %v6232_v51 = vadd.f32 %v14035_v23, %v6218_v60  ;;  %v11515_v2 = vor.u32 %v12775_v19, %v11512_v6  ;;  %v6248_v62 = vadd.f32 %v6247_v37, %v6234_v30  ;;  %v6301_v41 = vpop.f32.mrf.mxu0  ;;  %v11740_v60 = vld [vmem:[#allocation11 + $0x3b4] sm:$0xf0]  ;;  %v11467_v7 = vor.u32 %v12763_v53, %v11464_v50  ;;  %v12829_v43 = vld [vmem:[#allocation11 + $0x394] sm:$0xf]  ;;  %v11728_v30 = vld [vmem:[#allocation11 + $0x39c] sm:$0xf0] }
 0x394   : > { %7551 = vmatpush.bf16.msra.mxu3 %v11559_v18  ;;  %v11822_v12 = vld [vmem:[#allocation11 + $0x450] sm:$0xf]  ;;  %v11326_v50 = vld [vmem:[#allocation11 + $0x68] sm:$0xf] }
 0x395   : > { %7565 = vmatpush.bf16.msrb.mxu0 %v11655_v39  ;;  %v6261_v39 = vpop.f32.mrf.mxu1  ;;  %v6246_v23 = vadd.f32 %v14047_v38, %v6232_v51  ;;  %v6289_v56 = vpop.f32.mrf.mxu3  ;;  %v11299_v38 = vor.u32 %v12721_v61, %v11296_v16  ;;  %v12742_v51 = vld [vmem:[#allocation11 + $0xdc] sm:$0xf] }
 0x396   : > { %v6262_v46 = vadd.f32 %v6261_v39, %v6248_v62  ;;  %v11383_v10 = vor.u32 %v12742_v51, %v11380_v15 }
 0x397   : > { %7587 = vmatpush.bf16.msrb.mxu2 %v11347_v5  ;;  %7552 = vmatmul.bf16.vlgmr.msra.gmra.mxu3 %v14068_v45  ;;  %v6260_v36 = vadd.f32 %v14057_v14, %v6246_v23  ;;  %v12748_v5 = vld [vmem:[#allocation11 + $0x10c] sm:$0xf]  ;;  %v6329_v18 = vpop.f32.mrf.mxu2 }
 0x398   : > { %7600 = vmatpush.bf16.msrb.mxu3 %v11455_v49  ;;  %v6276_v14 = vadd.f32 %v6275_v32, %v6262_v46  ;;  %v11407_v31 = vor.u32 %v12748_v5, %v11404_v1  ;;  %v12745_v49 = vld [vmem:[#allocation11 + $0xf4] sm:$0xf]  ;;  %v12739_v32 = vld [vmem:[#allocation11 + $0xc4] sm:$0xf]  ;;  %v11363_v46 = vor.u32 %v12738_v44, %v11362_v26  ;;  %v12842_v26 = vld [vmem:[#allocation11 + $0x3f8] sm:$0xf0] }
 0x399   : > { %7614 = vmatpush.bf16.msra.mxu0 %v11551_v54  ;;  %v11416_v54 = vld [vmem:[#allocation11 + $0x12c] sm:$0xf0]  ;;  %v6274_v22 = vadd.f32 %v14059_v28, %v6260_v36  ;;  %v11371_v61 = vor.u32 %v12739_v32, %v11368_v35  ;;  %v12823_v36 = vld [vmem:[#allocation11 + $0x364] sm:$0xf]  ;;  %v12845_v32 = vld [vmem:[#allocation11 + $0x410] sm:$0xf0] }
 0x39a   : > { %v11419_v59 = vor.u32 %v12751_v21, %v11416_v54  ;;  %v6290_v34 = vadd.f32 %v6289_v56, %v6276_v14  ;;  %v11272_v28 = vld [vmem:[#allocation11 + $0xc] sm:$0xf0]  ;;  %v11716_v21 = vld [vmem:[#allocation11 + $0x384] sm:$0xf0]  ;;  %v11542_v44 = vld [vmem:[#allocation11 + $0x218] sm:$0xf] }
 0x39b   : > { %7588 = vmatpush.bf16.msrb.mxu2 %v11335_v0  ;;  %v6288_v13 = vadd.f32 %v6287_v11, %v6274_v22  ;;  %v11392_v0 = vld [vmem:[#allocation11 + $0xfc] sm:$0xf0]  ;;  %v6303_v11 = vpop.f32.mrf.mxu0  ;;  %v11275_v6 = vor.u32 %v12715_v29, %v11272_v28  ;;  %v11834_v56 = vld [vmem:[#allocation11 + $0x468] sm:$0xf]  ;;  %v11810_v28 = vld [vmem:[#allocation11 + $0x438] sm:$0xf] }
 0x39c   : > { %7601 = vmatpush.bf16.msrb.mxu3 %v11443_v58  ;;  %v11395_v37 = vor.u32 %v12745_v49, %v11392_v0  ;;  %v6304_v58 = vadd.f32 %v6303_v11, %v6290_v34  ;;  %v11338_v49 = vld [vmem:[#allocation11 + $0x80] sm:$0xf]  ;;  %v12732_v0 = vld [vmem:[#allocation11 + $0x88] sm:$0xf0]  ;;  %v12817_v34 = vld [vmem:[#allocation11 + $0x334] sm:$0xf] }
 0x39d   : > { %7615 = vmatpush.bf16.msra.mxu0 %v11539_v33  ;;  %v6315_v33 = vpop.f32.mrf.mxu1  ;;  %v6343_v19 = vpop.f32.mrf.mxu3  ;;  %v11680_v29 = vld [vmem:[#allocation11 + $0x33c] sm:$0xf0]  ;;  %v11668_v11 = vld [vmem:[#allocation11 + $0x324] sm:$0xf0]  ;;  %v11554_v35 = vld [vmem:[#allocation11 + $0x230] sm:$0xf] }
 0x39e   : > { %v11683_v53 = vor.u32 %v12817_v34, %v11680_v29  ;;  %v11750_v34 = vld [vmem:[#allocation11 + $0x3c0] sm:$0xf]  ;;  %v12836_v29 = vld [vmem:[#allocation11 + $0x3c8] sm:$0xf0] }
 0x39f   : > { %7589 = vmatpush.bf16.msrb.mxu2 %v11323_v40  ;;  %v11743_v40 = vor.u32 %v12832_v24, %v11740_v60  ;;  %v6331_v39 = vpop.f32.mrf.mxu2  ;;  %v12851_v24 = vld [vmem:[#allocation11 + $0x440] sm:$0xf0]  ;;  %v11339_v60 = vor.u32 %v12732_v0, %v11338_v49  ;;  %v12717_v49 = vld [vmem:[#allocation11 + $0x10] sm:$0xf0] }
 0x3a0   : > { %7602 = vmatpush.bf16.msrb.mxu3 %v11431_v52  ;;  %v11731_v52 = vor.u32 %v12829_v43, %v11728_v30  ;;  %v11314_v43 = vld [vmem:[#allocation11 + $0x50] sm:$0xf]  ;;  %v12726_v30 = vld [vmem:[#allocation11 + $0x58] sm:$0xf0] }
 0x3a1   : > { %7616 = vmatpush.bf16.msra.mxu0 %v11527_v3  ;;  %v6302_v3 = vadd.f32 %v6301_v41, %v6288_v13  ;;  %v12854_v13 = vld [vmem:[#allocation11 + $0x458] sm:$0xf0] }
 0x3a2   : > { %v11823_v14 = vor.u32 %v12854_v13, %v11822_v12 }
 0x3a3   : > { %7590 = vmatpush.bf16.msrb.mxu2 %v11311_v20  ;;  %v6316_v57 = vadd.f32 %v6315_v33, %v6302_v3  ;;  %v12826_v20 = vld [vmem:[#allocation11 + $0x37c] sm:$0xf]  ;;  %v12735_v33 = vld [vmem:[#allocation11 + $0xa0] sm:$0xf0]  ;;  %v12729_v3 = vld [vmem:[#allocation11 + $0x70] sm:$0xf0] }
 0x3a4   : > { %7603 = vmatpush.bf16.msrb.mxu3 %v11419_v59  ;;  %v11719_v41 = vor.u32 %v12826_v20, %v11716_v21  ;;  %v11704_v59 = vld [vmem:[#allocation11 + $0x36c] sm:$0xf0]  ;;  %v11327_v15 = vor.u32 %v12729_v3, %v11326_v50  ;;  %v12853_v20 = vld [vmem:[#allocation11 + $0x454] sm:$0xf]  ;;  %v11824_v21 = vld [vmem:[#allocation11 + $0x45c] sm:$0xf0] }
 0x3a5   : > { %7617 = vmatpush.bf16.msra.mxu0 %v11515_v2  ;;  %v6317_v2 = vpop.f32.mrf.mxu1  ;;  %v6330_v63 = vadd.f32 %v6329_v18, %v6316_v57  ;;  %v6345_v16 = vpop.f32.mrf.mxu3  ;;  %v11707_v48 = vor.u32 %v12823_v36, %v11704_v59  ;;  %v12820_v18 = vld [vmem:[#allocation11 + $0x34c] sm:$0xf]  ;;  %v12811_v57 = vld [vmem:[#allocation11 + $0x304] sm:$0xf]  ;;  %v12777_v50 = vld [vmem:[#allocation11 + $0x1f0] sm:$0xf0] }
 0x3a6   : > { %v6318_v23 = vadd.f32 %v6317_v2, %v6304_v58  ;;  %v12856_v58 = vld [vmem:[#allocation11 + $0x46c] sm:$0xf]  ;;  %v11656_v2 = vld [vmem:[#allocation11 + $0x30c] sm:$0xf0]  ;;  %v12783_v36 = vld [vmem:[#allocation11 + $0x220] sm:$0xf0] }
 0x3a7   : > { %7591 = vmatpush.bf16.msrb.mxu2 %v11299_v38  ;;  %v6344_v54 = vadd.f32 %v6343_v19, %v6330_v63  ;;  %v12857_v38 = vld [vmem:[#allocation11 + $0x470] sm:$0xf0]  ;;  %v11798_v19 = vld [vmem:[#allocation11 + $0x420] sm:$0xf]  ;;  %v12786_v63 = vld [vmem:[#allocation11 + $0x238] sm:$0xf0] }
 0x3a8   : > { %7604 = vmatpush.bf16.msrb.mxu3 %v11407_v31  ;;  %v6332_v62 = vadd.f32 %v6331_v39, %v6318_v23  ;;  %v11835_v22 = vor.u32 %v12857_v38, %v11834_v56  ;;  %v11786_v39 = vld [vmem:[#allocation11 + $0x408] sm:$0xf]  ;;  %v12850_v38 = vld [vmem:[#allocation11 + $0x43c] sm:$0xf]  ;;  %v12808_v3 = vld [vmem:[#allocation11 + $0x2ec] sm:$0xf] }
 0x3a9   : > { %7618 = vmatpush.bf16.msra.mxu0 %v11503_v4  ;;  %v6520_v5 = vmax.f32 %v6344_v54, 0.0  ;;  %v11787_v23 = vor.u32 %v12845_v32, %v11786_v39  ;;  %v11659_v54 = vor.u32 %v12811_v57, %v11656_v2  ;;  %v11506_v57 = vld [vmem:[#allocation11 + $0x1d0] sm:$0xf]  ;;  %v12805_v2 = vld [vmem:[#allocation11 + $0x2d4] sm:$0xf] }
 0x3aa   : > { %v6346_v4 = vadd.f32 %v6345_v16, %v6332_v62  ;;  %7572 = vmatpush.bf16.msrb.mxu1 %v11835_v22  ;;  %v11302_v62 = vld [vmem:[#allocation11 + $0x38] sm:$0xf]  ;;  %v11827_v16 = vor.u32 %v12853_v20, %v11824_v21  ;;  %v12720_v22 = vld [vmem:[#allocation11 + $0x28] sm:$0xf0]  ;;  %v11632_v39 = vld [vmem:[#allocation11 + $0x2dc] sm:$0xf0] }
 0x3ab   : > { %7592 = vmatpush.bf16.msrb.mxu2 %v11287_v25  ;;  %v11695_v25 = vor.u32 %v12820_v18, %v11692_v8  ;;  %v11530_v18 = vld [vmem:[#allocation11 + $0x200] sm:$0xf]  ;;  %v12780_v8 = vld [vmem:[#allocation11 + $0x208] sm:$0xf0]  ;;  %v11635_v32 = vor.u32 %v12805_v2, %v11632_v39  ;;  %v13026_v2 = vld [vmem:[#allocation10] sm:$0x3f] }
 0x3ac   : > { %7605 = vmatpush.bf16.msrb.mxu3 %v11395_v37  ;;  %v6526_v1 = vmax.f32 %v6346_v4, 0.0  ;;  %v12814_v37 = vld [vmem:[#allocation11 + $0x31c] sm:$0xf]  ;;  %v11555_v4 = vor.u32 %v12786_v63, %v11554_v35  ;;  %v12841_v35 = vld [vmem:[#allocation11 + $0x3f4] sm:$0xf]  ;;  %v2621_v39 = vperm.slane %v13026_v2, 5 }
 0x3ad   : > { %7619 = vmatpush.bf16.msra.mxu0 %v11491_v9  ;;  %v11350_v9 = vld [vmem:[#allocation11 + $0x98] sm:$0xf]  ;;  %v11776_v63 = vld [vmem:[#allocation11 + $0x3fc] sm:$0xf0] }
 0x3ae   : > { %v14077_v42 = vpack.c.bf16 %v6526_v1, %v6520_v5  ;;  %v11351_v31 = vor.u32 %v12735_v33, %v11350_v9  ;;  %7573 = vmatpush.bf16.msrb.mxu1 %v11823_v14  ;;  %v11812_v5 = vld [vmem:[#allocation11 + $0x444] sm:$0xf0]  ;;  %v11290_v1 = vld [vmem:[#allocation11 + $0x20] sm:$0xf]  ;;  %v11762_v9 = vld [vmem:[#allocation11 + $0x3d8] sm:$0xf]  ;;  %v11779_v21 = vor.u32 %v12841_v35, %v11776_v63 }
 0x3af   : > { %7593 = vmatpush.bf16.msrb.mxu2 %v11275_v6  ;;  %v12848_v6 = vld [vmem:[#allocation11 + $0x428] sm:$0xf0]  ;;  %v12839_v33 = vld [vmem:[#allocation11 + $0x3e0] sm:$0xf0]  ;;  %v11291_v13 = vor.u32 %v12720_v22, %v11290_v1  ;;  %v11278_v14 = vld [vmem:[#allocation11 + $0x8] sm:$0xf] }
 0x3b0   : > { %7606 = vmatpush.bf16.msrb.mxu3 %v11383_v10  ;;  %7566 = vmatmul.bf16.vlgmr.msrb.gmra.mxu0 %v14077_v42  ;;  %v11799_v51 = vor.u32 %v12848_v6, %v11798_v19  ;;  %v11763_v12 = vor.u32 %v12839_v33, %v11762_v9  ;;  %v12844_v6 = vld [vmem:[#allocation11 + $0x40c] sm:$0xf]  ;;  %v11710_v1 = vld [vmem:[#allocation11 + $0x368] sm:$0xf]  ;;  %v12825_v22 = vld [vmem:[#allocation11 + $0x370] sm:$0xf0] }
 0x3b1   : > { %7620 = vmatpush.bf16.msra.mxu0 %v11479_v47  ;;  %v11811_v47 = vor.u32 %v12851_v24, %v11810_v28  ;;  %v11531_v28 = vor.u32 %v12780_v8, %v11530_v18  ;;  %v11746_v24 = vld [vmem:[#allocation11 + $0x3b0] sm:$0xf]  ;;  %v12799_v33 = vld [vmem:[#allocation11 + $0x2a4] sm:$0xf]  ;;  %v11626_v63 = vld [vmem:[#allocation11 + $0x2c0] sm:$0xf] }
 0x3b2   : > { %7594 = vmatmul.bf16.vlgmr.msrb.gmra.mxu2 %v13988_v55  ;;  %v11608_v18 = vld [vmem:[#allocation11 + $0x2ac] sm:$0xf0] }
 0x3b3   : > { %7642 = vmatpush.bf16.msra.mxu2 %v11743_v40  ;;  %7574 = vmatpush.bf16.msrb.mxu1 %v11811_v47  ;;  %v11836_v40 = vld [vmem:[#allocation11 + $0x474] sm:$0xf0]  ;;  %v12834_v47 = vld [vmem:[#allocation11 + $0x3b8] sm:$0xf0]  ;;  %v11611_v8 = vor.u32 %v12799_v33, %v11608_v18  ;;  %v11560_v33 = vld [vmem:[#allocation11 + $0x24c] sm:$0xf0] }
 0x3b4   : > { %7607 = vmatpush.bf16.msrb.mxu3 %v11371_v61  ;;  %v11839_v10 = vor.u32 %v12856_v58, %v11836_v40  ;;  %v12723_v61 = vld [vmem:[#allocation11 + $0x40] sm:$0xf0]  ;;  %v11747_v58 = vor.u32 %v12834_v47, %v11746_v24 }
 0x3b5   : > { %7621 = vmatpush.bf16.msra.mxu0 %v11467_v7  ;;  %v11671_v7 = vor.u32 %v12814_v37, %v11668_v11  ;;  %v11303_v56 = vor.u32 %v12723_v61, %v11302_v62  ;;  %v11644_v37 = vld [vmem:[#allocation11 + $0x2f4] sm:$0xf0]  ;;  %v11279_v11 = vor.u32 %v12717_v49, %v11278_v14  ;;  %v11722_v62 = vld [vmem:[#allocation11 + $0x380] sm:$0xf]  ;;  %v12828_v61 = vld [vmem:[#allocation11 + $0x388] sm:$0xf0]  ;;  %v11711_v14 = vor.u32 %v12825_v22, %v11710_v1 }
 0x3b6   : > { %v11647_v19 = vor.u32 %v12808_v3, %v11644_v37  ;;  %v12810_v49 = vld [vmem:[#allocation11 + $0x2f8] sm:$0xf0]  ;;  %v11596_v3 = vld [vmem:[#allocation11 + $0x294] sm:$0xf0]  ;;  %v11662_v1 = vld [vmem:[#allocation11 + $0x308] sm:$0xf] }
 0x3b7   : > { %7643 = vmatpush.bf16.msra.mxu2 %v11731_v52  ;;  %7608 = vmatmul.bf16.vlgmr.msrb.gmra.mxu3 %v14009_v17  ;;  %v11315_v52 = vor.u32 %v12726_v30, %v11314_v43  ;;  %v11734_v43 = vld [vmem:[#allocation11 + $0x398] sm:$0xf]  ;;  %v12831_v30 = vld [vmem:[#allocation11 + $0x3a0] sm:$0xf0]  ;;  %v12813_v22 = vld [vmem:[#allocation11 + $0x310] sm:$0xf0] }
 0x3b8   : > { %7575 = vmatpush.bf16.msrb.mxu1 %v11799_v51  ;;  %7656 = vmatpush.bf16.msra.mxu3 %v11839_v10  ;;  %v11788_v51 = vld [vmem:[#allocation11 + $0x414] sm:$0xf0]  ;;  %v12774_v10 = vld [vmem:[#allocation11 + $0x1d8] sm:$0xf0]  ;;  %v11735_v20 = vor.u32 %v12831_v30, %v11734_v43  ;;  %v12793_v43 = vld [vmem:[#allocation11 + $0x274] sm:$0xf] }
 0x3b9   : > { %7670 = vmatpush.bf16.msrb.mxu0 %v11363_v46  ;;  %v11815_v46 = vor.u32 %v12850_v38, %v11812_v5  ;;  %v11791_v40 = vor.u32 %v12844_v6, %v11788_v51  ;;  %v11638_v6 = vld [vmem:[#allocation11 + $0x2d8] sm:$0xf]  ;;  %v12807_v51 = vld [vmem:[#allocation11 + $0x2e0] sm:$0xf0]  ;;  %v11584_v30 = vld [vmem:[#allocation11 + $0x27c] sm:$0xf0] }
 0x3ba   : > { %v14092_v9 = vpop.f32.mrf.mxu3 }
 0x3bb   : > { %7644 = vmatpush.bf16.msra.mxu2 %v11719_v41  ;;  %v11774_v41 = vld [vmem:[#allocation11 + $0x3f0] sm:$0xf] }
 0x3bc   : > { %7576 = vmatpush.bf16.msrb.mxu1 %v11787_v23  ;;  %7657 = vmatpush.bf16.msra.mxu3 %v11827_v16  ;;  %v11775_v59 = vor.u32 %v12842_v26, %v11774_v41  ;;  %v14085_v23 = vpop.f32.mrf.mxu1  ;;  %v11494_v16 = vld [vmem:[#allocation11 + $0x1b8] sm:$0xf]  ;;  %v12802_v41 = vld [vmem:[#allocation11 + $0x2bc] sm:$0xf]  ;;  %v11620_v26 = vld [vmem:[#allocation11 + $0x2c4] sm:$0xf0] }
 0x3bd   : > { %7671 = vmatpush.bf16.msrb.mxu0 %v11351_v31  ;;  %v12847_v31 = vld [vmem:[#allocation11 + $0x424] sm:$0xf] }
 0x3bf   : > { %7645 = vmatpush.bf16.msra.mxu2 %v11707_v48  ;;  %v11543_v48 = vor.u32 %v12783_v36, %v11542_v44  ;;  %v11623_v44 = vor.u32 %v12802_v41, %v11620_v26  ;;  %v12838_v36 = vld [vmem:[#allocation11 + $0x3dc] sm:$0xf]  ;;  %v11572_v41 = vld [vmem:[#allocation11 + $0x264] sm:$0xf0] }
 0x3c0   : > { %7622 = vmatmul.bf16.vlgmr.msra.gmra.mxu0 %v14055_v27  ;;  %7577 = vmatpush.bf16.msrb.mxu1 %v11775_v59  ;;  %v11764_v59 = vld [vmem:[#allocation11 + $0x3e4] sm:$0xf0] }
 0x3c1   : > { %7672 = vmatpush.bf16.msrb.mxu0 %v11339_v60  ;;  %7658 = vmatpush.bf16.msra.mxu3 %v11815_v46  ;;  %v11518_v60 = vld [vmem:[#allocation11 + $0x1e8] sm:$0xf]  ;;  %v11767_v38 = vor.u32 %v12838_v36, %v11764_v59  ;;  %v11482_v46 = vld [vmem:[#allocation11 + $0x1a0] sm:$0xf] }
 0x3c2   : > { %v11614_v59 = vld [vmem:[#allocation11 + $0x2a8] sm:$0xf] }
 0x3c3   : > { %7646 = vmatpush.bf16.msra.mxu2 %v11695_v25  ;;  %v11800_v25 = vld [vmem:[#allocation11 + $0x42c] sm:$0xf0] }
 0x3c4   : > { %7578 = vmatpush.bf16.msrb.mxu1 %v11763_v12  ;;  %v11803_v0 = vor.u32 %v12847_v31, %v11800_v25  ;;  %v12835_v12 = vld [vmem:[#allocation11 + $0x3c4] sm:$0xf]  ;;  %v11650_v25 = vld [vmem:[#allocation11 + $0x2f0] sm:$0xf]  ;;  %v6373_v47 = vpop.f32.mrf.mxu1 }
 0x3c5   : > { %7673 = vmatpush.bf16.msrb.mxu0 %v11327_v15  ;;  %v14083_v15 = vpop.f32.mrf.mxu0  ;;  %v11651_v24 = vor.u32 %v12810_v49, %v11650_v25 }
 0x3c6   : > { %7659 = vmatpush.bf16.msra.mxu3 %v11803_v0  ;;  %v6358_v26 = vadd.f32 %v14083_v15, %v2621_v39 }
 0x3c7   : > { %7647 = vmatpush.bf16.msra.mxu2 %v11683_v53  ;;  %v11751_v53 = vor.u32 %v12836_v29, %v11750_v34  ;;  %v11698_v34 = vld [vmem:[#allocation11 + $0x350] sm:$0xf]  ;;  %v12822_v29 = vld [vmem:[#allocation11 + $0x358] sm:$0xf0] }
 0x3c9   : > { %7674 = vmatpush.bf16.msrb.mxu0 %v11315_v52  ;;  %7579 = vmatpush.bf16.msrb.mxu1 %v11751_v53  ;;  %v14087_v52 = vpop.f32.mrf.mxu2  ;;  %v12765_v53 = vld [vmem:[#allocation11 + $0x190] sm:$0xf0] }
 0x3ca   : > { %7660 = vmatpush.bf16.msra.mxu3 %v11791_v40  ;;  %v12819_v40 = vld [vmem:[#allocation11 + $0x340] sm:$0xf0] }
 0x3cb   : > { %7648 = vmatpush.bf16.msra.mxu2 %v11671_v7  ;;  %v11519_v7 = vor.u32 %v12777_v50, %v11518_v60  ;;  %v12796_v50 = vld [vmem:[#allocation11 + $0x28c] sm:$0xf] }
 0x3cc   : > { %v11599_v37 = vor.u32 %v12796_v50, %v11596_v3  ;;  %v11578_v50 = vld [vmem:[#allocation11 + $0x260] sm:$0xf] }
 0x3cd   : > { %7675 = vmatpush.bf16.msrb.mxu0 %v11303_v56  ;;  %7628 = vmatpush.bf16.msra.mxu1 %v11647_v19  ;;  %v11723_v56 = vor.u32 %v12828_v61, %v11722_v62  ;;  %v11686_v19 = vld [vmem:[#allocation11 + $0x338] sm:$0xf]  ;;  %v6427_v61 = vpop.f32.mrf.mxu1 }
 0x3ce   : > { %7661 = vmatpush.bf16.msra.mxu3 %v11779_v21  ;;  %v11687_v35 = vor.u32 %v12819_v40, %v11686_v19  ;;  %v11674_v21 = vld [vmem:[#allocation11 + $0x320] sm:$0xf]  ;;  %v12789_v40 = vld [vmem:[#allocation11 + $0x250] sm:$0xf0] }
 0x3cf   : > { %7649 = vmatpush.bf16.msra.mxu2 %v11659_v54  ;;  %v11507_v54 = vor.u32 %v12774_v10, %v11506_v57  ;;  %v11587_v10 = vor.u32 %v12793_v43, %v11584_v30 }
 0x3d1   : > { %7676 = vmatpush.bf16.msrb.mxu0 %v11291_v13  ;;  %7629 = vmatpush.bf16.msra.mxu1 %v11635_v32  ;;  %v11752_v13 = vld [vmem:[#allocation11 + $0x3cc] sm:$0xf0]  ;;  %v14094_v60 = vpop.f32.mrf.mxu2  ;;  %v6401_v32 = vpop.f32.mrf.mxu3 }
 0x3d2   : > { %7650 = vmatmul.bf16.vlgmr.msra.gmra.mxu2 %v14077_v42  ;;  %7662 = vmatpush.bf16.msra.mxu3 %v11767_v38  ;;  %v11755_v31 = vor.u32 %v12835_v12, %v11752_v13  ;;  %v6372_v38 = vadd.f32 %v14085_v23, %v6358_v26  ;;  %v11663_v13 = vor.u32 %v12813_v22, %v11662_v1  ;;  %v11434_v1 = vld [vmem:[#allocation11 + $0x140] sm:$0xf]  ;;  %v12756_v22 = vld [vmem:[#allocation11 + $0x148] sm:$0xf0] }
 0x3d3   : > { %7698 = vmatpush.bf16.msrb.mxu2 %v11555_v4  ;;  %v12771_v4 = vld [vmem:[#allocation11 + $0x1c0] sm:$0xf0] }
 0x3d4   : > { %v11495_v5 = vor.u32 %v12771_v4, %v11494_v16  ;;  %v12790_v4 = vld [vmem:[#allocation11 + $0x25c] sm:$0xf]  ;;  %v6386_v15 = vadd.f32 %v14087_v52, %v6372_v38  ;;  %v11590_v52 = vld [vmem:[#allocation11 + $0x278] sm:$0xf]  ;;  %v12759_v38 = vld [vmem:[#allocation11 + $0x160] sm:$0xf0] }
 0x3d5   : > { %7677 = vmatpush.bf16.msrb.mxu0 %v11279_v11  ;;  %7630 = vmatpush.bf16.msra.mxu1 %v11623_v44  ;;  %v11699_v11 = vor.u32 %v12822_v29, %v11698_v34  ;;  %v11575_v44 = vor.u32 %v12790_v4, %v11572_v41  ;;  %v12795_v29 = vld [vmem:[#allocation11 + $0x280] sm:$0xf0]  ;;  %v11458_v4 = vld [vmem:[#allocation11 + $0x170] sm:$0xf]  ;;  %v12762_v41 = vld [vmem:[#allocation11 + $0x178] sm:$0xf0] }
 0x3d6   : > { %7663 = vmatpush.bf16.msra.mxu3 %v11755_v31  ;;  %v12798_v31 = vld [vmem:[#allocation11 + $0x298] sm:$0xf0]  ;;  %v6400_v23 = vadd.f32 %v14092_v9, %v6386_v15  ;;  %v12792_v9 = vld [vmem:[#allocation11 + $0x268] sm:$0xf0]  ;;  %v11410_v15 = vld [vmem:[#allocation11 + $0x110] sm:$0xf] }
 0x3d7   : > { %7699 = vmatpush.bf16.msrb.mxu2 %v11543_v48  ;;  %v14090_v48 = vpop.f32.mrf.mxu0 }
 0x3d8   : > { %7678 = vmatmul.bf16.vlgmr.msrb.gmra.mxu0 %v13988_v55  ;;  %v12768_v55 = vld [vmem:[#allocation11 + $0x1a8] sm:$0xf0] }
 0x3d9   : > { %7726 = vmatpush.bf16.msra.mxu0 %v11747_v58  ;;  %v11483_v0 = vor.u32 %v12768_v55, %v11482_v46  ;;  %7631 = vmatpush.bf16.msra.mxu1 %v11611_v8  ;;  %v6441_v16 = vpop.f32.mrf.mxu2  ;;  %v12787_v55 = vld [vmem:[#allocation11 + $0x244] sm:$0xf] }
 0x3da   : > { %7712 = vmatpush.bf16.msrb.mxu3 %v11651_v24  ;;  %v11563_v8 = vor.u32 %v12787_v55, %v11560_v33  ;;  %v11591_v24 = vor.u32 %v12795_v29, %v11590_v52  ;;  %v11422_v55 = vld [vmem:[#allocation11 + $0x128] sm:$0xf]  ;;  %v12753_v33 = vld [vmem:[#allocation11 + $0x130] sm:$0xf0] }
 0x3db   : > { %7700 = vmatpush.bf16.msrb.mxu2 %v11531_v28  ;;  %v11470_v28 = vld [vmem:[#allocation11 + $0x188] sm:$0xf] }
 0x3dc   : > { %v11471_v58 = vor.u32 %v12765_v53, %v11470_v28 }
 0x3dd   : > { %7727 = vmatpush.bf16.msra.mxu0 %v11735_v20  ;;  %7632 = vmatpush.bf16.msra.mxu1 %v11599_v37  ;;  %v12804_v20 = vld [vmem:[#allocation11 + $0x2c8] sm:$0xf0] }
 0x3de   : > { %v11627_v62 = vor.u32 %v12804_v20, %v11626_v63 }
 0x3df   : > { %7701 = vmatpush.bf16.msrb.mxu2 %v11519_v7  ;;  %v11639_v7 = vor.u32 %v12807_v51, %v11638_v6  ;;  %v6413_v57 = vpop.f32.mrf.mxu0 }
 0x3e0   : > { %v6414_v28 = vadd.f32 %v6413_v57, %v6400_v23  ;;  %v12744_v23 = vld [vmem:[#allocation11 + $0xe8] sm:$0xf0] }
 0x3e1   : > { %7728 = vmatpush.bf16.msra.mxu0 %v11723_v56  ;;  %7713 = vmatpush.bf16.msrb.mxu3 %v11639_v7  ;;  %v12801_v56 = vld [vmem:[#allocation11 + $0x2b0] sm:$0xf0]  ;;  %v6443_v34 = vpop.f32.mrf.mxu2 }
 0x3e2   : > { %7633 = vmatpush.bf16.msra.mxu1 %v11587_v10  ;;  %v11615_v46 = vor.u32 %v12801_v56, %v11614_v59  ;;  %v6428_v3 = vadd.f32 %v6427_v61, %v6414_v28  ;;  %v11446_v56 = vld [vmem:[#allocation11 + $0x158] sm:$0xf] }
 0x3e3   : > { %7702 = vmatpush.bf16.msrb.mxu2 %v11507_v54  ;;  %v12816_v54 = vld [vmem:[#allocation11 + $0x328] sm:$0xf0]  ;;  %v11830_v28 = vld [vmem:[#allocation11 + $0x458] sm:$0xf] }
 0x3e4   : > { %v11675_v36 = vor.u32 %v12816_v54, %v11674_v21 }
 0x3e5   : > { %7729 = vmatpush.bf16.msra.mxu0 %v11711_v14  ;;  %7714 = vmatpush.bf16.msrb.mxu3 %v11627_v62  ;;  %v11602_v14 = vld [vmem:[#allocation11 + $0x290] sm:$0xf] }
 0x3e6   : > { %7634 = vmatpush.bf16.msra.mxu1 %v11575_v44  ;;  %v11603_v25 = vor.u32 %v12798_v31, %v11602_v14  ;;  %v11386_v31 = vld [vmem:[#allocation11 + $0xe0] sm:$0xf] }
 0x3e7   : > { %7703 = vmatpush.bf16.msrb.mxu2 %v11495_v5  ;;  %v6360_v5 = vadd.f32 %v14090_v48, %v2621_v39  ;;  %v6415_v12 = vpop.f32.mrf.mxu0 }
 0x3e9   : > { %7730 = vmatpush.bf16.msra.mxu0 %v11699_v11  ;;  %v6374_v18 = vadd.f32 %v6373_v47, %v6360_v5  ;;  %7715 = vmatpush.bf16.msrb.mxu3 %v11615_v46  ;;  %v6442_v11 = vadd.f32 %v6441_v16, %v6428_v3  ;;  %v11447_v5 = vor.u32 %v12759_v38, %v11446_v56  ;;  %v12849_v3 = vld [vmem:[#allocation11 + $0x430] sm:$0xf0] }
 0x3ea   : > { %7635 = vmatpush.bf16.msra.mxu1 %v11563_v8  ;;  %v11435_v46 = vor.u32 %v12756_v22, %v11434_v1  ;;  %v12750_v8 = vld [vmem:[#allocation11 + $0x118] sm:$0xf0]  ;;  %v12869_v1 = vld [vmem:[#allocation14 + $0x50] sm:$0xff] }
 0x3eb   : > { %7704 = vmatpush.bf16.msrb.mxu2 %v11483_v0  ;;  %v6388_v48 = vadd.f32 %v14094_v60, %v6374_v18  ;;  %v6429_v0 = vpop.f32.mrf.mxu1  ;;  %v11579_v60 = vor.u32 %v12792_v9, %v11578_v50  ;;  %v11423_v18 = vor.u32 %v12753_v33, %v11422_v55  ;;  %v11806_v9 = vld [vmem:[#allocation11 + $0x428] sm:$0xf]  ;;  %v12868_v55 = vld [vmem:[#allocation14 + $0x48] sm:$0xff] }
 0x3ed   : > { %7731 = vmatpush.bf16.msra.mxu0 %v11687_v35  ;;  %v6402_v49 = vadd.f32 %v6401_v32, %v6388_v48  ;;  %7716 = vmatpush.bf16.msrb.mxu3 %v11603_v25  ;;  %v11387_v48 = vor.u32 %v12744_v23, %v11386_v31  ;;  %v11374_v25 = vld [vmem:[#allocation11 + $0xc8] sm:$0xf] }
 0x3ef   : > { %7705 = vmatpush.bf16.msrb.mxu2 %v11471_v58  ;;  %v6416_v47 = vadd.f32 %v6415_v12, %v6402_v49  ;;  %v6469_v53 = vpop.f32.mrf.mxu0  ;;  %v11566_v58 = vld [vmem:[#allocation11 + $0x248] sm:$0xf]  ;;  %v11411_v12 = vor.u32 %v12750_v8, %v11410_v15  ;;  %v12741_v49 = vld [vmem:[#allocation11 + $0xd0] sm:$0xf0] }
 0x3f0   : > { %v11567_v30 = vor.u32 %v12789_v40, %v11566_v58  ;;  %v11375_v52 = vor.u32 %v12741_v49, %v11374_v25  ;;  %v11770_v40 = vld [vmem:[#allocation11 + $0x3e0] sm:$0xf] }
 0x3f1   : > { %7732 = vmatpush.bf16.msra.mxu0 %v11675_v36  ;;  %7717 = vmatpush.bf16.msrb.mxu3 %v11591_v24  ;;  %v6430_v19 = vadd.f32 %v6429_v0, %v6416_v47  ;;  %v11459_v36 = vor.u32 %v12762_v41, %v11458_v4  ;;  %v11842_v0 = vld [vmem:[#allocation11 + $0x470] sm:$0xf]  ;;  %v12855_v24 = vld [vmem:[#allocation11 + $0x460] sm:$0xf0] }
 0x3f2   : > { %7706 = vmatmul.bf16.vlgmr.msrb.gmra.mxu2 %v14055_v27  ;;  %v6455_v27 = vpop.f32.mrf.mxu3  ;;  %v11831_v47 = vor.u32 %v12855_v24, %v11830_v28 }
 0x3f3   : > { %v6483_v6 = vpop.f32.mrf.mxu1  ;;  %v6456_v7 = vadd.f32 %v6455_v27, %v6442_v11  ;;  %v6444_v43 = vadd.f32 %v6443_v34, %v6430_v19  ;;  %v11398_v27 = vld [vmem:[#allocation11 + $0xf8] sm:$0xf]  ;;  %v12858_v34 = vld [vmem:[#allocation11 + $0x478] sm:$0xf0] }
 0x3f4   : > { %v11843_v29 = vor.u32 %v12858_v34, %v11842_v0  ;;  %v12846_v11 = vld [vmem:[#allocation11 + $0x418] sm:$0xf0] }
 0x3f5   : > { %7733 = vmatpush.bf16.msra.mxu0 %v11663_v13  ;;  %7718 = vmatpush.bf16.msrb.mxu3 %v11579_v60  ;;  %v6497_v51 = vpop.f32.mrf.mxu2  ;;  %v12747_v13 = vld [vmem:[#allocation11 + $0x100] sm:$0xf0]  ;;  %v11807_v60 = vor.u32 %v12849_v3, %v11806_v9  ;;  %v12882_v3 = vld [vmem:[#allocation14 + $0xb8] sm:$0xff] }
 0x3f6   : > { %v11399_v14 = vor.u32 %v12747_v13, %v11398_v27  ;;  %v12867_v27 = vld [vmem:[#allocation14 + $0x40] sm:$0xff] }
 0x3f7   : > { %v6471_v10 = vpop.f32.mrf.mxu0 }
 0x3f8   : > { %7734 = vmatmul.bf16.vlgmr.msra.gmra.mxu0 %v14077_v42  ;;  %v6470_v42 = vadd.f32 %v6469_v53, %v6456_v7  ;;  %v11818_v53 = vld [vmem:[#allocation11 + $0x440] sm:$0xf]  ;;  %v12840_v7 = vld [vmem:[#allocation11 + $0x3e8] sm:$0xf0] }
 0x3f9   : > { %7719 = vmatpush.bf16.msrb.mxu3 %v11567_v30  ;;  %v11758_v30 = vld [vmem:[#allocation11 + $0x3c8] sm:$0xf]  ;;  %7987 = vmatpush.bf16.msrb.mxu0 %v12882_v3 }
 0x3fa   : > { %v6457_v37 = vpop.f32.mrf.mxu3  ;;  %v6484_v32 = vadd.f32 %v6483_v6, %v6470_v42  ;;  %v11782_v6 = vld [vmem:[#allocation11 + $0x3f8] sm:$0xf]  ;;  %v12866_v42 = vld [vmem:[#allocation14 + $0x38] sm:$0xff] }
 0x3fb   : > { %v6458_v57 = vadd.f32 %v6457_v37, %v6444_v43  ;;  %v6485_v35 = vpop.f32.mrf.mxu1  ;;  %v11794_v37 = vld [vmem:[#allocation11 + $0x410] sm:$0xf]  ;;  %v11771_v43 = vor.u32 %v12840_v7, %v11770_v40  ;;  %7959 = vmatpush.bf16.msra.mxu2 %v12866_v42  ;;  %v12879_v42 = vld [vmem:[#allocation14 + $0xa0] sm:$0xff] }
 0x3fc   : > { %v6498_v20 = vadd.f32 %v6497_v51, %v6484_v32  ;;  %v11795_v19 = vor.u32 %v12846_v11, %v11794_v37  ;;  %v12843_v51 = vld [vmem:[#allocation11 + $0x400] sm:$0xf0]  ;;  %v12862_v32 = vld [vmem:[#allocation14 + $0x18] sm:$0xff]  ;;  %v12881_v11 = vld [vmem:[#allocation14 + $0xb0] sm:$0xff] }
 0x3fd   : > { %v6472_v39 = vadd.f32 %v6471_v10, %v6458_v57  ;;  %v6499_v63 = vpop.f32.mrf.mxu2  ;;  %v11783_v58 = vor.u32 %v12843_v51, %v11782_v6  ;;  %v12865_v10 = vld [vmem:[#allocation14 + $0x30] sm:$0xff]  ;;  %7988 = vmatpush.bf16.msrb.mxu0 %v12881_v11  ;;  %v12880_v40 = vld [vmem:[#allocation14 + $0xa8] sm:$0xff] }
 0x3ff   : > { %v6486_v21 = vadd.f32 %v6485_v35, %v6472_v39  ;;  %7960 = vmatpush.bf16.msra.mxu2 %v12865_v10  ;;  %v12863_v39 = vld [vmem:[#allocation14 + $0x20] sm:$0xff]  ;;  %v12861_v35 = vld [vmem:[#allocation14 + $0x10] sm:$0xff] }
 0x401   : > { %v6500_v62 = vadd.f32 %v6499_v63, %v6486_v21  ;;  %v12874_v63 = vld [vmem:[#allocation14 + $0x78] sm:$0xff]  ;;  %v12860_v21 = vld [vmem:[#allocation14 + $0x8] sm:$0xff]  ;;  %7989 = vmatpush.bf16.msrb.mxu0 %v12880_v40 }
 0x402   : > { %v6511_v2 = vpop.f32.mrf.mxu3 }
 0x403   : > { %v6512_v54 = vadd.f32 %v6511_v2, %v6498_v20  ;;  %v12864_v2 = vld [vmem:[#allocation14 + $0x28] sm:$0xff]  ;;  %v7511_v20 = vpop.f32.mrf.mxu0  ;;  %v7525_v41 = vpop.f32.mrf.mxu1 }
 0x404   : > { %7961 = vmatpush.bf16.msra.mxu2 %v12864_v2 }
 0x405   : > { %v6521_v26 = vmax.f32 %v6512_v54, 0.0  ;;  %v12873_v54 = vld [vmem:[#allocation14 + $0x70] sm:$0xff]  ;;  %7990 = vmatpush.bf16.msrb.mxu0 %v12879_v42 }
 0x408   : > { %7962 = vmatpush.bf16.msra.mxu2 %v12863_v39 }
 0x40a   : > { %v6513_v61 = vpop.f32.mrf.mxu3 }
 0x40b   : > { %v6514_v16 = vadd.f32 %v6513_v61, %v6500_v62  ;;  %v12859_v62 = vld [vmem:[#allocation14] sm:$0xff]  ;;  %v12872_v61 = vld [vmem:[#allocation14 + $0x68] sm:$0xff]  ;;  %v7527_v22 = vpop.f32.mrf.mxu1 }
 0x40c   : > { %7963 = vmatpush.bf16.msra.mxu2 %v12862_v32 }
 0x40d   : > { %v6527_v44 = vmax.f32 %v6514_v16, 0.0 }
 0x40f   : > { %v14104_v59 = vpack.c.bf16 %v6527_v44, %v6521_v26  ;;  %v7513_v26 = vpop.f32.mrf.mxu0  ;;  %v12871_v44 = vld [vmem:[#allocation14 + $0x60] sm:$0xff] }
 0x410   : > { %7964 = vmatpush.bf16.msra.mxu2 %v12861_v35 }
 0x411   : > { %7580 = vmatmul.bf16.vlgmr.msrb.gmra.mxu1 %v14104_v59  ;;  %7664 = vmatmul.bf16.vlgmr.msra.gmra.mxu3 %v14104_v59 }
 0x412   : > { %7684 = vmatpush.bf16.msrb.mxu1 %v11459_v36  ;;  %7973 = vmatpush.bf16.msra.mxu3 %v12874_v63  ;;  %v12870_v36 = vld [vmem:[#allocation14 + $0x58] sm:$0xff] }
 0x414   : > { %7965 = vmatpush.bf16.msra.mxu2 %v12860_v21  ;;  %v12878_v21 = vld [vmem:[#allocation14 + $0x98] sm:$0xff] }
 0x415   : > { %v7539_v16 = vpop.f32.mrf.mxu2  ;;  %7991 = vmatpush.bf16.msrb.mxu0 %v12878_v21 }
 0x416   : > { %7685 = vmatpush.bf16.msrb.mxu1 %v11447_v5  ;;  %7974 = vmatpush.bf16.msra.mxu3 %v12873_v54 }
 0x418   : > { %7966 = vmatpush.bf16.msra.mxu2 %v12859_v62 }
 0x41a   : > { %7686 = vmatpush.bf16.msrb.mxu1 %v11435_v46  ;;  %v7553_v4 = vpop.f32.mrf.mxu3  ;;  %7975 = vmatpush.bf16.msra.mxu3 %v12872_v61 }
 0x41d   : > { %v7541_v56 = vpop.f32.mrf.mxu2 }
 0x41e   : > { %7687 = vmatpush.bf16.msrb.mxu1 %v11423_v18  ;;  %7976 = vmatpush.bf16.msra.mxu3 %v12871_v44 }
 0x421   : > { %7636 = vmatmul.bf16.vlgmr.msra.gmra.mxu1 %v14068_v45  ;;  %7720 = vmatmul.bf16.vlgmr.msrb.gmra.mxu3 %v14068_v45  ;;  %v12852_v45 = vld [vmem:[#allocation11 + $0x448] sm:$0xf0] }
 0x422   : > { %7688 = vmatpush.bf16.msrb.mxu1 %v11411_v12  ;;  %v11819_v50 = vor.u32 %v12852_v45, %v11818_v53  ;;  %7977 = vmatpush.bf16.msra.mxu3 %v12870_v36  ;;  %v7555_v5 = vpop.f32.mrf.mxu3  ;;  %v12875_v36 = vld [vmem:[#allocation14 + $0x80] sm:$0xff] }
 0x426   : > { %7689 = vmatpush.bf16.msrb.mxu1 %v11399_v14  ;;  %7978 = vmatpush.bf16.msra.mxu3 %v12869_v1 }
 0x42a   : > { %7690 = vmatpush.bf16.msrb.mxu1 %v11387_v48  ;;  %7979 = vmatpush.bf16.msra.mxu3 %v12868_v55 }
 0x42d   : > { %v7567_v38 = vpop.f32.mrf.mxu0 }
 0x42e   : > { %7691 = vmatpush.bf16.msrb.mxu1 %v11375_v52  ;;  %7980 = vmatpush.bf16.msra.mxu3 %v12867_v27 }
 0x431   : > { %7692 = vmatmul.bf16.vlgmr.msrb.gmra.mxu1 %v14009_v17  ;;  %v12837_v17 = vld [vmem:[#allocation11 + $0x3d0] sm:$0xf0] }
 0x432   : > { %7740 = vmatpush.bf16.msra.mxu1 %v11843_v29  ;;  %v11759_v57 = vor.u32 %v12837_v17, %v11758_v30 }
 0x435   : > { %v7595_v18 = vpop.f32.mrf.mxu2  ;;  %v7569_v13 = vpop.f32.mrf.mxu0 }
 0x436   : > { %7741 = vmatpush.bf16.msra.mxu1 %v11831_v47 }
 0x43a   : > { %7742 = vmatpush.bf16.msra.mxu1 %v11819_v50  ;;  %v7609_v12 = vpop.f32.mrf.mxu3 }
 0x43d   : > { %v7597_v29 = vpop.f32.mrf.mxu2  ;;  %v7623_v45 = vpop.f32.mrf.mxu0 }
 0x43e   : > { %7743 = vmatpush.bf16.msra.mxu1 %v11807_v60 }
 0x442   : > { %7744 = vmatpush.bf16.msra.mxu1 %v11795_v19  ;;  %v7611_v53 = vpop.f32.mrf.mxu3 }
 0x445   : > { %v7625_v17 = vpop.f32.mrf.mxu0 }
 0x446   : > { %7745 = vmatpush.bf16.msra.mxu1 %v11783_v58 }
 0x44a   : > { %7746 = vmatpush.bf16.msra.mxu1 %v11771_v43 }
 0x44e   : > { %7747 = vmatpush.bf16.msra.mxu1 %v11759_v57 }
 0x451   : > { %7748 = vmatmul.bf16.vlgmr.msra.gmra.mxu1 %v14104_v59  ;;  %v14112_v59 = vld [vmem:[#allocation13] sm:$0x7] }
 0x452   : > { %v6728_v46 = vperm.slane %v14112_v59, 0  ;;  %v6729_v24 = vperm.slane %v14112_v59, 1 }
 0x454   : > { %v7512_v33 = vadd.f32 %v7511_v20, %v6728_v46  ;;  %v7514_v8 = vadd.f32 %v7513_v26, %v6728_v46  ;;  %v7596_v60 = vadd.f32 %v7595_v18, %v6729_v24  ;;  %v7598_v43 = vadd.f32 %v7597_v29, %v6729_v24  ;;  %v12876_v26 = vld [vmem:[#allocation14 + $0x88] sm:$0xff] }
 0x455   : > { %v7651_v6 = vpop.f32.mrf.mxu2  ;;  %v7679_v44 = vpop.f32.mrf.mxu0 }
 0x456   : > { %v7526_v15 = vadd.f32 %v7525_v41, %v7512_v33  ;;  %v7528_v31 = vadd.f32 %v7527_v22, %v7514_v8  ;;  %v7610_v19 = vadd.f32 %v7609_v12, %v7596_v60  ;;  %v7612_v57 = vadd.f32 %v7611_v53, %v7598_v43  ;;  %v13023_v53 = vld [vmem:[#allocation16] ss:$0 sm:$0xff] }
 0x458   : > { %v7540_v23 = vadd.f32 %v7539_v16, %v7526_v15  ;;  %v7542_v25 = vadd.f32 %v7541_v56, %v7528_v31  ;;  %v7624_v58 = vadd.f32 %v7623_v45, %v7610_v19  ;;  %v7626_v10 = vadd.f32 %v7625_v17, %v7612_v57 }
 0x45a   : > { %v7554_v48 = vadd.f32 %v7553_v4, %v7540_v23  ;;  %v7556_v49 = vadd.f32 %v7555_v5, %v7542_v25  ;;  %v12877_v4 = vld [vmem:[#allocation14 + $0x90] sm:$0xff] }
 0x45b   : > { %7992 = vmatpush.bf16.msrb.mxu0 %v12877_v4 }
 0x45c   : > { %v7568_v0 = vadd.f32 %v7567_v38, %v7554_v48  ;;  %v7570_v34 = vadd.f32 %v7569_v13, %v7556_v49  ;;  %v6730_v38 = vperm.slane %v14112_v59, 2 }
 0x45d   : > { %v7653_v35 = vpop.f32.mrf.mxu2  ;;  %v7681_v5 = vpop.f32.mrf.mxu0 }
 0x45e   : > { %v7680_v22 = vadd.f32 %v7679_v44, %v6730_v38  ;;  %v7682_v33 = vadd.f32 %v7681_v5, %v6730_v38 }
 0x45f   : > { %7993 = vmatpush.bf16.msrb.mxu0 %v12876_v26 }
 0x463   : > { %7994 = vmatpush.bf16.msrb.mxu0 %v12875_v36 }
 0x475   : > { %v7707_v1 = vpop.f32.mrf.mxu2  ;;  %v7735_v8 = vpop.f32.mrf.mxu0 }
 0x47d   : > { %v7709_v27 = vpop.f32.mrf.mxu2  ;;  %v7737_v49 = vpop.f32.mrf.mxu0 }
 0x48e   : > { %v7581_v14 = vpop.f32.mrf.mxu1 }
 0x48f   : > { %v7582_v52 = vadd.f32 %v7581_v14, %v7568_v0 }
 0x491   : > { %v7754_v50 = vmax.f32 %v7582_v52, 0.0 }
 0x494   : > { %v7665_v7 = vpop.f32.mrf.mxu3 }
 0x496   : > { %v7583_v28 = vpop.f32.mrf.mxu1 }
 0x497   : > { %v7584_v47 = vadd.f32 %v7583_v28, %v7570_v34 }
 0x499   : > { %v7757_v9 = vmax.f32 %v7584_v47, 0.0 }
 0x49b   : > { %v7760_v37 = vpack.c.bf16 %v7757_v9, %v7754_v50 }
 0x49c   : > { %v7667_v54 = vpop.f32.mrf.mxu3 }
 0x49d   : > { %7967 = vmatmul.bf16.vlgmr.msra.gmra.mxu2 %v7760_v37 }
 0x49e   : > { %v7637_v51 = vpop.f32.mrf.mxu1 }
 0x49f   : > { %v7638_v30 = vadd.f32 %v7637_v51, %v7624_v58 }
 0x4a1   : > { %v7652_v2 = vadd.f32 %v7651_v6, %v7638_v30 }
 0x4a3   : > { %v7666_v63 = vadd.f32 %v7665_v7, %v7652_v2 }
 0x4a4   : > { %v7721_v46 = vpop.f32.mrf.mxu3 }
 0x4a5   : > { %v7755_v61 = vmax.f32 %v7666_v63, 0.0 }
 0x4a6   : > { %v7639_v39 = vpop.f32.mrf.mxu1 }
 0x4a7   : > { %v7640_v32 = vadd.f32 %v7639_v39, %v7626_v10 }
 0x4a9   : > { %v7654_v20 = vadd.f32 %v7653_v35, %v7640_v32 }
 0x4ab   : > { %v7668_v62 = vadd.f32 %v7667_v54, %v7654_v20 }
 0x4ac   : > { %v7723_v23 = vpop.f32.mrf.mxu3 }
 0x4ad   : > { %v7758_v16 = vmax.f32 %v7668_v62, 0.0 }
 0x4ae   : > { %v7693_v56 = vpop.f32.mrf.mxu1 }
 0x4af   : > { %v7761_v41 = vpack.c.bf16 %v7758_v16, %v7755_v61  ;;  %v7694_v18 = vadd.f32 %v7693_v56, %v7680_v22 }
 0x4b1   : > { %7981 = vmatmul.bf16.vlgmr.msra.gmra.mxu3 %v7761_v41  ;;  %v7708_v12 = vadd.f32 %v7707_v1, %v7694_v18 }
 0x4b3   : > { %v7722_v31 = vadd.f32 %v7721_v46, %v7708_v12 }
 0x4b5   : > { %v7736_v25 = vadd.f32 %v7735_v8, %v7722_v31 }
 0x4b6   : > { %v7695_v55 = vpop.f32.mrf.mxu1 }
 0x4b7   : > { %v7696_v15 = vadd.f32 %v7695_v55, %v7682_v33 }
 0x4b9   : > { %v7710_v13 = vadd.f32 %v7709_v27, %v7696_v15 }
 0x4bb   : > { %v7724_v48 = vadd.f32 %v7723_v23, %v7710_v13 }
 0x4bd   : > { %v7738_v0 = vadd.f32 %v7737_v49, %v7724_v48 }
 0x4ce   : > { %v7749_v14 = vpop.f32.mrf.mxu1 }
 0x4cf   : > { %v7750_v59 = vadd.f32 %v7749_v14, %v7736_v25 }
 0x4d1   : > { %v7756_v29 = vmax.f32 %v7750_v59, 0.0 }
 0x4d6   : > { %v7751_v34 = vpop.f32.mrf.mxu1 }
 0x4d7   : > { %v7752_v52 = vadd.f32 %v7751_v34, %v7738_v0 }
 0x4d9   : > { %v7759_v28 = vmax.f32 %v7752_v52, 0.0 }
 0x4db   : > { %v7762_v24 = vpack.c.bf16 %v7759_v28, %v7756_v29 }
 0x4dd   : > { %7995 = vmatmul.bf16.vlgmr.msrb.gmra.mxu0 %v7762_v24 }
 0x520   : > { %v7968_v47 = vpop.f32.mrf.mxu2 }
 0x521   : > { %v7969_v50 = vadd.f32 %v13023_v53, %v7968_v47 }
 0x528   : > { %v7970_v37 = vpop.f32.mrf.mxu2 }
 0x529   : > { %v7971_v6 = vadd.f32 %v13023_v53, %v7970_v37 }
 0x534   : > { %v7982_v45 = vpop.f32.mrf.mxu3 }
 0x535   : > { %v7983_v9 = vadd.f32 %v7982_v45, %v7969_v50 }
 0x53c   : > { %v7984_v19 = vpop.f32.mrf.mxu3 }
 0x53d   : > { %v7985_v51 = vadd.f32 %v7984_v19, %v7971_v6 }
 0x55a   : > { %v7996_v3 = vpop.f32.mrf.mxu0 }
 0x55b   : > { %v7997_v60 = vadd.f32 %v7996_v3, %v7983_v9 }
 0x55d   : > { %v8001_v11 = vmax.f32 %v7997_v60, 0.0 }
 0x55f   : > { %8003 = vst [vmem:[%s477_s19] sm:$0xff] %v8001_v11 }
 0x562   : > { %v7998_v58 = vpop.f32.mrf.mxu0 }
 0x563   : > { %v7999_v40 = vadd.f32 %v7998_v58, %v7985_v51 }
 0x565   : > { %v8002_v7 = vmax.f32 %v7999_v40, 0.0 }
 0x567   : > { %8004 = vst [vmem:[%s477_s19 + $0x8] sm:$0xff] %v8002_v7 }
 0x568   : > { %13324 = shalt.err (!%p13321_p8)
}
 0x569   : > { %s13399_s27 = smov 128   ;;  %s13400_s23 = smov 8  }
 0x56a   : > { %12918 = dma.vmem_to_hbm [thread:$0]  (%p13557_p2), %s8019_s22, 256, %s8021_s25, %s8006_s16, %s13399_s27, %s13399_s27, %s13400_s23  }
 0x56b PF: > { %p12970_p9 = scmp.ge.s32.totalorder %s13379_s12, 2  ;;  %s8035_s28 = sand.u32 1, %s13367_s30  }
 0x56c   : > { %s8036_s29 = scalar_lea.sflag [#allocation4], %s8035_s28 }
 0x56d   : > { %p12950_p10 = pnand %p12970_p9, %p13561_p4 }
 0x56f   : > { %p12951_p12 = pneg %p12950_p10 }
 0x571   : > { %13362 = dma.done.wait (%p12951_p12), %s8036_s29, 256  }
 0x572   : > { %13364 = vsyncadd (%p12951_p12), %s8036_s29, 4294967040  ;;  %p26_p13 = scmp.ge.s32.totalorder %s13531_s13, 5   ;;  %s14214_s30 = smov %s13371_s10 }
 0x573   : > { %s14215_s10 = smov %s13375_s11  ;;  %s14216_s11 = smov %s13542_s18 }
 0x574   : > { %s14217_s12 = smov %s13531_s13  ;;  %28 = sbr.rel (!%p26_p13) target bundleno = 14 (0xe), region = 133 }
 0x579   :  { %8042 = vsyncpa [#allocation3], 1 }
 0x57a   :  { %8044 = vsyncpa [#allocation3 + $0x1], 1 }
 0x57b   :  { %8045 = vsyncpa [#allocation6], 1 }
 0x57c   :  { %8046 = vsyncpa [#allocation9], 1 }
 0x57d   :  { %8047 = vsyncpa [#allocation12], 1 }
 0x57e   :  { %8048 = vsyncpa [#allocation15], 1 }
 0x57f   :  { %8049 = vsyncpa [#allocation4], 1 }
 0x580   :  { %8051 = vsyncpa [#allocation4 + $0x1], 1 }

</bundles_post_ra>
